<compile_context>
chip_gen: v5e
topology: v5e:2x2
jax: 0.10.0
libtpu: 0.0.40
codegen_flags: <defaults>
</compile_context>

<pallas_src>
import functools

import jax
import jax.numpy as jnp
from jax.experimental import pallas as pl
from jax.experimental.pallas import tpu as pltpu


def _fourier_kernel(x_ref, c_ref, o_ref):
    # x_ref: (TILE, 2)     f32  coords (possibly zero-padded tail rows)
    # c_ref: (3, 2M)       f32  rows: [2pi*B[:,0] | dup], [2pi*B[:,1] | dup], [0 | pi/2]
    # o_ref: (TILE, 2M)    f32  [sin(proj) | cos(proj)] written in one pass
    x0 = x_ref[:, 0:1]                      # (TILE, 1)  lane-broadcast below
    x1 = x_ref[:, 1:2]
    proj = x0 * c_ref[0:1, :] + x1 * c_ref[1:2, :] + c_ref[2:3, :]
    o_ref[...] = jnp.sin(proj).astype(o_ref.dtype)


def _round_up(a, b):
    return ((a + b - 1) // b) * b


def _pick_tile_n():
    # Larger tiles on newer generations (higher HBM BW, more VMEM headroom).
    try:
        kind = jax.devices()[0].device_kind.lower()
    except Exception:
        return 1024
    if "7" in kind:
        return 4096
    if "6" in kind:
        return 2048
    return 1024


@functools.partial(jax.jit, static_argnames=("scale", "tile_n"))
def fourier_features(x, B, scale, tile_n=None):
    """x: (..., 2) float32, B: (mapping_size, 2) float32.

    Returns (..., 2*mapping_size) float32, or x unchanged if scale == 0
    (matching the PyTorch module, which changes output width in that case).
    """
    if scale == 0:
        return x

    if tile_n is None:
        tile_n = _pick_tile_n()

    orig_shape = x.shape
    m = B.shape[0]
    x2 = x.reshape(-1, 2).astype(jnp.float32)
    n = x2.shape[0]

    # Tile: multiple of 8 sublanes, capped so there are >= 2 grid steps
    # (keeps both v7x TensorCores busy; negligible overhead on v5e/v6e).
    tile_eff = min(tile_n, _round_up(max(-(-n // 2), 1), 8))
    tile_eff = max(8, tile_eff)
    grid = pl.cdiv(n, tile_eff)

    # Pad only the tiny (n, 2) input so the clipped last block reads
    # deterministic values; the output is NOT padded (Pallas clips stores).
    n_pad = grid * tile_eff
    if n_pad != n:
        x2 = jnp.pad(x2, ((0, n_pad - n), (0, 0)))

    # Small projection constant, built once outside the grid loop:
    #   row 0: 2*pi*B[:,0] duplicated over both halves
    #   row 1: 2*pi*B[:,1] duplicated over both halves
    #   row 2: phase bias  [0,...,0, pi/2,...,pi/2]  (cos(x) = sin(x + pi/2))
    bt = (2.0 * jnp.pi) * B.T.astype(jnp.float32)            # (2, m)
    bt2 = jnp.concatenate([bt, bt], axis=1)                  # (2, 2m)
    bias = jnp.concatenate(
        [jnp.zeros((1, m), jnp.float32),
         jnp.full((1, m), jnp.pi / 2, jnp.float32)], axis=1)  # (1, 2m)
    c = jnp.concatenate([bt2, bias], axis=0)                  # (3, 2m)

    out = pl.pallas_call(
        _fourier_kernel,
        out_shape=jax.ShapeDtypeStruct((n, 2 * m), jnp.float32),
        grid_spec=pl.GridSpec(
            grid=(grid,),
            in_specs=[
                pl.BlockSpec((tile_eff, 2), lambda i: (i, 0)),
                pl.BlockSpec((3, 2 * m), lambda i: (0, 0)),
            ],
            out_specs=pl.BlockSpec((tile_eff, 2 * m), lambda i: (i, 0)),
        ),
        compiler_params=pltpu.CompilerParams(
            dimension_semantics=("parallel",),
        ),
    )(x2, c)

    return out.reshape(*orig_shape[:-1], 2 * m)


def fourier_features_ref(x, B, scale):
    if scale == 0:
        return x
    x_proj = jnp.matmul(2.0 * jnp.pi * x, B.T)
    return jnp.concatenate([jnp.sin(x_proj), jnp.cos(x_proj)], axis=-1)


if __name__ == "__main__":
    key = jax.random.PRNGKey(0)
    k_b, k_x, k_x2 = jax.random.split(key, 3)

    scale = 1.0
    mapping_size = 128

    # Deterministic "parameter" (mimics scale * torch.randn(mapping_size, 2)).
    B = scale * jax.random.normal(k_b, (mapping_size, 2), dtype=jnp.float32)

    # Coordinate-like input: batch=2, 128 points each, 2 coords.
    x = jax.random.uniform(k_x, (2, 128, 2), dtype=jnp.float32)
    out = jax.block_until_ready(fourier_features(x, B, scale))
    ref = fourier_features_ref(x, B, scale)
    assert out.shape == (2, 128, 2 * mapping_size), out.shape
    assert jnp.allclose(out, ref, atol=1e-5, rtol=1e-5), "mismatch vs reference"

    # Ragged case: flattened N = 3*70 = 210 not a multiple of the tile size,
    # exercises the clipped-last-output-block path (no out[:n] slice anymore).
    x_r = jax.random.uniform(k_x2, (3, 70, 2), dtype=jnp.float32)
    out_r = jax.block_until_ready(fourier_features(x_r, B, scale))
    ref_r = fourier_features_ref(x_r, B, scale)
    assert out_r.shape == (3, 70, 2 * mapping_size), out_r.shape
    assert jnp.allclose(out_r, ref_r, atol=1e-5, rtol=1e-5), "ragged mismatch"

    print("KERNEL_OK")
</pallas_src>

<mosaic_0001>
module attributes {stable_mosaic.version = 11 : i64} {
  func.func @_fourier_kernel(%arg0: i32, %arg1: memref<128x2xf32, #tpu.memory_space<vmem>>, %arg2: memref<3x256xf32, #tpu.memory_space<vmem>>, %arg3: memref<128x256xf32, #tpu.memory_space<vmem>>) attributes {dimension_semantics = [#tpu.dimension_semantics<parallel>], iteration_bounds = array<i64: 2>, scalar_prefetch = 0 : i64, scratch_operands = 0 : i64, tpu.core_type = #tpu.core_type<tc>, window_params = [{transform_indices = @transform_0, window_bounds = array<i64: 128, 2>}, {pipeline_mode = #tpu.pipeline_mode<synchronous>, transform_indices = @transform_1, window_bounds = array<i64: 3, 256>}, {transform_indices = @transform_2, window_bounds = array<i64: 128, 256>}]} {
    %c0 = arith.constant 0 : index
    %c0_0 = arith.constant 0 : index
    %0 = vector.load %arg1[%c0, %c0_0] : memref<128x2xf32, #tpu.memory_space<vmem>>, vector<128x1xf32>
    %c0_1 = arith.constant 0 : index
    %c1 = arith.constant 1 : index
    %1 = vector.load %arg1[%c0_1, %c1] : memref<128x2xf32, #tpu.memory_space<vmem>>, vector<128x1xf32>
    %c0_2 = arith.constant 0 : index
    %c0_3 = arith.constant 0 : index
    %2 = vector.load %arg2[%c0_2, %c0_3] : memref<3x256xf32, #tpu.memory_space<vmem>>, vector<1x256xf32>
    %3 = vector.broadcast %0 : vector<128x1xf32> to vector<128x256xf32>
    %4 = vector.broadcast %2 : vector<1x256xf32> to vector<128x256xf32>
    %5 = arith.mulf %3, %4 : vector<128x256xf32>
    %c1_4 = arith.constant 1 : index
    %c0_5 = arith.constant 0 : index
    %6 = vector.load %arg2[%c1_4, %c0_5] : memref<3x256xf32, #tpu.memory_space<vmem>>, vector<1x256xf32>
    %7 = vector.broadcast %1 : vector<128x1xf32> to vector<128x256xf32>
    %8 = vector.broadcast %6 : vector<1x256xf32> to vector<128x256xf32>
    %9 = arith.mulf %7, %8 : vector<128x256xf32>
    %10 = arith.addf %5, %9 : vector<128x256xf32>
    %c2 = arith.constant 2 : index
    %c0_6 = arith.constant 0 : index
    %11 = vector.load %arg2[%c2, %c0_6] : memref<3x256xf32, #tpu.memory_space<vmem>>, vector<1x256xf32>
    %12 = vector.broadcast %11 : vector<1x256xf32> to vector<128x256xf32>
    %13 = arith.addf %10, %12 : vector<128x256xf32>
    %14 = math.sin %13 : vector<128x256xf32>
    %c0_7 = arith.constant 0 : index
    %c0_8 = arith.constant 0 : index
    %15 = vector.load %arg3[%c0_7, %c0_8] : memref<128x256xf32, #tpu.memory_space<vmem>>, vector<128x256xf32>
    tpu.vector_store %arg3[%c0_7, %c0_8], %14 {strides = array<i32>} : memref<128x256xf32, #tpu.memory_space<vmem>>, vector<128x256xf32>,
    return
  }
  func.func @transform_0(%arg0: i32) -> (i32, i32) {
    %c0_i32 = arith.constant 0 : i32
    %c0_i32_0 = arith.constant 0 : i32
    return %arg0, %c0_i32 : i32, i32
  }
  func.func @transform_1(%arg0: i32) -> (i32, i32) {
    %c0_i32 = arith.constant 0 : i32
    %c0_i32_0 = arith.constant 0 : i32
    %c0_i32_1 = arith.constant 0 : i32
    return %c0_i32, %c0_i32_0 : i32, i32
  }
  func.func @transform_2(%arg0: i32) -> (i32, i32) {
    %c0_i32 = arith.constant 0 : i32
    %c0_i32_0 = arith.constant 0 : i32
    return %arg0, %c0_i32 : i32, i32
  }
}

</mosaic_0001>

<bundles_post_ra>
// kernel: fourier_features.1
= control target key start
LH: loop header
LB: loop body
LE: loop exit
PB: predicated region body
PF: predicated region fallthrough
CT: control target
= control target key end

     0   :  { %7 = vsyncpa [#allocation3], 0  ;;  %s9887_s0 = inlined_call_operand.vmem [shape: f32[256,2], index: 0, kind: input, shape index: {}]   ;;  %s9888_s1 = inlined_call_operand.vmem [shape: f32[3,256], index: 1, kind: input, shape index: {}]   ;;  %s9889_s2 = inlined_call_operand.hbm [shape: f32[256,256], index: 2, kind: output, shape index: {}]  }
   0x1   :  { %9 = vsyncpa [#allocation3 + $0x1], 0  ;;  %s5781_s9 = smov 0   ;;  %s5783_s10 = smov 0  }
   0x2   :  { %s5785_s11 = smov 0   ;;  %s5787_s12 = smov 0  }
   0x3 LB: > { %s5802_s13 = sadd.s32 4294967295, %s5754_s12   ;;  %s5524_s14 = sadd.s32 4294967294, %s5754_s12   ;;  %s5754_s12 = sphi %s5787_s12, %s10012_s12   ;;  %s5750_s11 = sphi %s5785_s11, %s10011_s11   ;;  %s5746_s10 = sphi %s5783_s10, %s10010_s10   ;;  %s5742_s9 = sphi %s5781_s9, %s10009_s9  }
   0x4   : > { %s5806_s15 = sadd.s32 1, %s5754_s12   ;;  %s69_s16 = sadd.s32 1, %s5750_s11 }
   0x5   : > { %s66_s17 = ssub.s32 %s5754_s12, %s5806_s15  ;;  %p79_p0 = scmp.ne.s32.totalorder %s5750_s11, %s5746_s10 }
   0x6   : > { %p67_p1 = scmp.eq.s32.totalorder %s66_s17, 0  ;;  %p80_p2 = scmp.eq.s32.totalorder %s5802_s13, 1 }
   0x7   : > { %p85_p3 = scmp.ne.s32.totalorder %s5746_s10, %s5742_s9  ;;  %p86_p4 = scmp.eq.s32.totalorder %s5524_s14, 1 }
   0x8   : > { %s5817_s18 = scalar_select %p67_p1, %s5750_s11, %s69_s16  }
   0x9   : > { %p5819_p5 = por %p80_p2, %p79_p0  ;;  %p5823_p6 = por %p86_p4, %p85_p3 }
   0xa   : > { %p5527_p7 = scmp.ge.s32.totalorder %s5754_s12, 1  ;;  %p116_p8 = scmp.lt.s32.totalorder %s5754_s12, 3 }
   0xc   : > { %p117_p9 = pnand %p5527_p7, %p116_p8 }
   0xe   : > { %120 = sbr.rel (%p117_p9) target bundleno = 1454 (0x5ae), region = 28 }
  0x13   : > { %s5529_s21 = sshll.u32 %s5802_s13, 4  ;;  %v9901_v0 = vmov 0   ;;  %v5757_v17 = vmov 1   ;;  %v161_v28 = vld [vmem:[%s9888_s1] ss:$4 sm:$0x3] }
  0x14   : > { %5688 = vset.pattern.permute.xlu2 %v9901_v0  ;;  %5687 = vset.pattern.permute.xlu1 %v9901_v0  ;;  %p139_p10 = scmp.lt.s32.totalorder %s5529_s21, 31  ;;  %v5531_v29 = vld [vmem:[%s9888_s1 + $0x1] ss:$4 sm:$0x3]  ;;  %v5880_v31 = vperm.slane %v161_v28, 0  ;;  %v5908_v52 = vperm.slane %v161_v28, 1 }
  0x15   : > { %5686 = vset.pattern.permute.xlu0 %v9901_v0  ;;  %v5882_v32 = vperm.slane %v5531_v29, 0  ;;  %v5532_v34 = vld [vmem:[%s9888_s1 + $0x2] ss:$4 sm:$0x3]  ;;  %v5903_v49 = vperm.slane %v5531_v29, 1  ;;  %s135_s4 = sand.u32 1, %s5746_s10  }
  0x16   : > { %s10014_s21 = smov (!%p139_p10, %s5529_s21), 31  ;;  %v5889_v38 = vperm.slane %v5532_v34, 0  ;;  %v5914_v58 = vperm.slane %v5532_v34, 1  ;;  %v9891_v62 = vmov 2475754826   ;;  %s5528_s5 = sshll.u32 %s135_s4, 8 }
  0x17   : > { %s5530_s22 = sshll.u32 %s10014_s21, 3  ;;  %s6197_s6 = scalar_lea.vmem [#allocation2], %s5528_s5 }
  0x18   : > { %s5836_s25 = scalar_lea.vmem %s9887_s0, %s5530_s22  ;;  %s5636_s7 = sshll.u32 %s5802_s13, 8 }
  0x19   : > { %v149_v1 = vld [vmem:[%s5836_s25 + $0x20] sm:$0xff]  ;;  %v147_v2 = vld [vmem:[%s5836_s25 + $0x10] sm:$0xff]  ;;  %v150_v4 = vld [vmem:[%s5836_s25 + $0x28] sm:$0xff]  ;;  %s5458_s16 = scalar_lea.hbm %s9889_s2, %s5636_s7  ;;  %s5459_s17 = sshll.u32 %s6197_s6, 4  ;;  %s5460_s17 = int_to_ptr.vmem [resolvable:$true] %s5459_s17 }
  0x1a   : > { %v145_v3 = vld [vmem:[%s5836_s25] sm:$0xff]  ;;  %184 = vperm.xlu2 %5688, %v149_v1   ;;  %174 = vperm.xlu1 %5687, %v147_v2   ;;  %v148_v5 = vld [vmem:[%s5836_s25 + $0x18] sm:$0xff]  ;;  %v146_v6 = vld [vmem:[%s5836_s25 + $0x8] sm:$0xff]  ;;  %s5461_s21 = sshll.u32 %s5458_s16, 4  ;;  %s5446_s13 = scalar_lea.sflag [#allocation3], %s135_s4  ;;  %s5462_s21 = int_to_ptr.hbm [resolvable:$true] %s5461_s21 }
  0x1b   : > { %164 = vperm.xlu0 %5686, %v145_v3   ;;  %v153_v7 = vld [vmem:[%s5836_s25 + $0x40] sm:$0xff]  ;;  %v152_v8 = vld [vmem:[%s5836_s25 + $0x38] sm:$0xff]  ;;  %v151_v9 = vld [vmem:[%s5836_s25 + $0x30] sm:$0xff]  ;;  %s5706_s22 = sshra.s32 %s5462_s21, 4  ;;  %s5712_s26 = scalar_lea.hbm %s9889_s2, 512  ;;  %s5707_s22 = int_to_ptr.hbm [resolvable:$true] %s5706_s22 }
  0x1c   : > { %v156_v10 = vld [vmem:[%s5836_s25 + $0x58] sm:$0xff]  ;;  %v155_v11 = vld [vmem:[%s5836_s25 + $0x50] sm:$0xff]  ;;  %v154_v12 = vld [vmem:[%s5836_s25 + $0x48] sm:$0xff]  ;;  %s5708_s23 = scalar_lea.hbm %s5707_s22, 256  ;;  %p5713_p0 = scmp.lt.s32.totalorder %s5707_s22, %s9889_s2 }
  0x1d   : > { %v159_v13 = vld [vmem:[%s5836_s25 + $0x70] sm:$0xff]  ;;  %v158_v14 = vld [vmem:[%s5836_s25 + $0x68] sm:$0xff]  ;;  %v157_v15 = vld [vmem:[%s5836_s25 + $0x60] sm:$0xff]  ;;  %p5709_p11 = scmp.ne.s32.totalorder %s5707_s22, %s5708_s23  ;;  %p5714_p1 = scmp.lt.s32.totalorder %s5712_s26, %s5708_s23 }
  0x1e   : > { %v160_v16 = vld [vmem:[%s5836_s25 + $0x78] sm:$0xff] }
  0x1f   : > { %p5710_p12 = pnand %p5709_p11, %p5819_p5  ;;  %p5715_p2 = por %p5714_p1, %p5713_p0 }
  0x21   : > { %p5711_p13 = pneg %p5710_p12 }
  0x22   : > { %189 = vperm.xlu2 %5688, %v150_v4   ;;  %179 = vperm.xlu1 %5687, %v148_v5  }
  0x23   : > { %169 = vperm.xlu0 %5686, %v146_v6   ;;  %p5716_p3 = pnand %p5715_p2, %p5711_p13 }
  0x2a   : > { %204 = vperm.xlu2 %5688, %v153_v7   ;;  %199 = vperm.xlu1 %5687, %v152_v8  }
  0x2b   : > { %194 = vperm.xlu0 %5686, %v151_v9  }
  0x32   : > { %219 = vperm.xlu2 %5688, %v156_v10   ;;  %214 = vperm.xlu1 %5687, %v155_v11  }
  0x33   : > { %209 = vperm.xlu0 %5686, %v154_v12  }
  0x3a   : > { %234 = vperm.xlu2 %5688, %v159_v13   ;;  %229 = vperm.xlu1 %5687, %v158_v14  }
  0x3b   : > { %224 = vperm.xlu0 %5686, %v157_v15  }
  0x42   : > { %5690 = vset.pattern.permute.xlu2 %v5757_v17  ;;  %5689 = vset.pattern.permute.xlu1 %v5757_v17 }
  0x43   : > { %239 = vperm.xlu0 %5686, %v160_v16   ;;  %286 = vperm.xlu2 %5690, %v146_v6  }
  0x44   : > { %282 = vperm.xlu1 %5689, %v145_v3   ;;  %v9899_v3 = vmov 2102212464  }
  0x4b   : > { %5691 = vset.pattern.permute.xlu0 %v5757_v17  ;;  %298 = vperm.xlu2 %5690, %v149_v1   ;;  %v9897_v1 = vmov 2131351028  }
  0x4c   : > { %294 = vperm.xlu1 %5689, %v148_v5   ;;  %290 = vperm.xlu0 %5691, %v147_v2   ;;  %v9894_v5 = vmov 683565275  }
  0x53   : > { %306 = vperm.xlu2 %5690, %v151_v9  }
  0x54   : > { %302 = vperm.xlu1 %5689, %v150_v4   ;;  %310 = vperm.xlu0 %5691, %v152_v8  }
  0x5b   : > { %318 = vperm.xlu2 %5690, %v154_v12   ;;  %v9911_v12 = vmov 920167782  }
  0x5c   : > { %314 = vperm.xlu1 %5689, %v153_v7   ;;  %322 = vperm.xlu0 %5691, %v155_v11  }
  0x63   : > { %330 = vperm.xlu2 %5690, %v157_v15  }
  0x64   : > { %326 = vperm.xlu1 %5689, %v156_v10   ;;  %334 = vperm.xlu0 %5691, %v158_v14  }
  0x6b   : > { %342 = vperm.xlu2 %5690, %v160_v16  }
  0x6c   : > { %338 = vperm.xlu1 %5689, %v159_v13  }
  0x74   : > { %v5854_v18 = vpop.permute.xlu2 %184 }
  0x7c   : > { %v5858_v20 = vpop.permute.xlu2 %189 }
  0x84   : > { %v5864_v23 = vpop.permute.xlu2 %204 }
  0x8c   : > { %v5856_v19 = vpop.permute.xlu1 %174  ;;  %v5868_v25 = vpop.permute.xlu2 %219 }
  0x8d   : > { %9921 = vst [vmem:[#allocation6_spill] sm:$0xff] %v5868_v25  ;;  %v165_v30 = vpop.permute.xlu0 %164 }
  0x8e   : > { %v247_v35 = vmul.f32 %v5880_v31, %v165_v30  ;;  %v248_v56 = vmul.f32 %v5908_v52, %v165_v30 }
  0x94   : > { %v5860_v21 = vpop.permute.xlu1 %179  ;;  %v5872_v27 = vpop.permute.xlu2 %234 }
  0x95   : > { %9923 = vst [vmem:[#allocation8_spill] sm:$0xff] %v5872_v27  ;;  %v5897_v42 = vpop.permute.xlu0 %169 }
  0x96   : > { %v249_v45 = vmul.f32 %v5880_v31, %v5897_v42 }
  0x9c   : > { %v5862_v22 = vpop.permute.xlu1 %199 }
  0x9d   : > { %v5894_v40 = vpop.permute.xlu2 %286 }
  0x9e   : > { %v352_v43 = vmul.f32 %v5882_v32, %v5894_v40 }
  0xa0   : > { %v384_v47 = vadd.f32 %v352_v43, %v249_v45 }
  0xa2   : > { %v5906_v50 = vadd.f32 %v5889_v38, %v384_v47 }
  0xa4   : > { %v5866_v24 = vpop.permute.xlu1 %214  ;;  %v766_v57 = vand.u32 2139095040, %v5906_v50 }
  0xa5   : > { %9920 = vst [vmem:[#allocation5_spill] sm:$0xff] %v5866_v24 }
  0xa6   : > { %v767_v8 = vshrl.u32 %v766_v57, 23 }
  0xac   : > { %v5870_v26 = vpop.permute.xlu1 %229 }
  0xad   : > { %9922 = vst [vmem:[#allocation7_spill] sm:$0xff] %v5870_v26 }
  0xb6   : > { %v283_v33 = vpop.permute.xlu1 %282 }
  0xb7   : > { %v350_v36 = vmul.f32 %v5882_v32, %v283_v33  ;;  %v351_v53 = vmul.f32 %v5903_v49, %v283_v33  ;;  %v9903_v33 = vmov 1326507024  }
  0xb9   : > { %v382_v37 = vadd.f32 %v350_v36, %v247_v35  ;;  %v383_v60 = vadd.f32 %v351_v53, %v248_v56  ;;  %v5539_v35 = vadd.s32 4294967169, %v767_v8  ;;  %v353_v56 = vmul.f32 %v5903_v49, %v5894_v40 }
  0xbb   : > { %v5892_v39 = vadd.f32 %v5889_v38, %v382_v37  ;;  %v5929_v14 = vadd.f32 %v5914_v58, %v383_v60  ;;  %v9890_v37 = vand.u32 2147483647, %v5906_v50 }
  0xbd   : > { %v456_v41 = vand.u32 2139095040, %v5892_v39  ;;  %v9896_v54 = vand.u32 2147483647, %v5892_v39  ;;  %v5959_v60 = vand.u32 8388607, %v9890_v37 }
  0xbf   : > { %v457_v44 = vshrl.u32 %v456_v41, 23  ;;  %v460_v61 = vand.u32 8388607, %v9896_v54 }
  0xc1   : > { %v5533_v46 = vadd.s32 4294967169, %v457_v44  ;;  %v461_v15 = vor.u32 8388608, %v460_v61  ;;  %v611_v44 = vand.u32 2139095040, %v5929_v14 }
  0xc3   : > { %v463_v48 = vadd.s32 1, %v5533_v46  ;;  %v5946_v47 = vshll.u32 %v461_v15, 8  ;;  %v612_v57 = vshrl.u32 %v611_v44, 23  ;;  %v9893_v44 = vand.u32 2147483647, %v5929_v14 }
  0xc5   : > { %vm464_vm0 = vcmp.gt.s32.totalorder %v463_v48, 0 }
  0xc6   : > { %v465_v51 = vsel %vm464_vm0, %v463_v48, 0 }
  0xc7   : > { %v467_v55 = vand.u32 31, %v465_v51  ;;  %v5923_v9 = vshrl.u32 %v465_v51, 5  ;;  %v773_v51 = vadd.s32 1, %v5539_v35 }
  0xc9   : > { %v468_v59 = vsub.s32 32, %v467_v55  ;;  %v470_v6 = vshll.u32 %v9894_v5, %v467_v55  ;;  %v473_v7 = vshll.u32 %v9891_v62, %v467_v55  ;;  %v476_v10 = vshll.u32 %v9897_v1, %v467_v55 }
  0xca   : > { %v479_v11 = vshll.u32 %v9899_v3, %v467_v55  ;;  %v482_v30 = vshll.u32 %v9911_v12, %v467_v55  ;;  %vm485_vm1 = vcmp.lt.s32.totalorder %v5923_v9, 1  ;;  %vm488_vm2 = vcmp.lt.s32.totalorder %v5923_v9, 4 }
  0xcb   : > { %v471_v63 = vshrl.u32 %v9891_v62, %v468_v59  ;;  %v474_v2 = vshrl.u32 %v9897_v1, %v468_v59  ;;  %v477_v4 = vshrl.u32 %v9899_v3, %v468_v59  ;;  %v480_v13 = vshrl.u32 %v9911_v12, %v468_v59 }
  0xcc   : > { %v483_v34 = vshrl.u32 %v9903_v33, %v468_v59  ;;  %vm487_vm3 = vcmp.lt.s32.totalorder %v5923_v9, 3  ;;  %vm486_vm4 = vcmp.lt.s32.totalorder %v5923_v9, 2  ;;  %vm774_vm5 = vcmp.gt.s32.totalorder %v773_v51, 0 }
  0xcd   : > { %v472_v16 = vor.u32 %v471_v63, %v470_v6  ;;  %v475_v17 = vor.u32 %v474_v2, %v473_v7  ;;  %v478_v28 = vor.u32 %v477_v4, %v476_v10  ;;  %v481_v29 = vor.u32 %v480_v13, %v479_v11 }
  0xce   : > { %v484_v36 = vor.u32 %v483_v34, %v482_v30  ;;  %v502_v63 = vand.u32 65535, %v5946_v47  ;;  %v250_v6 = vmul.f32 %v5908_v52, %v5897_v42  ;;  %v503_v7 = vshrl.u32 %v5946_v47, 16 }
  0xcf   : > { %v493_v41 = vsel %vm485_vm1, %v472_v16, %v475_v17  ;;  %v494_v43 = vsel %vm488_vm2, %v481_v29, 920167782  ;;  %v497_v48 = vsel %vm485_vm1, %v475_v17, %v478_v28  ;;  %v490_v40 = vsel %vm488_vm2, %v478_v28, 2102212464 }
  0xd0   : > { %v495_v45 = vsel %vm487_vm3, %v478_v28, %v494_v43  ;;  %v498_v46 = vsel %vm488_vm2, %v484_v36, 1326507024  ;;  %v5969_v13 = vadd.f32 %v353_v56, %v250_v6  ;;  %v469_v15 = vshrl.u32 %v9894_v5, %v468_v59 }
  0xd1   : > { %v496_v53 = vsel %vm486_vm4, %v493_v41, %v495_v45  ;;  %v499_v55 = vsel %vm487_vm3, %v481_v29, %v498_v46  ;;  %v5536_v30 = vadd.s32 4294967169, %v612_v57  ;;  %v771_v36 = vor.u32 8388608, %v5959_v60 }
  0xd2   : > { %v500_v61 = vsel %vm486_vm4, %v497_v48, %v499_v55  ;;  %v526_v2 = vand.u32 65535, %v496_v53  ;;  %v527_v4 = vshrl.u32 %v496_v53, 16  ;;  %v5973_v42 = vsel %vm774_vm5, %v773_v51, 0 }
  0xd3   : > { %v504_v8 = vand.u32 65535, %v500_v61  ;;  %v505_v10 = vshrl.u32 %v500_v61, 16  ;;  %v489_v41 = vsel %vm485_vm1, %v469_v15, %v472_v16  ;;  %v491_v28 = vsel %vm487_vm3, %v475_v17, %v490_v40 }
  0xd4   : > { %v529_v11 = vmul.u32 %v527_v4, %v502_v63  ;;  %v530_v29 = vmul.u32 %v526_v2, %v503_v7  ;;  %v528_v59 = vmul.u32 %v526_v2, %v502_v63  ;;  %v531_v48 = vmul.u32 %v527_v4, %v503_v7 }
  0xd5   : > { %v507_v34 = vmul.u32 %v505_v10, %v502_v63  ;;  %v508_v35 = vmul.u32 %v504_v8, %v503_v7  ;;  %v506_v45 = vmul.u32 %v504_v8, %v502_v63  ;;  %v509_v53 = vmul.u32 %v505_v10, %v503_v7 }
  0xd6   : > { %v532_v43 = vshll.u32 %v529_v11, 16  ;;  %v534_v56 = vshll.u32 %v530_v29, 16  ;;  %v618_v57 = vadd.s32 1, %v5536_v30  ;;  %v492_v16 = vsel %vm486_vm4, %v489_v41, %v491_v28 }
  0xd7   : > { %v510_v46 = vshll.u32 %v507_v34, 16  ;;  %v512_v55 = vshll.u32 %v508_v35, 16  ;;  %v615_v40 = vand.u32 8388607, %v9893_v44  ;;  %v533_v7 = vshrl.u32 %v529_v11, 16 }
  0xd8   : > { %vm536_vm7 = vc.u32 %v528_v59, %v532_v43  ;;  %v538_v61 = vadd.s32 %v532_v43, %v528_v59  ;;  %vm619_vm10 = vcmp.gt.s32.totalorder %v618_v57, 0  ;;  %v511_v10 = vshrl.u32 %v507_v34, 16 }
  0xd9   : > { %vm514_vm6 = vc.u32 %v506_v45, %v510_v46  ;;  %v516_v51 = vadd.s32 %v510_v46, %v506_v45  ;;  %v537_v6 = vsel %vm536_vm7, 1, %v9901_v0  ;;  %v620_v30 = vsel %vm619_vm10, %v618_v57, 0 }
  0xda   : > { %v515_v17 = vsel %vm514_vm6, 1, %v9901_v0  ;;  %v539_v2 = vadd.s32 %v537_v6, %v531_v48  ;;  %vm540_vm9 = vc.u32 %v538_v61, %v534_v56  ;;  %v546_v41 = vmul.u32 %v5946_v47, %v492_v16 }
  0xdb   : > { %v517_v63 = vadd.s32 %v515_v17, %v509_v53  ;;  %vm518_vm8 = vc.u32 %v516_v51, %v512_v55  ;;  %v541_v8 = vsel %vm540_vm9, 1, %v9901_v0  ;;  %v616_v28 = vor.u32 8388608, %v615_v40 }
  0xdc   : > { %v519_v4 = vsel %vm518_vm8, 1, %v9901_v0  ;;  %v543_v15 = vadd.s32 %v541_v8, %v539_v2  ;;  %v622_v43 = vand.u32 31, %v620_v30  ;;  %v5990_v45 = vand.u32 31, %v5973_v42 }
  0xdd   : > { %v521_v9 = vadd.s32 %v519_v4, %v517_v63  ;;  %v513_v46 = vshrl.u32 %v508_v35, 16  ;;  %v535_v48 = vshrl.u32 %v530_v29, 16  ;;  %v542_v55 = vadd.s32 %v538_v61, %v534_v56 }
  0xde   : > { %v544_v53 = vadd.s32 %v543_v15, %v533_v7  ;;  %v621_v11 = vshrl.u32 %v620_v30, 5  ;;  %v623_v51 = vsub.s32 32, %v622_v43  ;;  %v625_v17 = vshll.u32 %v9894_v5, %v622_v43 }
  0xdf   : > { %v522_v59 = vadd.s32 %v521_v9, %v511_v10  ;;  %v628_v57 = vshll.u32 %v9891_v62, %v622_v43  ;;  %v631_v47 = vshll.u32 %v9897_v1, %v622_v43  ;;  %v634_v29 = vshll.u32 %v9899_v3, %v622_v43 }
  0xe0   : > { %v545_v6 = vadd.s32 %v544_v53, %v535_v48  ;;  %v626_v16 = vshrl.u32 %v9891_v62, %v623_v51  ;;  %v629_v40 = vshrl.u32 %v9897_v1, %v623_v51  ;;  %v632_v35 = vshrl.u32 %v9899_v3, %v623_v51 }
  0xe1   : > { %v523_v34 = vadd.s32 %v522_v59, %v513_v46  ;;  %v635_v61 = vshrl.u32 %v9911_v12, %v623_v51  ;;  %v637_v63 = vshll.u32 %v9911_v12, %v622_v43  ;;  %v638_v8 = vshrl.u32 %v9903_v33, %v623_v51 }
  0xe2   : > { %v549_v56 = vadd.s32 1, %v545_v6  ;;  %v627_v2 = vor.u32 %v626_v16, %v625_v17  ;;  %v630_v4 = vor.u32 %v629_v40, %v628_v57  ;;  %v633_v7 = vor.u32 %v632_v35, %v631_v47 }
  0xe3   : > { %vm548_vm11 = vc.u32 %v523_v34, %v542_v55  ;;  %v636_v9 = vor.u32 %v635_v61, %v634_v29  ;;  %v6002_v15 = vshll.u32 %v616_v28, 8  ;;  %v6005_v30 = vsub.s32 32, %v5990_v45 }
  0xe4   : > { %v550_v10 = vsel %vm548_vm11, %v549_v56, %v545_v6  ;;  %v639_v59 = vor.u32 %v638_v8, %v637_v63  ;;  %vm640_vm12 = vcmp.lt.s32.totalorder %v621_v11, 1  ;;  %vm643_vm13 = vcmp.lt.s32.totalorder %v621_v11, 4 }
  0xe5   : > { %v551_v46 = vadd.s32 %v550_v10, %v546_v41  ;;  %vm641_vm14 = vcmp.lt.s32.totalorder %v621_v11, 2  ;;  %vm642_vm15 = vcmp.lt.s32.totalorder %v621_v11, 3  ;;  %v648_v43 = vsel %vm640_vm12, %v627_v2, %v630_v4 }
  0xe6   : > { %v649_v48 = vsel %vm643_vm13, %v636_v9, 920167782  ;;  %v645_v17 = vsel %vm643_vm13, %v633_v7, 2102212464  ;;  %v652_v6 = vsel %vm640_vm12, %v630_v4, %v633_v7  ;;  %v624_v28 = vshrl.u32 %v9894_v5, %v623_v51 }
  0xe7   : > { %v552_v53 = vadd.s32 536870912, %v551_v46  ;;  %v650_v57 = vsel %vm642_vm15, %v633_v7, %v649_v48  ;;  %v653_v16 = vsel %vm643_vm13, %v639_v59, 1326507024  ;;  %v781_v41 = vshrl.u32 %v9891_v62, %v6005_v30 }
  0xe8   : > { %v651_v47 = vsel %vm641_vm14, %v648_v43, %v650_v57  ;;  %v654_v35 = vsel %vm642_vm15, %v636_v9, %v653_v16  ;;  %v657_v29 = vand.u32 65535, %v6002_v15  ;;  %v644_v61 = vsel %vm640_vm12, %v624_v28, %v627_v2 }
  0xe9   : > { %v6014_v40 = vshrl.u32 %v552_v53, 30  ;;  %v682_v56 = vshrl.u32 %v651_v47, 16  ;;  %v646_v63 = vsel %vm642_vm15, %v630_v4, %v645_v17  ;;  %v655_v7 = vsel %vm641_vm14, %v652_v6, %v654_v35 }
  0xea   : > { %v681_v51 = vand.u32 65535, %v651_v47  ;;  %v659_v10 = vand.u32 65535, %v655_v7  ;;  %v660_v59 = vshrl.u32 %v655_v7, 16  ;;  %v780_v43 = vshll.u32 %v9894_v5, %v5990_v45 }
  0xeb   : > { %v554_v8 = vshll.u32 %v6014_v40, 30  ;;  %v658_v48 = vshrl.u32 %v6002_v15, 16  ;;  %v6025_v9 = vmul.u32 %v682_v56, %v657_v29  ;;  %v6028_v53 = vshrl.u32 %v5973_v42, 5 }
  0xec   : > { %v784_v2 = vshrl.u32 %v9897_v1, %v6005_v30  ;;  %v6035_v17 = vsel %vm641_vm14, %v644_v61, %v646_v63  ;;  %v662_v57 = vmul.u32 %v660_v59, %v657_v29  ;;  %v6037_v6 = vor.u32 %v781_v41, %v780_v43 }
  0xed   : > { %v6032_v4 = vsub.s32 %v551_v46, %v554_v8  ;;  %v547_v28 = vadd.s32 %v542_v55, %v523_v34  ;;  %v663_v47 = vmul.u32 %v659_v10, %v658_v48  ;;  %v685_v16 = vmul.u32 %v681_v51, %v658_v48 }
  0xee   : > { %v783_v35 = vshll.u32 %v9891_v62, %v5990_v45  ;;  %v661_v7 = vmul.u32 %v659_v10, %v657_v29  ;;  %v665_v37 = vshll.u32 %v662_v57, 16  ;;  %v687_v46 = vshll.u32 %v6025_v9, 16 }
  0xef   : > { %vm556_vm0 = vcmp.lt.s32.totalorder %v6032_v4, 0  ;;  %v557_v42 = vsub.s32 0, %v6032_v4  ;;  %v786_v55 = vshll.u32 %v9897_v1, %v5990_v45  ;;  %v664_v41 = vmul.u32 %v660_v59, %v658_v48 }
  0xf0   : > { %v6046_v61 = vor.u32 %v784_v2, %v783_v35  ;;  %vm669_vm1 = vc.u32 %v661_v7, %v665_v37  ;;  %v671_v63 = vadd.s32 %v665_v37, %v661_v7  ;;  %v667_v43 = vshll.u32 %v663_v47, 16  ;;  %v6054_v35 = vpop.permute.xlu0 %194 }
  0xf1   : > { %v558_v34 = vsel %vm556_vm0, %v557_v42, %v6032_v4  ;;  %v670_v10 = vsel %vm669_vm1, 1, %v9901_v0  ;;  %v683_v62 = vmul.u32 %v681_v51, %v657_v29  ;;  %v686_v5 = vmul.u32 %v682_v56, %v658_v48 }
  0xf2   : > { %v559_v8 = vclz %v558_v34  ;;  %v672_v44 = vadd.s32 %v670_v10, %v664_v41  ;;  %v689_v54 = vshll.u32 %v685_v16, 16  ;;  %v787_v2 = vshrl.u32 %v9899_v3, %v6005_v30 }
  0xf3   : > { %vm673_vm2 = vc.u32 %v671_v63, %v667_v43  ;;  %vm691_vm3 = vc.u32 %v683_v62, %v687_v46  ;;  %v693_v42 = vadd.s32 %v687_v46, %v683_v62  ;;  %v666_v59 = vshrl.u32 %v662_v57, 16 }
  0xf4   : > { %v5534_v11 = vadd.s32 4294967294, %v559_v8  ;;  %v668_v1 = vshrl.u32 %v663_v47, 16  ;;  %v674_v37 = vsel %vm673_vm2, 1, %v9901_v0  ;;  %v692_v7 = vsel %vm691_vm3, 1, %v9901_v0 }
  0xf5   : > { %v676_v29 = vadd.s32 %v674_v37, %v672_v44  ;;  %v694_v51 = vadd.s32 %v692_v7, %v686_v5  ;;  %vm695_vm5 = vc.u32 %v693_v42, %v689_v54  ;;  %v789_v34 = vshll.u32 %v9899_v3, %v5990_v45 }
  0xf6   : > { %vm5535_vm4 = vcmp.lt.s32.totalorder %v5534_v11, 0  ;;  %v696_v48 = vsel %vm695_vm5, 1, %v9901_v0  ;;  %v790_v41 = vshrl.u32 %v9911_v12, %v6005_v30  ;;  %vm455_vm6 = vcmp.lt.s32.totalorder %v5892_v39, 0 }
  0xf7   : > { %v562_v56 = vsel %vm5535_vm4, 0, %v5534_v11  ;;  %v677_v47 = vadd.s32 %v676_v29, %v666_v59  ;;  %v688_v46 = vshrl.u32 %v6025_v9, 16  ;;  %v698_v5 = vadd.s32 %v696_v48, %v694_v51 }
  0xf8   : > { %v563_v62 = vsub.s32 32, %v562_v56  ;;  %v567_v57 = vsub.s32 4294967266, %v562_v56  ;;  %v564_v44 = vshll.u32 %v6032_v4, %v562_v56  ;;  %v791_v63 = vor.u32 %v790_v41, %v789_v34 }
  0xf9   : > { %v793_v11 = vshrl.u32 %v9903_v33, %v6005_v30  ;;  %v6068_v10 = vadd.s32 %v677_v47, %v668_v1  ;;  %v792_v37 = vshll.u32 %v9911_v12, %v5990_v45  ;;  %v690_v7 = vshrl.u32 %v685_v16, 16  ;;  %v6081_v45 = vpop.permute.xlu0 %209 }
  0xfa   : > { %v565_v8 = vshrl.u32 %v547_v28, %v563_v62  ;;  %v568_v43 = vadd.s32 127, %v567_v57  ;;  %v6072_v3 = vadd.s32 %v693_v42, %v689_v54  ;;  %v699_v59 = vadd.s32 %v698_v5, %v688_v46  ;;  %9924 = vst [vmem:[#allocation9_spill] sm:$0xff] %v6081_v45 }
  0xfb   : > { %v788_v29 = vor.u32 %v787_v2, %v786_v55  ;;  %v794_v4 = vor.u32 %v793_v11, %v792_v37  ;;  %vm795_vm7 = vcmp.lt.s32.totalorder %v6028_v53, 1  ;;  %v577_v51 = vsub.s32 4, %v6014_v40 }
  0xfc   : > { %v566_v9 = vor.u32 %v565_v8, %v564_v44  ;;  %v569_v0 = vshll.u32 %v568_v43, 23  ;;  %v700_v56 = vadd.s32 %v699_v59, %v690_v7  ;;  %vm798_vm8 = vcmp.lt.s32.totalorder %v6028_v53, 4 }
  0xfd   : > { %v803_v1 = vsel %vm795_vm7, %v6037_v6, %v6046_v61  ;;  %vm703_vm9 = vc.u32 %v6068_v10, %v6072_v3  ;;  %vm797_vm10 = vcmp.lt.s32.totalorder %v6028_v53, 3  ;;  %v804_v28 = vsel %vm798_vm8, %v791_v63, 920167782 }
  0xfe   : > { %v570_v54 = vor.u32 4788187, %v569_v0  ;;  %v704_v16 = vadd.s32 1, %v700_v56  ;;  %vm796_vm11 = vcmp.lt.s32.totalorder %v6028_v53, 2  ;;  %v805_v55 = vsel %vm797_vm10, %v788_v29, %v804_v28 }
  0xff   : > { %v807_v2 = vsel %vm795_vm7, %v6046_v61, %v788_v29  ;;  %v573_v0 = vcvt.s32.f32 %v566_v9  ;;  %v6096_v48 = vsel %vm796_vm11, %v803_v1, %v805_v55  ;;  %v808_v34 = vsel %vm798_vm8, %v794_v4, 1326507024 }
 0x100   : > { %v571_v42 = vand.u32 2147483647, %v570_v54  ;;  %v578_v41 = vsel %vm455_vm6, %v577_v51, %v6014_v40  ;;  %v705_v62 = vsel %vm703_vm9, %v704_v16, %v700_v56  ;;  %v809_v57 = vsel %vm797_vm10, %v791_v63, %v808_v34 }
 0x101   : > { %v6107_v47 = vshll.u32 %v771_v36, 8  ;;  %v9925_v44 = vmul.u32 %v6002_v15, %v6035_v17  ;;  %v810_v11 = vsel %vm796_vm11, %v807_v2, %v809_v57  ;;  %v837_v8 = vshrl.u32 %v6096_v48, 16  ;;  %v6134_v16 = vpop.permute.xlu0 %224 }
 0x102   : > { %v574_v46 = vmul.f32 %v573_v0, %v571_v42  ;;  %v814_v37 = vand.u32 65535, %v810_v11  ;;  %v815_v63 = vshrl.u32 %v810_v11, 16  ;;  %v9926_v60 = vand.u32 2147483647, %v5892_v39  ;;  %9927 = vst [vmem:[#allocation10_spill] sm:$0xff] %v6134_v16 }
 0x103   : > { %v706_v5 = vadd.s32 %v705_v62, %v9925_v44  ;;  %v812_v40 = vand.u32 65535, %v6107_v47  ;;  %v813_v43 = vshrl.u32 %v6107_v47, 16  ;;  %v6123_v17 = vadd.f32 %v5914_v58, %v5969_v13 }
 0x104   : > { %vm454_vm12 = vcmp.le.f32.partialorder %v9926_v60, 0.7853982  ;;  %v575_v36 = vxor.u32 2147483648, %v574_v46  ;;  %v9928_v42 = vmov 683565275   ;;  %v836_v62 = vand.u32 65535, %v6096_v48 }
 0x105   : > { %v707_v7 = vadd.s32 536870912, %v706_v5  ;;  %v580_v59 = vsel %vm454_vm12, 0, %v578_v41  ;;  %v817_v9 = vmul.u32 %v815_v63, %v812_v40  ;;  %v6119_v15 = vmul.u32 %v814_v37, %v813_v43 }
 0x106   : > { %v576_v4 = vsel %vm455_vm6, %v575_v36, %v574_v46  ;;  %v816_v1 = vmul.u32 %v814_v37, %v812_v40  ;;  %v6132_v28 = vmul.u32 %v837_v8, %v812_v40  ;;  %v597_v2 = vadd.s32 3, %v580_v59 }
 0x107   : > { %v6127_v51 = vshrl.u32 %v707_v7, 30  ;;  %v6130_v56 = vsel %vm454_vm12, %v5892_v39, %v576_v4  ;;  %v820_v54 = vshll.u32 %v817_v9, 16  ;;  %v779_v0 = vshrl.u32 %v9928_v42, %v6005_v30 }
 0x108   : > { %v581_v55 = vmul.f32 %v6130_v56, %v6130_v56  ;;  %v822_v34 = vshll.u32 %v6119_v15, 16  ;;  %v800_v11 = vsel %vm798_vm8, %v788_v29, 2102212464  ;;  %v819_v37 = vmul.u32 %v815_v63, %v813_v43 }
 0x109   : > { %v709_v13 = vshll.u32 %v6127_v51, 30  ;;  %vm824_vm13 = vc.u32 %v816_v1, %v820_v54  ;;  %v826_v41 = vadd.s32 %v820_v54, %v816_v1  ;;  %v9929_v60 = vmov 0  }
 0x10a   : > { %v582_v57 = vmul.f32 -0.001358992, %v581_v55  ;;  %v589_v46 = vmul.f32 -0.00019511016, %v581_v55  ;;  %v825_v36 = vsel %vm824_vm13, 1, %v9929_v60  ;;  %v842_v7 = vshll.u32 %v6132_v28, 16 }
 0x10b   : > { %v6143_v44 = vsub.s32 %v706_v5, %v709_v13  ;;  %vm828_vm14 = vc.u32 %v826_v41, %v822_v34  ;;  %v6151_v48 = vand.u32 3, %v597_v2  ;;  %v827_v1 = vadd.s32 %v825_v36, %v819_v37 }
 0x10c   : > { %v583_v30 = vadd.f32 0.041655596, %v582_v57  ;;  %v590_v59 = vadd.f32 0.008332121, %v589_v46  ;;  %v829_v5 = vsel %vm828_vm14, 1, %v9929_v60  ;;  %v840_v54 = vmul.u32 %v836_v62, %v813_v43 }
 0x10d   : > { %vm711_vm15 = vcmp.lt.s32.totalorder %v6143_v44, 0  ;;  %v712_v4 = vsub.s32 0, %v6143_v44  ;;  %v838_v33 = vmul.u32 %v836_v62, %v812_v40  ;;  %v799_v41 = vsel %vm795_vm7, %v779_v0, %v6037_v6 }
 0x10e   : > { %v584_v13 = vmul.f32 %v583_v30, %v581_v55  ;;  %v591_v29 = vmul.f32 %v590_v59, %v581_v55  ;;  %v801_v57 = vsel %vm797_vm10, %v6046_v61, %v800_v11  ;;  %v831_v2 = vadd.s32 %v829_v5, %v827_v1 }
 0x10f   : > { %v713_v63 = vsel %vm711_vm15, %v712_v4, %v6143_v44  ;;  %vm846_vm0 = vc.u32 %v838_v33, %v842_v7  ;;  %v848_v36 = vadd.s32 %v842_v7, %v838_v33  ;;  %vm600_vm1 = vcmp.eq.s32.totalorder %v6151_v48, 0  ;;  %v6163_v4 = vpop.permute.xlu0 %239 }
 0x110   : > { %v714_v34 = vclz %v713_v63  ;;  %v585_v46 = vadd.f32 -0.4999988, %v584_v13  ;;  %v592_v37 = vadd.f32 -0.16666654, %v591_v29  ;;  %vm603_vm2 = vcmp.eq.s32.totalorder %v6151_v48, 2  ;;  %9930 = vst [vmem:[#allocation11_spill] sm:$0xff] %v6163_v4 }
 0x111   : > { %v821_v40 = vshrl.u32 %v817_v9, 16  ;;  %v841_v62 = vmul.u32 %v837_v8, %v813_v43  ;;  %v844_v59 = vshll.u32 %v840_v54, 16  ;;  %vm599_vm3 = vcmp.lt.s32.totalorder %v6151_v48, 2 }
 0x112   : > { %v5537_v30 = vadd.s32 4294967294, %v714_v34  ;;  %v586_v6 = vmul.f32 %v585_v46, %v581_v55  ;;  %v593_v0 = vmul.f32 %v592_v37, %v581_v55  ;;  %v702_v61 = vadd.s32 %v6072_v3, %v6068_v10 }
 0x113   : > { %v847_v33 = vsel %vm846_vm0, 1, %v9929_v60  ;;  %vm596_vm4 = vweird.f32 %v5892_v39  ;;  %v832_v11 = vadd.s32 %v831_v2, %v821_v40  ;;  %vm850_vm6 = vc.u32 %v848_v36, %v844_v59 }
 0x114   : > { %vm5538_vm5 = vcmp.lt.s32.totalorder %v5537_v30, 0  ;;  %v849_v7 = vadd.s32 %v847_v33, %v841_v62  ;;  %v587_v8 = vadd.f32 1.0, %v586_v6  ;;  %v594_v43 = vadd.f32 1.0, %v593_v0 }
 0x115   : > { %v717_v9 = vsel %vm5538_vm5, 0, %v5537_v30  ;;  %v802_v55 = vsel %vm796_vm11, %v799_v41, %v801_v57  ;;  %v823_v13 = vshrl.u32 %v6119_v15, 16  ;;  %v851_v3 = vsel %vm850_vm6, 1, %v9929_v60 }
 0x116   : > { %v718_v1 = vsub.s32 32, %v717_v9  ;;  %v722_v5 = vsub.s32 4294967266, %v717_v9  ;;  %v595_v10 = vmul.f32 %v594_v43, %v6130_v56  ;;  %v604_v29 = vxor.u32 2147483648, %v587_v8 }
 0x117   : > { %v843_v63 = vshrl.u32 %v6132_v28, 16  ;;  %v853_v34 = vadd.s32 %v851_v3, %v849_v7  ;;  %v719_v2 = vshll.u32 %v6143_v44, %v717_v9  ;;  %v833_v53 = vadd.s32 %v832_v11, %v823_v13  ;;  %v6189_v7 = vpop.permute.xlu0 %290 }
 0x118   : > { %v720_v46 = vshrl.u32 %v702_v61, %v718_v1  ;;  %v723_v37 = vadd.s32 127, %v722_v5  ;;  %v601_v41 = vxor.u32 2147483648, %v595_v10  ;;  %v845_v57 = vshrl.u32 %v840_v54, 16 }
 0x119   : > { %v854_v30 = vadd.s32 %v853_v34, %v843_v63  ;;  %v9905_v40 = vand.u32 2147483647, %v6123_v17  ;;  %v852_v6 = vadd.s32 %v848_v36, %v844_v59  ;;  %v921_v56 = vand.u32 2139095040, %v6123_v17 }
 0x11a   : > { %v721_v15 = vor.u32 %v720_v46, %v719_v2  ;;  %v724_v62 = vshll.u32 %v723_v37, 23  ;;  %v602_v28 = vsel %vm600_vm1, %v587_v8, %v601_v41  ;;  %v605_v44 = vsel %vm603_vm2, %v604_v29, %v595_v10 }
 0x11b   : > { %v732_v0 = vsub.s32 4, %v6127_v51  ;;  %v855_v61 = vadd.s32 %v854_v30, %v845_v57  ;;  %v606_v54 = vsel %vm599_vm3, %v602_v28, %v605_v44  ;;  %vm858_vm7 = vc.u32 %v833_v53, %v852_v6 }
 0x11c   : > { %v725_v33 = vor.u32 4788187, %v724_v62  ;;  %v922_v11 = vshrl.u32 %v921_v56, 23  ;;  %v607_v36 = vsel %vm596_vm4, nan, %v606_v54  ;;  %vm610_vm8 = vcmp.lt.s32.totalorder %v5929_v14, 0 }
 0x11d   : > { %v859_v59 = vadd.s32 1, %v855_v61  ;;  %v925_v8 = vand.u32 8388607, %v9905_v40  ;;  %v728_v9 = vcvt.s32.f32 %v721_v15  ;;  %v856_v1 = vmul.u32 %v6107_v47, %v802_v55  ;;  %5413 = vst [vmem:[%s6197_s6] sm:$0xff] %v607_v36 }
 0x11e   : > { %v726_v43 = vand.u32 2147483647, %v725_v33  ;;  %v5542_v48 = vadd.s32 4294967169, %v922_v11  ;;  %v733_v39 = vsel %vm610_vm8, %v732_v0, %v6127_v51  ;;  %v354_v13 = vmul.f32 %v5882_v32, %v6189_v7 }
 0x11f   : > { %v860_v5 = vsel %vm858_vm7, %v859_v59, %v855_v61  ;;  %v251_v63 = vmul.f32 %v5880_v31, %v5856_v19  ;;  %v9931_v47 = vand.u32 2147483647, %v5929_v14  ;;  %v926_v55 = vor.u32 8388608, %v925_v8 }
 0x120   : > { %v729_v3 = vmul.f32 %v728_v9, %v726_v43  ;;  %v861_v10 = vadd.s32 %v860_v5, %v856_v1  ;;  %v928_v29 = vadd.s32 1, %v5542_v48  ;;  %v6216_v0 = vmul.f32 %v5908_v52, %v5856_v19 }
 0x121   : > { %vm609_vm9 = vcmp.le.f32.partialorder %v9931_v47, 0.7853982  ;;  %v386_v51 = vadd.f32 %v354_v13, %v251_v63  ;;  %v6212_v56 = vshll.u32 %v926_v55, 8  ;;  %vm765_vm11 = vcmp.lt.s32.totalorder %v5906_v50, 0 }
 0x122   : > { %v730_v34 = vxor.u32 2147483648, %v729_v3  ;;  %v735_v2 = vsel %vm609_vm9, 0, %v733_v39  ;;  %v862_v46 = vadd.s32 536870912, %v861_v10  ;;  %vm929_vm10 = vcmp.gt.s32.totalorder %v928_v29, 0 }
 0x123   : > { %v930_v37 = vsel %vm929_vm10, %v928_v29, 0  ;;  %v752_v62 = vadd.s32 3, %v735_v2  ;;  %v6222_v54 = vadd.f32 %v5889_v38, %v386_v51  ;;  %v857_v8 = vadd.s32 %v852_v6, %v833_v53 }
 0x124   : > { %v731_v41 = vsel %vm610_vm8, %v730_v34, %v729_v3  ;;  %v863_v57 = vshrl.u32 %v862_v46, 30  ;;  %v932_v30 = vand.u32 31, %v930_v37  ;;  %v6229_v43 = vand.u32 65535, %v6212_v56 }
 0x125   : > { %v734_v15 = vsel %vm609_vm9, %v5929_v14, %v731_v41  ;;  %v6226_v59 = vand.u32 3, %v752_v62  ;;  %v6232_v19 = vshrl.u32 %v6212_v56, 16  ;;  %v6236_v5 = vshrl.u32 %v930_v37, 5 }
 0x126   : > { %v736_v28 = vmul.f32 %v734_v15, %v734_v15  ;;  %v864_v44 = vshll.u32 %v863_v57, 30  ;;  %v6219_v61 = vsub.s32 32, %v932_v30  ;;  %v887_v39 = vsub.s32 4, %v863_v57 }
 0x127   : > { %v935_v13 = vshll.u32 %v9928_v42, %v932_v30  ;;  %v9932_v3 = vmov 2475754826   ;;  %v9933_v63 = vmov 2131351028   ;;  %vm758_vm13 = vcmp.eq.s32.totalorder %v6226_v59, 2 }
 0x128   : > { %v737_v33 = vmul.f32 -0.001358992, %v736_v28  ;;  %v744_v11 = vmul.f32 -0.00019511016, %v736_v28  ;;  %v6224_v36 = vsub.s32 %v861_v10, %v864_v44  ;;  %v936_v53 = vshrl.u32 %v9932_v3, %v6219_v61 }
 0x129   : > { %v939_v47 = vshrl.u32 %v9933_v63, %v6219_v61  ;;  %v938_v34 = vshll.u32 %v9932_v3, %v932_v30  ;;  %v9934_v2 = vmov 2102212464   ;;  %v945_v37 = vshrl.u32 %v9911_v12, %v6219_v61 }
 0x12a   : > { %v738_v9 = vadd.f32 0.041655596, %v737_v33  ;;  %v745_v1 = vadd.f32 0.008332121, %v744_v11  ;;  %vm866_vm12 = vcmp.lt.s32.totalorder %v6224_v36, 0  ;;  %v867_v48 = vsub.s32 0, %v6224_v36 }
 0x12b   : > { %v942_v46 = vshrl.u32 %v9934_v2, %v6219_v61  ;;  %v941_v62 = vshll.u32 %v9933_v63, %v932_v30  ;;  %v9935_v44 = vmov 1326507024   ;;  %vm755_vm14 = vcmp.eq.s32.totalorder %v6226_v59, 0 }
 0x12c   : > { %v739_v6 = vmul.f32 %v738_v9, %v736_v28  ;;  %v746_v10 = vmul.f32 %v745_v1, %v736_v28  ;;  %v868_v29 = vsel %vm866_vm12, %v867_v48, %v6224_v36  ;;  %v948_v33 = vshrl.u32 %v9935_v44, %v6219_v61 }
 0x12d   : > { %v869_v55 = vclz %v868_v29  ;;  %v6256_v9 = vsel %vm765_vm11, %v887_v39, %v863_v57  ;;  %v944_v1 = vshll.u32 %v9934_v2, %v932_v30  ;;  %v947_v48 = vshll.u32 %v9911_v12, %v932_v30 }
 0x12e   : > { %v740_v51 = vadd.f32 -0.4999988, %v739_v6  ;;  %v747_v41 = vadd.f32 -0.16666654, %v746_v10  ;;  %vm754_vm15 = vcmp.lt.s32.totalorder %v6226_v59, 2  ;;  %v937_v6 = vor.u32 %v936_v53, %v935_v13 }
 0x12f   : > { %v5540_v11 = vadd.s32 4294967294, %v869_v55  ;;  %v940_v10 = vor.u32 %v939_v47, %v938_v34  ;;  %vm751_vm0 = vweird.f32 %v5929_v14  ;;  %v943_v4 = vor.u32 %v942_v46, %v941_v62 }
 0x130   : > { %v741_v29 = vmul.f32 %v740_v51, %v736_v28  ;;  %v748_v40 = vmul.f32 %v747_v41, %v736_v28  ;;  %v946_v27 = vor.u32 %v945_v37, %v944_v1  ;;  %v949_v55 = vor.u32 %v948_v33, %v947_v48 }
 0x131   : > { %vm5541_vm1 = vcmp.lt.s32.totalorder %v5540_v11, 0  ;;  %vm950_vm2 = vcmp.lt.s32.totalorder %v6236_v5, 1  ;;  %v9936_v39 = vand.u32 2147483647, %v5906_v50  ;;  %vm951_vm4 = vcmp.lt.s32.totalorder %v6236_v5, 2 }
 0x132   : > { %v742_v26 = vadd.f32 1.0, %v741_v29  ;;  %v749_v16 = vadd.f32 1.0, %v748_v40  ;;  %v872_v57 = vsel %vm5541_vm1, 0, %v5540_v11  ;;  %vm952_vm5 = vcmp.lt.s32.totalorder %v6236_v5, 3 }
 0x133   : > { %vm6265_vm3 = vcmp.le.f32.partialorder %v9936_v39, 0.7853982  ;;  %v873_v28 = vsub.s32 32, %v872_v57  ;;  %v877_v13 = vsub.s32 4294967266, %v872_v57  ;;  %vm953_vm6 = vcmp.lt.s32.totalorder %v6236_v5, 4 }
 0x134   : > { %v750_v53 = vmul.f32 %v749_v16, %v734_v15  ;;  %v759_v47 = vxor.u32 2147483648, %v742_v26  ;;  %v958_v40 = vsel %vm950_vm2, %v937_v6, %v940_v10  ;;  %v874_v34 = vshll.u32 %v6224_v36, %v872_v57 }
 0x135   : > { %v875_v46 = vshrl.u32 %v857_v8, %v873_v28  ;;  %v878_v37 = vadd.s32 127, %v877_v13  ;;  %v959_v51 = vsel %vm953_vm6, %v946_v27, 920167782  ;;  %v962_v15 = vsel %vm950_vm2, %v940_v10, %v943_v4 }
 0x136   : > { %v756_v41 = vxor.u32 2147483648, %v750_v53  ;;  %v760_v62 = vsel %vm758_vm13, %v759_v47, %v750_v53  ;;  %v960_v16 = vsel %vm952_vm5, %v943_v4, %v959_v51  ;;  %v963_v8 = vsel %vm953_vm6, %v949_v55, 1326507024 }
 0x137   : > { %v876_v33 = vor.u32 %v875_v46, %v874_v34  ;;  %v879_v11 = vshll.u32 %v878_v37, 23  ;;  %v961_v36 = vsel %vm951_vm4, %v958_v40, %v960_v16  ;;  %v964_v48 = vsel %vm952_vm5, %v946_v27, %v963_v8 }
 0x138   : > { %v757_v1 = vsel %vm755_vm14, %v742_v26, %v756_v41  ;;  %v991_v29 = vand.u32 65535, %v961_v36  ;;  %v992_v57 = vshrl.u32 %v961_v36, 16  ;;  %v934_v13 = vshrl.u32 %v9928_v42, %v6219_v61 }
 0x139   : > { %v761_v39 = vsel %vm754_vm15, %v757_v1, %v760_v62  ;;  %v880_v28 = vor.u32 4788187, %v879_v11  ;;  %v965_v53 = vsel %vm951_vm4, %v962_v15, %v964_v48  ;;  %v955_v26 = vsel %vm953_vm6, %v943_v4, 2102212464 }
 0x13a   : > { %v762_v55 = vsel %vm751_vm0, nan, %v761_v39  ;;  %v969_v47 = vand.u32 65535, %v965_v53  ;;  %v970_v27 = vshrl.u32 %v965_v53, 16  ;;  %v883_v34 = vcvt.s32.f32 %v876_v33 }
 0x13b   : > { %v881_v40 = vand.u32 2147483647, %v880_v28  ;;  %v994_v59 = vmul.u32 %v992_v57, %v6229_v43  ;;  %v995_v46 = vmul.u32 %v991_v29, %v6232_v19  ;;  %5414 = vst [vmem:[%s6197_s6 + $0x8] sm:$0xff] %v762_v55  ;;  %v890_v61 = vsel %vm6265_vm3, 0, %v6256_v9 }
 0x13c   : > { %v954_v14 = vsel %vm950_vm2, %v934_v13, %v937_v6  ;;  %v972_v37 = vmul.u32 %v970_v27, %v6229_v43  ;;  %v973_v4 = vmul.u32 %v969_v47, %v6232_v19  ;;  %v956_v41 = vsel %vm952_vm5, %v940_v10, %v955_v26 }
 0x13d   : > { %v884_v51 = vmul.f32 %v883_v34, %v881_v40  ;;  %v993_v62 = vmul.u32 %v991_v29, %v6229_v43  ;;  %v997_v16 = vshll.u32 %v994_v59, 16  ;;  %v971_v15 = vmul.u32 %v969_v47, %v6229_v43 }
 0x13e   : > { %v974_v33 = vmul.u32 %v970_v27, %v6232_v19  ;;  %v975_v11 = vshll.u32 %v972_v37, 16  ;;  %v996_v9 = vmul.u32 %v992_v57, %v6232_v19  ;;  %v999_v6 = vshll.u32 %v995_v46, 16 }
 0x13f   : > { %v885_v36 = vxor.u32 2147483648, %v884_v51  ;;  %vm1001_vm7 = vc.u32 %v993_v62, %v997_v16  ;;  %v1003_v8 = vadd.s32 %v997_v16, %v993_v62  ;;  %v977_v1 = vshll.u32 %v973_v4, 16 }
 0x140   : > { %vm979_vm8 = vc.u32 %v971_v15, %v975_v11  ;;  %v981_v48 = vadd.s32 %v975_v11, %v971_v15  ;;  %v1002_v39 = vsel %vm1001_vm7, 1, %v9929_v60  ;;  %v998_v55 = vshrl.u32 %v994_v59, 16 }
 0x141   : > { %v886_v10 = vsel %vm765_vm11, %v885_v36, %v884_v51  ;;  %v980_v29 = vsel %vm979_vm8, 1, %v9929_v60  ;;  %v1004_v43 = vadd.s32 %v1002_v39, %v996_v9  ;;  %vm1005_vm9 = vc.u32 %v1003_v8, %v999_v6 }
 0x142   : > { %v889_v19 = vsel %vm6265_vm3, %v5906_v50, %v886_v10  ;;  %v982_v57 = vadd.s32 %v980_v29, %v974_v33  ;;  %vm983_vm10 = vc.u32 %v981_v48, %v977_v1  ;;  %v1006_v28 = vsel %vm1005_vm9, 1, %v9929_v60 }
 0x143   : > { %v891_v13 = vmul.f32 %v889_v19, %v889_v19  ;;  %v984_v53 = vsel %vm983_vm10, 1, %v9929_v60  ;;  %v1008_v26 = vadd.s32 %v1006_v28, %v1004_v43  ;;  %v976_v47 = vshrl.u32 %v972_v37, 16 }
 0x144   : > { %v986_v27 = vadd.s32 %v984_v53, %v982_v57  ;;  %v1000_v40 = vshrl.u32 %v995_v46, 16  ;;  %v1076_v34 = vand.u32 2139095040, %v6222_v54  ;;  %v9910_v30 = vand.u32 2147483647, %v6222_v54 }
 0x145   : > { %v892_v51 = vmul.f32 -0.001358992, %v891_v13  ;;  %v899_v62 = vmul.f32 -0.00019511016, %v891_v13  ;;  %v1009_v16 = vadd.s32 %v1008_v26, %v998_v55  ;;  %v355_v15 = vmul.f32 %v5903_v49, %v6189_v7 }
 0x146   : > { %v978_v33 = vshrl.u32 %v973_v4, 16  ;;  %v987_v11 = vadd.s32 %v986_v27, %v976_v47  ;;  %v1077_v9 = vshrl.u32 %v1076_v34, 23  ;;  %v957_v59 = vsel %vm951_vm4, %v954_v14, %v956_v41 }
 0x147   : > { %v893_v36 = vadd.f32 0.041655596, %v892_v51  ;;  %v900_v1 = vadd.f32 0.008332121, %v899_v62  ;;  %v1010_v37 = vadd.s32 %v1009_v16, %v1000_v40  ;;  %v907_v46 = vadd.s32 3, %v890_v61  ;;  %v295_v61 = vpop.permute.xlu1 %294 }
 0x148   : > { %v6332_v48 = vadd.s32 %v987_v11, %v978_v33  ;;  %v6334_v39 = vadd.s32 %v1003_v8, %v999_v6  ;;  %v5545_v10 = vadd.s32 4294967169, %v1077_v9  ;;  %v1080_v7 = vand.u32 8388607, %v9910_v30 }
 0x149   : > { %v894_v29 = vmul.f32 %v893_v36, %v891_v13  ;;  %v901_v43 = vmul.f32 %v900_v1, %v891_v13  ;;  %v1014_v57 = vadd.s32 1, %v1010_v37  ;;  %v387_v4 = vadd.f32 %v355_v15, %v6216_v0 }
 0x14a   : > { %v1011_v28 = vmul.u32 %v6212_v56, %v957_v59  ;;  %vm1013_vm11 = vc.u32 %v6332_v48, %v6334_v39  ;;  %v1083_v5 = vadd.s32 1, %v5545_v10  ;;  %v6344_v14 = vmul.f32 %v5880_v31, %v5860_v21 }
 0x14b   : > { %v895_v41 = vadd.f32 -0.4999988, %v894_v29  ;;  %v902_v6 = vadd.f32 -0.16666654, %v901_v43  ;;  %v1015_v8 = vsel %vm1013_vm11, %v1014_v57, %v1010_v37  ;;  %v6348_v53 = vmul.f32 %v5908_v52, %v5860_v21 }
 0x14c   : > { %v908_v55 = vand.u32 3, %v907_v46  ;;  %v1016_v0 = vadd.s32 %v1015_v8, %v1011_v28  ;;  %vm1084_vm12 = vcmp.gt.s32.totalorder %v1083_v5, 0  ;;  %v1081_v47 = vor.u32 8388608, %v1080_v7 }
 0x14d   : > { %v896_v56 = vmul.f32 %v895_v41, %v891_v13  ;;  %v903_v26 = vmul.f32 %v902_v6, %v891_v13  ;;  %v1085_v27 = vsel %vm1084_vm12, %v1083_v5, 0  ;;  %v6351_v40 = vmul.f32 %v5882_v32, %v295_v61 }
 0x14e   : > { %v6354_v34 = vadd.f32 %v5914_v58, %v387_v4  ;;  %v1017_v51 = vadd.s32 536870912, %v1016_v0  ;;  %v1087_v62 = vand.u32 31, %v1085_v27  ;;  %v6357_v16 = vmul.f32 %v5903_v49, %v295_v61 }
 0x14f   : > { %v897_v21 = vadd.f32 1.0, %v896_v56  ;;  %v904_v15 = vadd.f32 1.0, %v903_v26  ;;  %vm906_vm13 = vweird.f32 %v5906_v50  ;;  %vm909_vm14 = vcmp.lt.s32.totalorder %v908_v55, 2 }
 0x150   : > { %vm910_vm15 = vcmp.eq.s32.totalorder %v908_v55, 0  ;;  %v6360_v13 = vshrl.u32 %v1017_v51, 30  ;;  %v6362_v33 = vsub.s32 32, %v1087_v62  ;;  %vm913_vm0 = vcmp.eq.s32.totalorder %v908_v55, 2 }
 0x151   : > { %v905_v11 = vmul.f32 %v904_v15, %v889_v19  ;;  %v914_v9 = vxor.u32 2147483648, %v897_v21  ;;  %v6364_v36 = vshll.u32 %v1081_v47, 8  ;;  %v6367_v59 = vshrl.u32 %v1085_v27, 5 }
 0x152   : > { %v1019_v1 = vshll.u32 %v6360_v13, 30  ;;  %v1091_v37 = vshrl.u32 %v9932_v3, %v6362_v33  ;;  %v1231_v46 = vand.u32 2139095040, %v6354_v34  ;;  %v1090_v29 = vshll.u32 %v9928_v42, %v1087_v62 }
 0x153   : > { %v911_v10 = vxor.u32 2147483648, %v905_v11  ;;  %v1093_v43 = vshll.u32 %v9932_v3, %v1087_v62  ;;  %v1094_v19 = vshrl.u32 %v9933_v63, %v6362_v33  ;;  %v1096_v7 = vshll.u32 %v9933_v63, %v1087_v62 }
 0x154   : > { %v6376_v57 = vsub.s32 %v1016_v0, %v1019_v1  ;;  %v1097_v4 = vshrl.u32 %v9934_v2, %v6362_v33  ;;  %v1100_v28 = vshrl.u32 %v9911_v12, %v6362_v33  ;;  %v915_v61 = vsel %vm913_vm0, %v914_v9, %v905_v11 }
 0x155   : > { %v912_v5 = vsel %vm910_vm15, %v897_v21, %v911_v10  ;;  %v1092_v41 = vor.u32 %v1091_v37, %v1090_v29  ;;  %v1099_v6 = vshll.u32 %v9934_v2, %v1087_v62  ;;  %v6389_v56 = vor.u32 %v1094_v19, %v1093_v43 }
 0x156   : > { %v916_v8 = vsel %vm909_vm14, %v912_v5, %v915_v61  ;;  %vm1021_vm1 = vcmp.lt.s32.totalorder %v6376_v57, 0  ;;  %v1022_v0 = vsub.s32 0, %v6376_v57  ;;  %v1102_v27 = vshll.u32 %v9911_v12, %v1087_v62 }
 0x157   : > { %v917_v26 = vsel %vm906_vm13, nan, %v916_v8  ;;  %v1101_v47 = vor.u32 %v1100_v28, %v1099_v6  ;;  %v1103_v51 = vshrl.u32 %v9935_v44, %v6362_v33  ;;  %vm920_vm2 = vcmp.lt.s32.totalorder %v6123_v17, 0 }
 0x158   : > { %v1012_v55 = vadd.s32 %v6334_v39, %v6332_v48  ;;  %v1023_v21 = vsel %vm1021_vm1, %v1022_v0, %v6376_v57  ;;  %v1098_v15 = vor.u32 %v1097_v4, %v1096_v7  ;;  %5415 = vst [vmem:[%s6197_s6 + $0x10] sm:$0xff] %v917_v26  ;;  %v9939_v11 = vand.u32 2147483647, %v6123_v17 }
 0x159   : > { %v1024_v9 = vclz %v1023_v21  ;;  %v1104_v62 = vor.u32 %v1103_v51, %v1102_v27  ;;  %v1122_v1 = vand.u32 65535, %v6364_v36  ;;  %v1232_v37 = vshrl.u32 %v1231_v46, 23 }
 0x15a   : > { %vm6403_vm3 = vcmp.le.f32.partialorder %v9939_v11, 0.7853982  ;;  %v1042_v10 = vsub.s32 4, %v6360_v13  ;;  %vm1105_vm4 = vcmp.lt.s32.totalorder %v6367_v59, 1  ;;  %vm1108_vm5 = vcmp.lt.s32.totalorder %v6367_v59, 4 }
 0x15b   : > { %v1123_v48 = vshrl.u32 %v6364_v36, 16  ;;  %v5543_v39 = vadd.s32 4294967294, %v1024_v9  ;;  %vm1107_vm6 = vcmp.lt.s32.totalorder %v6367_v59, 3  ;;  %v1113_v29 = vsel %vm1105_vm4, %v1092_v41, %v6389_v56 }
 0x15c   : > { %v1114_v43 = vsel %vm1108_vm5, %v1101_v47, 920167782  ;;  %vm1106_vm7 = vcmp.lt.s32.totalorder %v6367_v59, 2  ;;  %v1117_v19 = vsel %vm1105_vm4, %v6389_v56, %v1098_v15  ;;  %v1118_v7 = vsel %vm1108_vm5, %v1104_v62, 1326507024 }
 0x15d   : > { %v1115_v46 = vsel %vm1107_vm6, %v1098_v15, %v1114_v43  ;;  %vm5544_vm8 = vcmp.lt.s32.totalorder %v5543_v39, 0  ;;  %v1119_v28 = vsel %vm1107_vm6, %v1101_v47, %v1118_v7  ;;  %v5548_v5 = vadd.s32 4294967169, %v1232_v37 }
 0x15e   : > { %v1116_v4 = vsel %vm1106_vm7, %v1113_v29, %v1115_v46  ;;  %v1027_v61 = vsel %vm5544_vm8, 0, %v5543_v39  ;;  %v1120_v6 = vsel %vm1106_vm7, %v1117_v19, %v1119_v28  ;;  %v1043_v51 = vsel %vm920_vm2, %v1042_v10, %v6360_v13 }
 0x15f   : > { %v1146_v8 = vand.u32 65535, %v1116_v4  ;;  %v1147_v0 = vshrl.u32 %v1116_v4, 16  ;;  %v1028_v26 = vsub.s32 32, %v1027_v61  ;;  %v1032_v27 = vsub.s32 4294967266, %v1027_v61 }
 0x160   : > { %v1124_v21 = vand.u32 65535, %v1120_v6  ;;  %v1029_v11 = vshll.u32 %v6376_v57, %v1027_v61  ;;  %v1089_v9 = vshrl.u32 %v9928_v42, %v6362_v33  ;;  %v1125_v47 = vshrl.u32 %v1120_v6, 16 }
 0x161   : > { %v1149_v62 = vmul.u32 %v1147_v0, %v1122_v1  ;;  %v1030_v37 = vshrl.u32 %v1012_v55, %v1028_v26  ;;  %v1033_v39 = vadd.s32 127, %v1032_v27  ;;  %v1150_v43 = vmul.u32 %v1146_v8, %v1123_v48 }
 0x162   : > { %v1128_v29 = vmul.u32 %v1124_v21, %v1123_v48  ;;  %v1045_v46 = vsel %vm6403_vm3, 0, %v1043_v51  ;;  %v1109_v19 = vsel %vm1105_vm4, %v1089_v9, %v1092_v41  ;;  %v1127_v7 = vmul.u32 %v1125_v47, %v1122_v1 }
 0x163   : > { %v1152_v13 = vshll.u32 %v1149_v62, 16  ;;  %v1031_v10 = vor.u32 %v1030_v37, %v1029_v11  ;;  %v1034_v4 = vshll.u32 %v1033_v39, 23  ;;  %v1110_v57 = vsel %vm1108_vm5, %v1098_v15, 2102212464 }
 0x164   : > { %v1148_v33 = vmul.u32 %v1146_v8, %v1122_v1  ;;  %v1126_v28 = vmul.u32 %v1124_v21, %v1122_v1  ;;  %v1129_v61 = vmul.u32 %v1125_v47, %v1123_v48  ;;  %v1130_v55 = vshll.u32 %v1127_v7, 16 }
 0x165   : > { %v1151_v6 = vmul.u32 %v1147_v0, %v1123_v48  ;;  %v1035_v26 = vor.u32 4788187, %v1034_v4  ;;  %v1132_v27 = vshll.u32 %v1128_v29, 16  ;;  %v1154_v30 = vshll.u32 %v1150_v43, 16 }
 0x166   : > { %vm1156_vm9 = vc.u32 %v1148_v33, %v1152_v13  ;;  %vm1134_vm10 = vc.u32 %v1126_v28, %v1130_v55  ;;  %v1136_v51 = vadd.s32 %v1130_v55, %v1126_v28  ;;  %v1158_v9 = vadd.s32 %v1152_v13, %v1148_v33 }
 0x167   : > { %v1157_v41 = vsel %vm1156_vm9, 1, %v9929_v60  ;;  %v1036_v12 = vand.u32 2147483647, %v1035_v26  ;;  %v1038_v11 = vcvt.s32.f32 %v1031_v10  ;;  %v1135_v37 = vsel %vm1134_vm10, 1, %v9929_v60 }
 0x168   : > { %v1159_v39 = vadd.s32 %v1157_v41, %v1151_v6  ;;  %v1111_v15 = vsel %vm1107_vm6, %v6389_v56, %v1110_v57  ;;  %v1137_v1 = vadd.s32 %v1135_v37, %v1129_v61  ;;  %vm1138_vm11 = vc.u32 %v1136_v51, %v1132_v27 }
 0x169   : > { %vm1160_vm12 = vc.u32 %v1158_v9, %v1154_v30  ;;  %v1039_v48 = vmul.f32 %v1038_v11, %v1036_v12  ;;  %v1131_v8 = vshrl.u32 %v1127_v7, 16  ;;  %v1139_v0 = vsel %vm1138_vm11, 1, %v9929_v60 }
 0x16a   : > { %v1161_v21 = vsel %vm1160_vm12, 1, %v9929_v60  ;;  %v1141_v47 = vadd.s32 %v1139_v0, %v1137_v1  ;;  %v1153_v13 = vshrl.u32 %v1149_v62, 16  ;;  %v1238_v10 = vadd.s32 1, %v5548_v5 }
 0x16b   : > { %v1163_v4 = vadd.s32 %v1161_v21, %v1159_v39  ;;  %v388_v33 = vadd.f32 %v6351_v40, %v6344_v14  ;;  %v1040_v28 = vxor.u32 2147483648, %v1039_v48  ;;  %v1133_v55 = vshrl.u32 %v1128_v29, 16 }
 0x16c   : > { %v9913_v56 = vand.u32 2147483647, %v6354_v34  ;;  %v1142_v57 = vadd.s32 %v1141_v47, %v1131_v8  ;;  %v1155_v61 = vshrl.u32 %v1150_v43, 16  ;;  %vm1239_vm13 = vcmp.gt.s32.totalorder %v1238_v10, 0 }
 0x16d   : > { %v1164_v6 = vadd.s32 %v1163_v4, %v1153_v13  ;;  %v1041_v12 = vsel %vm920_vm2, %v1040_v28, %v1039_v48  ;;  %v1062_v7 = vadd.s32 3, %v1045_v46  ;;  %v1112_v62 = vsel %vm1106_vm7, %v1109_v19, %v1111_v15 }
 0x16e   : > { %v1240_v26 = vsel %vm1239_vm13, %v1238_v10, 0  ;;  %v1044_v14 = vsel %vm6403_vm3, %v6123_v17, %v1041_v12  ;;  %v6461_v40 = vadd.s32 %v1142_v57, %v1133_v55  ;;  %v6463_v5 = vadd.s32 %v1158_v9, %v1154_v30 }
 0x16f   : > { %v1165_v29 = vadd.s32 %v1164_v6, %v1155_v61  ;;  %v6467_v43 = vadd.f32 %v6357_v16, %v6348_v53  ;;  %v1046_v27 = vmul.f32 %v1044_v14, %v1044_v14  ;;  %v1242_v51 = vand.u32 31, %v1240_v26 }
 0x170   : > { %v6470_v46 = vadd.f32 %v5889_v38, %v388_v33  ;;  %vm1168_vm14 = vc.u32 %v6461_v40, %v6463_v5  ;;  %v1235_v50 = vand.u32 8388607, %v9913_v56  ;;  %v1166_v41 = vmul.u32 %v6364_v36, %v1112_v62 }
 0x171   : > { %v1169_v59 = vadd.s32 1, %v1165_v29  ;;  %v1047_v19 = vmul.f32 -0.001358992, %v1046_v27  ;;  %v1054_v30 = vmul.f32 -0.00019511016, %v1046_v27  ;;  %v6477_v9 = vsub.s32 32, %v1242_v51 }
 0x172   : > { %v6479_v53 = vand.u32 3, %v1062_v7  ;;  %v1245_v11 = vshll.u32 %v9928_v42, %v1242_v51  ;;  %v1248_v37 = vshll.u32 %v9932_v3, %v1242_v51  ;;  %v1254_v48 = vshll.u32 %v9934_v2, %v1242_v51 }
 0x173   : > { %v1170_v16 = vsel %vm1168_vm14, %v1169_v59, %v1165_v29  ;;  %v1048_v39 = vadd.f32 0.041655596, %v1047_v19  ;;  %v1055_v15 = vadd.f32 0.008332121, %v1054_v30  ;;  %v1246_v8 = vshrl.u32 %v9932_v3, %v6477_v9 }
 0x174   : > { %v1171_v1 = vadd.s32 %v1170_v16, %v1166_v41  ;;  %v1249_v36 = vshrl.u32 %v9933_v63, %v6477_v9  ;;  %v1252_v0 = vshrl.u32 %v9934_v2, %v6477_v9  ;;  %v9942_v21 = vmov 920167782  }
 0x175   : > { %v1255_v47 = vshrl.u32 %v9942_v21, %v6477_v9  ;;  %v1049_v13 = vmul.f32 %v1048_v39, %v1046_v27  ;;  %v1056_v4 = vmul.f32 %v1055_v15, %v1046_v27  ;;  %v6492_v33 = vshrl.u32 %v1240_v26, 5 }
 0x176   : > { %v1172_v10 = vadd.s32 536870912, %v1171_v1  ;;  %v6494_v28 = vor.u32 %v1246_v8, %v1245_v11  ;;  %v6496_v55 = vor.u32 %v1249_v36, %v1248_v37  ;;  %v1251_v57 = vshll.u32 %v9933_v63, %v1242_v51 }
 0x177   : > { %v1256_v61 = vor.u32 %v1255_v47, %v1254_v48  ;;  %v1050_v6 = vadd.f32 -0.4999988, %v1049_v13  ;;  %v1057_v12 = vadd.f32 -0.16666654, %v1056_v4  ;;  %v1258_v62 = vshrl.u32 %v9935_v44, %v6477_v9 }
 0x178   : > { %v6499_v7 = vshrl.u32 %v1172_v10, 30  ;;  %vm1065_vm15 = vcmp.eq.s32.totalorder %v6479_v53, 0  ;;  %v1236_v29 = vor.u32 8388608, %v1235_v50  ;;  %v6504_v59 = vor.u32 %v1252_v0, %v1251_v57 }
 0x179   : > { %v1257_v26 = vshll.u32 %v9942_v21, %v1242_v51  ;;  %v1051_v19 = vmul.f32 %v1050_v6, %v1046_v27  ;;  %v1058_v30 = vmul.f32 %v1057_v12, %v1046_v27  ;;  %vm1064_vm0 = vcmp.lt.s32.totalorder %v6479_v53, 2 }
 0x17a   : > { %v1174_v41 = vshll.u32 %v6499_v7, 30  ;;  %vm1263_vm1 = vcmp.lt.s32.totalorder %v6492_v33, 4  ;;  %vm1061_vm2 = vweird.f32 %v6123_v17  ;;  %vm1260_vm3 = vcmp.lt.s32.totalorder %v6492_v33, 1 }
 0x17b   : > { %v1259_v16 = vor.u32 %v1258_v62, %v1257_v26  ;;  %vm1262_vm4 = vcmp.lt.s32.totalorder %v6492_v33, 3  ;;  %v1269_v50 = vsel %vm1263_vm1, %v1256_v61, 920167782  ;;  %v1052_v11 = vadd.f32 1.0, %v1051_v19 }
 0x17c   : > { %v1059_v51 = vadd.f32 1.0, %v1058_v30  ;;  %v1175_v37 = vsub.s32 %v1171_v1, %v1174_v41  ;;  %v1268_v27 = vsel %vm1260_vm3, %v6494_v28, %v6496_v55  ;;  %vm1261_vm5 = vcmp.lt.s32.totalorder %v6492_v33, 2 }
 0x17d   : > { %v1270_v39 = vsel %vm1262_vm4, %v6504_v59, %v1269_v50  ;;  %v1272_v15 = vsel %vm1260_vm3, %v6496_v55, %v6504_v59  ;;  %v6527_v48 = vshll.u32 %v1236_v29, 8  ;;  %v1069_v1 = vxor.u32 2147483648, %v1052_v11 }
 0x17e   : > { %v1060_v8 = vmul.f32 %v1059_v51, %v1044_v14  ;;  %vm1176_vm6 = vcmp.lt.s32.totalorder %v1175_v37, 0  ;;  %v1177_v36 = vsub.s32 0, %v1175_v37  ;;  %vm1068_vm7 = vcmp.eq.s32.totalorder %v6479_v53, 2 }
 0x17f   : > { %v1271_v0 = vsel %vm1261_vm5, %v1268_v27, %v1270_v39  ;;  %v1273_v47 = vsel %vm1263_vm1, %v1259_v16, 1326507024  ;;  %v1386_v14 = vand.u32 2139095040, %v6470_v46  ;;  %v1277_v29 = vand.u32 65535, %v6527_v48 }
 0x180   : > { %v1066_v4 = vxor.u32 2147483648, %v1060_v8  ;;  %v1178_v10 = vsel %vm1176_vm6, %v1177_v36, %v1175_v37  ;;  %v1274_v57 = vsel %vm1262_vm4, %v1256_v61, %v1273_v47  ;;  %v1070_v6 = vsel %vm1068_vm7, %v1069_v1, %v1060_v8 }
 0x181   : > { %v1179_v12 = vclz %v1178_v10  ;;  %v1275_v62 = vsel %vm1261_vm5, %v1272_v15, %v1274_v57  ;;  %v1302_v41 = vshrl.u32 %v1271_v0, 16  ;;  %v1278_v50 = vshrl.u32 %v6527_v48, 16 }
 0x182   : > { %v1067_v26 = vsel %vm1065_vm15, %v1052_v11, %v1066_v4  ;;  %v1279_v19 = vand.u32 65535, %v1275_v62  ;;  %v1280_v30 = vshrl.u32 %v1275_v62, 16  ;;  %v1301_v51 = vand.u32 65535, %v1271_v0 }
 0x183   : > { %v1071_v16 = vsel %vm1064_vm0, %v1067_v26, %v1070_v6  ;;  %v5546_v61 = vadd.s32 4294967294, %v1179_v12  ;;  %vm1075_vm8 = vcmp.lt.s32.totalorder %v6222_v54, 0  ;;  %v1167_v39 = vadd.s32 %v6463_v5, %v6461_v40 }
 0x184   : > { %v1072_v27 = vsel %vm1061_vm2, nan, %v1071_v16  ;;  %v1282_v11 = vmul.u32 %v1280_v30, %v1277_v29  ;;  %v1387_v15 = vshrl.u32 %v1386_v14, 23  ;;  %v1197_v8 = vsub.s32 4, %v6499_v7 }
 0x185   : > { %vm5547_vm9 = vcmp.lt.s32.totalorder %v5546_v61, 0  ;;  %v1244_v53 = vshrl.u32 %v9928_v42, %v6477_v9  ;;  %v1283_v1 = vmul.u32 %v1279_v19, %v1278_v50  ;;  %5416 = vst [vmem:[%s6197_s6 + $0x18] sm:$0xff] %v1072_v27  ;;  %v1281_v0 = vmul.u32 %v1279_v19, %v1277_v29 }
 0x186   : > { %v1182_v36 = vsel %vm5547_vm9, 0, %v5546_v61  ;;  %v1285_v47 = vshll.u32 %v1282_v11, 16  ;;  %v1304_v17 = vmul.u32 %v1302_v41, %v1277_v29  ;;  %v9943_v4 = vand.u32 2147483647, %v6222_v54 }
 0x187   : > { %v1183_v40 = vsub.s32 32, %v1182_v36  ;;  %v1187_v5 = vsub.s32 4294967266, %v1182_v36  ;;  %v1284_v57 = vmul.u32 %v1280_v30, %v1278_v50  ;;  %v1303_v14 = vmul.u32 %v1301_v51, %v1277_v29 }
 0x188   : > { %vm6557_vm10 = vcmp.le.f32.partialorder %v9943_v4, 0.7853982  ;;  %v1287_v6 = vshll.u32 %v1283_v1, 16  ;;  %vm1289_vm11 = vc.u32 %v1281_v0, %v1285_v47  ;;  %v1291_v12 = vadd.s32 %v1285_v47, %v1281_v0 }
 0x189   : > { %v1305_v9 = vmul.u32 %v1301_v51, %v1278_v50  ;;  %v1184_v62 = vshll.u32 %v1175_v37, %v1182_v36  ;;  %v1185_v26 = vshrl.u32 %v1167_v39, %v1183_v40  ;;  %v1188_v16 = vadd.s32 127, %v1187_v5 }
 0x18a   : > { %v1290_v19 = vsel %vm1289_vm11, 1, %v9929_v60  ;;  %v1286_v61 = vshrl.u32 %v1282_v11, 16  ;;  %vm1293_vm12 = vc.u32 %v1291_v12, %v1287_v6  ;;  %v1307_v4 = vshll.u32 %v1304_v17, 16 }
 0x18b   : > { %v1292_v27 = vadd.s32 %v1290_v19, %v1284_v57  ;;  %v1186_v56 = vor.u32 %v1185_v26, %v1184_v62  ;;  %v1189_v13 = vshll.u32 %v1188_v16, 23  ;;  %v1294_v25 = vsel %vm1293_vm12, 1, %v9929_v60 }
 0x18c   : > { %v1306_v24 = vmul.u32 %v1302_v41, %v1278_v50  ;;  %v1309_v29 = vshll.u32 %v1305_v9, 16  ;;  %vm1311_vm13 = vc.u32 %v1303_v14, %v1307_v4  ;;  %v1313_v45 = vadd.s32 %v1307_v4, %v1303_v14 }
 0x18d   : > { %v1296_v30 = vadd.s32 %v1294_v25, %v1292_v27  ;;  %v1190_v0 = vor.u32 4788187, %v1189_v13  ;;  %v1198_v37 = vsel %vm1075_vm8, %v1197_v8, %v6499_v7  ;;  %v1265_v51 = vsel %vm1263_vm1, %v6504_v59, 2102212464 }
 0x18e   : > { %v1312_v39 = vsel %vm1311_vm13, 1, %v9929_v60  ;;  %v1288_v11 = vshrl.u32 %v1283_v1, 16  ;;  %vm1315_vm14 = vc.u32 %v1313_v45, %v1309_v29  ;;  %v1193_v25 = vcvt.s32.f32 %v1186_v56 }
 0x18f   : > { %v1297_v36 = vadd.s32 %v1296_v30, %v1286_v61  ;;  %v1314_v47 = vadd.s32 %v1312_v39, %v1306_v24  ;;  %v1191_v41 = vand.u32 2147483647, %v1190_v0  ;;  %v1316_v50 = vsel %vm1315_vm14, 1, %v9929_v60 }
 0x190   : > { %v5551_v40 = vadd.s32 4294967169, %v1387_v15  ;;  %v1200_v13 = vsel %vm6557_vm10, 0, %v1198_v37  ;;  %v1264_v7 = vsel %vm1260_vm3, %v1244_v53, %v6494_v28  ;;  %v1308_v8 = vshrl.u32 %v1304_v17, 16 }
 0x191   : > { %v1318_v59 = vadd.s32 %v1316_v50, %v1314_v47  ;;  %v1194_v5 = vmul.f32 %v1193_v25, %v1191_v41  ;;  %v1266_v24 = vsel %vm1262_vm4, %v6496_v55, %v1265_v51  ;;  %v6579_v1 = vadd.s32 %v1297_v36, %v1288_v11  ;;  %v6589_v55 = vpop.permute.xlu2 %298 }
 0x192   : > { %v1393_v56 = vadd.s32 1, %v5551_v40  ;;  %v1310_v57 = vshrl.u32 %v1305_v9, 16  ;;  %v6583_v15 = vadd.f32 %v5914_v58, %v6467_v43  ;;  %v6585_v12 = vadd.s32 %v1313_v45, %v1309_v29 }
 0x193   : > { %v1319_v14 = vadd.s32 %v1318_v59, %v1308_v8  ;;  %v1195_v6 = vxor.u32 2147483648, %v1194_v5  ;;  %v1217_v28 = vadd.s32 3, %v1200_v13  ;;  %v1267_v53 = vsel %vm1261_vm5, %v1264_v7, %v1266_v24 }
 0x194   : > { %vm1394_vm15 = vcmp.gt.s32.totalorder %v1393_v56, 0  ;;  %vm1323_vm0 = vc.u32 %v6579_v1, %v6585_v12  ;;  %v9946_v43 = vand.u32 2147483647, %v6470_v46  ;;  %v255_v19 = vmul.f32 %v5880_v31, %v5854_v18 }
 0x195   : > { %v1320_v17 = vadd.s32 %v1319_v14, %v1310_v57  ;;  %v1395_v62 = vsel %vm1394_vm15, %v1393_v56, 0  ;;  %v1196_v9 = vsel %vm1075_vm8, %v1195_v6, %v1194_v5  ;;  %v1321_v27 = vmul.u32 %v6527_v48, %v1267_v53 }
 0x196   : > { %v1390_v26 = vand.u32 8388607, %v9946_v43  ;;  %v1397_v45 = vand.u32 31, %v1395_v62  ;;  %v1199_v16 = vsel %vm6557_vm10, %v6222_v54, %v1196_v9  ;;  %v358_v30 = vmul.f32 %v5882_v32, %v6589_v55 }
 0x197   : > { %v1324_v33 = vadd.s32 1, %v1320_v17  ;;  %v1201_v61 = vmul.f32 %v1199_v16, %v1199_v16  ;;  %v6607_v29 = vand.u32 3, %v1217_v28  ;;  %v9917_v37 = vand.u32 2147483647, %v6583_v15 }
 0x198   : > { %v6603_v4 = vsub.s32 32, %v1397_v45  ;;  %v1391_v11 = vor.u32 8388608, %v1390_v26  ;;  %v6610_v36 = vshrl.u32 %v1395_v62, 5  ;;  %v1409_v13 = vshll.u32 %v9934_v2, %v1397_v45 }
 0x199   : > { %v1325_v0 = vsel %vm1323_vm0, %v1324_v33, %v1320_v17  ;;  %v1202_v51 = vmul.f32 -0.001358992, %v1201_v61  ;;  %v1209_v10 = vmul.f32 -0.00019511016, %v1201_v61  ;;  %v1403_v8 = vshll.u32 %v9932_v3, %v1397_v45 }
 0x19a   : > { %v1326_v39 = vadd.s32 %v1325_v0, %v1321_v27  ;;  %v1404_v47 = vshrl.u32 %v9933_v63, %v6603_v4  ;;  %v1407_v48 = vshrl.u32 %v9934_v2, %v6603_v4  ;;  %v1410_v41 = vshrl.u32 %v9942_v21, %v6603_v4 }
 0x19b   : > { %v1203_v25 = vadd.f32 0.041655596, %v1202_v51  ;;  %v1210_v50 = vadd.f32 0.008332121, %v1209_v10  ;;  %v1401_v7 = vshrl.u32 %v9932_v3, %v6603_v4  ;;  %v1406_v59 = vshll.u32 %v9933_v63, %v1397_v45 }
 0x19c   : > { %v1327_v40 = vadd.s32 536870912, %v1326_v39  ;;  %v1413_v5 = vshrl.u32 %v9935_v44, %v6603_v4  ;;  %v1411_v14 = vor.u32 %v1410_v41, %v1409_v13  ;;  %v1400_v6 = vshll.u32 %v9928_v42, %v1397_v45 }
 0x19d   : > { %v1204_v24 = vmul.f32 %v1203_v25, %v1201_v61  ;;  %v1211_v56 = vmul.f32 %v1210_v50, %v1201_v61  ;;  %v6628_v28 = vor.u32 %v1404_v47, %v1403_v8  ;;  %v6630_v53 = vor.u32 %v1407_v48, %v1406_v59 }
 0x19e   : > { %v6625_v57 = vshrl.u32 %v1327_v40, 30  ;;  %v1412_v17 = vshll.u32 %v9942_v21, %v1397_v45  ;;  %v6633_v62 = vadd.f32 %v358_v30, %v255_v19  ;;  %vm1220_vm1 = vcmp.eq.s32.totalorder %v6607_v29, 0 }
 0x19f   : > { %v1205_v9 = vadd.f32 -0.4999988, %v1204_v24  ;;  %v1212_v43 = vadd.f32 -0.16666654, %v1211_v56  ;;  %vm1223_vm2 = vcmp.eq.s32.totalorder %v6607_v29, 2  ;;  %v6638_v33 = vor.u32 %v1401_v7, %v1400_v6 }
 0x1a0   : > { %v1329_v26 = vshll.u32 %v6625_v57, 30  ;;  %v1414_v27 = vor.u32 %v1413_v5, %v1412_v17  ;;  %vm1415_vm3 = vcmp.lt.s32.totalorder %v6610_v36, 1  ;;  %vm1418_vm4 = vcmp.lt.s32.totalorder %v6610_v36, 4 }
 0x1a1   : > { %v1206_v0 = vmul.f32 %v1205_v9, %v1201_v61  ;;  %v1213_v51 = vmul.f32 %v1212_v43, %v1201_v61  ;;  %vm1219_vm5 = vcmp.lt.s32.totalorder %v6607_v29, 2  ;;  %v1424_v19 = vsel %vm1418_vm4, %v1411_v14, 920167782 }
 0x1a2   : > { %v6643_v45 = vsub.s32 %v1326_v39, %v1329_v26  ;;  %vm1216_vm6 = vweird.f32 %v6222_v54  ;;  %vm1417_vm7 = vcmp.lt.s32.totalorder %v6610_v36, 3  ;;  %v1427_v30 = vsel %vm1415_vm3, %v6628_v28, %v6630_v53 }
 0x1a3   : > { %v6653_v10 = vshll.u32 %v1391_v11, 8  ;;  %v1541_v61 = vand.u32 2139095040, %v6583_v15  ;;  %v1207_v47 = vadd.f32 1.0, %v1206_v0  ;;  %v1214_v48 = vadd.f32 1.0, %v1213_v51 }
 0x1a4   : > { %vm1331_vm8 = vcmp.lt.s32.totalorder %v6643_v45, 0  ;;  %v1332_v39 = vsub.s32 0, %v6643_v45  ;;  %vm1416_vm9 = vcmp.lt.s32.totalorder %v6610_v36, 2  ;;  %v1423_v41 = vsel %vm1415_vm3, %v6638_v33, %v6628_v28 }
 0x1a5   : > { %v1425_v11 = vsel %vm1417_vm7, %v6630_v53, %v1424_v19  ;;  %v1428_v25 = vsel %vm1418_vm4, %v1414_v27, 1326507024  ;;  %v1215_v50 = vmul.f32 %v1214_v48, %v1199_v16  ;;  %v1224_v40 = vxor.u32 2147483648, %v1207_v47 }
 0x1a6   : > { %v1333_v13 = vsel %vm1331_vm8, %v1332_v39, %v6643_v45  ;;  %v1429_v7 = vsel %vm1417_vm7, %v1411_v14, %v1428_v25  ;;  %v1432_v5 = vand.u32 65535, %v6653_v10  ;;  %v1433_v24 = vshrl.u32 %v6653_v10, 16 }
 0x1a7   : > { %v1334_v8 = vclz %v1333_v13  ;;  %v1430_v59 = vsel %vm1416_vm9, %v1427_v30, %v1429_v7  ;;  %v1221_v56 = vxor.u32 2147483648, %v1215_v50  ;;  %v1426_v6 = vsel %vm1416_vm9, %v1423_v41, %v1425_v11 }
 0x1a8   : > { %v1434_v17 = vand.u32 65535, %v1430_v59  ;;  %v1435_v16 = vshrl.u32 %v1430_v59, 16  ;;  %v1322_v9 = vadd.s32 %v6585_v12, %v6579_v1  ;;  %v1399_v14 = vshrl.u32 %v9928_v42, %v6603_v4 }
 0x1a9   : > { %v5549_v43 = vadd.s32 4294967294, %v1334_v8  ;;  %v1542_v26 = vshrl.u32 %v1541_v61, 23  ;;  %v1222_v27 = vsel %vm1220_vm1, %v1207_v47, %v1221_v56  ;;  %v1225_v0 = vsel %vm1223_vm2, %v1224_v40, %v1215_v50 }
 0x1aa   : > { %v1437_v51 = vmul.u32 %v1435_v16, %v1432_v5  ;;  %v1438_v19 = vmul.u32 %v1434_v17, %v1433_v24  ;;  %v1226_v30 = vsel %vm1219_vm5, %v1222_v27, %v1225_v0  ;;  %vm1230_vm10 = vcmp.lt.s32.totalorder %v6354_v34, 0 }
 0x1ab   : > { %vm5550_vm11 = vcmp.lt.s32.totalorder %v5549_v43, 0  ;;  %v1456_v1 = vand.u32 65535, %v1426_v6  ;;  %v1457_v12 = vshrl.u32 %v1426_v6, 16  ;;  %v1227_v4 = vsel %vm1216_vm6, nan, %v1226_v30 }
 0x1ac   : > { %v1337_v61 = vsel %vm5550_vm11, 0, %v5549_v43  ;;  %v1436_v48 = vmul.u32 %v1434_v17, %v1432_v5  ;;  %v1440_v47 = vshll.u32 %v1437_v51, 16  ;;  %v1352_v11 = vsub.s32 4, %v6625_v57  ;;  %5417 = vst [vmem:[%s6197_s6 + $0x20] sm:$0xff] %v1227_v4 }
 0x1ad   : > { %v1338_v39 = vsub.s32 32, %v1337_v61  ;;  %v1342_v41 = vsub.s32 4294967266, %v1337_v61  ;;  %v1439_v25 = vmul.u32 %v1435_v16, %v1433_v24  ;;  %v1339_v29 = vshll.u32 %v6643_v45, %v1337_v61 }
 0x1ae   : > { %v1442_v50 = vshll.u32 %v1438_v19, 16  ;;  %vm1444_vm12 = vc.u32 %v1436_v48, %v1440_v47  ;;  %v1446_v40 = vadd.s32 %v1440_v47, %v1436_v48  ;;  %v9947_v13 = vand.u32 2147483647, %v6354_v34 }
 0x1af   : > { %v1340_v54 = vshrl.u32 %v1322_v9, %v1338_v39  ;;  %v1343_v8 = vadd.s32 127, %v1342_v41  ;;  %v1445_v59 = vsel %vm1444_vm12, 1, %v9929_v60  ;;  %v1459_v56 = vmul.u32 %v1457_v12, %v1432_v5 }
 0x1b0   : > { %vm6695_vm13 = vcmp.le.f32.partialorder %v9947_v13, 0.7853982  ;;  %v1447_v6 = vadd.s32 %v1445_v59, %v1439_v25  ;;  %vm1448_vm14 = vc.u32 %v1446_v40, %v1442_v50  ;;  %v1458_v17 = vmul.u32 %v1456_v1, %v1432_v5 }
 0x1b1   : > { %v1460_v16 = vmul.u32 %v1456_v1, %v1433_v24  ;;  %v1341_v43 = vor.u32 %v1340_v54, %v1339_v29  ;;  %v1344_v45 = vshll.u32 %v1343_v8, 23  ;;  %v1449_v27 = vsel %vm1448_vm14, 1, %v9929_v60 }
 0x1b2   : > { %v1462_v0 = vshll.u32 %v1459_v56, 16  ;;  %v1420_v30 = vsel %vm1418_vm4, %v6630_v53, 2102212464  ;;  %v1441_v4 = vshrl.u32 %v1437_v51, 16  ;;  %v1451_v61 = vadd.s32 %v1449_v27, %v1447_v6 }
 0x1b3   : > { %v1461_v9 = vmul.u32 %v1457_v12, %v1433_v24  ;;  %v1345_v48 = vor.u32 4788187, %v1344_v45  ;;  %v1464_v47 = vshll.u32 %v1460_v16, 16  ;;  %v1353_v5 = vsel %vm1230_vm10, %v1352_v11, %v6625_v57 }
 0x1b4   : > { %vm1466_vm15 = vc.u32 %v1458_v17, %v1462_v0  ;;  %v1468_v39 = vadd.s32 %v1462_v0, %v1458_v17  ;;  %v1452_v1 = vadd.s32 %v1451_v61, %v1441_v4  ;;  %v5554_v25 = vadd.s32 4294967169, %v1542_v26 }
 0x1b5   : > { %v1467_v41 = vsel %vm1466_vm15, 1, %v9929_v60  ;;  %v1346_v29 = vand.u32 2147483647, %v1345_v48  ;;  %v1348_v50 = vcvt.s32.f32 %v1341_v43  ;;  %v1419_v53 = vsel %vm1415_vm3, %v1399_v14, %v6638_v33 }
 0x1b6   : > { %v1469_v40 = vadd.s32 %v1467_v41, %v1461_v9  ;;  %vm1470_vm0 = vc.u32 %v1468_v39, %v1464_v47  ;;  %v1443_v24 = vshrl.u32 %v1438_v19, 16  ;;  %v1548_v12 = vadd.s32 1, %v5554_v25 }
 0x1b7   : > { %v1471_v51 = vsel %vm1470_vm0, 1, %v9929_v60  ;;  %v1349_v13 = vmul.f32 %v1348_v50, %v1346_v29  ;;  %v1421_v57 = vsel %vm1417_vm7, %v6628_v28, %v1420_v30  ;;  %v1463_v11 = vshrl.u32 %v1459_v56, 16 }
 0x1b8   : > { %v1473_v54 = vadd.s32 %v1471_v51, %v1469_v40  ;;  %v6717_v26 = vmul.f32 %v5908_v52, %v5854_v18  ;;  %v1355_v8 = vsel %vm6695_vm13, 0, %v1353_v5  ;;  %v6721_v59 = vadd.s32 %v1452_v1, %v1443_v24 }
 0x1b9   : > { %vm1549_vm1 = vcmp.gt.s32.totalorder %v1548_v12, 0  ;;  %v1350_v33 = vxor.u32 2147483648, %v1349_v13  ;;  %v1465_v14 = vshrl.u32 %v1460_v16, 16  ;;  %v6725_v17 = vmul.f32 %v5903_v49, %v6589_v55 }
 0x1ba   : > { %v1474_v19 = vadd.s32 %v1473_v54, %v1463_v11  ;;  %v1550_v6 = vsel %vm1549_vm1, %v1548_v12, 0  ;;  %v1422_v28 = vsel %vm1416_vm9, %v1419_v53, %v1421_v57  ;;  %v6729_v56 = vadd.s32 %v1468_v39, %v1464_v47 }
 0x1bb   : > { %v1552_v18 = vand.u32 31, %v1550_v6  ;;  %v6733_v43 = vadd.f32 %v5889_v38, %v6633_v62  ;;  %v1351_v45 = vsel %vm1230_vm10, %v1350_v33, %v1349_v13  ;;  %v1545_v27 = vand.u32 8388607, %v9917_v37 }
 0x1bc   : > { %v1475_v16 = vadd.s32 %v1474_v19, %v1465_v14  ;;  %v1354_v55 = vsel %vm6695_vm13, %v6354_v34, %v1351_v45  ;;  %v1372_v36 = vadd.s32 3, %v1355_v8  ;;  %vm1478_vm2 = vc.u32 %v6721_v59, %v6729_v56 }
 0x1bd   : > { %v6744_v0 = vsub.s32 32, %v1552_v18  ;;  %v1356_v30 = vmul.f32 %v1354_v55, %v1354_v55  ;;  %v1476_v62 = vmul.u32 %v6653_v10, %v1422_v28  ;;  %v1555_v61 = vshll.u32 %v9928_v42, %v1552_v18 }
 0x1be   : > { %v1479_v4 = vadd.s32 1, %v1475_v16  ;;  %v1558_v48 = vshll.u32 %v9932_v3, %v1552_v18  ;;  %v6757_v25 = vshrl.u32 %v1550_v6, 5  ;;  %v1561_v29 = vshll.u32 %v9933_v63, %v1552_v18 }
 0x1bf   : > { %v1556_v9 = vshrl.u32 %v9932_v3, %v6744_v0  ;;  %v1559_v7 = vshrl.u32 %v9933_v63, %v6744_v0  ;;  %v1562_v47 = vshrl.u32 %v9934_v2, %v6744_v0  ;;  %v1357_v39 = vmul.f32 -0.001358992, %v1356_v30 }
 0x1c0   : > { %v1364_v5 = vmul.f32 -0.00019511016, %v1356_v30  ;;  %v1480_v1 = vsel %vm1478_vm2, %v1479_v4, %v1475_v16  ;;  %v1565_v10 = vshrl.u32 %v9942_v21, %v6744_v0  ;;  %v1564_v50 = vshll.u32 %v9934_v2, %v1552_v18 }
 0x1c1   : > { %v1481_v41 = vadd.s32 %v1480_v1, %v1476_v62  ;;  %v1358_v40 = vadd.f32 0.041655596, %v1357_v39  ;;  %v6761_v24 = vor.u32 %v1556_v9, %v1555_v61  ;;  %v6763_v51 = vor.u32 %v1559_v7, %v1558_v48 }
 0x1c2   : > { %v1365_v53 = vadd.f32 0.008332121, %v1364_v5  ;;  %v1566_v13 = vor.u32 %v1565_v10, %v1564_v50  ;;  %v1567_v57 = vshll.u32 %v9942_v21, %v1552_v18  ;;  %v1568_v11 = vshrl.u32 %v9935_v44, %v6744_v0 }
 0x1c3   : > { %v1482_v12 = vadd.s32 536870912, %v1481_v41  ;;  %v1359_v54 = vmul.f32 %v1358_v40, %v1356_v30  ;;  %v6768_v33 = vor.u32 %v1562_v47, %v1561_v29  ;;  %v1693_v14 = vand.u32 2147483647, %v6733_v43 }
 0x1c4   : > { %v1366_v8 = vmul.f32 %v1365_v53, %v1356_v30  ;;  %v1373_v19 = vand.u32 3, %v1372_v36  ;;  %v1546_v28 = vor.u32 8388608, %v1545_v27  ;;  %v1569_v45 = vor.u32 %v1568_v11, %v1567_v57 }
 0x1c5   : > { %v6771_v6 = vshrl.u32 %v1482_v12, 30  ;;  %v1360_v16 = vadd.f32 -0.4999988, %v1359_v54  ;;  %vm1570_vm3 = vcmp.lt.s32.totalorder %v6757_v25, 1  ;;  %vm1573_vm4 = vcmp.lt.s32.totalorder %v6757_v25, 4 }
 0x1c6   : > { %v1367_v62 = vadd.f32 -0.16666654, %v1366_v8  ;;  %vm1572_vm5 = vcmp.lt.s32.totalorder %v6757_v25, 3  ;;  %v1578_v4 = vsel %vm1570_vm3, %v6761_v24, %v6763_v51  ;;  %v1579_v36 = vsel %vm1573_vm4, %v1566_v13, 920167782 }
 0x1c7   : > { %v1484_v18 = vshll.u32 %v6771_v6, 30  ;;  %v1361_v27 = vmul.f32 %v1360_v16, %v1356_v30  ;;  %v1580_v9 = vsel %vm1572_vm5, %v6768_v33, %v1579_v36  ;;  %v1582_v48 = vsel %vm1570_vm3, %v6763_v51, %v6768_v33 }
 0x1c8   : > { %v1368_v61 = vmul.f32 %v1367_v62, %v1356_v30  ;;  %vm1371_vm6 = vweird.f32 %v6354_v34  ;;  %vm1374_vm7 = vcmp.lt.s32.totalorder %v1373_v19, 2  ;;  %v1583_v47 = vsel %vm1573_vm4, %v1569_v45, 1326507024 }
 0x1c9   : > { %v6791_v7 = vsub.s32 %v1481_v41, %v1484_v18  ;;  %v6795_v39 = vshll.u32 %v1546_v28, 8  ;;  %v1362_v30 = vadd.f32 1.0, %v1361_v27  ;;  %vm1571_vm8 = vcmp.lt.s32.totalorder %v6757_v25, 2 }
 0x1ca   : > { %v1369_v5 = vadd.f32 1.0, %v1368_v61  ;;  %v1584_v1 = vsel %vm1572_vm5, %v1566_v13, %v1583_v47  ;;  %v1581_v41 = vsel %vm1571_vm8, %v1578_v4, %v1580_v9  ;;  %vm1375_vm10 = vcmp.eq.s32.totalorder %v1373_v19, 0 }
 0x1cb   : > { %vm1486_vm9 = vcmp.lt.s32.totalorder %v6791_v7, 0  ;;  %v1487_v10 = vsub.s32 0, %v6791_v7  ;;  %v1585_v29 = vsel %vm1571_vm8, %v1582_v48, %v1584_v1  ;;  %v1379_v40 = vxor.u32 2147483648, %v1362_v30 }
 0x1cc   : > { %v1370_v50 = vmul.f32 %v1369_v5, %v1354_v55  ;;  %v1589_v53 = vand.u32 65535, %v1585_v29  ;;  %v1590_v12 = vshrl.u32 %v1585_v29, 16  ;;  %vm1378_vm11 = vcmp.eq.s32.totalorder %v1373_v19, 2 }
 0x1cd   : > { %v1488_v57 = vsel %vm1486_vm9, %v1487_v10, %v6791_v7  ;;  %v1587_v13 = vand.u32 65535, %v6795_v39  ;;  %v1477_v54 = vadd.s32 %v6729_v56, %v6721_v59  ;;  %v1588_v28 = vshrl.u32 %v6795_v39, 16 }
 0x1ce   : > { %v1376_v11 = vxor.u32 2147483648, %v1370_v50  ;;  %v1489_v8 = vclz %v1488_v57  ;;  %v1611_v16 = vand.u32 65535, %v1581_v41  ;;  %v1612_v62 = vshrl.u32 %v1581_v41, 16 }
 0x1cf   : > { %v1592_v45 = vmul.u32 %v1590_v12, %v1587_v13  ;;  %v1696_v55 = vand.u32 2139095040, %v6733_v43  ;;  %v1380_v4 = vsel %vm1378_vm11, %v1379_v40, %v1370_v50  ;;  %v1593_v27 = vmul.u32 %v1589_v53, %v1588_v28 }
 0x1d0   : > { %v1377_v18 = vsel %vm1375_vm10, %v1362_v30, %v1376_v11  ;;  %v5552_v36 = vadd.s32 4294967294, %v1489_v8  ;;  %v1507_v9 = vsub.s32 4, %v6771_v6  ;;  %v1591_v48 = vmul.u32 %v1589_v53, %v1587_v13 }
 0x1d1   : > { %v1381_v61 = vsel %vm1374_vm7, %v1377_v18, %v1380_v4  ;;  %v1595_v47 = vshll.u32 %v1592_v45, 16  ;;  %vm1385_vm12 = vcmp.lt.s32.totalorder %v6470_v46, 0  ;;  %v1594_v56 = vmul.u32 %v1590_v12, %v1588_v28 }
 0x1d2   : > { %v1382_v59 = vsel %vm1371_vm6, nan, %v1381_v61  ;;  %vm5553_vm13 = vcmp.lt.s32.totalorder %v5552_v36, 0  ;;  %v1597_v5 = vshll.u32 %v1593_v27, 16  ;;  %v1614_v10 = vmul.u32 %v1612_v62, %v1587_v13 }
 0x1d3   : > { %v1492_v1 = vsel %vm5553_vm13, 0, %v5552_v36  ;;  %vm1599_vm14 = vc.u32 %v1591_v48, %v1595_v47  ;;  %v1601_v30 = vadd.s32 %v1595_v47, %v1591_v48  ;;  %5418 = vst [vmem:[%s6197_s6 + $0x28] sm:$0xff] %v1382_v59  ;;  %v1613_v50 = vmul.u32 %v1611_v16, %v1587_v13 }
 0x1d4   : > { %v1493_v41 = vsub.s32 32, %v1492_v1  ;;  %v1497_v19 = vsub.s32 4294967266, %v1492_v1  ;;  %v1600_v29 = vsel %vm1599_vm14, 1, %v9929_v60  ;;  %v9950_v40 = vand.u32 2147483647, %v6470_v46 }
 0x1d5   : > { %v1494_v53 = vshll.u32 %v6791_v7, %v1492_v1  ;;  %v1602_v12 = vadd.s32 %v1600_v29, %v1594_v56  ;;  %vm1603_vm0 = vc.u32 %v1601_v30, %v1597_v5  ;;  %v1615_v57 = vmul.u32 %v1611_v16, %v1588_v28 }
 0x1d6   : > { %vm6821_vm15 = vcmp.le.f32.partialorder %v9950_v40, 0.7853982  ;;  %v1495_v11 = vshrl.u32 %v1477_v54, %v1493_v41  ;;  %v1498_v8 = vadd.s32 127, %v1497_v19  ;;  %v1604_v18 = vsel %vm1603_vm0, 1, %v9929_v60 }
 0x1d7   : > { %v1617_v4 = vshll.u32 %v1614_v10, 16  ;;  %v1596_v36 = vshrl.u32 %v1592_v45, 16  ;;  %v1606_v61 = vadd.s32 %v1604_v18, %v1602_v12  ;;  %v1616_v48 = vmul.u32 %v1612_v62, %v1588_v28 }
 0x1d8   : > { %v1619_v13 = vshll.u32 %v1615_v57, 16  ;;  %v1496_v47 = vor.u32 %v1495_v11, %v1494_v53  ;;  %v1499_v59 = vshll.u32 %v1498_v8, 23  ;;  %v1554_v37 = vshrl.u32 %v9928_v42, %v6744_v0  ;;  %v303_v0 = vpop.permute.xlu1 %302 }
 0x1d9   : > { %vm1621_vm1 = vc.u32 %v1613_v50, %v1617_v4  ;;  %v1623_v40 = vadd.s32 %v1617_v4, %v1613_v50  ;;  %v1607_v7 = vadd.s32 %v1606_v61, %v1596_v36  ;;  %v1697_v16 = vshrl.u32 %v1696_v55, 23 }
 0x1da   : > { %v1622_v56 = vsel %vm1621_vm1, 1, %v9929_v60  ;;  %v1500_v54 = vor.u32 4788187, %v1499_v59  ;;  %v1575_v5 = vsel %vm1573_vm4, %v6768_v33, 2102212464  ;;  %v1508_v28 = vsel %vm1385_vm12, %v1507_v9, %v6771_v6 }
 0x1db   : > { %v1624_v45 = vadd.s32 %v1622_v56, %v1616_v48  ;;  %vm1625_vm2 = vc.u32 %v1623_v40, %v1619_v13  ;;  %v1598_v62 = vshrl.u32 %v1593_v27, 16  ;;  %v5557_v30 = vadd.s32 4294967169, %v1697_v16 }
 0x1dc   : > { %v1626_v1 = vsel %vm1625_vm2, 1, %v9929_v60  ;;  %v1501_v41 = vand.u32 2147483647, %v1500_v54  ;;  %v1503_v19 = vcvt.s32.f32 %v1496_v47  ;;  %v1618_v29 = vshrl.u32 %v1614_v10, 16 }
 0x1dd   : > { %v1628_v55 = vadd.s32 %v1626_v1, %v1624_v45  ;;  %v1574_v50 = vsel %vm1570_vm3, %v1554_v37, %v6761_v24  ;;  %v1576_v33 = vsel %vm1572_vm5, %v6763_v51, %v1575_v5  ;;  %v6843_v53 = vadd.s32 %v1607_v7, %v1598_v62 }
 0x1de   : > { %v1703_v6 = vadd.s32 1, %v5557_v30  ;;  %v1504_v27 = vmul.f32 %v1503_v19, %v1501_v41  ;;  %v1510_v9 = vsel %vm6821_vm15, 0, %v1508_v28  ;;  %v1620_v12 = vshrl.u32 %v1615_v57, 16 }
 0x1df   : > { %v1629_v11 = vadd.s32 %v1628_v55, %v1618_v29  ;;  %v360_v10 = vmul.f32 %v5882_v32, %v303_v0  ;;  %v391_v8 = vadd.f32 %v6725_v17, %v6717_v26  ;;  %v6850_v18 = vadd.s32 %v1623_v40, %v1619_v13 }
 0x1e0   : > { %vm1704_vm3 = vcmp.gt.s32.totalorder %v1703_v6, 0  ;;  %v1505_v37 = vxor.u32 2147483648, %v1504_v27  ;;  %v1577_v24 = vsel %vm1571_vm8, %v1574_v50, %v1576_v33  ;;  %v1527_v36 = vadd.s32 3, %v1510_v9 }
 0x1e1   : > { %v1630_v51 = vadd.s32 %v1629_v11, %v1620_v12  ;;  %v1705_v4 = vsel %vm1704_vm3, %v1703_v6, 0  ;;  %vm1633_vm4 = vc.u32 %v6843_v53, %v6850_v18  ;;  %v1700_v57 = vand.u32 8388607, %v1693_v14 }
 0x1e2   : > { %v1707_v61 = vand.u32 31, %v1705_v4  ;;  %v257_v26 = vmul.f32 %v5880_v31, %v5858_v20  ;;  %v258_v17 = vmul.f32 %v5908_v52, %v5858_v20  ;;  %v1506_v25 = vsel %vm1385_vm12, %v1505_v37, %v1504_v27 }
 0x1e3   : > { %v1634_v48 = vadd.s32 1, %v1630_v51  ;;  %v6865_v13 = vadd.f32 %v5914_v58, %v391_v8  ;;  %v1509_v47 = vsel %vm6821_vm15, %v6470_v46, %v1506_v25  ;;  %v1631_v59 = vmul.u32 %v6795_v39, %v1577_v24 }
 0x1e4   : > { %v6871_v40 = vsub.s32 32, %v1707_v61  ;;  %v361_v7 = vmul.f32 %v5903_v49, %v303_v0  ;;  %v6874_v56 = vadd.f32 %v360_v10, %v257_v26  ;;  %v1511_v20 = vmul.f32 %v1509_v47, %v1509_v47 }
 0x1e5   : > { %v1635_v16 = vsel %vm1633_vm4, %v1634_v48, %v1630_v51  ;;  %v6876_v54 = vand.u32 3, %v1527_v36  ;;  %v1701_v45 = vor.u32 8388608, %v1700_v57  ;;  %v6884_v0 = vshrl.u32 %v1705_v4, 5 }
 0x1e6   : > { %v1636_v5 = vadd.s32 %v1635_v16, %v1631_v59  ;;  %v1711_v28 = vshrl.u32 %v9932_v3, %v6871_v40  ;;  %v1512_v62 = vmul.f32 -0.001358992, %v1511_v20  ;;  %v1519_v34 = vmul.f32 -0.00019511016, %v1511_v20 }
 0x1e7   : > { %v1714_v39 = vshrl.u32 %v9933_v63, %v6871_v40  ;;  %v1720_v1 = vshrl.u32 %v9942_v21, %v6871_v40  ;;  %v1717_v41 = vshrl.u32 %v9934_v2, %v6871_v40  ;;  %v1719_v19 = vshll.u32 %v9934_v2, %v1707_v61 }
 0x1e8   : > { %v1637_v30 = vadd.s32 536870912, %v1636_v5  ;;  %v1513_v29 = vadd.f32 0.041655596, %v1512_v62  ;;  %v1520_v55 = vadd.f32 0.008332121, %v1519_v34  ;;  %v1710_v50 = vshll.u32 %v9928_v42, %v1707_v61 }
 0x1e9   : > { %v1713_v33 = vshll.u32 %v9932_v3, %v1707_v61  ;;  %v1716_v27 = vshll.u32 %v9933_v63, %v1707_v61  ;;  %v1721_v9 = vor.u32 %v1720_v1, %v1719_v19  ;;  %v1723_v12 = vshrl.u32 %v9935_v44, %v6871_v40 }
 0x1ea   : > { %v6891_v6 = vshrl.u32 %v1637_v30, 30  ;;  %v1514_v11 = vmul.f32 %v1513_v29, %v1511_v20  ;;  %v1521_v10 = vmul.f32 %v1520_v55, %v1511_v20  ;;  %v6896_v8 = vor.u32 %v1711_v28, %v1710_v50 }
 0x1eb   : > { %v6898_v37 = vor.u32 %v1714_v39, %v1713_v33  ;;  %v6900_v24 = vadd.f32 %v361_v7, %v258_v17  ;;  %v1718_v4 = vor.u32 %v1717_v41, %v1716_v27  ;;  %v1722_v36 = vshll.u32 %v9942_v21, %v1707_v61 }
 0x1ec   : > { %v1639_v51 = vshll.u32 %v6891_v6, 30  ;;  %v1515_v57 = vadd.f32 -0.4999988, %v1514_v11  ;;  %v1522_v26 = vadd.f32 -0.16666654, %v1521_v10  ;;  %vm1728_vm5 = vcmp.lt.s32.totalorder %v6884_v0, 4 }
 0x1ed   : > { %v6905_v25 = vshll.u32 %v1701_v45, 8  ;;  %vm1530_vm6 = vcmp.eq.s32.totalorder %v6876_v54, 0  ;;  %v1724_v59 = vor.u32 %v1723_v12, %v1722_v36  ;;  %vm1725_vm7 = vcmp.lt.s32.totalorder %v6884_v0, 1 }
 0x1ee   : > { %v6908_v48 = vsub.s32 %v1636_v5, %v1639_v51  ;;  %v1734_v17 = vsel %vm1728_vm5, %v1721_v9, 920167782  ;;  %v1516_v7 = vmul.f32 %v1515_v57, %v1511_v20  ;;  %v1523_v16 = vmul.f32 %v1522_v26, %v1511_v20 }
 0x1ef   : > { %vm1529_vm8 = vcmp.lt.s32.totalorder %v6876_v54, 2  ;;  %vm1727_vm9 = vcmp.lt.s32.totalorder %v6884_v0, 3  ;;  %v1733_v61 = vsel %vm1725_vm7, %v6896_v8, %v6898_v37  ;;  %vm1526_vm10 = vweird.f32 %v6470_v46 }
 0x1f0   : > { %vm1641_vm11 = vcmp.lt.s32.totalorder %v6908_v48, 0  ;;  %v1642_v5 = vsub.s32 0, %v6908_v48  ;;  %v1735_v45 = vsel %vm1727_vm9, %v1718_v4, %v1734_v17  ;;  %v1851_v20 = vand.u32 2139095040, %v6865_v13 }
 0x1f1   : > { %v1517_v28 = vadd.f32 1.0, %v1516_v7  ;;  %v1524_v62 = vadd.f32 1.0, %v1523_v16  ;;  %vm1726_vm12 = vcmp.lt.s32.totalorder %v6884_v0, 2  ;;  %v1737_v34 = vsel %vm1725_vm7, %v6898_v37, %v1718_v4 }
 0x1f2   : > { %vm1533_vm13 = vcmp.eq.s32.totalorder %v6876_v54, 2  ;;  %v1643_v39 = vsel %vm1641_vm11, %v1642_v5, %v6908_v48  ;;  %v1736_v1 = vsel %vm1726_vm12, %v1733_v61, %v1735_v45  ;;  %v1738_v30 = vsel %vm1728_vm5, %v1724_v59, 1326507024 }
 0x1f3   : > { %v1525_v41 = vmul.f32 %v1524_v62, %v1509_v47  ;;  %v1534_v19 = vxor.u32 2147483648, %v1517_v28  ;;  %v1644_v29 = vclz %v1643_v39  ;;  %v1739_v55 = vsel %vm1727_vm9, %v1721_v9, %v1738_v30 }
 0x1f4   : > { %v1632_v50 = vadd.s32 %v6850_v18, %v6843_v53  ;;  %v1740_v33 = vsel %vm1726_vm12, %v1737_v34, %v1739_v55  ;;  %v1742_v27 = vand.u32 65535, %v6905_v25  ;;  %v1743_v12 = vshrl.u32 %v6905_v25, 16 }
 0x1f5   : > { %v1531_v11 = vxor.u32 2147483648, %v1525_v41  ;;  %v5555_v10 = vadd.s32 4294967294, %v1644_v29  ;;  %v1744_v51 = vand.u32 65535, %v1740_v33  ;;  %v1852_v36 = vshrl.u32 %v1851_v20, 23 }
 0x1f6   : > { %v1662_v47 = vsub.s32 4, %v6891_v6  ;;  %v1709_v57 = vshrl.u32 %v9928_v42, %v6871_v40  ;;  %v1745_v9 = vshrl.u32 %v1740_v33, 16  ;;  %v1766_v26 = vand.u32 65535, %v1736_v1 }
 0x1f7   : > { %v1532_v53 = vsel %vm1530_vm6, %v1517_v28, %v1531_v11  ;;  %v1535_v18 = vsel %vm1533_vm13, %v1534_v19, %v1525_v41  ;;  %vm5556_vm14 = vcmp.lt.s32.totalorder %v5555_v10, 0  ;;  %v1767_v59 = vshrl.u32 %v1736_v1, 16 }
 0x1f8   : > { %v1536_v17 = vsel %vm1529_vm8, %v1532_v53, %v1535_v18  ;;  %v1647_v7 = vsel %vm5556_vm14, 0, %v5555_v10  ;;  %v1747_v16 = vmul.u32 %v1745_v9, %v1742_v27  ;;  %v1748_v61 = vmul.u32 %v1744_v51, %v1743_v12 }
 0x1f9   : > { %v1537_v40 = vsel %vm1526_vm10, nan, %v1536_v17  ;;  %v1648_v5 = vsub.s32 32, %v1647_v7  ;;  %v1652_v45 = vsub.s32 4294967266, %v1647_v7  ;;  %v1730_v20 = vsel %vm1728_vm5, %v1718_v4, 2102212464 }
 0x1fa   : > { %v1746_v28 = vmul.u32 %v1744_v51, %v1742_v27  ;;  %v1750_v62 = vshll.u32 %v1747_v16, 16  ;;  %v1768_v34 = vmul.u32 %v1766_v26, %v1742_v27  ;;  %v1770_v39 = vmul.u32 %v1766_v26, %v1743_v12  ;;  %5419 = vst [vmem:[%s6197_s6 + $0x30] sm:$0xff] %v1537_v40 }
 0x1fb   : > { %vm1540_vm15 = vcmp.lt.s32.totalorder %v6583_v15, 0  ;;  %v1649_v54 = vshll.u32 %v6908_v48, %v1647_v7  ;;  %v1650_v1 = vshrl.u32 %v1632_v50, %v1648_v5  ;;  %v1653_v30 = vadd.s32 127, %v1652_v45 }
 0x1fc   : > { %v1769_v41 = vmul.u32 %v1767_v59, %v1742_v27  ;;  %v1749_v19 = vmul.u32 %v1745_v9, %v1743_v12  ;;  %v1752_v46 = vshll.u32 %v1748_v61, 16  ;;  %vm1754_vm0 = vc.u32 %v1746_v28, %v1750_v62 }
 0x1fd   : > { %v1756_v29 = vadd.s32 %v1750_v62, %v1746_v28  ;;  %v1651_v55 = vor.u32 %v1650_v1, %v1649_v54  ;;  %v1654_v33 = vshll.u32 %v1653_v30, 23  ;;  %v1755_v4 = vsel %vm1754_vm0, 1, %v9929_v60 }
 0x1fe   : > { %v1772_v11 = vshll.u32 %v1769_v41, 16  ;;  %v1751_v10 = vshrl.u32 %v1747_v16, 16  ;;  %v1757_v51 = vadd.s32 %v1755_v4, %v1749_v19  ;;  %v1771_v26 = vmul.u32 %v1767_v59, %v1743_v12 }
 0x1ff   : > { %vm1758_vm1 = vc.u32 %v1756_v29, %v1752_v46  ;;  %v1655_v53 = vor.u32 4788187, %v1654_v33  ;;  %v1774_v48 = vshll.u32 %v1770_v39, 16  ;;  %v5560_v17 = vadd.s32 4294967169, %v1852_v36 }
 0x200   : > { %v1759_v18 = vsel %vm1758_vm1, 1, %v9929_v60  ;;  %vm1776_vm2 = vc.u32 %v1768_v34, %v1772_v11  ;;  %v1778_v9 = vadd.s32 %v1772_v11, %v1768_v34  ;;  %v1658_v40 = vcvt.s32.f32 %v1651_v55 }
 0x201   : > { %v1761_v50 = vadd.s32 %v1759_v18, %v1757_v51  ;;  %v1777_v27 = vsel %vm1776_vm2, 1, %v9929_v60  ;;  %v1656_v7 = vand.u32 2147483647, %v1655_v53  ;;  %v1729_v5 = vsel %vm1725_vm7, %v1709_v57, %v6896_v8 }
 0x202   : > { %v1779_v16 = vadd.s32 %v1777_v27, %v1771_v26  ;;  %v1731_v12 = vsel %vm1727_vm9, %v6898_v37, %v1730_v20  ;;  %vm1780_vm3 = vc.u32 %v1778_v9, %v1774_v48  ;;  %v1858_v45 = vadd.s32 1, %v5560_v17 }
 0x203   : > { %v1762_v59 = vadd.s32 %v1761_v50, %v1751_v10  ;;  %v1659_v28 = vmul.f32 %v1658_v40, %v1656_v7  ;;  %v1753_v62 = vshrl.u32 %v1748_v61, 16  ;;  %v1781_v54 = vsel %vm1780_vm3, 1, %v9929_v60 }
 0x204   : > { %v1848_v36 = vand.u32 2147483647, %v6865_v13  ;;  %v1663_v34 = vsel %vm1540_vm15, %v1662_v47, %v6891_v6  ;;  %v1773_v1 = vshrl.u32 %v1769_v41, 16  ;;  %v1783_v8 = vadd.s32 %v1781_v54, %v1779_v16 }
 0x205   : > { %vm1859_vm4 = vcmp.gt.s32.totalorder %v1858_v45, 0  ;;  %v1660_v57 = vxor.u32 2147483648, %v1659_v28  ;;  %v1732_v37 = vsel %vm1726_vm12, %v1729_v5, %v1731_v12  ;;  %v6975_v20 = vadd.s32 %v1762_v59, %v1753_v62 }
 0x206   : > { %v1860_v30 = vsel %vm1859_vm4, %v1858_v45, 0  ;;  %v6979_v61 = vadd.f32 %v5889_v38, %v6874_v56  ;;  %v9953_v19 = vand.u32 2147483647, %v6583_v15  ;;  %v1775_v6 = vshrl.u32 %v1770_v39, 16 }
 0x207   : > { %v1784_v47 = vadd.s32 %v1783_v8, %v1773_v1  ;;  %v1661_v41 = vsel %vm1540_vm15, %v1660_v57, %v1659_v28  ;;  %v6989_v0 = vadd.s32 %v1778_v9, %v1774_v48  ;;  %v1855_v29 = vand.u32 8388607, %v1848_v36 }
 0x208   : > { %vm6983_vm5 = vcmp.le.f32.partialorder %v9953_v19, 0.7853982  ;;  %v1862_v55 = vand.u32 31, %v1860_v30  ;;  %v1786_v39 = vmul.u32 %v6905_v25, %v1732_v37  ;;  %v7001_v10 = vshrl.u32 %v1860_v30, 5 }
 0x209   : > { %v1664_v56 = vsel %vm6983_vm5, %v6583_v15, %v1661_v41  ;;  %v1665_v33 = vsel %vm6983_vm5, 0, %v1663_v34  ;;  %v1785_v4 = vadd.s32 %v1784_v47, %v1775_v6  ;;  %vm1788_vm6 = vc.u32 %v6975_v20, %v6989_v0 }
 0x20a   : > { %v1666_v11 = vmul.f32 %v1664_v56, %v1664_v56  ;;  %v7003_v51 = vsub.s32 32, %v1862_v55  ;;  %v1865_v53 = vshll.u32 %v9928_v42, %v1862_v55  ;;  %v1868_v18 = vshll.u32 %v9932_v3, %v1862_v55 }
 0x20b   : > { %v1789_v26 = vadd.s32 1, %v1785_v4  ;;  %v1871_v48 = vshll.u32 %v9933_v63, %v1862_v55  ;;  %v1874_v9 = vshll.u32 %v9934_v2, %v1862_v55  ;;  %v1877_v45 = vshll.u32 %v9942_v21, %v1862_v55 }
 0x20c   : > { %v1667_v50 = vmul.f32 -0.001358992, %v1666_v11  ;;  %v1674_v27 = vmul.f32 -0.00019511016, %v1666_v11  ;;  %v1866_v25 = vshrl.u32 %v9932_v3, %v7003_v51  ;;  %v1869_v7 = vshrl.u32 %v9933_v63, %v7003_v51 }
 0x20d   : > { %v1790_v17 = vsel %vm1788_vm6, %v1789_v26, %v1785_v4  ;;  %v1872_v40 = vshrl.u32 %v9934_v2, %v7003_v51  ;;  %v1875_v5 = vshrl.u32 %v9942_v21, %v7003_v51  ;;  %v1878_v34 = vshrl.u32 %v9935_v44, %v7003_v51 }
 0x20e   : > { %v1668_v16 = vadd.f32 0.041655596, %v1667_v50  ;;  %v1675_v12 = vadd.f32 0.008332121, %v1674_v27  ;;  %v1791_v59 = vadd.s32 %v1790_v17, %v1786_v39  ;;  %v7018_v28 = vor.u32 %v1866_v25, %v1865_v53 }
 0x20f   : > { %v7020_v62 = vor.u32 %v1869_v7, %v1868_v18  ;;  %v1876_v54 = vor.u32 %v1875_v5, %v1874_v9  ;;  %v1873_v37 = vor.u32 %v1872_v40, %v1871_v48  ;;  %v1682_v30 = vadd.s32 3, %v1665_v33 }
 0x210   : > { %v1669_v1 = vmul.f32 %v1668_v16, %v1666_v11  ;;  %v1676_v8 = vmul.f32 %v1675_v12, %v1666_v11  ;;  %v1792_v57 = vadd.s32 536870912, %v1791_v59  ;;  %v1856_v19 = vor.u32 8388608, %v1855_v29 }
 0x211   : > { %v1879_v46 = vor.u32 %v1878_v34, %v1877_v45  ;;  %vm1880_vm7 = vcmp.lt.s32.totalorder %v7001_v10, 1  ;;  %vm1883_vm8 = vcmp.lt.s32.totalorder %v7001_v10, 4  ;;  %vm1882_vm9 = vcmp.lt.s32.totalorder %v7001_v10, 3 }
 0x212   : > { %v1670_v6 = vadd.f32 -0.4999988, %v1669_v1  ;;  %v1677_v47 = vadd.f32 -0.16666654, %v1676_v8  ;;  %v7025_v41 = vshrl.u32 %v1792_v57, 30  ;;  %v1888_v55 = vsel %vm1880_vm7, %v7018_v28, %v7020_v62 }
 0x213   : > { %v1889_v33 = vsel %vm1883_vm8, %v1876_v54, 920167782  ;;  %v1893_v29 = vsel %vm1883_vm8, %v1879_v46, 1326507024  ;;  %v1892_v53 = vsel %vm1880_vm7, %v7020_v62, %v1873_v37  ;;  %v1683_v18 = vand.u32 3, %v1682_v30 }
 0x214   : > { %v1671_v4 = vmul.f32 %v1670_v6, %v1666_v11  ;;  %v1678_v39 = vmul.f32 %v1677_v47, %v1666_v11  ;;  %v1794_v26 = vshll.u32 %v7025_v41, 30  ;;  %v1890_v48 = vsel %vm1882_vm9, %v1873_v37, %v1889_v33 }
 0x215   : > { %v1894_v50 = vsel %vm1882_vm9, %v1876_v54, %v1893_v29  ;;  %v7045_v27 = vshll.u32 %v1856_v19, 8  ;;  %vm1881_vm10 = vcmp.lt.s32.totalorder %v7001_v10, 2  ;;  %v7050_v11 = vadd.f32 %v5914_v58, %v6900_v24 }
 0x216   : > { %v1672_v25 = vadd.f32 1.0, %v1671_v4  ;;  %v1679_v9 = vadd.f32 1.0, %v1678_v39  ;;  %v1795_v17 = vsub.s32 %v1791_v59, %v1794_v26  ;;  %vm1681_vm11 = vweird.f32 %v6583_v15 }
 0x217   : > { %v1891_v7 = vsel %vm1881_vm10, %v1888_v55, %v1890_v48  ;;  %v1895_v40 = vsel %vm1881_vm10, %v1892_v53, %v1894_v50  ;;  %vm1684_vm13 = vcmp.lt.s32.totalorder %v1683_v18, 2  ;;  %v1897_v59 = vand.u32 65535, %v7045_v27 }
 0x218   : > { %v1680_v5 = vmul.f32 %v1679_v9, %v1664_v56  ;;  %v1689_v16 = vxor.u32 2147483648, %v1672_v25  ;;  %vm1796_vm12 = vcmp.lt.s32.totalorder %v1795_v17, 0  ;;  %v1797_v12 = vsub.s32 0, %v1795_v17 }
 0x219   : > { %v1899_v45 = vand.u32 65535, %v1895_v40  ;;  %v1900_v54 = vshrl.u32 %v1895_v40, 16  ;;  %vm1685_vm14 = vcmp.eq.s32.totalorder %v1683_v18, 0  ;;  %v1898_v1 = vshrl.u32 %v7045_v27, 16 }
 0x21a   : > { %v1686_v24 = vxor.u32 2147483648, %v1680_v5  ;;  %v1798_v34 = vsel %vm1796_vm12, %v1797_v12, %v1795_v17  ;;  %vm1688_vm15 = vcmp.eq.s32.totalorder %v1683_v18, 2  ;;  %v1922_v30 = vshrl.u32 %v1891_v7, 16 }
 0x21b   : > { %v1799_v8 = vclz %v1798_v34  ;;  %v1902_v57 = vmul.u32 %v1900_v54, %v1897_v59  ;;  %v1690_v56 = vsel %vm1688_vm15, %v1689_v16, %v1680_v5  ;;  %v1903_v46 = vmul.u32 %v1899_v45, %v1898_v1 }
 0x21c   : > { %v1687_v19 = vsel %vm1685_vm14, %v1672_v25, %v1686_v24  ;;  %v1921_v6 = vand.u32 65535, %v1891_v7  ;;  %v1787_v55 = vadd.s32 %v6989_v0, %v6975_v20  ;;  %v1864_v29 = vshrl.u32 %v9928_v42, %v7003_v51 }
 0x21d   : > { %v1691_v47 = vsel %vm1684_vm13, %v1687_v19, %v1690_v56  ;;  %v5558_v33 = vadd.s32 4294967294, %v1799_v8  ;;  %v1885_v39 = vsel %vm1883_vm8, %v1873_v37, 2102212464  ;;  %v1901_v26 = vmul.u32 %v1899_v45, %v1897_v59 }
 0x21e   : > { %v1692_v4 = vsel %vm1681_vm11, nan, %v1691_v47  ;;  %v1905_v53 = vshll.u32 %v1902_v57, 16  ;;  %v1904_v48 = vmul.u32 %v1900_v54, %v1898_v1  ;;  %v1907_v50 = vshll.u32 %v1903_v46, 16 }
 0x21f   : > { %vm5559_vm0 = vcmp.lt.s32.totalorder %v5558_v33, 0  ;;  %v1924_v18 = vmul.u32 %v1922_v30, %v1897_v59  ;;  %5420 = vst [vmem:[%s6197_s6 + $0x38] sm:$0xff] %v1692_v4  ;;  %v1925_v0 = vmul.u32 %v1921_v6, %v1898_v1  ;;  %v1923_v15 = vmul.u32 %v1921_v6, %v1897_v59 }
 0x220   : > { %v1802_v25 = vsel %vm5559_vm0, 0, %v5558_v33  ;;  %vm1909_vm1 = vc.u32 %v1901_v26, %v1905_v53  ;;  %v1911_v20 = vadd.s32 %v1905_v53, %v1901_v26  ;;  %v1906_v40 = vshrl.u32 %v1902_v57, 16 }
 0x221   : > { %v1803_v9 = vsub.s32 32, %v1802_v25  ;;  %v1807_v7 = vsub.s32 4294967266, %v1802_v25  ;;  %v1910_v51 = vsel %vm1909_vm1, 1, %v9929_v60  ;;  %v1927_v37 = vshll.u32 %v1924_v18, 16 }
 0x222   : > { %v1912_v5 = vadd.s32 %v1910_v51, %v1904_v48  ;;  %vm1913_vm2 = vc.u32 %v1911_v20, %v1907_v50  ;;  %v1804_v16 = vshll.u32 %v1795_v17, %v1802_v25  ;;  %v1926_v34 = vmul.u32 %v1922_v30, %v1898_v1 }
 0x223   : > { %v1805_v12 = vshrl.u32 %v1787_v55, %v1803_v9  ;;  %v1808_v45 = vadd.s32 127, %v1807_v7  ;;  %v1914_v54 = vsel %vm1913_vm2, 1, %v9929_v60  ;;  %v1929_v8 = vshll.u32 %v1925_v0, 16 }
 0x224   : > { %v1916_v24 = vadd.s32 %v1914_v54, %v1912_v5  ;;  %vm1931_vm3 = vc.u32 %v1923_v15, %v1927_v37  ;;  %v1933_v33 = vadd.s32 %v1927_v37, %v1923_v15  ;;  %v1817_v59 = vsub.s32 4, %v7025_v41 }
 0x225   : > { %v1806_v19 = vor.u32 %v1805_v12, %v1804_v16  ;;  %v1809_v56 = vshll.u32 %v1808_v45, 23  ;;  %v1932_v47 = vsel %vm1931_vm3, 1, %v9929_v60  ;;  %v2003_v4 = vand.u32 2147483647, %v6979_v61 }
 0x226   : > { %v1917_v57 = vadd.s32 %v1916_v24, %v1906_v40  ;;  %v1934_v6 = vadd.s32 %v1932_v47, %v1926_v34  ;;  %vm1695_vm4 = vcmp.lt.s32.totalorder %v6733_v43, 0  ;;  %v1884_v1 = vsel %vm1880_vm7, %v1864_v29, %v7018_v28 }
 0x227   : > { %v1810_v17 = vor.u32 4788187, %v1809_v56  ;;  %vm1935_vm5 = vc.u32 %v1933_v33, %v1929_v8  ;;  %v1886_v30 = vsel %vm1882_vm9, %v7020_v62, %v1885_v39  ;;  %v1908_v55 = vshrl.u32 %v1903_v46, 16 }
 0x228   : > { %v1936_v26 = vsel %vm1935_vm5, 1, %v9929_v60  ;;  %v2006_v53 = vand.u32 2139095040, %v6979_v61  ;;  %v1813_v50 = vcvt.s32.f32 %v1806_v19  ;;  %v1928_v25 = vshrl.u32 %v1924_v18, 16 }
 0x229   : > { %v1811_v48 = vand.u32 2147483647, %v1810_v17  ;;  %v1938_v20 = vadd.s32 %v1936_v26, %v1934_v6  ;;  %v1818_v9 = vsel %vm1695_vm4, %v1817_v59, %v7025_v41  ;;  %v1918_v7 = vadd.s32 %v1917_v57, %v1908_v55 }
 0x22a   : > { %v2007_v28 = vshrl.u32 %v2006_v53, 23  ;;  %v2010_v29 = vand.u32 8388607, %v2003_v4  ;;  %v1930_v62 = vshrl.u32 %v1925_v0, 16  ;;  %vm7090_vm6 = vcmp.le.f32.partialorder %v1693_v14, 0.7853982  ;;  %v307_v0 = vpop.permute.xlu2 %306 }
 0x22b   : > { %v1814_v51 = vmul.f32 %v1813_v50, %v1811_v48  ;;  %v1939_v46 = vadd.s32 %v1938_v20, %v1928_v25  ;;  %v1937_v18 = vadd.s32 %v1933_v33, %v1929_v8  ;;  %v2161_v40 = vand.u32 2139095040, %v7050_v11 }
 0x22c   : > { %v5563_v15 = vadd.s32 4294967169, %v2007_v28  ;;  %v1820_v41 = vsel %vm7090_vm6, 0, %v1818_v9  ;;  %v1887_v37 = vsel %vm1881_vm10, %v1884_v1, %v1886_v30  ;;  %v2011_v12 = vor.u32 8388608, %v2010_v29 }
 0x22d   : > { %v1815_v5 = vxor.u32 2147483648, %v1814_v51  ;;  %v1940_v16 = vadd.s32 %v1939_v46, %v1930_v62  ;;  %vm1943_vm7 = vc.u32 %v1918_v7, %v1937_v18  ;;  %v2162_v24 = vshrl.u32 %v2161_v40, 23 }
 0x22e   : > { %v2013_v45 = vadd.s32 1, %v5563_v15  ;;  %v1837_v8 = vadd.s32 3, %v1820_v41  ;;  %v1941_v19 = vmul.u32 %v7045_v27, %v1887_v37  ;;  %v362_v10 = vmul.f32 %v5882_v32, %v307_v0 }
 0x22f   : > { %v1816_v14 = vsel %vm1695_vm4, %v1815_v5, %v1814_v51  ;;  %v1944_v54 = vadd.s32 1, %v1940_v16  ;;  %v7110_v6 = vshll.u32 %v2011_v12, 8  ;;  %v259_v17 = vmul.f32 %v5880_v31, %v6054_v35 }
 0x230   : > { %v7104_v34 = vsel %vm7090_vm6, %v6733_v43, %v1816_v14  ;;  %vm2014_vm8 = vcmp.gt.s32.totalorder %v2013_v45, 0  ;;  %v5566_v55 = vadd.s32 4294967169, %v2162_v24  ;;  %v7116_v27 = vmul.f32 %v5908_v52, %v6054_v35 }
 0x231   : > { %v1821_v56 = vmul.f32 %v7104_v34, %v7104_v34  ;;  %v1945_v47 = vsel %vm1943_vm7, %v1944_v54, %v1940_v16  ;;  %v2015_v33 = vsel %vm2014_vm8, %v2013_v45, 0  ;;  %v7119_v26 = vmul.f32 %v5903_v49, %v307_v0 }
 0x232   : > { %v1946_v59 = vadd.s32 %v1945_v47, %v1941_v19  ;;  %v2017_v57 = vand.u32 31, %v2015_v33  ;;  %v7121_v53 = vand.u32 3, %v1837_v8  ;;  %v7123_v50 = vadd.f32 %v362_v10, %v259_v17 }
 0x233   : > { %v1822_v1 = vmul.f32 -0.001358992, %v1821_v56  ;;  %v1829_v30 = vmul.f32 -0.00019511016, %v1821_v56  ;;  %vm1850_vm9 = vcmp.lt.s32.totalorder %v6865_v13, 0  ;;  %v7126_v28 = vadd.s32 %v1937_v18, %v1918_v7 }
 0x234   : > { %v1947_v48 = vadd.s32 536870912, %v1946_v59  ;;  %v2018_v9 = vsub.s32 32, %v2017_v57  ;;  %v7129_v51 = vand.u32 65535, %v7110_v6  ;;  %v7132_v35 = vshrl.u32 %v7110_v6, 16 }
 0x235   : > { %v1823_v25 = vadd.f32 0.041655596, %v1822_v1  ;;  %v1830_v20 = vadd.f32 0.008332121, %v1829_v30  ;;  %v7134_v39 = vshrl.u32 %v2015_v33, 5  ;;  %v7136_v15 = vadd.s32 1, %v5566_v55 }
 0x236   : > { %v1948_v29 = vshrl.u32 %v1947_v48, 30  ;;  %vm1843_vm10 = vcmp.eq.s32.totalorder %v7121_v53, 2  ;;  %v2020_v5 = vshll.u32 %v9928_v42, %v2017_v57  ;;  %v2023_v7 = vshll.u32 %v9932_v3, %v2017_v57 }
 0x237   : > { %v1824_v62 = vmul.f32 %v1823_v25, %v1821_v56  ;;  %v1831_v46 = vmul.f32 %v1830_v20, %v1821_v56  ;;  %v2026_v18 = vshll.u32 %v9933_v63, %v2017_v57  ;;  %v2021_v16 = vshrl.u32 %v9932_v3, %v2018_v9 }
 0x238   : > { %v1949_v40 = vshll.u32 %v1948_v29, 30  ;;  %v2027_v0 = vshrl.u32 %v9934_v2, %v2018_v9  ;;  %vm1840_vm11 = vcmp.eq.s32.totalorder %v7121_v53, 0  ;;  %v2024_v45 = vshrl.u32 %v9933_v63, %v2018_v9 }
 0x239   : > { %v1825_v41 = vadd.f32 -0.4999988, %v1824_v62  ;;  %v1832_v37 = vadd.f32 -0.16666654, %v1831_v46  ;;  %v2030_v14 = vshrl.u32 %v9942_v21, %v2018_v9  ;;  %v2033_v54 = vshrl.u32 %v9935_v44, %v2018_v9 }
 0x23a   : > { %v7145_v12 = vsub.s32 %v1946_v59, %v1949_v40  ;;  %vm1839_vm12 = vcmp.lt.s32.totalorder %v7121_v53, 2  ;;  %v1972_v19 = vsub.s32 4, %v1948_v29  ;;  %v2029_v10 = vshll.u32 %v9934_v2, %v2017_v57 }
 0x23b   : > { %v1826_v24 = vmul.f32 %v1825_v41, %v1821_v56  ;;  %v1833_v8 = vmul.f32 %v1832_v37, %v1821_v56  ;;  %vm1836_vm13 = vweird.f32 %v6733_v43  ;;  %v2019_v33 = vshrl.u32 %v9928_v42, %v2018_v9 }
 0x23c   : > { %vm1951_vm14 = vcmp.lt.s32.totalorder %v7145_v12, 0  ;;  %v1952_v47 = vsub.s32 0, %v7145_v12  ;;  %v2032_v59 = vshll.u32 %v9942_v21, %v2017_v57  ;;  %v2022_v30 = vor.u32 %v2021_v16, %v2020_v5 }
 0x23d   : > { %v1827_v17 = vadd.f32 1.0, %v1826_v24  ;;  %v1834_v1 = vadd.f32 1.0, %v1833_v8  ;;  %v2028_v55 = vor.u32 %v2027_v0, %v2026_v18  ;;  %v2025_v48 = vor.u32 %v2024_v45, %v2023_v7 }
 0x23e   : > { %v1953_v56 = vsel %vm1951_vm14, %v1952_v47, %v7145_v12  ;;  %v2031_v25 = vor.u32 %v2030_v14, %v2029_v10  ;;  %v2034_v20 = vor.u32 %v2033_v54, %v2032_v59  ;;  %vm7161_vm15 = vcmp.le.f32.partialorder %v1848_v36, 0.7853982 }
 0x23f   : > { %v1835_v62 = vmul.f32 %v1834_v1, %v7104_v34  ;;  %v1844_v46 = vxor.u32 2147483648, %v1827_v17  ;;  %v1954_v9 = vclz %v1953_v56  ;;  %v7167_v57 = vsel %vm1850_vm9, %v1972_v19, %v1948_v29 }
 0x240   : > { %vm2035_vm0 = vcmp.lt.s32.totalorder %v7134_v39, 1  ;;  %vm2036_vm1 = vcmp.lt.s32.totalorder %v7134_v39, 2  ;;  %vm2037_vm2 = vcmp.lt.s32.totalorder %v7134_v39, 3  ;;  %vm2038_vm3 = vcmp.lt.s32.totalorder %v7134_v39, 4 }
 0x241   : > { %v1841_v34 = vxor.u32 2147483648, %v1835_v62  ;;  %v1845_v36 = vsel %vm1843_vm10, %v1844_v46, %v1835_v62  ;;  %v5561_v5 = vadd.s32 4294967294, %v1954_v9  ;;  %v2040_v7 = vsel %vm2038_vm3, %v2028_v55, 2102212464 }
 0x242   : > { %v2043_v18 = vsel %vm2035_vm0, %v2022_v30, %v2025_v48  ;;  %v2044_v41 = vsel %vm2038_vm3, %v2031_v25, 920167782  ;;  %v2047_v29 = vsel %vm2035_vm0, %v2025_v48, %v2028_v55  ;;  %v2048_v37 = vsel %vm2038_vm3, %v2034_v20, 1326507024 }
 0x243   : > { %v1842_v16 = vsel %vm1840_vm11, %v1827_v17, %v1841_v34  ;;  %vm5562_vm4 = vcmp.lt.s32.totalorder %v5561_v5, 0  ;;  %v2045_v0 = vsel %vm2037_vm2, %v2028_v55, %v2044_v41  ;;  %v2049_v45 = vsel %vm2037_vm2, %v2031_v25, %v2048_v37 }
 0x244   : > { %v1846_v14 = vsel %vm1839_vm12, %v1842_v16, %v1845_v36  ;;  %v1957_v54 = vsel %vm5562_vm4, 0, %v5561_v5  ;;  %v2046_v24 = vsel %vm2036_vm1, %v2043_v18, %v2045_v0  ;;  %v2050_v8 = vsel %vm2036_vm1, %v2047_v29, %v2049_v45 }
 0x245   : > { %v1847_v19 = vsel %vm1836_vm13, nan, %v1846_v14  ;;  %v1958_v10 = vsub.s32 32, %v1957_v54  ;;  %v1962_v47 = vsub.s32 4294967266, %v1957_v54  ;;  %v2039_v59 = vsel %vm2035_vm0, %v2019_v33, %v2022_v30 }
 0x246   : > { %v2041_v17 = vsel %vm2037_vm2, %v2025_v48, %v2040_v7  ;;  %v2054_v53 = vand.u32 65535, %v2050_v8  ;;  %v2055_v1 = vshrl.u32 %v2050_v8, 16  ;;  %v2077_v55 = vshrl.u32 %v2046_v24, 16  ;;  %5421 = vst [vmem:[%s6197_s6 + $0x40] sm:$0xff] %v1847_v19 }
 0x247   : > { %v1959_v56 = vshll.u32 %v7145_v12, %v1957_v54  ;;  %v1960_v25 = vshrl.u32 %v7126_v28, %v1958_v10  ;;  %v1963_v20 = vadd.s32 127, %v1962_v47  ;;  %v2076_v62 = vand.u32 65535, %v2046_v24 }
 0x248   : > { %v1975_v43 = vsel %vm7161_vm15, 0, %v7167_v57  ;;  %v2057_v46 = vmul.u32 %v2055_v1, %v7129_v51  ;;  %v2058_v33 = vmul.u32 %v2054_v53, %v7132_v35  ;;  %v2158_v30 = vand.u32 2147483647, %v7050_v11 }
 0x249   : > { %v1961_v48 = vor.u32 %v1960_v25, %v1959_v56  ;;  %v1964_v9 = vshll.u32 %v1963_v20, 23  ;;  %v7208_v34 = vsel %vm2036_vm1, %v2039_v59, %v2041_v17  ;;  %v2079_v28 = vmul.u32 %v2077_v55, %v7129_v51 }
 0x24a   : > { %v2056_v12 = vmul.u32 %v2054_v53, %v7129_v51  ;;  %v2059_v36 = vmul.u32 %v2055_v1, %v7132_v35  ;;  %v2060_v5 = vshll.u32 %v2057_v46, 16  ;;  %vm2169_vm5 = vcmp.gt.s32.totalorder %v7136_v15, 0 }
 0x24b   : > { %v1965_v57 = vor.u32 4788187, %v1964_v9  ;;  %v2062_v7 = vshll.u32 %v2058_v33, 16  ;;  %v2078_v18 = vmul.u32 %v2076_v62, %v7129_v51  ;;  %v2080_v41 = vmul.u32 %v2076_v62, %v7132_v35 }
 0x24c   : > { %v1968_v29 = vcvt.s32.f32 %v1961_v48  ;;  %vm2064_vm6 = vc.u32 %v2056_v12, %v2060_v5  ;;  %v2066_v39 = vadd.s32 %v2060_v5, %v2056_v12  ;;  %v2082_v37 = vshll.u32 %v2079_v28, 16 }
 0x24d   : > { %v1966_v16 = vand.u32 2147483647, %v1965_v57  ;;  %v2065_v0 = vsel %vm2064_vm6, 1, %v9929_v60  ;;  %v2081_v45 = vmul.u32 %v2077_v55, %v7132_v35  ;;  %v2084_v14 = vshll.u32 %v2080_v41, 16 }
 0x24e   : > { %v2067_v54 = vadd.s32 %v2065_v0, %v2059_v36  ;;  %vm2068_vm7 = vc.u32 %v2066_v39, %v2062_v7  ;;  %vm2086_vm8 = vc.u32 %v2078_v18, %v2082_v37  ;;  %v2088_v24 = vadd.s32 %v2082_v37, %v2078_v18 }
 0x24f   : > { %v1969_v8 = vmul.f32 %v1968_v29, %v1966_v16  ;;  %v2069_v19 = vsel %vm2068_vm7, 1, %v9929_v60  ;;  %v2087_v51 = vsel %vm2086_vm8, 1, %v9929_v60  ;;  %v2170_v10 = vsel %vm2169_vm5, %v7136_v15, 0 }
 0x250   : > { %v2061_v47 = vshrl.u32 %v2057_v46, 16  ;;  %v2071_v59 = vadd.s32 %v2069_v19, %v2067_v54  ;;  %v2089_v17 = vadd.s32 %v2087_v51, %v2081_v45  ;;  %vm2090_vm10 = vc.u32 %v2088_v24, %v2084_v14 }
 0x251   : > { %v1970_v53 = vxor.u32 2147483648, %v1969_v8  ;;  %v2091_v35 = vsel %vm2090_vm10, 1, %v9929_v60  ;;  %v2165_v1 = vand.u32 8388607, %v2158_v30  ;;  %v2172_v55 = vand.u32 31, %v2170_v10 }
 0x252   : > { %v2063_v56 = vshrl.u32 %v2058_v33, 16  ;;  %v2072_v25 = vadd.s32 %v2071_v59, %v2061_v47  ;;  %v2083_v20 = vshrl.u32 %v2079_v28, 16  ;;  %v2093_v62 = vadd.s32 %v2091_v35, %v2089_v17 }
 0x253   : > { %v1971_v48 = vsel %vm1850_vm9, %v1970_v53, %v1969_v8  ;;  %v1992_v9 = vadd.s32 3, %v1975_v43  ;;  %v2096_v15 = vmul.u32 %v7110_v6, %v7208_v34  ;;  %v7230_v46 = vsub.s32 32, %v2172_v55 }
 0x254   : > { %v1974_v12 = vsel %vm7161_vm15, %v6865_v13, %v1971_v48  ;;  %v7235_v36 = vadd.s32 %v2072_v25, %v2063_v56  ;;  %v2085_v5 = vshrl.u32 %v2080_v41, 16  ;;  %v2094_v33 = vadd.s32 %v2093_v62, %v2083_v20 }
 0x255   : > { %v1976_v57 = vmul.f32 %v1974_v12, %v1974_v12  ;;  %v7237_v28 = vadd.s32 %v2088_v24, %v2084_v14  ;;  %v7239_v7 = vshrl.u32 %v2170_v10, 5  ;;  %v2175_v43 = vshll.u32 %v9928_v42, %v2172_v55 }
 0x256   : > { %v2095_v18 = vadd.s32 %v2094_v33, %v2085_v5  ;;  %v2178_v6 = vshll.u32 %v9932_v3, %v2172_v55  ;;  %v2179_v34 = vshrl.u32 %v9933_v63, %v7230_v46  ;;  %v2182_v40 = vshrl.u32 %v9934_v2, %v7230_v46 }
 0x257   : > { %v1977_v29 = vmul.f32 -0.001358992, %v1976_v57  ;;  %v1984_v39 = vmul.f32 -0.00019511016, %v1976_v57  ;;  %vm2098_vm9 = vc.u32 %v7235_v36, %v7237_v28  ;;  %v2181_v41 = vshll.u32 %v9933_v63, %v2172_v55 }
 0x258   : > { %v2099_v37 = vadd.s32 1, %v2095_v18  ;;  %v2176_v16 = vshrl.u32 %v9932_v3, %v7230_v46  ;;  %v2184_v0 = vshll.u32 %v9934_v2, %v2172_v55  ;;  %v2185_v45 = vshrl.u32 %v9942_v21, %v7230_v46 }
 0x259   : > { %v1978_v14 = vadd.f32 0.041655596, %v1977_v29  ;;  %v1985_v54 = vadd.f32 0.008332121, %v1984_v39  ;;  %v2187_v24 = vshll.u32 %v9942_v21, %v2172_v55  ;;  %v2188_v8 = vshrl.u32 %v9935_v44, %v7230_v46 }
 0x25a   : > { %v2100_v19 = vsel %vm2098_vm9, %v2099_v37, %v2095_v18  ;;  %v7258_v51 = vor.u32 %v2179_v34, %v2178_v6  ;;  %v7260_v10 = vor.u32 %v2182_v40, %v2181_v41  ;;  %v2186_v47 = vor.u32 %v2185_v45, %v2184_v0 }
 0x25b   : > { %v1979_v59 = vmul.f32 %v1978_v14, %v1976_v57  ;;  %v1986_v17 = vmul.f32 %v1985_v54, %v1976_v57  ;;  %v2101_v53 = vadd.s32 %v2100_v19, %v2096_v15  ;;  %v2189_v35 = vor.u32 %v2188_v8, %v2187_v24 }
 0x25c   : > { %v7264_v56 = vadd.f32 %v5889_v38, %v7123_v50  ;;  %v1993_v25 = vand.u32 3, %v1992_v9  ;;  %v2166_v20 = vor.u32 8388608, %v2165_v1  ;;  %v7266_v55 = vor.u32 %v2176_v16, %v2175_v43 }
 0x25d   : > { %v1980_v62 = vadd.f32 -0.4999988, %v1979_v59  ;;  %v1987_v48 = vadd.f32 -0.16666654, %v1986_v17  ;;  %v2102_v5 = vadd.s32 536870912, %v2101_v53  ;;  %vm2193_vm11 = vcmp.lt.s32.totalorder %v7239_v7, 4 }
 0x25e   : > { %vm2190_vm12 = vcmp.lt.s32.totalorder %v7239_v7, 1  ;;  %vm2192_vm13 = vcmp.lt.s32.totalorder %v7239_v7, 3  ;;  %v2199_v15 = vsel %vm2193_vm11, %v2186_v47, 920167782  ;;  %v2203_v50 = vsel %vm2193_vm11, %v2189_v35, 1326507024 }
 0x25f   : > { %v1981_v33 = vmul.f32 %v1980_v62, %v1976_v57  ;;  %v1988_v9 = vmul.f32 %v1987_v48, %v1976_v57  ;;  %v7275_v1 = vshrl.u32 %v2102_v5, 30  ;;  %v2202_v43 = vsel %vm2190_vm12, %v7258_v51, %v7260_v10 }
 0x260   : > { %vm2191_vm14 = vcmp.lt.s32.totalorder %v7239_v7, 2  ;;  %v2198_v18 = vsel %vm2190_vm12, %v7266_v55, %v7258_v51  ;;  %v2204_v6 = vsel %vm2192_vm13, %v2186_v47, %v2203_v50  ;;  %v7288_v34 = vshll.u32 %v2166_v20, 8 }
 0x261   : > { %v1982_v57 = vadd.f32 1.0, %v1981_v33  ;;  %v1989_v40 = vadd.f32 1.0, %v1988_v9  ;;  %v2104_v29 = vshll.u32 %v7275_v1, 30  ;;  %v2200_v39 = vsel %vm2192_vm13, %v7260_v10, %v2199_v15 }
 0x262   : > { %v7296_v41 = vadd.f32 %v7119_v26, %v7116_v27  ;;  %vm1991_vm15 = vweird.f32 %v6865_v13  ;;  %v2205_v37 = vsel %vm2191_vm14, %v2202_v43, %v2204_v6  ;;  %v2316_v16 = vand.u32 2139095040, %v7264_v56 }
 0x263   : > { %v1990_v0 = vmul.f32 %v1989_v40, %v1974_v12  ;;  %vm1998_vm0 = vcmp.eq.s32.totalorder %v1993_v25, 2  ;;  %v1999_v45 = vxor.u32 2147483648, %v1982_v57  ;;  %v2105_v14 = vsub.s32 %v2101_v53, %v2104_v29 }
 0x264   : > { %v2201_v54 = vsel %vm2191_vm14, %v2198_v18, %v2200_v39  ;;  %v2207_v24 = vand.u32 65535, %v7288_v34  ;;  %v2209_v8 = vand.u32 65535, %v2205_v37  ;;  %v2210_v19 = vshrl.u32 %v2205_v37, 16 }
 0x265   : > { %v1996_v27 = vxor.u32 2147483648, %v1990_v0  ;;  %vm2106_vm1 = vcmp.lt.s32.totalorder %v2105_v14, 0  ;;  %v2107_v26 = vsub.s32 0, %v2105_v14  ;;  %v2208_v47 = vshrl.u32 %v7288_v34, 16 }
 0x266   : > { %vm1994_vm2 = vcmp.lt.s32.totalorder %v1993_v25, 2  ;;  %vm1995_vm3 = vcmp.eq.s32.totalorder %v1993_v25, 0  ;;  %v2000_v59 = vsel %vm1998_vm0, %v1999_v45, %v1990_v0  ;;  %v2212_v17 = vmul.u32 %v2210_v19, %v2207_v24 }
 0x267   : > { %v1997_v12 = vsel %vm1995_vm3, %v1982_v57, %v1996_v27  ;;  %v2108_v35 = vsel %vm2106_vm1, %v2107_v26, %v2105_v14  ;;  %v2213_v53 = vmul.u32 %v2209_v8, %v2208_v47  ;;  %v2232_v20 = vshrl.u32 %v2201_v54, 16 }
 0x268   : > { %v2001_v62 = vsel %vm1994_vm2, %v1997_v12, %v2000_v59  ;;  %v2109_v48 = vclz %v2108_v35  ;;  %v2215_v5 = vshll.u32 %v2212_v17, 16  ;;  %v2231_v15 = vand.u32 65535, %v2201_v54 }
 0x269   : > { %v2002_v50 = vsel %vm1991_vm15, nan, %v2001_v62  ;;  %v2174_v33 = vshrl.u32 %v9928_v42, %v7230_v46  ;;  %v2211_v9 = vmul.u32 %v2209_v8, %v2207_v24  ;;  %v2317_v43 = vshrl.u32 %v2316_v16, 23 }
 0x26a   : > { %v2097_v25 = vadd.s32 %v7237_v28, %v7235_v36  ;;  %v5564_v18 = vadd.s32 4294967294, %v2109_v48  ;;  %v2195_v6 = vsel %vm2193_vm11, %v7260_v10, 2102212464  ;;  %v2214_v57 = vmul.u32 %v2210_v19, %v2208_v47  ;;  %5422 = vst [vmem:[%s6197_s6 + $0x48] sm:$0xff] %v2002_v50 }
 0x26b   : > { %v2217_v40 = vshll.u32 %v2213_v53, 16  ;;  %vm2219_vm4 = vc.u32 %v2211_v9, %v2215_v5  ;;  %v2221_v29 = vadd.s32 %v2215_v5, %v2211_v9  ;;  %v2234_v13 = vmul.u32 %v2232_v20, %v2207_v24 }
 0x26c   : > { %vm2005_vm5 = vcmp.lt.s32.totalorder %v6979_v61, 0  ;;  %vm5565_vm6 = vcmp.lt.s32.totalorder %v5564_v18, 0  ;;  %v2216_v46 = vshrl.u32 %v2212_v17, 16  ;;  %v2220_v39 = vsel %vm2219_vm4, 1, %v9929_v60 }
 0x26d   : > { %v2235_v37 = vmul.u32 %v2231_v15, %v2208_v47  ;;  %v2112_v16 = vsel %vm5565_vm6, 0, %v5564_v18  ;;  %v2222_v36 = vadd.s32 %v2220_v39, %v2214_v57  ;;  %vm2223_vm7 = vc.u32 %v2221_v29, %v2217_v40 }
 0x26e   : > { %v2237_v28 = vshll.u32 %v2234_v13, 16  ;;  %v2113_v0 = vsub.s32 32, %v2112_v16  ;;  %v2117_v45 = vsub.s32 4294967266, %v2112_v16  ;;  %v2224_v10 = vsel %vm2223_vm7, 1, %v9929_v60 }
 0x26f   : > { %v2233_v54 = vmul.u32 %v2231_v15, %v2207_v24  ;;  %v2114_v8 = vshll.u32 %v2105_v14, %v2112_v16  ;;  %v2226_v19 = vadd.s32 %v2224_v10, %v2222_v36  ;;  %v2236_v27 = vmul.u32 %v2232_v20, %v2208_v47 }
 0x270   : > { %v2239_v26 = vshll.u32 %v2235_v37, 16  ;;  %v2115_v59 = vshrl.u32 %v2097_v25, %v2113_v0  ;;  %v2118_v12 = vadd.s32 127, %v2117_v45  ;;  %v2127_v35 = vsub.s32 4, %v7275_v1 }
 0x271   : > { %vm2241_vm8 = vc.u32 %v2233_v54, %v2237_v28  ;;  %v2243_v17 = vadd.s32 %v2237_v28, %v2233_v54  ;;  %v2227_v62 = vadd.s32 %v2226_v19, %v2216_v46  ;;  %v5569_v5 = vadd.s32 4294967169, %v2317_v43 }
 0x272   : > { %v2242_v48 = vsel %vm2241_vm8, 1, %v9929_v60  ;;  %v2116_v50 = vor.u32 %v2115_v59, %v2114_v8  ;;  %v2119_v9 = vshll.u32 %v2118_v12, 23  ;;  %v2194_v14 = vsel %vm2190_vm12, %v2174_v33, %v7266_v55 }
 0x273   : > { %v2244_v18 = vadd.s32 %v2242_v48, %v2236_v27  ;;  %vm2245_vm10 = vc.u32 %v2243_v17, %v2239_v26  ;;  %v2196_v24 = vsel %vm2192_vm13, %v7258_v51, %v2195_v6  ;;  %v2218_v47 = vshrl.u32 %v2213_v53, 16 }
 0x274   : > { %v2246_v20 = vsel %vm2245_vm10, 1, %v9929_v60  ;;  %v2120_v15 = vor.u32 4788187, %v2119_v9  ;;  %v2238_v25 = vshrl.u32 %v2234_v13, 16  ;;  %v2323_v40 = vadd.s32 1, %v5569_v5 }
 0x275   : > { %v2248_v57 = vadd.s32 %v2246_v20, %v2244_v18  ;;  %vm7330_vm9 = vcmp.le.f32.partialorder %v2003_v4, 0.7853982  ;;  %v2128_v55 = vsel %vm2005_vm5, %v2127_v35, %v7275_v1  ;;  %v7337_v33 = vadd.s32 %v2227_v62, %v2218_v47 }
 0x276   : > { %v2240_v51 = vshrl.u32 %v2235_v37, 16  ;;  %v2121_v53 = vand.u32 2147483647, %v2120_v15  ;;  %v2123_v6 = vcvt.s32.f32 %v2116_v50  ;;  %vm2324_vm11 = vcmp.gt.s32.totalorder %v2323_v40, 0 }
 0x277   : > { %v2249_v29 = vadd.s32 %v2248_v57, %v2238_v25  ;;  %v2197_v13 = vsel %vm2191_vm14, %v2194_v14, %v2196_v24  ;;  %v7341_v46 = vadd.s32 %v2243_v17, %v2239_v26  ;;  %v2313_v4 = vand.u32 2147483647, %v7264_v56 }
 0x278   : > { %v2325_v39 = vsel %vm2324_vm11, %v2323_v40, 0  ;;  %v2124_v16 = vmul.f32 %v2123_v6, %v2121_v53  ;;  %v2130_v36 = vsel %vm7330_vm9, 0, %v2128_v55  ;;  %v7350_v37 = vmul.f32 %v5880_v31, %v5862_v22 }
 0x279   : > { %v2250_v1 = vadd.s32 %v2249_v29, %v2240_v51  ;;  %v2327_v28 = vand.u32 31, %v2325_v39  ;;  %vm2253_vm12 = vc.u32 %v7337_v33, %v7341_v46  ;;  %v7356_v10 = vadd.f32 %v5914_v58, %v7296_v41  ;;  %v7395_v51 = vpop.permute.xlu0 %310 }
 0x27a   : > { %v2125_v7 = vxor.u32 2147483648, %v2124_v16  ;;  %v2147_v54 = vadd.s32 3, %v2130_v36  ;;  %v2251_v8 = vmul.u32 %v7288_v34, %v2197_v13  ;;  %v2320_v19 = vand.u32 8388607, %v2313_v4 }
 0x27b   : > { %v2254_v0 = vadd.s32 1, %v2250_v1  ;;  %v7352_v45 = vsub.s32 32, %v2327_v28  ;;  %v7363_v59 = vshrl.u32 %v2325_v39, 5  ;;  %v2330_v48 = vshll.u32 %v9928_v42, %v2327_v28 }
 0x27c   : > { %v2126_v27 = vsel %vm2005_vm5, %v2125_v7, %v2124_v16  ;;  %v2339_v5 = vshll.u32 %v9934_v2, %v2327_v28  ;;  %v2333_v18 = vshll.u32 %v9932_v3, %v2327_v28  ;;  %v2336_v14 = vshll.u32 %v9933_v63, %v2327_v28 }
 0x27d   : > { %v2255_v26 = vsel %vm2253_vm12, %v2254_v0, %v2250_v1  ;;  %v2331_v12 = vshrl.u32 %v9932_v3, %v7352_v45  ;;  %v7370_v41 = vsel %vm7330_vm9, %v6979_v61, %v2126_v27  ;;  %v2334_v34 = vshrl.u32 %v9933_v63, %v7352_v45 }
 0x27e   : > { %v2256_v17 = vadd.s32 %v2255_v26, %v2251_v8  ;;  %v2337_v35 = vshrl.u32 %v9934_v2, %v7352_v45  ;;  %v2131_v62 = vmul.f32 %v7370_v41, %v7370_v41  ;;  %v2340_v50 = vshrl.u32 %v9942_v21, %v7352_v45 }
 0x27f   : > { %v2343_v24 = vshrl.u32 %v9935_v44, %v7352_v45  ;;  %v2342_v25 = vshll.u32 %v9942_v21, %v2327_v28  ;;  %v7389_v40 = vor.u32 %v2331_v12, %v2330_v48  ;;  %v7391_v43 = vor.u32 %v2334_v34, %v2333_v18 }
 0x280   : > { %v2257_v9 = vadd.s32 536870912, %v2256_v17  ;;  %v2132_v47 = vmul.f32 -0.001358992, %v2131_v62  ;;  %v2139_v20 = vmul.f32 -0.00019511016, %v2131_v62  ;;  %v2341_v15 = vor.u32 %v2340_v50, %v2339_v5 }
 0x281   : > { %v7393_v55 = vor.u32 %v2337_v35, %v2336_v14  ;;  %v7397_v29 = vand.u32 3, %v2147_v54  ;;  %v2321_v13 = vor.u32 8388608, %v2320_v19  ;;  %v2344_v16 = vor.u32 %v2343_v24, %v2342_v25 }
 0x282   : > { %v7387_v57 = vshrl.u32 %v2257_v9, 30  ;;  %v2133_v53 = vadd.f32 0.041655596, %v2132_v47  ;;  %v2140_v6 = vadd.f32 0.008332121, %v2139_v20  ;;  %vm2345_vm13 = vcmp.lt.s32.totalorder %v7363_v59, 1 }
 0x283   : > { %vm2348_vm14 = vcmp.lt.s32.totalorder %v7363_v59, 4  ;;  %vm2347_vm15 = vcmp.lt.s32.totalorder %v7363_v59, 3  ;;  %v7407_v7 = vmul.f32 %v5882_v32, %v7395_v51  ;;  %v2353_v54 = vsel %vm2345_vm13, %v7389_v40, %v7391_v43 }
 0x284   : > { %v2259_v39 = vshll.u32 %v7387_v57, 30  ;;  %v2134_v36 = vmul.f32 %v2133_v53, %v2131_v62  ;;  %v2141_v1 = vmul.f32 %v2140_v6, %v2131_v62  ;;  %v2354_v28 = vsel %vm2348_vm14, %v2341_v15, 920167782 }
 0x285   : > { %v2355_v8 = vsel %vm2347_vm15, %v7393_v55, %v2354_v28  ;;  %vm2153_vm0 = vcmp.eq.s32.totalorder %v7397_v29, 2  ;;  %v2357_v26 = vsel %vm2345_vm13, %v7391_v43, %v7393_v55  ;;  %v7423_v12 = vshll.u32 %v2321_v13, 8 }
 0x286   : > { %v7409_v0 = vsub.s32 %v2256_v17, %v2259_v39  ;;  %v2135_v19 = vadd.f32 -0.4999988, %v2134_v36  ;;  %v2142_v27 = vadd.f32 -0.16666654, %v2141_v1  ;;  %vm2150_vm1 = vcmp.eq.s32.totalorder %v7397_v29, 0 }
 0x287   : > { %vm2346_vm3 = vcmp.lt.s32.totalorder %v7363_v59, 2  ;;  %v2358_v34 = vsel %vm2348_vm14, %v2344_v16, 1326507024  ;;  %vm2149_vm4 = vcmp.lt.s32.totalorder %v7397_v29, 2  ;;  %vm2146_vm5 = vweird.f32 %v6979_v61 }
 0x288   : > { %vm2261_vm2 = vcmp.lt.s32.totalorder %v7409_v0, 0  ;;  %v2262_v17 = vsub.s32 0, %v7409_v0  ;;  %v2136_v35 = vmul.f32 %v2135_v19, %v2131_v62  ;;  %v2143_v48 = vmul.f32 %v2142_v27, %v2131_v62 }
 0x289   : > { %v2356_v5 = vsel %vm2346_vm3, %v2353_v54, %v2355_v8  ;;  %v2359_v50 = vsel %vm2347_vm15, %v2341_v15, %v2358_v34  ;;  %v2252_v9 = vadd.s32 %v7341_v46, %v7337_v33  ;;  %v2468_v62 = vand.u32 2147483647, %v7356_v10 }
 0x28a   : > { %v2263_v18 = vsel %vm2261_vm2, %v2262_v17, %v7409_v0  ;;  %v2360_v14 = vsel %vm2346_vm3, %v2357_v26, %v2359_v50  ;;  %v2137_v24 = vadd.f32 1.0, %v2136_v35  ;;  %v2144_v47 = vadd.f32 1.0, %v2143_v48 }
 0x28b   : > { %v2264_v20 = vclz %v2263_v18  ;;  %v2364_v25 = vand.u32 65535, %v2360_v14  ;;  %v2362_v53 = vand.u32 65535, %v7423_v12  ;;  %v2363_v15 = vshrl.u32 %v7423_v12, 16 }
 0x28c   : > { %v2365_v6 = vshrl.u32 %v2360_v14, 16  ;;  %v2387_v13 = vshrl.u32 %v2356_v5, 16  ;;  %v2145_v39 = vmul.f32 %v2144_v47, %v7370_v41  ;;  %v2154_v33 = vxor.u32 2147483648, %v2137_v24 }
 0x28d   : > { %v5567_v46 = vadd.s32 4294967294, %v2264_v20  ;;  %v2471_v16 = vand.u32 2139095040, %v7356_v10  ;;  %v2329_v36 = vshrl.u32 %v9928_v42, %v7352_v45  ;;  %v2368_v28 = vmul.u32 %v2364_v25, %v2363_v15 }
 0x28e   : > { %v2367_v1 = vmul.u32 %v2365_v6, %v2362_v53  ;;  %v2386_v54 = vand.u32 65535, %v2356_v5  ;;  %v2151_v8 = vxor.u32 2147483648, %v2145_v39  ;;  %v2366_v19 = vmul.u32 %v2364_v25, %v2362_v53 }
 0x28f   : > { %vm5568_vm6 = vcmp.lt.s32.totalorder %v5567_v46, 0  ;;  %v2369_v27 = vmul.u32 %v2365_v6, %v2363_v15  ;;  %v2155_v26 = vsel %vm2153_vm0, %v2154_v33, %v2145_v39  ;;  %v2389_v41 = vmul.u32 %v2387_v13, %v2362_v53 }
 0x290   : > { %v2267_v17 = vsel %vm5568_vm6, 0, %v5567_v46  ;;  %v2370_v34 = vshll.u32 %v2367_v1, 16  ;;  %v2152_v35 = vsel %vm2150_vm1, %v2137_v24, %v2151_v8  ;;  %vm2160_vm7 = vcmp.lt.s32.totalorder %v7050_v11, 0 }
 0x291   : > { %v2268_v45 = vsub.s32 32, %v2267_v17  ;;  %v2272_v48 = vsub.s32 4294967266, %v2267_v17  ;;  %v2372_v50 = vshll.u32 %v2368_v28, 16  ;;  %v2156_v5 = vsel %vm2149_vm4, %v2152_v35, %v2155_v26 }
 0x292   : > { %v2269_v18 = vshll.u32 %v7409_v0, %v2267_v17  ;;  %vm2374_vm8 = vc.u32 %v2366_v19, %v2370_v34  ;;  %v2376_v14 = vadd.s32 %v2370_v34, %v2366_v19  ;;  %v2157_v47 = vsel %vm2146_vm5, nan, %v2156_v5 }
 0x293   : > { %v2270_v20 = vshrl.u32 %v2252_v9, %v2268_v45  ;;  %v2273_v25 = vadd.s32 127, %v2272_v48  ;;  %v2375_v24 = vsel %vm2374_vm8, 1, %v9929_v60  ;;  %v2388_v39 = vmul.u32 %v2386_v54, %v2362_v53  ;;  %5423 = vst [vmem:[%s6197_s6 + $0x50] sm:$0xff] %v2157_v47 }
 0x294   : > { %v2377_v6 = vadd.s32 %v2375_v24, %v2369_v27  ;;  %vm2378_vm10 = vc.u32 %v2376_v14, %v2372_v50  ;;  %v2390_v33 = vmul.u32 %v2386_v54, %v2363_v15  ;;  %v2392_v26 = vshll.u32 %v2389_v41, 16 }
 0x295   : > { %v2271_v46 = vor.u32 %v2270_v20, %v2269_v18  ;;  %v2274_v8 = vshll.u32 %v2273_v25, 23  ;;  %v2379_v29 = vsel %vm2378_vm10, 1, %v9929_v60  ;;  %v2282_v0 = vsub.s32 4, %v7387_v57 }
 0x296   : > { %v2371_v19 = vshrl.u32 %v2367_v1, 16  ;;  %v2381_v17 = vadd.s32 %v2379_v29, %v2377_v6  ;;  %v2391_v61 = vmul.u32 %v2387_v13, %v2363_v15  ;;  %v2394_v9 = vshll.u32 %v2390_v33, 16 }
 0x297   : > { %v2275_v34 = vor.u32 4788187, %v2274_v8  ;;  %vm2396_vm9 = vc.u32 %v2388_v39, %v2392_v26  ;;  %v2398_v35 = vadd.s32 %v2392_v26, %v2388_v39  ;;  %v2350_v53 = vsel %vm2348_vm14, %v7393_v55, 2102212464 }
 0x298   : > { %v2382_v54 = vadd.s32 %v2381_v17, %v2371_v19  ;;  %v2397_v27 = vsel %vm2396_vm9, 1, %v9929_v60  ;;  %v2472_v45 = vshrl.u32 %v2471_v16, 23  ;;  %v2278_v50 = vcvt.s32.f32 %v2271_v46 }
 0x299   : > { %v2276_v48 = vand.u32 2147483647, %v2275_v34  ;;  %v2399_v5 = vadd.s32 %v2397_v27, %v2391_v61  ;;  %vm2400_vm11 = vc.u32 %v2398_v35, %v2394_v9  ;;  %v2283_v15 = vsel %vm2160_vm7, %v2282_v0, %v7387_v57 }
 0x29a   : > { %v2373_v13 = vshrl.u32 %v2368_v28, 16  ;;  %v2401_v1 = vsel %vm2400_vm11, 1, %v9929_v60  ;;  %v5572_v18 = vadd.s32 4294967169, %v2472_v45  ;;  %vm7473_vm12 = vcmp.le.f32.partialorder %v2158_v30, 0.7853982 }
 0x29b   : > { %v2279_v14 = vmul.f32 %v2278_v50, %v2276_v48  ;;  %v2393_v16 = vshrl.u32 %v2389_v41, 16  ;;  %v2403_v47 = vadd.s32 %v2401_v1, %v2399_v5  ;;  %v2349_v20 = vsel %vm2345_vm13, %v2329_v36, %v7389_v40 }
 0x29c   : > { %v2351_v57 = vsel %vm2347_vm15, %v7391_v43, %v2350_v53  ;;  %v7483_v28 = vadd.s32 %v2382_v54, %v2373_v13  ;;  %v2478_v25 = vadd.s32 1, %v5572_v18  ;;  %v2285_v30 = vsel %vm7473_vm12, 0, %v2283_v15 }
 0x29d   : > { %v2280_v24 = vxor.u32 2147483648, %v2279_v14  ;;  %v2395_v6 = vshrl.u32 %v2390_v33, 16  ;;  %v2404_v39 = vadd.s32 %v2403_v47, %v2393_v16  ;;  %v365_v41 = vmul.f32 %v5903_v49, %v7395_v51 }
 0x29e   : > { %v7489_v46 = vadd.s32 %v2398_v35, %v2394_v9  ;;  %v2475_v40 = vand.u32 8388607, %v2468_v62  ;;  %vm2479_vm13 = vcmp.gt.s32.totalorder %v2478_v25, 0  ;;  %v2352_v36 = vsel %vm2346_vm3, %v2349_v20, %v2351_v57 }
 0x29f   : > { %v2281_v43 = vsel %vm2160_vm7, %v2280_v24, %v2279_v14  ;;  %v2405_v8 = vadd.s32 %v2404_v39, %v2395_v6  ;;  %v2480_v29 = vsel %vm2479_vm13, %v2478_v25, 0  ;;  %v2302_v26 = vadd.s32 3, %v2285_v30 }
 0x2a0   : > { %v2284_v33 = vsel %vm7473_vm12, %v7050_v11, %v2281_v43  ;;  %vm2408_vm14 = vc.u32 %v7483_v28, %v7489_v46  ;;  %v2482_v51 = vand.u32 31, %v2480_v29  ;;  %v262_v0 = vmul.f32 %v5908_v52, %v5862_v22 }
 0x2a1   : > { %v2286_v19 = vmul.f32 %v2284_v33, %v2284_v33  ;;  %v2409_v17 = vadd.s32 1, %v2405_v8  ;;  %v396_v59 = vadd.f32 %v7407_v7, %v7350_v37  ;;  %v2406_v61 = vmul.u32 %v7423_v12, %v2352_v36 }
 0x2a2   : > { %v7507_v34 = vsub.s32 32, %v2482_v51  ;;  %v7509_v9 = vadd.f32 %v365_v41, %v262_v0  ;;  %v7511_v27 = vand.u32 3, %v2302_v26  ;;  %v2476_v48 = vor.u32 8388608, %v2475_v40 }
 0x2a3   : > { %v2287_v35 = vmul.f32 -0.001358992, %v2286_v19  ;;  %v2294_v53 = vmul.f32 -0.00019511016, %v2286_v19  ;;  %v2410_v54 = vsel %vm2408_vm14, %v2409_v17, %v2405_v8  ;;  %v7513_v50 = vshrl.u32 %v2480_v29, 5 }
 0x2a4   : > { %v2411_v45 = vadd.s32 %v2410_v54, %v2406_v61  ;;  %v2486_v37 = vshrl.u32 %v9932_v3, %v7507_v34  ;;  %v2495_v7 = vshrl.u32 %v9942_v21, %v7507_v34  ;;  %v2489_v15 = vshrl.u32 %v9933_v63, %v7507_v34 }
 0x2a5   : > { %v2288_v22 = vadd.f32 0.041655596, %v2287_v35  ;;  %v2295_v5 = vadd.f32 0.008332121, %v2294_v53  ;;  %v2492_v13 = vshrl.u32 %v9934_v2, %v7507_v34  ;;  %v2494_v1 = vshll.u32 %v9934_v2, %v2482_v51 }
 0x2a6   : > { %v2412_v12 = vadd.s32 536870912, %v2411_v45  ;;  %v2485_v14 = vshll.u32 %v9928_v42, %v2482_v51  ;;  %v2488_v16 = vshll.u32 %v9932_v3, %v2482_v51  ;;  %v2491_v20 = vshll.u32 %v9933_v63, %v2482_v51 }
 0x2a7   : > { %v2289_v18 = vmul.f32 %v2288_v22, %v2286_v19  ;;  %v2296_v55 = vmul.f32 %v2295_v5, %v2286_v19  ;;  %v2496_v57 = vor.u32 %v2495_v7, %v2494_v1  ;;  %v2498_v25 = vshrl.u32 %v9935_v44, %v7507_v34 }
 0x2a8   : > { %v7526_v47 = vshrl.u32 %v2412_v12, 30  ;;  %v7532_v24 = vadd.f32 %v5889_v38, %v396_v59  ;;  %v7534_v39 = vor.u32 %v2486_v37, %v2485_v14  ;;  %v7537_v40 = vor.u32 %v2489_v15, %v2488_v16 }
 0x2a9   : > { %v2290_v30 = vadd.f32 -0.4999988, %v2289_v18  ;;  %v2297_v6 = vadd.f32 -0.16666654, %v2296_v55  ;;  %v7539_v43 = vor.u32 %v2492_v13, %v2491_v20  ;;  %v2497_v36 = vshll.u32 %v9942_v21, %v2482_v51 }
 0x2aa   : > { %v2414_v41 = vshll.u32 %v7526_v47, 30  ;;  %vm2304_vm15 = vcmp.lt.s32.totalorder %v7511_v27, 2  ;;  %vm2305_vm0 = vcmp.eq.s32.totalorder %v7511_v27, 0  ;;  %vm2503_vm1 = vcmp.lt.s32.totalorder %v7513_v50, 4 }
 0x2ab   : > { %v2291_v8 = vmul.f32 %v2290_v30, %v2286_v19  ;;  %v2298_v29 = vmul.f32 %v2297_v6, %v2286_v19  ;;  %vm2301_vm2 = vweird.f32 %v7050_v11  ;;  %v2499_v0 = vor.u32 %v2498_v25, %v2497_v36 }
 0x2ac   : > { %v7546_v26 = vsub.s32 %v2411_v45, %v2414_v41  ;;  %v2509_v17 = vsel %vm2503_vm1, %v2496_v57, 920167782  ;;  %v7550_v59 = vshll.u32 %v2476_v48, 8  ;;  %vm2500_vm3 = vcmp.lt.s32.totalorder %v7513_v50, 1 }
 0x2ad   : > { %v2292_v61 = vadd.f32 1.0, %v2291_v8  ;;  %v2299_v51 = vadd.f32 1.0, %v2298_v29  ;;  %vm2502_vm4 = vcmp.lt.s32.totalorder %v7513_v50, 3  ;;  %v2508_v35 = vsel %vm2500_vm3, %v7534_v39, %v7537_v40 }
 0x2ae   : > { %vm2416_vm5 = vcmp.lt.s32.totalorder %v7546_v26, 0  ;;  %v2417_v19 = vsub.s32 0, %v7546_v26  ;;  %v2510_v53 = vsel %vm2502_vm4, %v7539_v43, %v2509_v17  ;;  %vm2308_vm6 = vcmp.eq.s32.totalorder %v7511_v27, 2 }
 0x2af   : > { %v2300_v54 = vmul.f32 %v2299_v51, %v2284_v33  ;;  %v2309_v45 = vxor.u32 2147483648, %v2292_v61  ;;  %v2512_v48 = vsel %vm2500_vm3, %v7537_v40, %v7539_v43  ;;  %v2407_v22 = vadd.s32 %v7489_v46, %v7483_v28 }
 0x2b0   : > { %v2418_v5 = vsel %vm2416_vm5, %v2417_v19, %v7546_v26  ;;  %vm2501_vm7 = vcmp.lt.s32.totalorder %v7513_v50, 2  ;;  %v2513_v37 = vsel %vm2503_vm1, %v2499_v0, 1326507024  ;;  %v2517_v28 = vand.u32 65535, %v7550_v59 }
 0x2b1   : > { %v2306_v7 = vxor.u32 2147483648, %v2300_v54  ;;  %v2419_v33 = vclz %v2418_v5  ;;  %v2511_v12 = vsel %vm2501_vm7, %v2508_v35, %v2510_v53  ;;  %v2514_v15 = vsel %vm2502_vm4, %v2496_v57, %v2513_v37 }
 0x2b2   : > { %v2310_v13 = vsel %vm2308_vm6, %v2309_v45, %v2300_v54  ;;  %v2515_v1 = vsel %vm2501_vm7, %v2512_v48, %v2514_v15  ;;  %v2518_v46 = vshrl.u32 %v7550_v59, 16  ;;  %v2541_v25 = vand.u32 65535, %v2511_v12 }
 0x2b3   : > { %v2307_v18 = vsel %vm2305_vm0, %v2292_v61, %v2306_v7  ;;  %v5570_v55 = vadd.s32 4294967294, %v2419_v33  ;;  %v2519_v14 = vand.u32 65535, %v2515_v1  ;;  %v2520_v16 = vshrl.u32 %v2515_v1, 16 }
 0x2b4   : > { %v2311_v20 = vsel %vm2304_vm15, %v2307_v18, %v2310_v13  ;;  %v2542_v57 = vshrl.u32 %v2511_v12, 16  ;;  %v2623_v30 = vand.u32 2147483647, %v7532_v24  ;;  %v2484_v41 = vshrl.u32 %v9928_v42, %v7507_v34 }
 0x2b5   : > { %v2312_v6 = vsel %vm2301_vm2, nan, %v2311_v20  ;;  %vm5571_vm8 = vcmp.lt.s32.totalorder %v5570_v55, 0  ;;  %v2522_v36 = vmul.u32 %v2520_v16, %v2517_v28  ;;  %v2437_v29 = vsub.s32 4, %v7526_v47 }
 0x2b6   : > { %v2422_v8 = vsel %vm5571_vm8, 0, %v5570_v55  ;;  %v2523_v0 = vmul.u32 %v2519_v14, %v2518_v46  ;;  %v2544_v17 = vmul.u32 %v2542_v57, %v2517_v28  ;;  %5424 = vst [vmem:[%s6197_s6 + $0x58] sm:$0xff] %v2312_v6  ;;  %v2521_v51 = vmul.u32 %v2519_v14, %v2517_v28 }
 0x2b7   : > { %v2423_v27 = vsub.s32 32, %v2422_v8  ;;  %v2427_v61 = vsub.s32 4294967266, %v2422_v8  ;;  %v2525_v19 = vshll.u32 %v2522_v36, 16  ;;  %vm2315_vm10 = vcmp.lt.s32.totalorder %v7264_v56, 0 }
 0x2b8   : > { %v2424_v11 = vshll.u32 %v7546_v26, %v2422_v8  ;;  %v2524_v35 = vmul.u32 %v2520_v16, %v2518_v46  ;;  %v2527_v53 = vshll.u32 %v2523_v0, 16  ;;  %v2545_v54 = vmul.u32 %v2541_v25, %v2518_v46 }
 0x2b9   : > { %v2425_v45 = vshrl.u32 %v2407_v22, %v2423_v27  ;;  %v2428_v34 = vadd.s32 127, %v2427_v61  ;;  %vm2529_vm9 = vc.u32 %v2521_v51, %v2525_v19  ;;  %v2531_v48 = vadd.s32 %v2525_v19, %v2521_v51 }
 0x2ba   : > { %v2530_v5 = vsel %vm2529_vm9, 1, %v9929_v60  ;;  %v2543_v37 = vmul.u32 %v2541_v25, %v2517_v28  ;;  %v2546_v7 = vmul.u32 %v2542_v57, %v2518_v46  ;;  %v2547_v33 = vshll.u32 %v2544_v17, 16 }
 0x2bb   : > { %v2426_v12 = vor.u32 %v2425_v45, %v2424_v11  ;;  %v2429_v15 = vshll.u32 %v2428_v34, 23  ;;  %v2532_v13 = vadd.s32 %v2530_v5, %v2524_v35  ;;  %vm2533_vm11 = vc.u32 %v2531_v48, %v2527_v53  ;;  %v315_v48 = vpop.permute.xlu1 %314 }
 0x2bc   : > { %v2534_v1 = vsel %vm2533_vm11, 1, %v9929_v60  ;;  %v2549_v18 = vshll.u32 %v2545_v54, 16  ;;  %vm2551_vm12 = vc.u32 %v2543_v37, %v2547_v33  ;;  %v2553_v26 = vadd.s32 %v2547_v33, %v2543_v37 }
 0x2bd   : > { %v2430_v55 = vor.u32 4788187, %v2429_v15  ;;  %v2526_v14 = vshrl.u32 %v2522_v36, 16  ;;  %v2536_v22 = vadd.s32 %v2534_v1, %v2532_v13  ;;  %v2552_v16 = vsel %vm2551_vm12, 1, %v9929_v60 }
 0x2be   : > { %v2505_v28 = vsel %vm2503_vm1, %v7539_v43, 2102212464  ;;  %v2528_v46 = vshrl.u32 %v2523_v0, 16  ;;  %v2554_v20 = vadd.s32 %v2552_v16, %v2546_v7  ;;  %vm2555_vm13 = vc.u32 %v2553_v26, %v2549_v18 }
 0x2bf   : > { %v2431_v25 = vand.u32 2147483647, %v2430_v55  ;;  %v2433_v57 = vcvt.s32.f32 %v2426_v12  ;;  %v2537_v6 = vadd.s32 %v2536_v22, %v2526_v14  ;;  %v2556_v8 = vsel %vm2555_vm13, 1, %v9929_v60 }
 0x2c0   : > { %v2504_v27 = vsel %vm2500_vm3, %v2484_v41, %v7534_v39  ;;  %v2548_v36 = vshrl.u32 %v2544_v17, 16  ;;  %v2558_v61 = vadd.s32 %v2556_v8, %v2554_v20  ;;  %v2626_v51 = vand.u32 2139095040, %v7532_v24 }
 0x2c1   : > { %v2434_v19 = vmul.f32 %v2433_v57, %v2431_v25  ;;  %v2438_v43 = vsel %vm2315_vm10, %v2437_v29, %v7526_v47  ;;  %v2506_v0 = vsel %vm2502_vm4, %v7537_v40, %v2505_v28  ;;  %v2538_v11 = vadd.s32 %v2537_v6, %v2528_v46 }
 0x2c2   : > { %v2550_v35 = vshrl.u32 %v2545_v54, 16  ;;  %v2559_v53 = vadd.s32 %v2558_v61, %v2548_v36  ;;  %v2627_v45 = vshrl.u32 %v2626_v51, 23  ;;  %v2630_v39 = vand.u32 8388607, %v2623_v30 }
 0x2c3   : > { %v2435_v41 = vxor.u32 2147483648, %v2434_v19  ;;  %v2557_v17 = vadd.s32 %v2553_v26, %v2549_v18  ;;  %vm7616_vm14 = vcmp.le.f32.partialorder %v2313_v4, 0.7853982  ;;  %v2507_v47 = vsel %vm2501_vm7, %v2504_v27, %v2506_v0 }
 0x2c4   : > { %v2560_v29 = vadd.s32 %v2559_v53, %v2550_v35  ;;  %v5575_v40 = vadd.s32 4294967169, %v2627_v45  ;;  %v7624_v54 = vadd.f32 %v5914_v58, %v7509_v9  ;;  %v2440_v37 = vsel %vm7616_vm14, 0, %v2438_v43 }
 0x2c5   : > { %v2436_v5 = vsel %vm2315_vm10, %v2435_v41, %v2434_v19  ;;  %vm2563_vm15 = vc.u32 %v2538_v11, %v2557_v17  ;;  %v2631_v7 = vor.u32 8388608, %v2630_v39  ;;  %v263_v12 = vmul.f32 %v5880_v31, %v5864_v23 }
 0x2c6   : > { %v7633_v4 = vsel %vm7616_vm14, %v7264_v56, %v2436_v5  ;;  %v2564_v50 = vadd.s32 1, %v2560_v29  ;;  %v2633_v33 = vadd.s32 1, %v5575_v40  ;;  %v2561_v15 = vmul.u32 %v7550_v59, %v2507_v47 }
 0x2c7   : > { %v2441_v9 = vmul.f32 %v7633_v4, %v7633_v4  ;;  %v366_v13 = vmul.f32 %v5882_v32, %v315_v48  ;;  %v2457_v1 = vadd.s32 3, %v2440_v37  ;;  %v7641_v28 = vshll.u32 %v2631_v7, 8 }
 0x2c8   : > { %v2565_v18 = vsel %vm2563_vm15, %v2564_v50, %v2560_v29  ;;  %vm2634_vm0 = vcmp.gt.s32.totalorder %v2633_v33, 0  ;;  %v2778_v46 = vand.u32 2147483647, %v7624_v54  ;;  %v2781_v20 = vand.u32 2139095040, %v7624_v54 }
 0x2c9   : > { %v2442_v26 = vmul.f32 -0.001358992, %v2441_v9  ;;  %v2449_v55 = vmul.f32 -0.00019511016, %v2441_v9  ;;  %v2566_v14 = vadd.s32 %v2565_v18, %v2561_v15  ;;  %v2635_v22 = vsel %vm2634_vm0, %v2633_v33, 0 }
 0x2ca   : > { %v2637_v16 = vand.u32 31, %v2635_v22  ;;  %v7647_v25 = vmul.f32 %v5908_v52, %v5864_v23  ;;  %v7650_v8 = vmul.f32 %v5903_v49, %v315_v48  ;;  %v7652_v27 = vadd.f32 %v366_v13, %v263_v12 }
 0x2cb   : > { %v2443_v59 = vadd.f32 0.041655596, %v2442_v26  ;;  %v2450_v57 = vadd.f32 0.008332121, %v2449_v55  ;;  %v2567_v6 = vadd.s32 536870912, %v2566_v14  ;;  %v2458_v36 = vand.u32 3, %v2457_v1 }
 0x2cc   : > { %v2638_v61 = vsub.s32 32, %v2637_v16  ;;  %v7654_v43 = vadd.s32 %v2557_v17, %v2538_v11  ;;  %vm2470_vm1 = vcmp.lt.s32.totalorder %v7356_v10, 0  ;;  %v7658_v23 = vand.u32 65535, %v7641_v28 }
 0x2cd   : > { %v2444_v51 = vmul.f32 %v2443_v59, %v2441_v9  ;;  %v2451_v19 = vmul.f32 %v2450_v57, %v2441_v9  ;;  %v2568_v0 = vshrl.u32 %v2567_v6, 30  ;;  %v7661_v35 = vshrl.u32 %v7641_v28, 16 }
 0x2ce   : > { %v2782_v53 = vshrl.u32 %v2781_v20, 23  ;;  %v7665_v45 = vand.u32 8388607, %v2778_v46  ;;  %v7667_v47 = vshrl.u32 %v2635_v22, 5  ;;  %vm2460_vm2 = vcmp.eq.s32.totalorder %v2458_v36, 0 }
 0x2cf   : > { %v2445_v39 = vadd.f32 -0.4999988, %v2444_v51  ;;  %v2452_v41 = vadd.f32 -0.16666654, %v2451_v19  ;;  %v2569_v34 = vshll.u32 %v2568_v0, 30  ;;  %vm2463_vm3 = vcmp.eq.s32.totalorder %v2458_v36, 2 }
 0x2d0   : > { %v2640_v11 = vshll.u32 %v9928_v42, %v2637_v16  ;;  %v2641_v17 = vshrl.u32 %v9932_v3, %v2638_v61  ;;  %v2644_v29 = vshrl.u32 %v9933_v63, %v2638_v61  ;;  %v2650_v40 = vshrl.u32 %v9942_v21, %v2638_v61 }
 0x2d1   : > { %v2446_v48 = vmul.f32 %v2445_v39, %v2441_v9  ;;  %v2453_v5 = vmul.f32 %v2452_v41, %v2441_v9  ;;  %vm2459_vm4 = vcmp.lt.s32.totalorder %v2458_v36, 2  ;;  %v2570_v37 = vsub.s32 %v2566_v14, %v2569_v34 }
 0x2d2   : > { %v2643_v50 = vshll.u32 %v9932_v3, %v2637_v16  ;;  %vm2456_vm5 = vweird.f32 %v7264_v56  ;;  %v2592_v7 = vsub.s32 4, %v2568_v0  ;;  %v2647_v33 = vshrl.u32 %v9934_v2, %v2638_v61 }
 0x2d3   : > { %v2649_v12 = vshll.u32 %v9934_v2, %v2637_v16  ;;  %v2653_v15 = vshrl.u32 %v9935_v44, %v2638_v61  ;;  %v2447_v13 = vadd.f32 1.0, %v2446_v48  ;;  %v2454_v1 = vadd.f32 1.0, %v2453_v5 }
 0x2d4   : > { %vm2571_vm6 = vcmp.lt.s32.totalorder %v2570_v37, 0  ;;  %v2572_v18 = vsub.s32 0, %v2570_v37  ;;  %v2642_v26 = vor.u32 %v2641_v17, %v2640_v11  ;;  %v2645_v55 = vor.u32 %v2644_v29, %v2643_v50 }
 0x2d5   : > { %v2646_v9 = vshll.u32 %v9933_v63, %v2637_v16  ;;  %v2651_v14 = vor.u32 %v2650_v40, %v2649_v12  ;;  %v2455_v22 = vmul.f32 %v2454_v1, %v7633_v4  ;;  %v2464_v20 = vxor.u32 2147483648, %v2447_v13 }
 0x2d6   : > { %v2573_v59 = vsel %vm2571_vm6, %v2572_v18, %v2570_v37  ;;  %v2652_v57 = vshll.u32 %v9942_v21, %v2637_v16  ;;  %vm7683_vm7 = vcmp.le.f32.partialorder %v2468_v62, 0.7853982  ;;  %v2639_v19 = vshrl.u32 %v9928_v42, %v2638_v61 }
 0x2d7   : > { %v2574_v51 = vclz %v2573_v59  ;;  %v2648_v39 = vor.u32 %v2647_v33, %v2646_v9  ;;  %v5578_v41 = vadd.s32 4294967169, %v2782_v53  ;;  %v2461_v34 = vxor.u32 2147483648, %v2455_v22 }
 0x2d8   : > { %v7690_v11 = vsel %vm2470_vm1, %v2592_v7, %v2568_v0  ;;  %v2654_v4 = vor.u32 %v2653_v15, %v2652_v57  ;;  %vm2655_vm8 = vcmp.lt.s32.totalorder %v7667_v47, 1  ;;  %vm2656_vm10 = vcmp.lt.s32.totalorder %v7667_v47, 2 }
 0x2d9   : > { %v5573_v16 = vadd.s32 4294967294, %v2574_v51  ;;  %vm2658_vm9 = vcmp.lt.s32.totalorder %v7667_v47, 4  ;;  %v2663_v62 = vsel %vm2655_vm8, %v2642_v26, %v2645_v55  ;;  %v2462_v61 = vsel %vm2460_vm2, %v2447_v13, %v2461_v34 }
 0x2da   : > { %v2465_v53 = vsel %vm2463_vm3, %v2464_v20, %v2455_v22  ;;  %vm2657_vm11 = vcmp.lt.s32.totalorder %v7667_v47, 3  ;;  %v2664_v0 = vsel %vm2658_vm9, %v2651_v14, 920167782  ;;  %v2667_v40 = vsel %vm2655_vm8, %v2645_v55, %v2648_v39 }
 0x2db   : > { %v2466_v17 = vsel %vm2459_vm4, %v2462_v61, %v2465_v53  ;;  %vm5574_vm12 = vcmp.lt.s32.totalorder %v5573_v16, 0  ;;  %v2665_v29 = vsel %vm2657_vm11, %v2648_v39, %v2664_v0  ;;  %v2668_v7 = vsel %vm2658_vm9, %v2654_v4, 1326507024 }
 0x2dc   : > { %v2467_v48 = vsel %vm2456_vm5, nan, %v2466_v17  ;;  %v2577_v5 = vsel %vm5574_vm12, 0, %v5573_v16  ;;  %v2666_v50 = vsel %vm2656_vm10, %v2663_v62, %v2665_v29  ;;  %v2660_v12 = vsel %vm2658_vm9, %v2648_v39, 2102212464 }
 0x2dd   : > { %v2578_v33 = vsub.s32 32, %v2577_v5  ;;  %v2582_v36 = vsub.s32 4294967266, %v2577_v5  ;;  %v2669_v15 = vsel %vm2657_vm11, %v2651_v14, %v2668_v7  ;;  %5425 = vst [vmem:[%s6197_s6 + $0x60] sm:$0xff] %v2467_v48  ;;  %v2579_v13 = vshll.u32 %v2570_v37, %v2577_v5 }
 0x2de   : > { %v2670_v56 = vsel %vm2656_vm10, %v2667_v40, %v2669_v15  ;;  %v2696_v1 = vand.u32 65535, %v2666_v50  ;;  %v2697_v18 = vshrl.u32 %v2666_v50, 16  ;;  %v2595_v57 = vsel %vm7683_vm7, 0, %v7690_v11 }
 0x2df   : > { %v2580_v9 = vshrl.u32 %v7654_v43, %v2578_v33  ;;  %v2583_v22 = vadd.s32 127, %v2582_v36  ;;  %v2674_v20 = vand.u32 65535, %v2670_v56  ;;  %v2675_v59 = vshrl.u32 %v2670_v56, 16 }
 0x2e0   : > { %v2699_v51 = vmul.u32 %v2697_v18, %v7658_v23  ;;  %v2700_v14 = vmul.u32 %v2696_v1, %v7661_v35  ;;  %v2788_v39 = vadd.s32 1, %v5578_v41  ;;  %v2659_v4 = vsel %vm2655_vm8, %v2639_v19, %v2642_v26 }
 0x2e1   : > { %v2581_v37 = vor.u32 %v2580_v9, %v2579_v13  ;;  %v2584_v34 = vshll.u32 %v2583_v22, 23  ;;  %v2677_v16 = vmul.u32 %v2675_v59, %v7658_v23  ;;  %v2661_v43 = vsel %vm2657_vm11, %v2645_v55, %v2660_v12 }
 0x2e2   : > { %v2678_v62 = vmul.u32 %v2674_v20, %v7661_v35  ;;  %v2698_v61 = vmul.u32 %v2696_v1, %v7658_v23  ;;  %v2702_v11 = vshll.u32 %v2699_v51, 16  ;;  %v2676_v0 = vmul.u32 %v2674_v20, %v7658_v23 }
 0x2e3   : > { %v2585_v53 = vor.u32 4788187, %v2584_v34  ;;  %v2680_v17 = vshll.u32 %v2677_v16, 16  ;;  %v2701_v41 = vmul.u32 %v2697_v18, %v7661_v35  ;;  %v2588_v29 = vcvt.s32.f32 %v2581_v37 }
 0x2e4   : > { %v2679_v40 = vmul.u32 %v2675_v59, %v7661_v35  ;;  %v2682_v26 = vshll.u32 %v2678_v62, 16  ;;  %v2704_v19 = vshll.u32 %v2700_v14, 16  ;;  %vm2706_vm14 = vc.u32 %v2698_v61, %v2702_v11 }
 0x2e5   : > { %v2586_v48 = vand.u32 2147483647, %v2585_v53  ;;  %vm2684_vm13 = vc.u32 %v2676_v0, %v2680_v17  ;;  %v2686_v5 = vadd.s32 %v2680_v17, %v2676_v0  ;;  %v2707_v50 = vsel %vm2706_vm14, 1, %v9929_v60 }
 0x2e6   : > { %v2685_v55 = vsel %vm2684_vm13, 1, %v9929_v60  ;;  %v2708_v7 = vadd.s32 %v2702_v11, %v2698_v61  ;;  %vm2789_vm15 = vcmp.gt.s32.totalorder %v2788_v39, 0  ;;  %v2709_v36 = vadd.s32 %v2707_v50, %v2701_v41 }
 0x2e7   : > { %v2589_v33 = vmul.f32 %v2588_v29, %v2586_v48  ;;  %v2687_v23 = vadd.s32 %v2685_v55, %v2679_v40  ;;  %vm2688_vm0 = vc.u32 %v2686_v5, %v2682_v26  ;;  %v2662_v12 = vsel %vm2656_vm10, %v2659_v4, %v2661_v43 }
 0x2e8   : > { %v2689_v35 = vsel %vm2688_vm0, 1, %v9929_v60  ;;  %vm2710_vm2 = vc.u32 %v2708_v7, %v2704_v19  ;;  %v2790_v15 = vsel %vm2789_vm15, %v2788_v39, 0  ;;  %v2681_v56 = vshrl.u32 %v2677_v16, 16 }
 0x2e9   : > { %v2590_v13 = vxor.u32 2147483648, %v2589_v33  ;;  %v2691_v1 = vadd.s32 %v2689_v35, %v2687_v23  ;;  %v2711_v18 = vsel %vm2710_vm2, 1, %v9929_v60  ;;  %v2612_v9 = vadd.s32 3, %v2595_v57 }
 0x2ea   : > { %v2703_v22 = vshrl.u32 %v2699_v51, 16  ;;  %v2713_v20 = vadd.s32 %v2711_v18, %v2709_v36  ;;  %v2792_v59 = vand.u32 31, %v2790_v15  ;;  %v2683_v34 = vshrl.u32 %v2678_v62, 16 }
 0x2eb   : > { %v2591_v37 = vsel %vm2470_vm1, %v2590_v13, %v2589_v33  ;;  %v2692_v61 = vadd.s32 %v2691_v1, %v2681_v56  ;;  %v2716_v47 = vmul.u32 %v7641_v28, %v2662_v12  ;;  %v2705_v4 = vshrl.u32 %v2700_v14, 16 }
 0x2ec   : > { %v2594_v39 = vsel %vm7683_vm7, %v7356_v10, %v2591_v37  ;;  %v2714_v16 = vadd.s32 %v2713_v20, %v2703_v22  ;;  %v7748_v43 = vsub.s32 32, %v2792_v59  ;;  %v7752_v51 = vadd.s32 %v2708_v7, %v2704_v19 }
 0x2ed   : > { %v2596_v11 = vmul.f32 %v2594_v39, %v2594_v39  ;;  %v7750_v57 = vadd.s32 %v2692_v61, %v2683_v34  ;;  %v7754_v53 = vshrl.u32 %v2790_v15, 5  ;;  %v2795_v62 = vshll.u32 %v9928_v42, %v2792_v59 }
 0x2ee   : > { %v2715_v0 = vadd.s32 %v2714_v16, %v2705_v4  ;;  %v2798_v28 = vshll.u32 %v9932_v3, %v2792_v59  ;;  %v2799_v6 = vshrl.u32 %v9933_v63, %v7748_v43  ;;  %v2801_v41 = vshll.u32 %v9933_v63, %v2792_v59 }
 0x2ef   : > { %v2597_v17 = vmul.f32 -0.001358992, %v2596_v11  ;;  %v2604_v14 = vmul.f32 -0.00019511016, %v2596_v11  ;;  %vm2718_vm1 = vc.u32 %v7750_v57, %v7752_v51  ;;  %v2796_v40 = vshrl.u32 %v9932_v3, %v7748_v43 }
 0x2f0   : > { %v2719_v29 = vadd.s32 1, %v2715_v0  ;;  %v7765_v26 = vor.u32 %v2799_v6, %v2798_v28  ;;  %v2802_v19 = vshrl.u32 %v9934_v2, %v7748_v43  ;;  %v2804_v55 = vshll.u32 %v9934_v2, %v2792_v59 }
 0x2f1   : > { %v2598_v48 = vadd.f32 0.041655596, %v2597_v17  ;;  %v2605_v5 = vadd.f32 0.008332121, %v2604_v14  ;;  %v2805_v50 = vshrl.u32 %v9942_v21, %v7748_v43  ;;  %v2807_v23 = vshll.u32 %v9942_v21, %v2792_v59 }
 0x2f2   : > { %v2720_v7 = vsel %vm2718_vm1, %v2719_v29, %v2715_v0  ;;  %v7772_v33 = vor.u32 %v2802_v19, %v2801_v41  ;;  %v2808_v36 = vshrl.u32 %v9935_v44, %v7748_v43  ;;  %v2613_v56 = vand.u32 3, %v2612_v9 }
 0x2f3   : > { %v2599_v12 = vmul.f32 %v2598_v48, %v2596_v11  ;;  %v2606_v35 = vmul.f32 %v2605_v5, %v2596_v11  ;;  %v2721_v15 = vadd.s32 %v2720_v7, %v2716_v47  ;;  %v2806_v13 = vor.u32 %v2805_v50, %v2804_v55 }
 0x2f4   : > { %v2786_v1 = vor.u32 8388608, %v7665_v45  ;;  %v7778_v18 = vor.u32 %v2796_v40, %v2795_v62  ;;  %v2809_v22 = vor.u32 %v2808_v36, %v2807_v23  ;;  %vm2813_vm3 = vcmp.lt.s32.totalorder %v7754_v53, 4 }
 0x2f5   : > { %v2600_v20 = vadd.f32 -0.4999988, %v2599_v12  ;;  %v2607_v37 = vadd.f32 -0.16666654, %v2606_v35  ;;  %v2722_v34 = vadd.s32 536870912, %v2721_v15  ;;  %vm2810_vm4 = vcmp.lt.s32.totalorder %v7754_v53, 1 }
 0x2f6   : > { %vm2812_vm5 = vcmp.lt.s32.totalorder %v7754_v53, 3  ;;  %v2819_v59 = vsel %vm2813_vm3, %v2806_v13, 920167782  ;;  %v2823_v9 = vsel %vm2813_vm3, %v2809_v22, 1326507024  ;;  %v2822_v4 = vsel %vm2810_vm4, %v7765_v26, %v7772_v33 }
 0x2f7   : > { %v2601_v61 = vmul.f32 %v2600_v20, %v2596_v11  ;;  %v2608_v45 = vmul.f32 %v2607_v37, %v2596_v11  ;;  %v7787_v47 = vshrl.u32 %v2722_v34, 30  ;;  %vm2811_vm6 = vcmp.lt.s32.totalorder %v7754_v53, 2 }
 0x2f8   : > { %v2818_v16 = vsel %vm2810_vm4, %v7778_v18, %v7765_v26  ;;  %v2824_v0 = vsel %vm2812_vm5, %v2806_v13, %v2823_v9  ;;  %v7800_v62 = vshll.u32 %v2786_v1, 8  ;;  %v2820_v17 = vsel %vm2812_vm5, %v7772_v33, %v2819_v59 }
 0x2f9   : > { %v2602_v11 = vadd.f32 1.0, %v2601_v61  ;;  %v2609_v28 = vadd.f32 1.0, %v2608_v45  ;;  %v2724_v6 = vshll.u32 %v7787_v47, 30  ;;  %v399_v14 = vadd.f32 %v7650_v8, %v7647_v25 }
 0x2fa   : > { %v7810_v41 = vadd.f32 %v5889_v38, %v7652_v27  ;;  %vm2611_vm7 = vweird.f32 %v7356_v10  ;;  %v2825_v29 = vsel %vm2811_vm6, %v2822_v4, %v2824_v0  ;;  %vm2618_vm8 = vcmp.eq.s32.totalorder %v2613_v56, 2 }
 0x2fb   : > { %v2610_v40 = vmul.f32 %v2609_v28, %v2594_v39  ;;  %v2619_v19 = vxor.u32 2147483648, %v2602_v11  ;;  %v2725_v48 = vsub.s32 %v2721_v15, %v2724_v6  ;;  %v2821_v5 = vsel %vm2811_vm6, %v2818_v16, %v2820_v17 }
 0x2fc   : > { %v2827_v55 = vand.u32 65535, %v7800_v62  ;;  %v2829_v50 = vand.u32 65535, %v2825_v29  ;;  %v2830_v25 = vshrl.u32 %v2825_v29, 16  ;;  %v2828_v7 = vshrl.u32 %v7800_v62, 16 }
 0x2fd   : > { %v2616_v8 = vxor.u32 2147483648, %v2610_v40  ;;  %vm2726_vm10 = vcmp.lt.s32.totalorder %v2725_v48, 0  ;;  %v2727_v27 = vsub.s32 0, %v2725_v48  ;;  %vm2614_vm9 = vcmp.lt.s32.totalorder %v2613_v56, 2 }
 0x2fe   : > { %vm2615_vm11 = vcmp.eq.s32.totalorder %v2613_v56, 0  ;;  %v2620_v23 = vsel %vm2618_vm8, %v2619_v19, %v2610_v40  ;;  %v2832_v36 = vmul.u32 %v2830_v25, %v2827_v55  ;;  %v2833_v35 = vmul.u32 %v2829_v50, %v2828_v7 }
 0x2ff   : > { %v2617_v39 = vsel %vm2615_vm11, %v2602_v11, %v2616_v8  ;;  %v2728_v12 = vsel %vm2726_vm10, %v2727_v27, %v2725_v48  ;;  %v2852_v15 = vshrl.u32 %v2821_v5, 16  ;;  %v2851_v20 = vand.u32 65535, %v2821_v5 }
 0x300   : > { %v2621_v13 = vsel %vm2614_vm9, %v2617_v39, %v2620_v23  ;;  %v2729_v1 = vclz %v2728_v12  ;;  %v2835_v22 = vshll.u32 %v2832_v36, 16  ;;  %v7820_v37 = vadd.f32 %v5914_v58, %v399_v14 }
 0x301   : > { %v2622_v34 = vsel %vm2611_vm7, nan, %v2621_v13  ;;  %v2794_v56 = vshrl.u32 %v9928_v42, %v7748_v43  ;;  %v2831_v59 = vmul.u32 %v2829_v50, %v2827_v55  ;;  %v2717_v9 = vadd.s32 %v7752_v51, %v7750_v57 }
 0x302   : > { %v5576_v61 = vadd.s32 4294967294, %v2729_v1  ;;  %v2815_v45 = vsel %vm2813_vm3, %v7772_v33, 2102212464  ;;  %v2834_v4 = vmul.u32 %v2830_v25, %v2828_v7  ;;  %5426 = vst [vmem:[%s6197_s6 + $0x68] sm:$0xff] %v2622_v34  ;;  %v2837_v16 = vshll.u32 %v2833_v35, 16 }
 0x303   : > { %vm2839_vm12 = vc.u32 %v2831_v59, %v2835_v22  ;;  %v2841_v0 = vadd.s32 %v2835_v22, %v2831_v59  ;;  %v2854_v11 = vmul.u32 %v2852_v15, %v2827_v55  ;;  %vm2625_vm13 = vcmp.lt.s32.totalorder %v7532_v24, 0 }
 0x304   : > { %vm5577_vm14 = vcmp.lt.s32.totalorder %v5576_v61, 0  ;;  %v2836_v10 = vshrl.u32 %v2832_v36, 16  ;;  %v2840_v43 = vsel %vm2839_vm12, 1, %v9929_v60  ;;  %v2855_v28 = vmul.u32 %v2851_v20, %v2828_v7 }
 0x305   : > { %v2732_v6 = vsel %vm5577_vm14, 0, %v5576_v61  ;;  %v2842_v57 = vadd.s32 %v2840_v43, %v2834_v4  ;;  %vm2843_vm15 = vc.u32 %v2841_v0, %v2837_v16  ;;  %v2857_v51 = vshll.u32 %v2854_v11, 16  ;;  %v319_v43 = vpop.permute.xlu2 %318 }
 0x306   : > { %v2733_v17 = vsub.s32 32, %v2732_v6  ;;  %v2737_v14 = vsub.s32 4294967266, %v2732_v6  ;;  %v2844_v33 = vsel %vm2843_vm15, 1, %v9929_v60  ;;  %v2853_v29 = vmul.u32 %v2851_v20, %v2827_v55 }
 0x307   : > { %v2734_v40 = vshll.u32 %v2725_v48, %v2732_v6  ;;  %v2846_v19 = vadd.s32 %v2844_v33, %v2842_v57  ;;  %v2856_v5 = vmul.u32 %v2852_v15, %v2828_v7  ;;  %v2859_v50 = vshll.u32 %v2855_v28, 16 }
 0x308   : > { %v2735_v25 = vshrl.u32 %v2717_v9, %v2733_v17  ;;  %v2738_v8 = vadd.s32 127, %v2737_v14  ;;  %vm2861_vm0 = vc.u32 %v2853_v29, %v2857_v51  ;;  %v2863_v27 = vadd.s32 %v2857_v51, %v2853_v29  ;;  %v9970_v51 = vld [vmem:[#allocation9_spill] sm:$0xff] }
 0x309   : > { %v2747_v23 = vsub.s32 4, %v7787_v47  ;;  %v2847_v36 = vadd.s32 %v2846_v19, %v2836_v10  ;;  %v2862_v39 = vsel %vm2861_vm0, 1, %v9929_v60  ;;  %v2933_v12 = vand.u32 2147483647, %v7810_v41 }
 0x30a   : > { %v2736_v13 = vor.u32 %v2735_v25, %v2734_v40  ;;  %v2739_v1 = vshll.u32 %v2738_v8, 23  ;;  %v2864_v22 = vadd.s32 %v2862_v39, %v2856_v5  ;;  %vm2865_vm2 = vc.u32 %v2863_v27, %v2859_v50 }
 0x30b   : > { %v2814_v48 = vsel %vm2810_vm4, %v2794_v56, %v7778_v18  ;;  %v2816_v55 = vsel %vm2812_vm5, %v7765_v26, %v2815_v45  ;;  %v2838_v7 = vshrl.u32 %v2833_v35, 16  ;;  %v2866_v15 = vsel %vm2865_vm2, 1, %v9929_v60 }
 0x30c   : > { %v2740_v20 = vor.u32 4788187, %v2739_v1  ;;  %v2858_v34 = vshrl.u32 %v2854_v11, 16  ;;  %v2868_v59 = vadd.s32 %v2866_v15, %v2864_v22  ;;  %v2936_v9 = vand.u32 2139095040, %v7810_v41 }
 0x30d   : > { %v2743_v61 = vcvt.s32.f32 %v2736_v13  ;;  %v2748_v4 = vsel %vm2625_vm13, %v2747_v23, %v7787_v47  ;;  %v2848_v16 = vadd.s32 %v2847_v36, %v2838_v7  ;;  %v2860_v0 = vshrl.u32 %v2855_v28, 16 }
 0x30e   : > { %v2741_v18 = vand.u32 2147483647, %v2740_v20  ;;  %v2869_v56 = vadd.s32 %v2868_v59, %v2858_v34  ;;  %v2937_v10 = vshrl.u32 %v2936_v9, 23  ;;  %v2940_v26 = vand.u32 8388607, %v2933_v12 }
 0x30f   : > { %vm7853_vm1 = vcmp.le.f32.partialorder %v2623_v30, 0.7853982  ;;  %v2867_v45 = vadd.s32 %v2863_v27, %v2859_v50  ;;  %v3091_v11 = vand.u32 2139095040, %v7820_v37  ;;  %v2817_v47 = vsel %vm2811_vm6, %v2814_v48, %v2816_v55 }
 0x310   : > { %v2744_v6 = vmul.f32 %v2743_v61, %v2741_v18  ;;  %v2870_v28 = vadd.s32 %v2869_v56, %v2860_v0  ;;  %v5581_v57 = vadd.s32 4294967169, %v2937_v10  ;;  %v265_v17 = vmul.f32 %v5880_v31, %v9970_v51 }
 0x311   : > { %v2750_v14 = vsel %vm7853_vm1, 0, %v2748_v4  ;;  %vm2873_vm3 = vc.u32 %v2848_v16, %v2867_v45  ;;  %v2941_v29 = vor.u32 8388608, %v2940_v26  ;;  %v368_v19 = vmul.f32 %v5882_v32, %v319_v43 }
 0x312   : > { %v2745_v30 = vxor.u32 2147483648, %v2744_v6  ;;  %v2874_v33 = vadd.s32 1, %v2870_v28  ;;  %v2943_v40 = vadd.s32 1, %v5581_v57  ;;  %v369_v5 = vmul.f32 %v5903_v49, %v319_v43 }
 0x313   : > { %v2871_v53 = vmul.u32 %v7800_v62, %v2817_v47  ;;  %v3092_v50 = vshrl.u32 %v3091_v11, 23  ;;  %v266_v25 = vmul.f32 %v5908_v52, %v9970_v51  ;;  %v2767_v36 = vadd.s32 3, %v2750_v14 }
 0x314   : > { %v2746_v8 = vsel %vm2625_vm13, %v2745_v30, %v2744_v6  ;;  %v2875_v27 = vsel %vm2873_vm3, %v2874_v33, %v2870_v28  ;;  %vm2944_vm4 = vcmp.gt.s32.totalorder %v2943_v40, 0  ;;  %v7878_v22 = vshll.u32 %v2941_v29, 8 }
 0x315   : > { %v7874_v23 = vsel %vm7853_vm1, %v7532_v24, %v2746_v8  ;;  %v2876_v39 = vadd.s32 %v2875_v27, %v2871_v53  ;;  %v2945_v13 = vsel %vm2944_vm4, %v2943_v40, 0  ;;  %v7880_v48 = vadd.f32 %v368_v19, %v265_v17 }
 0x316   : > { %v2751_v62 = vmul.f32 %v7874_v23, %v7874_v23  ;;  %v2947_v1 = vand.u32 31, %v2945_v13  ;;  %v7882_v55 = vadd.f32 %v369_v5, %v266_v25  ;;  %v5584_v15 = vadd.s32 4294967169, %v3092_v50 }
 0x317   : > { %v2877_v7 = vadd.s32 536870912, %v2876_v39  ;;  %vm2780_vm5 = vcmp.lt.s32.totalorder %v7624_v54, 0  ;;  %v7885_v9 = vand.u32 3, %v2767_v36  ;;  %v7887_v61 = vadd.s32 %v2867_v45, %v2848_v16 }
 0x318   : > { %v2752_v20 = vmul.f32 -0.001358992, %v2751_v62  ;;  %v2759_v34 = vmul.f32 -0.00019511016, %v2751_v62  ;;  %v2948_v59 = vsub.s32 32, %v2947_v1  ;;  %v7897_v26 = vand.u32 65535, %v7878_v22 }
 0x319   : > { %v2878_v4 = vshrl.u32 %v2877_v7, 30  ;;  %v3088_v0 = vand.u32 2147483647, %v7820_v37  ;;  %vm7892_vm6 = vcmp.le.f32.partialorder %v2778_v46, 0.7853982  ;;  %v7900_v35 = vshrl.u32 %v7878_v22, 16 }
 0x31a   : > { %v2753_v18 = vadd.f32 0.041655596, %v2752_v20  ;;  %v2760_v56 = vadd.f32 0.008332121, %v2759_v34  ;;  %v7902_v16 = vshrl.u32 %v2945_v13, 5  ;;  %v2951_v45 = vshrl.u32 %v9932_v3, %v2948_v59 }
 0x31b   : > { %v2879_v11 = vshll.u32 %v2878_v4, 30  ;;  %v7905_v43 = vadd.s32 1, %v5584_v15  ;;  %v2902_v28 = vsub.s32 4, %v2878_v4  ;;  %v2950_v46 = vshll.u32 %v9928_v42, %v2947_v1 }
 0x31c   : > { %v2754_v6 = vmul.f32 %v2753_v18, %v2751_v62  ;;  %v2761_v47 = vmul.f32 %v2760_v56, %v2751_v62  ;;  %v2953_v51 = vshll.u32 %v9932_v3, %v2947_v1  ;;  %v2954_v17 = vshrl.u32 %v9933_v63, %v2948_v59 }
 0x31d   : > { %v7908_v57 = vsub.s32 %v2876_v39, %v2879_v11  ;;  %v2960_v14 = vshrl.u32 %v9942_v21, %v2948_v59  ;;  %v2956_v29 = vshll.u32 %v9933_v63, %v2947_v1  ;;  %v2957_v40 = vshrl.u32 %v9934_v2, %v2948_v59 }
 0x31e   : > { %v2755_v30 = vadd.f32 -0.4999988, %v2754_v6  ;;  %v2762_v33 = vadd.f32 -0.16666654, %v2761_v47  ;;  %vm2770_vm7 = vcmp.eq.s32.totalorder %v7885_v9, 0  ;;  %vm2773_vm8 = vcmp.eq.s32.totalorder %v7885_v9, 2 }
 0x31f   : > { %vm2881_vm10 = vcmp.lt.s32.totalorder %v7908_v57, 0  ;;  %v2882_v19 = vsub.s32 0, %v7908_v57  ;;  %v2952_v5 = vor.u32 %v2951_v45, %v2950_v46  ;;  %v2959_v53 = vshll.u32 %v9934_v2, %v2947_v1 }
 0x320   : > { %v2756_v50 = vmul.f32 %v2755_v30, %v2751_v62  ;;  %v2763_v25 = vmul.f32 %v2762_v33, %v2751_v62  ;;  %vm2769_vm9 = vcmp.lt.s32.totalorder %v7885_v9, 2  ;;  %v2903_v8 = vsel %vm2780_vm5, %v2902_v28, %v2878_v4 }
 0x321   : > { %v2963_v27 = vshrl.u32 %v9935_v44, %v2948_v59  ;;  %vm2766_vm11 = vweird.f32 %v7532_v24  ;;  %v2883_v36 = vsel %vm2881_vm10, %v2882_v19, %v7908_v57  ;;  %v2955_v39 = vor.u32 %v2954_v17, %v2953_v51 }
 0x322   : > { %v2961_v13 = vor.u32 %v2960_v14, %v2959_v53  ;;  %v2962_v7 = vshll.u32 %v9942_v21, %v2947_v1  ;;  %v2757_v15 = vadd.f32 1.0, %v2756_v50  ;;  %v2764_v20 = vadd.f32 1.0, %v2763_v25 }
 0x323   : > { %v2884_v34 = vclz %v2883_v36  ;;  %v2958_v18 = vor.u32 %v2957_v40, %v2956_v29  ;;  %v2905_v62 = vsel %vm7892_vm6, 0, %v2903_v8  ;;  %v2949_v56 = vshrl.u32 %v9928_v42, %v2948_v59 }
 0x324   : > { %v2964_v4 = vor.u32 %v2963_v27, %v2962_v7  ;;  %vm2965_vm12 = vcmp.lt.s32.totalorder %v7902_v16, 1  ;;  %vm3099_vm13 = vcmp.gt.s32.totalorder %v7905_v43, 0  ;;  %v2765_v11 = vmul.f32 %v2764_v20, %v7874_v23 }
 0x325   : > { %v2774_v45 = vxor.u32 2147483648, %v2757_v15  ;;  %v5579_v6 = vadd.s32 4294967294, %v2884_v34  ;;  %vm2968_vm14 = vcmp.lt.s32.totalorder %v7902_v16, 4  ;;  %vm2966_vm15 = vcmp.lt.s32.totalorder %v7902_v16, 2 }
 0x326   : > { %vm2967_vm0 = vcmp.lt.s32.totalorder %v7902_v16, 3  ;;  %v2969_v1 = vsel %vm2965_vm12, %v2949_v56, %v2952_v5  ;;  %v2974_v47 = vsel %vm2968_vm14, %v2961_v13, 920167782  ;;  %v2771_v59 = vxor.u32 2147483648, %v2765_v11 }
 0x327   : > { %vm5580_vm2 = vcmp.lt.s32.totalorder %v5579_v6, 0  ;;  %v2970_v28 = vsel %vm2968_vm14, %v2958_v18, 2102212464  ;;  %v2973_v46 = vsel %vm2965_vm12, %v2952_v5, %v2955_v39  ;;  %v2975_v23 = vsel %vm2967_vm0, %v2958_v18, %v2974_v47 }
 0x328   : > { %v2887_v51 = vsel %vm5580_vm2, 0, %v5579_v6  ;;  %v2977_v17 = vsel %vm2965_vm12, %v2955_v39, %v2958_v18  ;;  %v2978_v14 = vsel %vm2968_vm14, %v2964_v4, 1326507024  ;;  %v2772_v30 = vsel %vm2770_vm7, %v2757_v15, %v2771_v59 }
 0x329   : > { %v2775_v33 = vsel %vm2773_vm8, %v2774_v45, %v2765_v11  ;;  %v2888_v29 = vsub.s32 32, %v2887_v51  ;;  %v2892_v40 = vsub.s32 4294967266, %v2887_v51  ;;  %v2889_v5 = vshll.u32 %v7908_v57, %v2887_v51 }
 0x32a   : > { %v2776_v19 = vsel %vm2769_vm9, %v2772_v30, %v2775_v33  ;;  %v2976_v53 = vsel %vm2966_vm15, %v2973_v46, %v2975_v23  ;;  %v2979_v50 = vsel %vm2967_vm0, %v2961_v13, %v2978_v14  ;;  %v2971_v9 = vsel %vm2967_vm0, %v2955_v39, %v2970_v28 }
 0x32b   : > { %v2777_v25 = vsel %vm2766_vm11, nan, %v2776_v19  ;;  %v2890_v8 = vshrl.u32 %v7887_v61, %v2888_v29  ;;  %v2893_v27 = vadd.s32 127, %v2892_v40  ;;  %v2980_v36 = vsel %vm2966_vm15, %v2977_v17, %v2979_v50 }
 0x32c   : > { %v2984_v7 = vand.u32 65535, %v2980_v36  ;;  %v2985_v57 = vshrl.u32 %v2980_v36, 16  ;;  %v3007_v15 = vshrl.u32 %v2976_v53, 16  ;;  %5427 = vst [vmem:[%s6197_s6 + $0x70] sm:$0xff] %v2777_v25  ;;  %v7965_v20 = vadd.f32 %v5889_v38, %v7880_v48 }
 0x32d   : > { %v2891_v13 = vor.u32 %v2890_v8, %v2889_v5  ;;  %v2894_v24 = vshll.u32 %v2893_v27, 23  ;;  %v3006_v34 = vand.u32 65535, %v2976_v53  ;;  %v7967_v18 = vadd.s32 3, %v2905_v62 }
 0x32e   : > { %v2987_v61 = vmul.u32 %v2985_v57, %v7897_v26  ;;  %v2988_v56 = vmul.u32 %v2984_v7, %v7900_v35  ;;  %v7973_v39 = vand.u32 8388607, %v3088_v0  ;;  %v7977_v11 = vsel %vm2966_vm15, %v2969_v1, %v2971_v9 }
 0x32f   : > { %v2895_v4 = vor.u32 4788187, %v2894_v24  ;;  %v3009_v48 = vmul.u32 %v3007_v15, %v7897_v26  ;;  %v3100_v62 = vsel %vm3099_vm13, %v7905_v43, 0  ;;  %v2898_v45 = vcvt.s32.f32 %v2891_v13 }
 0x330   : > { %v2986_v6 = vmul.u32 %v2984_v7, %v7897_v26  ;;  %v2989_v47 = vmul.u32 %v2985_v57, %v7900_v35  ;;  %v2990_v59 = vshll.u32 %v2987_v61, 16  ;;  %v3008_v46 = vmul.u32 %v3006_v34, %v7897_v26 }
 0x331   : > { %v2896_v28 = vand.u32 2147483647, %v2895_v4  ;;  %v3010_v51 = vmul.u32 %v3006_v34, %v7900_v35  ;;  %v3012_v16 = vshll.u32 %v3009_v48, 16  ;;  %v2991_v1 = vshrl.u32 %v2987_v61, 16 }
 0x332   : > { %v2992_v23 = vshll.u32 %v2988_v56, 16  ;;  %vm2994_vm1 = vc.u32 %v2986_v6, %v2990_v59  ;;  %v2996_v17 = vadd.s32 %v2990_v59, %v2986_v6  ;;  %v3011_v43 = vmul.u32 %v3007_v15, %v7900_v35 }
 0x333   : > { %v2899_v14 = vmul.f32 %v2898_v45, %v2896_v28  ;;  %v2995_v30 = vsel %vm2994_vm1, 1, %v9929_v60  ;;  %v3014_v33 = vshll.u32 %v3010_v51, 16  ;;  %vm3016_vm4 = vc.u32 %v3008_v46, %v3012_v16 }
 0x334   : > { %v2997_v29 = vadd.s32 %v2995_v30, %v2989_v47  ;;  %vm2998_vm3 = vc.u32 %v2996_v17, %v2992_v23  ;;  %v3018_v40 = vadd.s32 %v3012_v16, %v3008_v46  ;;  %v3017_v5 = vsel %vm3016_vm4, 1, %v9929_v60 }
 0x335   : > { %v2900_v19 = vxor.u32 2147483648, %v2899_v14  ;;  %v2999_v26 = vsel %vm2998_vm3, 1, %v9929_v60  ;;  %v3102_v53 = vand.u32 31, %v3100_v62  ;;  %v2993_v50 = vshrl.u32 %v2988_v56, 16 }
 0x336   : > { %v3001_v25 = vadd.s32 %v2999_v26, %v2997_v29  ;;  %v3019_v8 = vadd.s32 %v3017_v5, %v3011_v43  ;;  %vm3020_vm7 = vc.u32 %v3018_v40, %v3014_v33  ;;  %v3013_v36 = vshrl.u32 %v3009_v48, 16 }
 0x337   : > { %v2901_v27 = vsel %vm2780_vm5, %v2900_v19, %v2899_v14  ;;  %v3021_v35 = vsel %vm3020_vm7, 1, %v9929_v60  ;;  %v7994_v9 = vsub.s32 32, %v3102_v53  ;;  %v7999_v13 = vshrl.u32 %v3100_v62, 5 }
 0x338   : > { %v2904_v7 = vsel %vm7892_vm6, %v7624_v54, %v2901_v27  ;;  %v3002_v57 = vadd.s32 %v3001_v25, %v2991_v1  ;;  %v3023_v15 = vadd.s32 %v3021_v35, %v3019_v8  ;;  %v3015_v34 = vshrl.u32 %v3010_v51, 16 }
 0x339   : > { %v2906_v24 = vmul.f32 %v2904_v7, %v2904_v7  ;;  %v8001_v61 = vadd.s32 %v3018_v40, %v3014_v33  ;;  %v3106_v56 = vshrl.u32 %v9932_v3, %v7994_v9  ;;  %v3105_v45 = vshll.u32 %v9928_v42, %v3102_v53 }
 0x33a   : > { %v8005_v4 = vadd.s32 %v3002_v57, %v2993_v50  ;;  %v3024_v48 = vadd.s32 %v3023_v15, %v3013_v36  ;;  %v3109_v10 = vshrl.u32 %v9933_v63, %v7994_v9  ;;  %v3108_v62 = vshll.u32 %v9932_v3, %v3102_v53 }
 0x33b   : > { %v2907_v6 = vmul.f32 -0.001358992, %v2906_v24  ;;  %v2914_v47 = vmul.f32 -0.00019511016, %v2906_v24  ;;  %v3111_v59 = vshll.u32 %v9933_v63, %v3102_v53  ;;  %v8014_v46 = vor.u32 %v3106_v56, %v3105_v45 }
 0x33c   : > { %v3025_v28 = vadd.s32 %v3024_v48, %v3015_v34  ;;  %vm3028_vm5 = vc.u32 %v8005_v4, %v8001_v61  ;;  %v3112_v51 = vshrl.u32 %v9934_v2, %v7994_v9  ;;  %v3114_v23 = vshll.u32 %v9934_v2, %v3102_v53 }
 0x33d   : > { %v2908_v16 = vadd.f32 0.041655596, %v2907_v6  ;;  %v2915_v1 = vadd.f32 0.008332121, %v2914_v47  ;;  %v3115_v17 = vshrl.u32 %v9942_v21, %v7994_v9  ;;  %v8021_v30 = vor.u32 %v3109_v10, %v3108_v62 }
 0x33e   : > { %v3029_v14 = vadd.s32 1, %v3025_v28  ;;  %v3117_v43 = vshll.u32 %v9942_v21, %v3102_v53  ;;  %v3118_v33 = vshrl.u32 %v9935_v44, %v7994_v9  ;;  %v3026_v19 = vmul.u32 %v7878_v22, %v7977_v11 }
 0x33f   : > { %v2909_v29 = vmul.f32 %v2908_v16, %v2906_v24  ;;  %v2916_v40 = vmul.f32 %v2915_v1, %v2906_v24  ;;  %v3116_v26 = vor.u32 %v3115_v17, %v3114_v23  ;;  %v3113_v50 = vor.u32 %v3112_v51, %v3111_v59 }
 0x340   : > { %v3030_v5 = vsel %vm3028_vm5, %v3029_v14, %v3025_v28  ;;  %v3119_v25 = vor.u32 %v3118_v33, %v3117_v43  ;;  %vm3120_vm6 = vcmp.lt.s32.totalorder %v7999_v13, 1  ;;  %vm3123_vm8 = vcmp.lt.s32.totalorder %v7999_v13, 4 }
 0x341   : > { %v2910_v8 = vadd.f32 -0.4999988, %v2909_v29  ;;  %v2917_v27 = vadd.f32 -0.16666654, %v2916_v40  ;;  %v3031_v36 = vadd.s32 %v3030_v5, %v3026_v19  ;;  %v2923_v53 = vand.u32 3, %v7967_v18 }
 0x342   : > { %v3096_v35 = vor.u32 8388608, %v7973_v39  ;;  %v3128_v22 = vsel %vm3120_vm6, %v8014_v46, %v8021_v30  ;;  %v3129_v11 = vsel %vm3123_vm8, %v3116_v26, 920167782  ;;  %vm3122_vm10 = vcmp.lt.s32.totalorder %v7999_v13, 3 }
 0x343   : > { %v2911_v57 = vmul.f32 %v2910_v8, %v2906_v24  ;;  %v2918_v15 = vmul.f32 %v2917_v27, %v2906_v24  ;;  %v3032_v34 = vadd.s32 536870912, %v3031_v36  ;;  %vm3121_vm9 = vcmp.lt.s32.totalorder %v7999_v13, 2 }
 0x344   : > { %v3130_v18 = vsel %vm3122_vm10, %v3113_v50, %v3129_v11  ;;  %v3132_v39 = vsel %vm3120_vm6, %v8021_v30, %v3113_v50  ;;  %v3133_v56 = vsel %vm3123_vm8, %v3119_v25, 1326507024  ;;  %v8053_v6 = vadd.f32 %v5914_v58, %v7882_v55 }
 0x345   : > { %v2912_v48 = vadd.f32 1.0, %v2911_v57  ;;  %v2919_v45 = vadd.f32 1.0, %v2918_v15  ;;  %v8047_v10 = vshrl.u32 %v3032_v34, 30  ;;  %v3131_v24 = vsel %vm3121_vm9, %v3128_v22, %v3130_v18 }
 0x346   : > { %vm2921_vm11 = vweird.f32 %v7624_v54  ;;  %v3134_v47 = vsel %vm3122_vm10, %v3116_v26, %v3133_v56  ;;  %v8058_v62 = vshll.u32 %v3096_v35, 8  ;;  %vm2924_vm12 = vcmp.lt.s32.totalorder %v2923_v53, 2 }
 0x347   : > { %v2920_v59 = vmul.f32 %v2919_v45, %v2904_v7  ;;  %v2929_v28 = vxor.u32 2147483648, %v2912_v48  ;;  %v3034_v51 = vshll.u32 %v8047_v10, 30  ;;  %vm2925_vm13 = vcmp.eq.s32.totalorder %v2923_v53, 0 }
 0x348   : > { %vm2928_vm14 = vcmp.eq.s32.totalorder %v2923_v53, 2  ;;  %v3135_v16 = vsel %vm3121_vm9, %v3132_v39, %v3134_v47  ;;  %v3162_v1 = vshrl.u32 %v3131_v24, 16  ;;  %v3104_v17 = vshrl.u32 %v9928_v42, %v7994_v9 }
 0x349   : > { %v2926_v55 = vxor.u32 2147483648, %v2920_v59  ;;  %v3035_v23 = vsub.s32 %v3031_v36, %v3034_v51  ;;  %v3161_v14 = vand.u32 65535, %v3131_v24  ;;  %v3137_v43 = vand.u32 65535, %v8058_v62 }
 0x34a   : > { %v3138_v7 = vshrl.u32 %v8058_v62, 16  ;;  %v3139_v33 = vand.u32 65535, %v3135_v16  ;;  %v3140_v29 = vshrl.u32 %v3135_v16, 16  ;;  %v2930_v19 = vsel %vm2928_vm14, %v2929_v28, %v2920_v59 }
 0x34b   : > { %v2927_v40 = vsel %vm2925_vm13, %v2912_v48, %v2926_v55  ;;  %vm3036_vm15 = vcmp.lt.s32.totalorder %v3035_v23, 0  ;;  %v3037_v26 = vsub.s32 0, %v3035_v23  ;;  %v3164_v27 = vmul.u32 %v3162_v1, %v3137_v43 }
 0x34c   : > { %v2931_v5 = vsel %vm2924_vm12, %v2927_v40, %v2930_v19  ;;  %v3142_v25 = vmul.u32 %v3140_v29, %v3137_v43  ;;  %v3143_v8 = vmul.u32 %v3139_v33, %v3138_v7  ;;  %v3027_v36 = vadd.s32 %v8001_v61, %v8005_v4 }
 0x34d   : > { %v2932_v9 = vsel %vm2921_vm11, nan, %v2931_v5  ;;  %v3038_v35 = vsel %vm3036_vm15, %v3037_v26, %v3035_v23  ;;  %v3165_v22 = vmul.u32 %v3161_v14, %v3138_v7  ;;  %v3125_v57 = vsel %vm3123_vm8, %v3113_v50, 2102212464 }
 0x34e   : > { %v3039_v11 = vclz %v3038_v35  ;;  %v3141_v15 = vmul.u32 %v3139_v33, %v3137_v43  ;;  %v3145_v34 = vshll.u32 %v3142_v25, 16  ;;  %5428 = vst [vmem:[%s6197_s6 + $0x78] sm:$0xff] %v2932_v9  ;;  %v3124_v53 = vsel %vm3120_vm6, %v3104_v17, %v8014_v46 }
 0x34f   : > { %v3144_v18 = vmul.u32 %v3140_v29, %v3138_v7  ;;  %v3147_v39 = vshll.u32 %v3143_v8, 16  ;;  %v3163_v54 = vmul.u32 %v3161_v14, %v3137_v43  ;;  %v3167_v61 = vshll.u32 %v3164_v27, 16 }
 0x350   : > { %v5582_v56 = vadd.s32 4294967294, %v3039_v11  ;;  %vm3149_vm0 = vc.u32 %v3141_v15, %v3145_v34  ;;  %v3151_v48 = vadd.s32 %v3145_v34, %v3141_v15  ;;  %v3126_v4 = vsel %vm3122_vm10, %v8021_v30, %v3125_v57 }
 0x351   : > { %v3150_v50 = vsel %vm3149_vm0, 1, %v9929_v60  ;;  %v3166_v45 = vmul.u32 %v3162_v1, %v3138_v7  ;;  %v3169_v24 = vshll.u32 %v3165_v22, 16  ;;  %vm3171_vm3 = vc.u32 %v3163_v54, %v3167_v61 }
 0x352   : > { %vm5583_vm2 = vcmp.lt.s32.totalorder %v5582_v56, 0  ;;  %v3152_v47 = vadd.s32 %v3150_v50, %v3144_v18  ;;  %vm3153_vm1 = vc.u32 %v3151_v48, %v3147_v39  ;;  %v3172_v28 = vsel %vm3171_vm3, 1, %v9929_v60 }
 0x353   : > { %v3042_v46 = vsel %vm5583_vm2, 0, %v5582_v56  ;;  %v3154_v59 = vsel %vm3153_vm1, 1, %v9929_v60  ;;  %v3173_v51 = vadd.s32 %v3167_v61, %v3163_v54  ;;  %v3146_v17 = vshrl.u32 %v3142_v25, 16  ;;  %v323_v61 = vpop.permute.xlu0 %322 }
 0x354   : > { %v3043_v16 = vsub.s32 32, %v3042_v46  ;;  %v3047_v55 = vsub.s32 4294967266, %v3042_v46  ;;  %v3156_v14 = vadd.s32 %v3154_v59, %v3152_v47  ;;  %v3044_v43 = vshll.u32 %v3035_v23, %v3042_v46 }
 0x355   : > { %v3148_v30 = vshrl.u32 %v3143_v8, 16  ;;  %v3174_v33 = vadd.s32 %v3172_v28, %v3166_v45  ;;  %vm3175_vm4 = vc.u32 %v3173_v51, %v3169_v24  ;;  %v3057_v19 = vsub.s32 4, %v8047_v10 }
 0x356   : > { %v3045_v1 = vshrl.u32 %v3027_v36, %v3043_v16  ;;  %v3048_v7 = vadd.s32 127, %v3047_v55  ;;  %v3157_v29 = vadd.s32 %v3156_v14, %v3146_v17  ;;  %v3176_v40 = vsel %vm3175_vm4, 1, %v9929_v60  ;;  %v9975_v55 = vld [vmem:[#allocation5_spill] sm:$0xff] }
 0x357   : > { %v3168_v26 = vshrl.u32 %v3164_v27, 16  ;;  %v3178_v5 = vadd.s32 %v3176_v40, %v3174_v33  ;;  %v3243_v9 = vand.u32 2147483647, %v7965_v20  ;;  %v3246_v25 = vand.u32 2139095040, %v7965_v20 }
 0x358   : > { %v3046_v35 = vor.u32 %v3045_v1, %v3044_v43  ;;  %v3049_v11 = vshll.u32 %v3048_v7, 23  ;;  %v3158_v57 = vadd.s32 %v3157_v29, %v3148_v30  ;;  %v3170_v23 = vshrl.u32 %v3165_v22, 16 }
 0x359   : > { %v3179_v8 = vadd.s32 %v3178_v5, %v3168_v26  ;;  %vm2935_vm7 = vcmp.lt.s32.totalorder %v7810_v41, 0  ;;  %v3127_v15 = vsel %vm3121_vm9, %v3124_v53, %v3126_v4  ;;  %v3177_v34 = vadd.s32 %v3173_v51, %v3169_v24 }
 0x35a   : > { %v3050_v36 = vor.u32 4788187, %v3049_v11  ;;  %v3058_v27 = vsel %vm2935_vm7, %v3057_v19, %v8047_v10  ;;  %v3247_v39 = vshrl.u32 %v3246_v25, 23  ;;  %v3250_v54 = vand.u32 8388607, %v3243_v9 }
 0x35b   : > { %v3180_v18 = vadd.s32 %v3179_v8, %v3170_v23  ;;  %v3053_v48 = vcvt.s32.f32 %v3046_v35  ;;  %vm3183_vm5 = vc.u32 %v3158_v57, %v3177_v34  ;;  %v3401_v22 = vand.u32 2139095040, %v8053_v6 }
 0x35c   : > { %v3051_v56 = vand.u32 2147483647, %v3050_v36  ;;  %vm8099_vm6 = vcmp.le.f32.partialorder %v2933_v12, 0.7853982  ;;  %v5587_v4 = vadd.s32 4294967169, %v3247_v39  ;;  %v3181_v45 = vmul.u32 %v8058_v62, %v3127_v15 }
 0x35d   : > { %v3184_v53 = vadd.s32 1, %v3180_v18  ;;  %v3060_v50 = vsel %vm8099_vm6, 0, %v3058_v27  ;;  %v3251_v47 = vor.u32 8388608, %v3250_v54  ;;  %v3398_v59 = vand.u32 2147483647, %v8053_v6 }
 0x35e   : > { %v3054_v10 = vmul.f32 %v3053_v48, %v3051_v56  ;;  %v3253_v46 = vadd.s32 1, %v5587_v4  ;;  %v370_v28 = vmul.f32 %v5882_v32, %v323_v61  ;;  %v3402_v16 = vshrl.u32 %v3401_v22, 23 }
 0x35f   : > { %v3185_v24 = vsel %vm3183_vm5, %v3184_v53, %v3180_v18  ;;  %v267_v17 = vmul.f32 %v5880_v31, %v9975_v55  ;;  %v8112_v14 = vmul.f32 %v5908_v52, %v9975_v55  ;;  %v3077_v43 = vadd.s32 3, %v3060_v50 }
 0x360   : > { %v3055_v51 = vxor.u32 2147483648, %v3054_v10  ;;  %v3186_v12 = vadd.s32 %v3185_v24, %v3181_v45  ;;  %vm3254_vm8 = vcmp.gt.s32.totalorder %v3253_v46, 0  ;;  %v8115_v62 = vmul.f32 %v5903_v49, %v323_v61 }
 0x361   : > { %v3255_v1 = vsel %vm3254_vm8, %v3253_v46, 0  ;;  %v8124_v40 = vshll.u32 %v3251_v47, 8  ;;  %v8128_v19 = vand.u32 8388607, %v3398_v59  ;;  %v8130_v26 = vadd.f32 %v370_v28, %v267_v17 }
 0x362   : > { %v3056_v30 = vsel %vm2935_vm7, %v3055_v51, %v3054_v10  ;;  %v3187_v33 = vadd.s32 536870912, %v3186_v12  ;;  %v3257_v29 = vand.u32 31, %v3255_v1  ;;  %v5590_v11 = vadd.s32 4294967169, %v3402_v16 }
 0x363   : > { %v8122_v7 = vsel %vm8099_vm6, %v7810_v41, %v3056_v30  ;;  %v8134_v25 = vand.u32 3, %v3077_v43  ;;  %vm8138_vm10 = vcmp.le.f32.partialorder %v3088_v0, 0.7853982  ;;  %vm3090_vm9 = vcmp.lt.s32.totalorder %v7820_v37, 0 }
 0x364   : > { %v3061_v5 = vmul.f32 %v8122_v7, %v8122_v7  ;;  %v3188_v35 = vshrl.u32 %v3187_v33, 30  ;;  %v3258_v8 = vsub.s32 32, %v3257_v29  ;;  %v3182_v39 = vadd.s32 %v3177_v34, %v3158_v57 }
 0x365   : > { %v8144_v54 = vand.u32 65535, %v8124_v40  ;;  %v8147_v56 = vshrl.u32 %v8124_v40, 16  ;;  %v3406_v48 = vor.u32 8388608, %v8128_v19  ;;  %v8152_v13 = vadd.s32 1, %v5590_v11 }
 0x366   : > { %v3062_v36 = vmul.f32 -0.001358992, %v3061_v5  ;;  %v3069_v15 = vmul.f32 -0.00019511016, %v3061_v5  ;;  %v3189_v27 = vshll.u32 %v3188_v35, 30  ;;  %v3212_v18 = vsub.s32 4, %v3188_v35 }
 0x367   : > { %v8158_v4 = vshrl.u32 %v3255_v1, 5  ;;  %v3260_v57 = vshll.u32 %v9928_v42, %v3257_v29  ;;  %v3261_v34 = vshrl.u32 %v9932_v3, %v3258_v8  ;;  %v3263_v24 = vshll.u32 %v9932_v3, %v3257_v29 }
 0x368   : > { %v3063_v0 = vadd.f32 0.041655596, %v3062_v36  ;;  %v3070_v22 = vadd.f32 0.008332121, %v3069_v15  ;;  %v8150_v61 = vsub.s32 %v3186_v12, %v3189_v27  ;;  %v8156_v53 = vsel %vm3090_vm9, %v3212_v18, %v3188_v35 }
 0x369   : > { %v3264_v47 = vshrl.u32 %v9933_v63, %v3258_v8  ;;  %v3266_v46 = vshll.u32 %v9933_v63, %v3257_v29  ;;  %v3267_v28 = vshrl.u32 %v9934_v2, %v3258_v8  ;;  %v3270_v55 = vshrl.u32 %v9942_v21, %v3258_v8 }
 0x36a   : > { %v3064_v10 = vmul.f32 %v3063_v0, %v3061_v5  ;;  %v3071_v50 = vmul.f32 %v3070_v22, %v3061_v5  ;;  %vm3191_vm11 = vcmp.lt.s32.totalorder %v8150_v61, 0  ;;  %v3192_v45 = vsub.s32 0, %v8150_v61 }
 0x36b   : > { %vm3080_vm12 = vcmp.eq.s32.totalorder %v8134_v25, 0  ;;  %vm3083_vm13 = vcmp.eq.s32.totalorder %v8134_v25, 2  ;;  %v3215_v43 = vsel %vm8138_vm10, 0, %v8156_v53  ;;  %v3259_v30 = vshrl.u32 %v9928_v42, %v3258_v8 }
 0x36c   : > { %v3065_v51 = vadd.f32 -0.4999988, %v3064_v10  ;;  %v3072_v12 = vadd.f32 -0.16666654, %v3071_v50  ;;  %v3193_v16 = vsel %vm3191_vm11, %v3192_v45, %v8150_v61  ;;  %v3273_v33 = vshrl.u32 %v9935_v44, %v3258_v8 }
 0x36d   : > { %v3194_v17 = vclz %v3193_v16  ;;  %vm3079_vm14 = vcmp.lt.s32.totalorder %v8134_v25, 2  ;;  %v3262_v11 = vor.u32 %v3261_v34, %v3260_v57  ;;  %v3269_v36 = vshll.u32 %v9934_v2, %v3257_v29 }
 0x36e   : > { %v3066_v1 = vmul.f32 %v3065_v51, %v3061_v5  ;;  %v3073_v35 = vmul.f32 %v3072_v12, %v3061_v5  ;;  %vm3076_vm15 = vweird.f32 %v7810_v41  ;;  %v3265_v27 = vor.u32 %v3264_v47, %v3263_v24 }
 0x36f   : > { %v5585_v15 = vadd.s32 4294967294, %v3194_v17  ;;  %v3268_v18 = vor.u32 %v3267_v28, %v3266_v46  ;;  %v3272_v0 = vshll.u32 %v9942_v21, %v3257_v29  ;;  %v3271_v10 = vor.u32 %v3270_v55, %v3269_v36 }
 0x370   : > { %v3067_v22 = vadd.f32 1.0, %v3066_v1  ;;  %v3074_v53 = vadd.f32 1.0, %v3073_v35  ;;  %vm3275_vm0 = vcmp.lt.s32.totalorder %v8158_v4, 1  ;;  %vm3276_vm1 = vcmp.lt.s32.totalorder %v8158_v4, 2 }
 0x371   : > { %vm5586_vm2 = vcmp.lt.s32.totalorder %v5585_v15, 0  ;;  %v3274_v8 = vor.u32 %v3273_v33, %v3272_v0  ;;  %vm3277_vm3 = vcmp.lt.s32.totalorder %v8158_v4, 3  ;;  %vm3278_vm4 = vcmp.lt.s32.totalorder %v8158_v4, 4 }
 0x372   : > { %v3075_v5 = vmul.f32 %v3074_v53, %v8122_v7  ;;  %v3084_v57 = vxor.u32 2147483648, %v3067_v22  ;;  %v3197_v34 = vsel %vm5586_vm2, 0, %v5585_v15  ;;  %v3280_v29 = vsel %vm3278_vm4, %v3268_v18, 2102212464 }
 0x373   : > { %v3198_v50 = vsub.s32 32, %v3197_v34  ;;  %v3202_v45 = vsub.s32 4294967266, %v3197_v34  ;;  %v3283_v24 = vsel %vm3275_vm0, %v3262_v11, %v3265_v27  ;;  %v3199_v46 = vshll.u32 %v8150_v61, %v3197_v34 }
 0x374   : > { %v3081_v47 = vxor.u32 2147483648, %v3075_v5  ;;  %v3284_v28 = vsel %vm3278_vm4, %v3271_v10, 920167782  ;;  %v3287_v51 = vsel %vm3275_vm0, %v3265_v27, %v3268_v18  ;;  %v3288_v55 = vsel %vm3278_vm4, %v3274_v8, 1326507024 }
 0x375   : > { %v3200_v12 = vshrl.u32 %v3182_v39, %v3198_v50  ;;  %v3203_v16 = vadd.s32 127, %v3202_v45  ;;  %v3285_v7 = vsel %vm3277_vm3, %v3268_v18, %v3284_v28  ;;  %v3085_v33 = vsel %vm3083_vm13, %v3084_v57, %v3075_v5 }
 0x376   : > { %v3082_v17 = vsel %vm3080_vm12, %v3067_v22, %v3081_v47  ;;  %v3286_v61 = vsel %vm3276_vm1, %v3283_v24, %v3285_v7  ;;  %v3289_v1 = vsel %vm3277_vm3, %v3271_v10, %v3288_v55  ;;  %v3279_v5 = vsel %vm3275_vm0, %v3259_v30, %v3262_v11 }
 0x377   : > { %v3086_v39 = vsel %vm3079_vm14, %v3082_v17, %v3085_v33  ;;  %v3201_v35 = vor.u32 %v3200_v12, %v3199_v46  ;;  %v3204_v36 = vshll.u32 %v3203_v16, 23  ;;  %v3290_v15 = vsel %vm3276_vm1, %v3287_v51, %v3289_v1 }
 0x378   : > { %v3087_v18 = vsel %vm3076_vm15, nan, %v3086_v39  ;;  %v3294_v0 = vand.u32 65535, %v3290_v15  ;;  %v3295_v22 = vshrl.u32 %v3290_v15, 16  ;;  %v3316_v53 = vand.u32 65535, %v3286_v61 }
 0x379   : > { %v3205_v8 = vor.u32 4788187, %v3204_v36  ;;  %v3281_v10 = vsel %vm3277_vm3, %v3265_v27, %v3280_v29  ;;  %v3317_v25 = vshrl.u32 %v3286_v61, 16  ;;  %5429 = vst [vmem:[%s6197_s6 + $0x80] sm:$0xff] %v3087_v18  ;;  %v8212_v57 = vadd.s32 3, %v3215_v43 }
 0x37a   : > { %v3297_v34 = vmul.u32 %v3295_v22, %v8144_v54  ;;  %v3298_v50 = vmul.u32 %v3294_v0, %v8147_v56  ;;  %vm3409_vm7 = vcmp.gt.s32.totalorder %v8152_v13, 0  ;;  %v3208_v45 = vcvt.s32.f32 %v3201_v35 }
 0x37b   : > { %v3206_v41 = vand.u32 2147483647, %v3205_v8  ;;  %v3319_v24 = vmul.u32 %v3317_v25, %v8144_v54  ;;  %v3320_v47 = vmul.u32 %v3316_v53, %v8147_v56  ;;  %v8221_v30 = vsel %vm3276_vm1, %v3279_v5, %v3281_v10 }
 0x37c   : > { %v3296_v11 = vmul.u32 %v3294_v0, %v8144_v54  ;;  %v3299_v43 = vmul.u32 %v3295_v22, %v8147_v56  ;;  %v3300_v27 = vshll.u32 %v3297_v34, 16  ;;  %v3302_v46 = vshll.u32 %v3298_v50, 16 }
 0x37d   : > { %v3209_v29 = vmul.f32 %v3208_v45, %v3206_v41  ;;  %v3318_v28 = vmul.u32 %v3316_v53, %v8144_v54  ;;  %v3322_v51 = vshll.u32 %v3319_v24, 16  ;;  %v3321_v16 = vmul.u32 %v3317_v25, %v8147_v56 }
 0x37e   : > { %vm3304_vm5 = vc.u32 %v3296_v11, %v3300_v27  ;;  %v3306_v12 = vadd.s32 %v3300_v27, %v3296_v11  ;;  %v3324_v7 = vshll.u32 %v3320_v47, 16  ;;  %v3410_v1 = vsel %vm3409_vm7, %v8152_v13, 0 }
 0x37f   : > { %v3210_v55 = vxor.u32 2147483648, %v3209_v29  ;;  %v3305_v4 = vsel %vm3304_vm5, 1, %v9929_v60  ;;  %vm3326_vm6 = vc.u32 %v3318_v28, %v3322_v51  ;;  %v3328_v17 = vadd.s32 %v3322_v51, %v3318_v28 }
 0x380   : > { %v3307_v33 = vadd.s32 %v3305_v4, %v3299_v43  ;;  %vm3308_vm8 = vc.u32 %v3306_v12, %v3302_v46  ;;  %v3327_v61 = vsel %vm3326_vm6, 1, %v9929_v60  ;;  %v3301_v36 = vshrl.u32 %v3297_v34, 16 }
 0x381   : > { %v3211_v54 = vsel %vm3090_vm9, %v3210_v55, %v3209_v29  ;;  %v3309_v39 = vsel %vm3308_vm8, 1, %v9929_v60  ;;  %v3329_v56 = vadd.s32 %v3327_v61, %v3321_v16  ;;  %vm3330_vm11 = vc.u32 %v3328_v17, %v3324_v7 }
 0x382   : > { %v3214_v35 = vsel %vm8138_vm10, %v7820_v37, %v3211_v54  ;;  %v3311_v15 = vadd.s32 %v3309_v39, %v3307_v33  ;;  %v3331_v18 = vsel %vm3330_vm11, 1, %v9929_v60  ;;  %v3323_v22 = vshrl.u32 %v3319_v24, 16 }
 0x383   : > { %v3216_v0 = vmul.f32 %v3214_v35, %v3214_v35  ;;  %v3333_v53 = vadd.s32 %v3331_v18, %v3329_v56  ;;  %v3412_v8 = vand.u32 31, %v3410_v1  ;;  %v3303_v13 = vshrl.u32 %v3298_v50, 16 }
 0x384   : > { %v3312_v5 = vadd.s32 %v3311_v15, %v3301_v36  ;;  %v3325_v10 = vshrl.u32 %v3320_v47, 16  ;;  %v3336_v25 = vmul.u32 %v8124_v40, %v8221_v30  ;;  %v8245_v34 = vadd.s32 %v3328_v17, %v3324_v7 }
 0x385   : > { %v3217_v41 = vmul.f32 -0.001358992, %v3216_v0  ;;  %v3224_v45 = vmul.f32 -0.00019511016, %v3216_v0  ;;  %v3334_v11 = vadd.s32 %v3333_v53, %v3323_v22  ;;  %v8241_v43 = vsub.s32 32, %v3412_v8 }
 0x386   : > { %v8243_v23 = vadd.s32 %v3312_v5, %v3303_v13  ;;  %v8247_v27 = vshrl.u32 %v3410_v1, 5  ;;  %v3415_v24 = vshll.u32 %v9928_v42, %v3412_v8  ;;  %v3418_v47 = vshll.u32 %v9932_v3, %v3412_v8 }
 0x387   : > { %v3218_v29 = vadd.f32 0.041655596, %v3217_v41  ;;  %v3225_v50 = vadd.f32 0.008332121, %v3224_v45  ;;  %v3335_v46 = vadd.s32 %v3334_v11, %v3325_v10  ;;  %v3416_v40 = vshrl.u32 %v9932_v3, %v8241_v43 }
 0x388   : > { %vm3338_vm10 = vc.u32 %v8243_v23, %v8245_v34  ;;  %v3419_v30 = vshrl.u32 %v9933_v63, %v8241_v43  ;;  %v3421_v28 = vshll.u32 %v9933_v63, %v3412_v8  ;;  %v3422_v7 = vshrl.u32 %v9934_v2, %v8241_v43 }
 0x389   : > { %v3219_v51 = vmul.f32 %v3218_v29, %v3216_v0  ;;  %v3226_v12 = vmul.f32 %v3225_v50, %v3216_v0  ;;  %v3339_v16 = vadd.s32 1, %v3335_v46  ;;  %v8260_v55 = vor.u32 %v3416_v40, %v3415_v24 }
 0x38a   : > { %v8262_v4 = vor.u32 %v3419_v30, %v3418_v47  ;;  %v3424_v17 = vshll.u32 %v9934_v2, %v3412_v8  ;;  %v3425_v33 = vshrl.u32 %v9942_v21, %v8241_v43  ;;  %v8267_v39 = vor.u32 %v3422_v7, %v3421_v28 }
 0x38b   : > { %v3220_v61 = vadd.f32 -0.4999988, %v3219_v51  ;;  %v3227_v1 = vadd.f32 -0.16666654, %v3226_v12  ;;  %v3340_v54 = vsel %vm3338_vm10, %v3339_v16, %v3335_v46  ;;  %v3427_v15 = vshll.u32 %v9942_v21, %v3412_v8 }
 0x38c   : > { %v3341_v56 = vadd.s32 %v3340_v54, %v3336_v25  ;;  %v3426_v36 = vor.u32 %v3425_v33, %v3424_v17  ;;  %v3428_v18 = vshrl.u32 %v9935_v44, %v8241_v43  ;;  %v3233_v13 = vand.u32 3, %v8212_v57 }
 0x38d   : > { %v3221_v22 = vmul.f32 %v3220_v61, %v3216_v0  ;;  %v3228_v53 = vmul.f32 %v3227_v1, %v3216_v0  ;;  %vm3430_vm9 = vcmp.lt.s32.totalorder %v8247_v27, 1  ;;  %vm3431_vm12 = vcmp.lt.s32.totalorder %v8247_v27, 2 }
 0x38e   : > { %v3342_v5 = vadd.s32 536870912, %v3341_v56  ;;  %v3429_v10 = vor.u32 %v3428_v18, %v3427_v15  ;;  %vm3433_vm13 = vcmp.lt.s32.totalorder %v8247_v27, 4  ;;  %vm3432_vm14 = vcmp.lt.s32.totalorder %v8247_v27, 3 }
 0x38f   : > { %v3222_v41 = vadd.f32 1.0, %v3221_v22  ;;  %v3229_v25 = vadd.f32 1.0, %v3228_v53  ;;  %v3439_v8 = vsel %vm3433_vm13, %v3426_v36, 920167782  ;;  %v3438_v57 = vsel %vm3430_vm9, %v8260_v55, %v8262_v4 }
 0x390   : > { %v8279_v45 = vshrl.u32 %v3342_v5, 30  ;;  %v3442_v0 = vsel %vm3430_vm9, %v8262_v4, %v8267_v39  ;;  %v3443_v11 = vsel %vm3433_vm13, %v3429_v10, 1326507024  ;;  %v3440_v50 = vsel %vm3432_vm14, %v8267_v39, %v3439_v8 }
 0x391   : > { %v3230_v24 = vmul.f32 %v3229_v25, %v3214_v35  ;;  %v3239_v29 = vxor.u32 2147483648, %v3222_v41  ;;  %v3444_v46 = vsel %vm3432_vm14, %v3426_v36, %v3443_v11  ;;  %v403_v47 = vadd.f32 %v8115_v62, %v8112_v14 }
 0x392   : > { %v3344_v40 = vshll.u32 %v8279_v45, 30  ;;  %v3445_v30 = vsel %vm3431_vm12, %v3442_v0, %v3444_v46  ;;  %v8303_v28 = vshll.u32 %v3406_v48, 8  ;;  %vm3234_vm15 = vcmp.lt.s32.totalorder %v3233_v13, 2 }
 0x393   : > { %v3236_v35 = vxor.u32 2147483648, %v3230_v24  ;;  %v3449_v51 = vand.u32 65535, %v3445_v30  ;;  %v3450_v12 = vshrl.u32 %v3445_v30, 16  ;;  %vm3235_vm0 = vcmp.eq.s32.totalorder %v3233_v13, 0 }
 0x394   : > { %vm3238_vm2 = vcmp.eq.s32.totalorder %v3233_v13, 2  ;;  %v3345_v16 = vsub.s32 %v3341_v56, %v3344_v40  ;;  %v3441_v14 = vsel %vm3431_vm12, %v3438_v57, %v3440_v50  ;;  %v3447_v17 = vand.u32 65535, %v8303_v28 }
 0x395   : > { %v3237_v62 = vsel %vm3235_vm0, %v3222_v41, %v3236_v35  ;;  %v3240_v7 = vsel %vm3238_vm2, %v3239_v29, %v3230_v24  ;;  %v3448_v33 = vshrl.u32 %v8303_v28, 16  ;;  %vm3231_vm1 = vweird.f32 %v7820_v37 }
 0x396   : > { %v3241_v19 = vsel %vm3234_vm15, %v3237_v62, %v3240_v7  ;;  %vm3346_vm3 = vcmp.lt.s32.totalorder %v3345_v16, 0  ;;  %v3347_v48 = vsub.s32 0, %v3345_v16  ;;  %v3452_v1 = vmul.u32 %v3450_v12, %v3447_v17 }
 0x397   : > { %v3242_v61 = vsel %vm3231_vm1, nan, %v3241_v19  ;;  %v3453_v54 = vmul.u32 %v3449_v51, %v3448_v33  ;;  %v3472_v36 = vshrl.u32 %v3441_v14, 16  ;;  %v3471_v15 = vand.u32 65535, %v3441_v14 }
 0x398   : > { %v3348_v56 = vsel %vm3346_vm3, %v3347_v48, %v3345_v16  ;;  %5430 = vst [vmem:[%s6197_s6 + $0x88] sm:$0xff] %v3242_v61  ;;  %v8313_v18 = vadd.f32 %v5889_v38, %v8130_v26  ;;  %v3451_v53 = vmul.u32 %v3449_v51, %v3447_v17  ;;  %v3455_v13 = vshll.u32 %v3452_v1, 16 }
 0x399   : > { %v3349_v22 = vclz %v3348_v56  ;;  %v8316_v5 = vadd.f32 %v5914_v58, %v403_v47  ;;  %v3414_v37 = vshrl.u32 %v9928_v42, %v8241_v43  ;;  %v3454_v10 = vmul.u32 %v3450_v12, %v3448_v33 }
 0x39a   : > { %v3457_v41 = vshll.u32 %v3453_v54, 16  ;;  %vm3459_vm4 = vc.u32 %v3451_v53, %v3455_v13  ;;  %v3461_v8 = vadd.s32 %v3455_v13, %v3451_v53  ;;  %v3474_v57 = vmul.u32 %v3472_v36, %v3447_v17 }
 0x39b   : > { %v5588_v25 = vadd.s32 4294967294, %v3349_v22  ;;  %vm3245_vm7 = vcmp.lt.s32.totalorder %v7965_v20, 0  ;;  %v3337_v26 = vadd.s32 %v8245_v34, %v8243_v23  ;;  %v3367_v0 = vsub.s32 4, %v8279_v45 }
 0x39c   : > { %v3460_v11 = vsel %vm3459_vm4, 1, %v9929_v60  ;;  %v3475_v24 = vmul.u32 %v3471_v15, %v3448_v33  ;;  %vm3463_vm6 = vc.u32 %v3461_v8, %v3457_v41  ;;  %v3477_v43 = vshll.u32 %v3474_v57, 16 }
 0x39d   : > { %vm5589_vm5 = vcmp.lt.s32.totalorder %v5588_v25, 0  ;;  %v3462_v29 = vadd.s32 %v3460_v11, %v3454_v10  ;;  %v3456_v46 = vshrl.u32 %v3452_v1, 16  ;;  %v3464_v47 = vsel %vm3463_vm6, 1, %v9929_v60 }
 0x39e   : > { %v3352_v50 = vsel %vm5589_vm5, 0, %v5588_v25  ;;  %v3473_v40 = vmul.u32 %v3471_v15, %v3447_v17  ;;  %v3476_v12 = vmul.u32 %v3472_v36, %v3448_v33  ;;  %v3479_v23 = vshll.u32 %v3475_v24, 16 }
 0x39f   : > { %v3353_v30 = vsub.s32 32, %v3352_v50  ;;  %v3357_v35 = vsub.s32 4294967266, %v3352_v50  ;;  %v3466_v51 = vadd.s32 %v3464_v47, %v3462_v29  ;;  %v3354_v14 = vshll.u32 %v3345_v16, %v3352_v50 }
 0x3a0   : > { %vm3481_vm8 = vc.u32 %v3473_v40, %v3477_v43  ;;  %v3483_v34 = vadd.s32 %v3477_v43, %v3473_v40  ;;  %v3435_v61 = vsel %vm3433_vm13, %v8267_v39, 2102212464  ;;  %v3553_v17 = vand.u32 2147483647, %v8313_v18 }
 0x3a1   : > { %v3355_v62 = vshrl.u32 %v3337_v26, %v3353_v30  ;;  %v3358_v7 = vadd.s32 127, %v3357_v35  ;;  %v3467_v19 = vadd.s32 %v3466_v51, %v3456_v46  ;;  %v3482_v48 = vsel %vm3481_vm8, 1, %v9929_v60  ;;  %v9980_v51 = vld [vmem:[#allocation6_spill] sm:$0xff] }
 0x3a2   : > { %v3484_v1 = vadd.s32 %v3482_v48, %v3476_v12  ;;  %vm3485_vm11 = vc.u32 %v3483_v34, %v3479_v23  ;;  %v3458_v33 = vshrl.u32 %v3453_v54, 16  ;;  %v3434_v36 = vsel %vm3430_vm9, %v3414_v37, %v8260_v55 }
 0x3a3   : > { %v3356_v56 = vor.u32 %v3355_v62, %v3354_v14  ;;  %v3359_v15 = vshll.u32 %v3358_v7, 23  ;;  %v3486_v16 = vsel %vm3485_vm11, 1, %v9929_v60  ;;  %v3478_v22 = vshrl.u32 %v3474_v57, 16 }
 0x3a4   : > { %v3488_v53 = vadd.s32 %v3486_v16, %v3484_v1  ;;  %v3556_v13 = vand.u32 2139095040, %v8313_v18  ;;  %v3368_v39 = vsel %vm3245_vm7, %v3367_v0, %v8279_v45  ;;  %v3436_v41 = vsel %vm3432_vm14, %v8262_v4, %v3435_v61 }
 0x3a5   : > { %v3360_v10 = vor.u32 4788187, %v3359_v15  ;;  %v3468_v54 = vadd.s32 %v3467_v19, %v3458_v33  ;;  %v3480_v25 = vshrl.u32 %v3475_v24, 16  ;;  %v3560_v55 = vand.u32 8388607, %v3553_v17  ;;  %v327_v24 = vpop.permute.xlu1 %326 }
 0x3a6   : > { %v3489_v8 = vadd.s32 %v3488_v53, %v3478_v22  ;;  %v3557_v26 = vshrl.u32 %v3556_v13, 23  ;;  %v3363_v57 = vcvt.s32.f32 %v3356_v56  ;;  %v3487_v11 = vadd.s32 %v3483_v34, %v3479_v23 }
 0x3a7   : > { %v3361_v37 = vand.u32 2147483647, %v3360_v10  ;;  %vm8346_vm10 = vcmp.le.f32.partialorder %v3243_v9, 0.7853982  ;;  %v3437_v45 = vsel %vm3431_vm12, %v3434_v36, %v3436_v41  ;;  %v3561_v47 = vor.u32 8388608, %v3560_v55 }
 0x3a8   : > { %v3490_v4 = vadd.s32 %v3489_v8, %v3480_v25  ;;  %v5593_v0 = vadd.s32 4294967169, %v3557_v26  ;;  %v3370_v50 = vsel %vm8346_vm10, 0, %v3368_v39  ;;  %vm3493_vm9 = vc.u32 %v3468_v54, %v3487_v11 }
 0x3a9   : > { %v3364_v43 = vmul.f32 %v3363_v57, %v3361_v37  ;;  %v3711_v30 = vand.u32 2139095040, %v8316_v5  ;;  %v3491_v35 = vmul.u32 %v8303_v28, %v3437_v45  ;;  %v269_v27 = vmul.f32 %v5880_v31, %v9980_v51 }
 0x3aa   : > { %v3494_v46 = vadd.s32 1, %v3490_v4  ;;  %v3563_v40 = vadd.s32 1, %v5593_v0  ;;  %v372_v12 = vmul.f32 %v5882_v32, %v327_v24  ;;  %v3387_v34 = vadd.s32 3, %v3370_v50 }
 0x3ab   : > { %v3365_v9 = vxor.u32 2147483648, %v3364_v43  ;;  %v8366_v28 = vshll.u32 %v3561_v47, 8  ;;  %v3712_v61 = vshrl.u32 %v3711_v30, 23  ;;  %v8372_v15 = vmul.f32 %v5908_v52, %v9980_v51 }
 0x3ac   : > { %v3495_v14 = vsel %vm3493_vm9, %v3494_v46, %v3490_v4  ;;  %vm3564_vm12 = vcmp.gt.s32.totalorder %v3563_v40, 0  ;;  %v8375_v33 = vmul.f32 %v5903_v49, %v327_v24  ;;  %v8377_v16 = vadd.f32 %v372_v12, %v269_v27 }
 0x3ad   : > { %v3366_v23 = vsel %vm3245_vm7, %v3365_v9, %v3364_v43  ;;  %v3496_v62 = vadd.s32 %v3495_v14, %v3491_v35  ;;  %v3565_v7 = vsel %vm3564_vm12, %v3563_v40, 0  ;;  %v8381_v13 = vand.u32 3, %v3387_v34 }
 0x3ae   : > { %v8364_v19 = vsel %vm8346_vm10, %v7965_v20, %v3366_v23  ;;  %v3567_v48 = vand.u32 31, %v3565_v7  ;;  %vm3400_vm13 = vcmp.lt.s32.totalorder %v8053_v6, 0  ;;  %v8384_v39 = vadd.s32 %v3487_v11, %v3468_v54 }
 0x3af   : > { %v3371_v1 = vmul.f32 %v8364_v19, %v8364_v19  ;;  %v3497_v56 = vadd.s32 536870912, %v3496_v62  ;;  %v8387_v41 = vand.u32 65535, %v8366_v28  ;;  %v3708_v25 = vand.u32 2147483647, %v8316_v5 }
 0x3b0   : > { %v8379_v36 = vsub.s32 32, %v3567_v48  ;;  %v5596_v8 = vadd.s32 4294967169, %v3712_v61  ;;  %v8391_v57 = vshrl.u32 %v8366_v28, 16  ;;  %v8393_v29 = vshrl.u32 %v3565_v7, 5 }
 0x3b1   : > { %v3372_v22 = vmul.f32 -0.001358992, %v3371_v1  ;;  %v3379_v53 = vmul.f32 -0.00019511016, %v3371_v1  ;;  %v3498_v10 = vshrl.u32 %v3497_v56, 30  ;;  %v3570_v45 = vshll.u32 %v9928_v42, %v3567_v48 }
 0x3b2   : > { %v3571_v54 = vshrl.u32 %v9932_v3, %v8379_v36  ;;  %v3574_v11 = vshrl.u32 %v9933_v63, %v8379_v36  ;;  %v3580_v43 = vshrl.u32 %v9942_v21, %v8379_v36  ;;  %vm3393_vm14 = vcmp.eq.s32.totalorder %v8381_v13, 2 }
 0x3b3   : > { %v3373_v26 = vadd.f32 0.041655596, %v3372_v22  ;;  %v3380_v55 = vadd.f32 0.008332121, %v3379_v53  ;;  %v3499_v37 = vshll.u32 %v3498_v10, 30  ;;  %v3522_v50 = vsub.s32 4, %v3498_v10 }
 0x3b4   : > { %v3573_v46 = vshll.u32 %v9932_v3, %v3567_v48  ;;  %v3577_v47 = vshrl.u32 %v9934_v2, %v8379_v36  ;;  %v3579_v40 = vshll.u32 %v9934_v2, %v3567_v48  ;;  %vm3390_vm0 = vcmp.eq.s32.totalorder %v8381_v13, 0 }
 0x3b5   : > { %v3374_v4 = vmul.f32 %v3373_v26, %v3371_v1  ;;  %v3381_v0 = vmul.f32 %v3380_v55, %v3371_v1  ;;  %v8400_v24 = vsub.s32 %v3496_v62, %v3499_v37  ;;  %v3572_v51 = vor.u32 %v3571_v54, %v3570_v45 }
 0x3b6   : > { %v8412_v27 = vor.u32 %v3574_v11, %v3573_v46  ;;  %v3576_v12 = vshll.u32 %v9933_v63, %v3567_v48  ;;  %v3583_v14 = vshrl.u32 %v9935_v44, %v8379_v36  ;;  %vm3389_vm2 = vcmp.lt.s32.totalorder %v8381_v13, 2 }
 0x3b7   : > { %v3375_v30 = vadd.f32 -0.4999988, %v3374_v4  ;;  %v3382_v9 = vadd.f32 -0.16666654, %v3381_v0  ;;  %vm3501_vm15 = vcmp.lt.s32.totalorder %v8400_v24, 0  ;;  %v3502_v35 = vsub.s32 0, %v8400_v24 }
 0x3b8   : > { %v3581_v7 = vor.u32 %v3580_v43, %v3579_v40  ;;  %vm3386_vm1 = vweird.f32 %v7965_v20  ;;  %v3578_v56 = vor.u32 %v3577_v47, %v3576_v12  ;;  %v3582_v22 = vshll.u32 %v9942_v21, %v3567_v48 }
 0x3b9   : > { %v3376_v23 = vmul.f32 %v3375_v30, %v3371_v1  ;;  %v3383_v34 = vmul.f32 %v3382_v9, %v3371_v1  ;;  %v3503_v62 = vsel %vm3501_vm15, %v3502_v35, %v8400_v24  ;;  %v8421_v53 = vadd.s32 1, %v5596_v8 }
 0x3ba   : > { %v3504_v61 = vclz %v3503_v62  ;;  %v8425_v37 = vsel %vm3400_vm13, %v3522_v50, %v3498_v10  ;;  %vm3585_vm3 = vcmp.lt.s32.totalorder %v8393_v29, 1  ;;  %vm8430_vm4 = vcmp.le.f32.partialorder %v3398_v59, 0.7853982 }
 0x3bb   : > { %v3377_v26 = vadd.f32 1.0, %v3376_v23  ;;  %v3384_v55 = vadd.f32 1.0, %v3383_v34  ;;  %v3584_v54 = vor.u32 %v3583_v14, %v3582_v22  ;;  %vm3588_vm7 = vcmp.lt.s32.totalorder %v8393_v29, 4 }
 0x3bc   : > { %v5591_v45 = vadd.s32 4294967294, %v3504_v61  ;;  %v3593_v48 = vsel %vm3585_vm3, %v3572_v51, %v8412_v27  ;;  %vm3587_vm5 = vcmp.lt.s32.totalorder %v8393_v29, 3  ;;  %v3594_v11 = vsel %vm3588_vm7, %v3581_v7, 920167782 }
 0x3bd   : > { %v3385_v8 = vmul.f32 %v3384_v55, %v8364_v19  ;;  %v3394_v10 = vxor.u32 2147483648, %v3377_v26  ;;  %vm3586_vm8 = vcmp.lt.s32.totalorder %v8393_v29, 2  ;;  %v3595_v59 = vsel %vm3587_vm5, %v3578_v56, %v3594_v11 }
 0x3be   : > { %vm5592_vm6 = vcmp.lt.s32.totalorder %v5591_v45, 0  ;;  %v3597_v4 = vsel %vm3585_vm3, %v8412_v27, %v3578_v56  ;;  %v3596_v50 = vsel %vm3586_vm8, %v3593_v48, %v3595_v59  ;;  %v3598_v30 = vsel %vm3588_vm7, %v3584_v54, 1326507024 }
 0x3bf   : > { %v3391_v0 = vxor.u32 2147483648, %v3385_v8  ;;  %v3395_v19 = vsel %vm3393_vm14, %v3394_v10, %v3385_v8  ;;  %v3507_v43 = vsel %vm5592_vm6, 0, %v5591_v45  ;;  %v3599_v35 = vsel %vm3587_vm5, %v3581_v7, %v3598_v30 }
 0x3c0   : > { %v3508_v46 = vsub.s32 32, %v3507_v43  ;;  %v3509_v47 = vshll.u32 %v8400_v24, %v3507_v43  ;;  %v3512_v40 = vsub.s32 4294967266, %v3507_v43  ;;  %v3626_v12 = vand.u32 65535, %v3596_v50 }
 0x3c1   : > { %v3392_v9 = vsel %vm3390_vm0, %v3377_v26, %v3391_v0  ;;  %v3627_v14 = vshrl.u32 %v3596_v50, 16  ;;  %v3600_v24 = vsel %vm3586_vm8, %v3597_v4, %v3599_v35  ;;  %vm3719_vm11 = vcmp.gt.s32.totalorder %v8421_v53, 0 }
 0x3c2   : > { %v3396_v23 = vsel %vm3389_vm2, %v3392_v9, %v3395_v19  ;;  %v3510_v34 = vshrl.u32 %v8384_v39, %v3508_v46  ;;  %v3513_v62 = vadd.s32 127, %v3512_v40  ;;  %v3569_v7 = vshrl.u32 %v9928_v42, %v8379_v36 }
 0x3c3   : > { %v3397_v61 = vsel %vm3386_vm1, nan, %v3396_v23  ;;  %v3604_v22 = vand.u32 65535, %v3600_v24  ;;  %v3605_v26 = vshrl.u32 %v3600_v24, 16  ;;  %v3629_v13 = vmul.u32 %v3627_v14, %v8387_v41 }
 0x3c4   : > { %v3511_v55 = vor.u32 %v3510_v34, %v3509_v47  ;;  %v3514_v45 = vshll.u32 %v3513_v62, 23  ;;  %v3630_v39 = vmul.u32 %v3626_v12, %v8391_v57  ;;  %5431 = vst [vmem:[%s6197_s6 + $0x90] sm:$0xff] %v3397_v61  ;;  %v3525_v54 = vsel %vm8430_vm4, 0, %v8425_v37 }
 0x3c5   : > { %v3589_v20 = vsel %vm3585_vm3, %v3569_v7, %v3572_v51  ;;  %v3607_v48 = vmul.u32 %v3605_v26, %v8387_v41  ;;  %v3608_v36 = vmul.u32 %v3604_v22, %v8391_v57  ;;  %v3590_v10 = vsel %vm3588_vm7, %v3578_v56, 2102212464 }
 0x3c6   : > { %v3515_v8 = vor.u32 4788187, %v3514_v45  ;;  %v3628_v11 = vmul.u32 %v3626_v12, %v8387_v41  ;;  %v3632_v59 = vshll.u32 %v3629_v13, 16  ;;  %v3518_v4 = vcvt.s32.f32 %v3511_v55 }
 0x3c7   : > { %v3606_v0 = vmul.u32 %v3604_v22, %v8387_v41  ;;  %v3609_v19 = vmul.u32 %v3605_v26, %v8391_v57  ;;  %v3610_v37 = vshll.u32 %v3607_v48, 16  ;;  %v3612_v50 = vshll.u32 %v3608_v36, 16 }
 0x3c8   : > { %v3516_v43 = vand.u32 2147483647, %v3515_v8  ;;  %v3631_v51 = vmul.u32 %v3627_v14, %v8391_v57  ;;  %v3634_v46 = vshll.u32 %v3630_v39, 16  ;;  %vm3636_vm9 = vc.u32 %v3628_v11, %v3632_v59 }
 0x3c9   : > { %vm3614_vm10 = vc.u32 %v3606_v0, %v3610_v37  ;;  %v3616_v47 = vadd.s32 %v3610_v37, %v3606_v0  ;;  %v3638_v40 = vadd.s32 %v3632_v59, %v3628_v11  ;;  %v3591_v56 = vsel %vm3587_vm5, %v8412_v27, %v3590_v10 }
 0x3ca   : > { %v3519_v30 = vmul.f32 %v3518_v4, %v3516_v43  ;;  %v3615_v9 = vsel %vm3614_vm10, 1, %v9929_v60  ;;  %v3637_v41 = vsel %vm3636_vm9, 1, %v9929_v60  ;;  %v3611_v57 = vshrl.u32 %v3607_v48, 16 }
 0x3cb   : > { %v3617_v35 = vadd.s32 %v3615_v9, %v3609_v19  ;;  %vm3618_vm12 = vc.u32 %v3616_v47, %v3612_v50  ;;  %v3639_v12 = vadd.s32 %v3637_v41, %v3631_v51  ;;  %vm3640_vm14 = vc.u32 %v3638_v40, %v3634_v46 }
 0x3cc   : > { %v3520_v23 = vxor.u32 2147483648, %v3519_v30  ;;  %v3619_v14 = vsel %vm3618_vm12, 1, %v9929_v60  ;;  %v3641_v34 = vsel %vm3640_vm14, 1, %v9929_v60  ;;  %v3633_v24 = vshrl.u32 %v3629_v13, 16 }
 0x3cd   : > { %v3621_v62 = vadd.s32 %v3619_v14, %v3617_v35  ;;  %v3643_v61 = vadd.s32 %v3641_v34, %v3639_v12  ;;  %v3720_v27 = vsel %vm3719_vm11, %v8421_v53, 0  ;;  %v3592_v22 = vsel %vm3586_vm8, %v3589_v20, %v3591_v56 }
 0x3ce   : > { %v3521_v7 = vsel %vm3400_vm13, %v3520_v23, %v3519_v30  ;;  %v3613_v26 = vshrl.u32 %v3608_v36, 16  ;;  %v3722_v55 = vand.u32 31, %v3720_v27  ;;  %v3635_v8 = vshrl.u32 %v3630_v39, 16 }
 0x3cf   : > { %v3524_v45 = vsel %vm8430_vm4, %v8053_v6, %v3521_v7  ;;  %v3622_v48 = vadd.s32 %v3621_v62, %v3611_v57  ;;  %v3644_v13 = vadd.s32 %v3643_v61, %v3633_v24  ;;  %v8504_v10 = vadd.f32 %v8375_v33, %v8372_v15 }
 0x3d0   : > { %v3526_v53 = vmul.f32 %v3524_v45, %v3524_v45  ;;  %v3715_v11 = vand.u32 8388607, %v3708_v25  ;;  %v8508_v59 = vsub.s32 32, %v3722_v55  ;;  %v3542_v29 = vadd.s32 3, %v3525_v54 }
 0x3d1   : > { %v8510_v20 = vadd.s32 %v3622_v48, %v3613_v26  ;;  %v8512_v36 = vadd.s32 %v3638_v40, %v3634_v46  ;;  %v3645_v1 = vadd.s32 %v3644_v13, %v3635_v8  ;;  %v3646_v39 = vmul.u32 %v8366_v28, %v3592_v22 }
 0x3d2   : > { %v3527_v4 = vmul.f32 -0.001358992, %v3526_v53  ;;  %v3534_v0 = vmul.f32 -0.00019511016, %v3526_v53  ;;  %v8515_v19 = vshrl.u32 %v3720_v27, 5  ;;  %v3725_v33 = vshll.u32 %v9928_v42, %v3722_v55 }
 0x3d3   : > { %vm3648_vm13 = vc.u32 %v8510_v20, %v8512_v36  ;;  %v3649_v15 = vadd.s32 1, %v3645_v1  ;;  %v3729_v54 = vshrl.u32 %v9933_v63, %v8508_v59  ;;  %v3728_v50 = vshll.u32 %v9932_v3, %v3722_v55 }
 0x3d4   : > { %v3528_v37 = vadd.f32 0.041655596, %v3527_v4  ;;  %v3535_v43 = vadd.f32 0.008332121, %v3534_v0  ;;  %v3732_v51 = vshrl.u32 %v9934_v2, %v8508_v59  ;;  %v3726_v28 = vshrl.u32 %v9932_v3, %v8508_v59 }
 0x3d5   : > { %v3650_v46 = vsel %vm3648_vm13, %v3649_v15, %v3645_v1  ;;  %v3734_v47 = vshll.u32 %v9934_v2, %v3722_v55  ;;  %v3735_v40 = vshrl.u32 %v9942_v21, %v8508_v59  ;;  %v3731_v41 = vshll.u32 %v9933_v63, %v3722_v55 }
 0x3d6   : > { %v3529_v30 = vmul.f32 %v3528_v37, %v3526_v53  ;;  %v3536_v56 = vmul.f32 %v3535_v43, %v3526_v53  ;;  %v3651_v9 = vadd.s32 %v3650_v46, %v3646_v39  ;;  %v8531_v35 = vor.u32 %v3729_v54, %v3728_v50 }
 0x3d7   : > { %v3736_v12 = vor.u32 %v3735_v40, %v3734_v47  ;;  %v3737_v23 = vshll.u32 %v9942_v21, %v3722_v55  ;;  %v3738_v57 = vshrl.u32 %v9935_v44, %v8508_v59  ;;  %v3733_v24 = vor.u32 %v3732_v51, %v3731_v41 }
 0x3d8   : > { %v3530_v14 = vadd.f32 -0.4999988, %v3529_v30  ;;  %v3537_v34 = vadd.f32 -0.16666654, %v3536_v56  ;;  %v3652_v62 = vadd.s32 536870912, %v3651_v9  ;;  %v3543_v61 = vand.u32 3, %v3542_v29 }
 0x3d9   : > { %v3716_v27 = vor.u32 8388608, %v3715_v11  ;;  %v8536_v7 = vor.u32 %v3726_v28, %v3725_v33  ;;  %v3739_v22 = vor.u32 %v3738_v57, %v3737_v23  ;;  %vm3743_vm15 = vcmp.lt.s32.totalorder %v8515_v19, 4 }
 0x3da   : > { %v3531_v26 = vmul.f32 %v3530_v14, %v3526_v53  ;;  %v3538_v48 = vmul.f32 %v3537_v34, %v3526_v53  ;;  %v8538_v8 = vshrl.u32 %v3652_v62, 30  ;;  %vm3740_vm0 = vcmp.lt.s32.totalorder %v8515_v19, 1 }
 0x3db   : > { %vm3742_vm2 = vcmp.lt.s32.totalorder %v8515_v19, 3  ;;  %v3749_v55 = vsel %vm3743_vm15, %v3736_v12, 920167782  ;;  %v3753_v13 = vsel %vm3743_vm15, %v3739_v22, 1326507024  ;;  %v3752_v53 = vsel %vm3740_vm0, %v8531_v35, %v3733_v24 }
 0x3dc   : > { %v3532_v11 = vadd.f32 1.0, %v3531_v26  ;;  %v3539_v29 = vadd.f32 1.0, %v3538_v48  ;;  %v3654_v1 = vshll.u32 %v8538_v8, 30  ;;  %v3748_v4 = vsel %vm3740_vm0, %v8536_v7, %v8531_v35 }
 0x3dd   : > { %v3750_v0 = vsel %vm3742_vm2, %v3733_v24, %v3749_v55  ;;  %v3754_v39 = vsel %vm3742_vm2, %v3736_v12, %v3753_v13  ;;  %v8559_v15 = vshll.u32 %v3716_v27, 8  ;;  %vm3741_vm1 = vcmp.lt.s32.totalorder %v8515_v19, 2 }
 0x3de   : > { %v3540_v33 = vmul.f32 %v3539_v29, %v3524_v45  ;;  %v3549_v54 = vxor.u32 2147483648, %v3532_v11  ;;  %v3655_v37 = vsub.s32 %v3651_v9, %v3654_v1  ;;  %v8564_v43 = vadd.f32 %v5889_v38, %v8377_v16 }
 0x3df   : > { %vm3544_vm3 = vcmp.lt.s32.totalorder %v3543_v61, 2  ;;  %vm3545_vm4 = vcmp.eq.s32.totalorder %v3543_v61, 0  ;;  %v3755_v50 = vsel %vm3741_vm1, %v3752_v53, %v3754_v39  ;;  %v3751_v28 = vsel %vm3741_vm1, %v3748_v4, %v3750_v0 }
 0x3e0   : > { %v3546_v51 = vxor.u32 2147483648, %v3540_v33  ;;  %vm3656_vm7 = vcmp.lt.s32.totalorder %v3655_v37, 0  ;;  %v3657_v46 = vsub.s32 0, %v3655_v37  ;;  %vm3548_vm5 = vcmp.eq.s32.totalorder %v3543_v61, 2 }
 0x3e1   : > { %v3757_v45 = vand.u32 65535, %v8559_v15  ;;  %v3759_v47 = vand.u32 65535, %v3755_v50  ;;  %v3760_v40 = vshrl.u32 %v3755_v50, 16  ;;  %v3550_v16 = vsel %vm3548_vm5, %v3549_v54, %v3540_v33 }
 0x3e2   : > { %v3547_v30 = vsel %vm3545_vm4, %v3532_v11, %v3546_v51  ;;  %v3658_v56 = vsel %vm3656_vm7, %v3657_v46, %v3655_v37  ;;  %v3758_v9 = vshrl.u32 %v8559_v15, 16  ;;  %vm3541_vm6 = vweird.f32 %v8053_v6 }
 0x3e3   : > { %v3551_v41 = vsel %vm3544_vm3, %v3547_v30, %v3550_v16  ;;  %v3659_v12 = vclz %v3658_v56  ;;  %v3782_v23 = vshrl.u32 %v3751_v28, 16  ;;  %v3762_v14 = vmul.u32 %v3760_v40, %v3757_v45 }
 0x3e4   : > { %v3552_v57 = vsel %vm3541_vm6, nan, %v3551_v41  ;;  %v3763_v34 = vmul.u32 %v3759_v47, %v3758_v9  ;;  %v3781_v62 = vand.u32 65535, %v3751_v28  ;;  %v8576_v27 = vadd.f32 %v5914_v58, %v8504_v10 }
 0x3e5   : > { %v3647_v22 = vadd.s32 %v8512_v36, %v8510_v20  ;;  %v5594_v26 = vadd.s32 4294967294, %v3659_v12  ;;  %v3724_v48 = vshrl.u32 %v9928_v42, %v8508_v59  ;;  %5432 = vst [vmem:[%s6197_s6 + $0x98] sm:$0xff] %v3552_v57  ;;  %v3745_v6 = vsel %vm3743_vm15, %v3733_v24, 2102212464 }
 0x3e6   : > { %v3761_v61 = vmul.u32 %v3759_v47, %v3757_v45  ;;  %v3764_v55 = vmul.u32 %v3760_v40, %v3758_v9  ;;  %v3765_v13 = vshll.u32 %v3762_v14, 16  ;;  %v3766_v11 = vshrl.u32 %v3762_v14, 16 }
 0x3e7   : > { %vm5595_vm8 = vcmp.lt.s32.totalorder %v5594_v26, 0  ;;  %v3767_v29 = vshll.u32 %v3763_v34, 16  ;;  %v3784_v1 = vmul.u32 %v3782_v23, %v3757_v45  ;;  %vm3555_vm11 = vcmp.lt.s32.totalorder %v8313_v18, 0 }
 0x3e8   : > { %v3662_v10 = vsel %vm5595_vm8, 0, %v5594_v26  ;;  %vm3769_vm10 = vc.u32 %v3761_v61, %v3765_v13  ;;  %v3771_v20 = vadd.s32 %v3765_v13, %v3761_v61  ;;  %v3785_v36 = vmul.u32 %v3781_v62, %v3758_v9 }
 0x3e9   : > { %v3663_v53 = vsub.s32 32, %v3662_v10  ;;  %v3667_v4 = vsub.s32 4294967266, %v3662_v10  ;;  %v3770_v59 = vsel %vm3769_vm10, 1, %v9929_v60  ;;  %v3783_v0 = vmul.u32 %v3781_v62, %v3757_v45  ;;  %v8595_v62 = vpop.permute.xlu2 %330 }
 0x3ea   : > { %v3772_v39 = vadd.s32 %v3770_v59, %v3764_v55  ;;  %vm3773_vm9 = vc.u32 %v3771_v20, %v3767_v29  ;;  %v3786_v24 = vmul.u32 %v3782_v23, %v3758_v9  ;;  %v3787_v33 = vshll.u32 %v3784_v1, 16 }
 0x3eb   : > { %v3664_v54 = vshll.u32 %v3655_v37, %v3662_v10  ;;  %v3665_v50 = vshrl.u32 %v3647_v22, %v3663_v53  ;;  %v3668_v51 = vadd.s32 127, %v3667_v4  ;;  %v3774_v46 = vsel %vm3773_vm9, 1, %v9929_v60  ;;  %v9983_v53 = vld [vmem:[#allocation10_spill] sm:$0xff] }
 0x3ec   : > { %v3776_v28 = vadd.s32 %v3774_v46, %v3772_v39  ;;  %v3789_v47 = vshll.u32 %v3785_v36, 16  ;;  %vm3791_vm12 = vc.u32 %v3783_v0, %v3787_v33  ;;  %v3793_v40 = vadd.s32 %v3787_v33, %v3783_v0 }
 0x3ed   : > { %v3666_v30 = vor.u32 %v3665_v50, %v3664_v54  ;;  %v3669_v16 = vshll.u32 %v3668_v51, 23  ;;  %v3677_v56 = vsub.s32 4, %v8538_v8  ;;  %v3792_v41 = vsel %vm3791_vm12, 1, %v9929_v60 }
 0x3ee   : > { %v3777_v45 = vadd.s32 %v3776_v28, %v3766_v11  ;;  %v3794_v12 = vadd.s32 %v3792_v41, %v3786_v24  ;;  %vm3795_vm14 = vc.u32 %v3793_v40, %v3789_v47  ;;  %v3863_v9 = vand.u32 2147483647, %v8564_v43 }
 0x3ef   : > { %v3670_v37 = vor.u32 4788187, %v3669_v16  ;;  %v3744_v23 = vsel %vm3740_vm0, %v3724_v48, %v8536_v7  ;;  %v3768_v57 = vshrl.u32 %v3763_v34, 16  ;;  %v3796_v14 = vsel %vm3795_vm14, 1, %v9929_v60 }
 0x3f0   : > { %v3746_v22 = vsel %vm3742_vm2, %v8531_v35, %v3745_v6  ;;  %v3788_v26 = vshrl.u32 %v3784_v1, 16  ;;  %v3798_v61 = vadd.s32 %v3796_v14, %v3794_v12  ;;  %v3866_v55 = vand.u32 2139095040, %v8564_v43 }
 0x3f1   : > { %v3671_v13 = vand.u32 2147483647, %v3670_v37  ;;  %v3673_v11 = vcvt.s32.f32 %v3666_v30  ;;  %v3678_v29 = vsel %vm3555_vm11, %v3677_v56, %v8538_v8  ;;  %v3778_v7 = vadd.s32 %v3777_v45, %v3768_v57 }
 0x3f2   : > { %v3790_v34 = vshrl.u32 %v3785_v36, 16  ;;  %v3799_v48 = vadd.s32 %v3798_v61, %v3788_v26  ;;  %v3867_v10 = vshrl.u32 %v3866_v55, 23  ;;  %v3870_v20 = vand.u32 8388607, %v3863_v9 }
 0x3f3   : > { %v271_v35 = vmul.f32 %v5880_v31, %v9983_v53  ;;  %v374_v6 = vmul.f32 %v5882_v32, %v8595_v62  ;;  %v3674_v1 = vmul.f32 %v3673_v11, %v3671_v13  ;;  %v3797_v4 = vadd.s32 %v3793_v40, %v3789_v47 }
 0x3f4   : > { %vm8612_vm13 = vcmp.le.f32.partialorder %v3553_v17, 0.7853982  ;;  %v3747_v8 = vsel %vm3741_vm1, %v3744_v23, %v3746_v22  ;;  %v3800_v36 = vadd.s32 %v3799_v48, %v3790_v34  ;;  %v5599_v0 = vadd.s32 4294967169, %v3867_v10 }
 0x3f5   : > { %v3675_v39 = vxor.u32 2147483648, %v3674_v1  ;;  %v3680_v24 = vsel %vm8612_vm13, 0, %v3678_v29  ;;  %vm3803_vm15 = vc.u32 %v3778_v7, %v3797_v4  ;;  %v4018_v33 = vand.u32 2147483647, %v8576_v27 }
 0x3f6   : > { %v3804_v54 = vadd.s32 1, %v3800_v36  ;;  %v3871_v50 = vor.u32 8388608, %v3870_v20  ;;  %v3873_v51 = vadd.s32 1, %v5599_v0  ;;  %v4021_v17 = vand.u32 2139095040, %v8576_v27 }
 0x3f7   : > { %v3676_v46 = vsel %vm3555_vm11, %v3675_v39, %v3674_v1  ;;  %v3801_v19 = vmul.u32 %v8559_v15, %v3747_v8  ;;  %v406_v28 = vadd.f32 %v374_v6, %v271_v35  ;;  %v3697_v16 = vadd.s32 3, %v3680_v24 }
 0x3f8   : > { %v3679_v47 = vsel %vm8612_vm13, %v8313_v18, %v3676_v46  ;;  %v3805_v40 = vsel %vm3803_vm15, %v3804_v54, %v3800_v36  ;;  %vm3874_vm0 = vcmp.gt.s32.totalorder %v3873_v51, 0  ;;  %v8628_v12 = vshll.u32 %v3871_v50, 8 }
 0x3f9   : > { %v3681_v30 = vmul.f32 %v3679_v47, %v3679_v47  ;;  %v3806_v56 = vadd.s32 %v3805_v40, %v3801_v19  ;;  %v3875_v41 = vsel %vm3874_vm0, %v3873_v51, 0  ;;  %v4022_v37 = vshrl.u32 %v4021_v17, 23 }
 0x3fa   : > { %v3877_v45 = vand.u32 31, %v3875_v41  ;;  %v8632_v23 = vand.u32 8388607, %v4018_v33  ;;  %v8636_v22 = vmul.f32 %v5908_v52, %v9983_v53  ;;  %v8639_v26 = vadd.f32 %v5889_v38, %v406_v28 }
 0x3fb   : > { %v3682_v15 = vmul.f32 -0.001358992, %v3681_v30  ;;  %v3689_v57 = vmul.f32 -0.00019511016, %v3681_v30  ;;  %v3807_v14 = vadd.s32 536870912, %v3806_v56  ;;  %v8643_v11 = vand.u32 3, %v3697_v16 }
 0x3fc   : > { %v8641_v61 = vsub.s32 32, %v3877_v45  ;;  %v8645_v34 = vadd.s32 %v3797_v4, %v3778_v7  ;;  %v8648_v48 = vand.u32 65535, %v8628_v12  ;;  %v5602_v10 = vadd.s32 4294967169, %v4022_v37 }
 0x3fd   : > { %v3683_v55 = vadd.f32 0.041655596, %v3682_v15  ;;  %v3690_v13 = vadd.f32 0.008332121, %v3689_v57  ;;  %v3808_v29 = vshrl.u32 %v3807_v14, 30  ;;  %v4026_v20 = vor.u32 8388608, %v8632_v23 }
 0x3fe   : > { %vm3710_vm2 = vcmp.lt.s32.totalorder %v8316_v5, 0  ;;  %v8652_v1 = vshrl.u32 %v3875_v41, 5  ;;  %v3880_v59 = vshll.u32 %v9928_v42, %v3877_v45  ;;  %v3881_v8 = vshrl.u32 %v9932_v3, %v8641_v61 }
 0x3ff   : > { %v3684_v53 = vmul.f32 %v3683_v55, %v3681_v30  ;;  %v3691_v35 = vmul.f32 %v3690_v13, %v3681_v30  ;;  %v3809_v6 = vshll.u32 %v3808_v29, 30  ;;  %v3884_v7 = vshrl.u32 %v9933_v63, %v8641_v61 }
 0x400   : > { %v3890_v4 = vshrl.u32 %v9942_v21, %v8641_v61  ;;  %vm3703_vm1 = vcmp.eq.s32.totalorder %v8643_v11, 2  ;;  %v3883_v24 = vshll.u32 %v9932_v3, %v3877_v45  ;;  %vm3700_vm3 = vcmp.eq.s32.totalorder %v8643_v11, 0 }
 0x401   : > { %v3685_v36 = vadd.f32 -0.4999988, %v3684_v53  ;;  %v3692_v0 = vadd.f32 -0.16666654, %v3691_v35  ;;  %v8662_v39 = vsub.s32 %v3806_v56, %v3809_v6  ;;  %v3886_v54 = vshll.u32 %v9933_v63, %v3877_v45 }
 0x402   : > { %v3887_v50 = vshrl.u32 %v9934_v2, %v8641_v61  ;;  %v3889_v51 = vshll.u32 %v9934_v2, %v3877_v45  ;;  %v3893_v17 = vshrl.u32 %v9935_v44, %v8641_v61  ;;  %vm3699_vm4 = vcmp.lt.s32.totalorder %v8643_v11, 2 }
 0x403   : > { %v3686_v46 = vmul.f32 %v3685_v36, %v3681_v30  ;;  %v3693_v19 = vmul.f32 %v3692_v0, %v3681_v30  ;;  %vm3811_vm7 = vcmp.lt.s32.totalorder %v8662_v39, 0  ;;  %v3812_v28 = vsub.s32 0, %v8662_v39 }
 0x404   : > { %vm3696_vm5 = vweird.f32 %v8313_v18  ;;  %v3832_v40 = vsub.s32 4, %v3808_v29  ;;  %v3882_v16 = vor.u32 %v3881_v8, %v3880_v59  ;;  %v3885_v56 = vor.u32 %v3884_v7, %v3883_v24 }
 0x405   : > { %v3891_v41 = vor.u32 %v3890_v4, %v3889_v51  ;;  %v3687_v37 = vadd.f32 1.0, %v3686_v46  ;;  %v3694_v15 = vadd.f32 1.0, %v3693_v19  ;;  %v3813_v57 = vsel %vm3811_vm7, %v3812_v28, %v8662_v39 }
 0x406   : > { %v3892_v14 = vshll.u32 %v9942_v21, %v3877_v45  ;;  %v3814_v55 = vclz %v3813_v57  ;;  %v3888_v30 = vor.u32 %v3887_v50, %v3886_v54  ;;  %v3913_v13 = vshrl.u32 %v8628_v12, 16 }
 0x407   : > { %v8679_v53 = vadd.s32 1, %v5602_v10  ;;  %v3695_v35 = vmul.f32 %v3694_v15, %v3679_v47  ;;  %v3704_v6 = vxor.u32 2147483648, %v3687_v37  ;;  %vm8683_vm6 = vcmp.le.f32.partialorder %v3708_v25, 0.7853982 }
 0x408   : > { %v3894_v8 = vor.u32 %v3893_v17, %v3892_v14  ;;  %vm3895_vm8 = vcmp.lt.s32.totalorder %v8652_v1, 1  ;;  %v5597_v7 = vadd.s32 4294967294, %v3814_v55  ;;  %v8690_v45 = vsel %vm3710_vm2, %v3832_v40, %v3808_v29 }
 0x409   : > { %vm3898_vm11 = vcmp.lt.s32.totalorder %v8652_v1, 4  ;;  %v3903_v47 = vsel %vm3895_vm8, %v3882_v16, %v3885_v56  ;;  %v3701_v10 = vxor.u32 2147483648, %v3695_v35  ;;  %vm3896_vm10 = vcmp.lt.s32.totalorder %v8652_v1, 2 }
 0x40a   : > { %vm3897_vm9 = vcmp.lt.s32.totalorder %v8652_v1, 3  ;;  %v3904_v25 = vsel %vm3898_vm11, %v3891_v41, 920167782  ;;  %v3705_v4 = vsel %vm3703_vm1, %v3704_v6, %v3695_v35  ;;  %vm5598_vm12 = vcmp.lt.s32.totalorder %v5597_v7, 0 }
 0x40b   : > { %v3905_v29 = vsel %vm3897_vm9, %v3888_v30, %v3904_v25  ;;  %v3907_v36 = vsel %vm3895_vm8, %v3885_v56, %v3888_v30  ;;  %v3702_v0 = vsel %vm3700_vm3, %v3687_v37, %v3701_v10  ;;  %v3817_v24 = vsel %vm5598_vm12, 0, %v5597_v7 }
 0x40c   : > { %v3906_v54 = vsel %vm3896_vm10, %v3903_v47, %v3905_v29  ;;  %v3908_v50 = vsel %vm3898_vm11, %v3894_v8, 1326507024  ;;  %vm4029_vm14 = vcmp.gt.s32.totalorder %v8679_v53, 0  ;;  %v3706_v51 = vsel %vm3699_vm4, %v3702_v0, %v3705_v4 }
 0x40d   : > { %v3818_v17 = vsub.s32 32, %v3817_v24  ;;  %v3822_v46 = vsub.s32 4294967266, %v3817_v24  ;;  %v3900_v19 = vsel %vm3898_vm11, %v3888_v30, 2102212464  ;;  %v3707_v28 = vsel %vm3696_vm5, nan, %v3706_v51 }
 0x40e   : > { %v3909_v40 = vsel %vm3897_vm9, %v3891_v41, %v3908_v50  ;;  %v3936_v37 = vand.u32 65535, %v3906_v54  ;;  %v3937_v15 = vshrl.u32 %v3906_v54, 16  ;;  %v3819_v57 = vshll.u32 %v8662_v39, %v3817_v24  ;;  %5433 = vst [vmem:[%s6197_s6 + $0xa0] sm:$0xff] %v3707_v28 }
 0x40f   : > { %v3820_v14 = vshrl.u32 %v8645_v34, %v3818_v17  ;;  %v3823_v55 = vadd.s32 127, %v3822_v46  ;;  %v3910_v11 = vsel %vm3896_vm10, %v3907_v36, %v3909_v40  ;;  %v3879_v30 = vshrl.u32 %v9928_v42, %v8641_v61 }
 0x410   : > { %v3914_v35 = vand.u32 65535, %v3910_v11  ;;  %v3915_v18 = vshrl.u32 %v3910_v11, 16  ;;  %v3939_v6 = vmul.u32 %v3937_v15, %v8648_v48  ;;  %v3835_v39 = vsel %vm8683_vm6, 0, %v8690_v45 }
 0x411   : > { %v3821_v8 = vor.u32 %v3820_v14, %v3819_v57  ;;  %v3824_v41 = vshll.u32 %v3823_v55, 23  ;;  %v3940_v7 = vmul.u32 %v3936_v37, %v3913_v13  ;;  %v3899_v34 = vsel %vm3895_vm8, %v3879_v30, %v3882_v16 }
 0x412   : > { %v3901_v47 = vsel %vm3897_vm9, %v3885_v56, %v3900_v19  ;;  %v3917_v10 = vmul.u32 %v3915_v18, %v8648_v48  ;;  %v3918_v61 = vmul.u32 %v3914_v35, %v3913_v13  ;;  %v3938_v4 = vmul.u32 %v3936_v37, %v8648_v48 }
 0x413   : > { %v3825_v25 = vor.u32 4788187, %v3824_v41  ;;  %v3941_v29 = vmul.u32 %v3937_v15, %v3913_v13  ;;  %v3942_v36 = vshll.u32 %v3939_v6, 16  ;;  %v3828_v0 = vcvt.s32.f32 %v3821_v8 }
 0x414   : > { %v3916_v24 = vmul.u32 %v3914_v35, %v8648_v48  ;;  %v3919_v54 = vmul.u32 %v3915_v18, %v3913_v13  ;;  %v3920_v45 = vshll.u32 %v3917_v10, 16  ;;  %v3922_v51 = vshll.u32 %v3918_v61, 16 }
 0x415   : > { %v3826_v50 = vand.u32 2147483647, %v3825_v25  ;;  %v3944_v17 = vshll.u32 %v3940_v7, 16  ;;  %vm3946_vm13 = vc.u32 %v3938_v4, %v3942_v36  ;;  %v3948_v46 = vadd.s32 %v3942_v36, %v3938_v4 }
 0x416   : > { %vm3924_vm15 = vc.u32 %v3916_v24, %v3920_v45  ;;  %v3926_v16 = vadd.s32 %v3920_v45, %v3916_v24  ;;  %v3947_v56 = vsel %vm3946_vm13, 1, %v9929_v60  ;;  %v4030_v37 = vsel %vm4029_vm14, %v8679_v53, 0 }
 0x417   : > { %v3829_v19 = vmul.f32 %v3828_v0, %v3826_v50  ;;  %v3925_v28 = vsel %vm3924_vm15, 1, %v9929_v60  ;;  %v3949_v40 = vadd.s32 %v3947_v56, %v3941_v29  ;;  %v3902_v48 = vsel %vm3896_vm10, %v3899_v34, %v3901_v47 }
 0x418   : > { %v3927_v13 = vadd.s32 %v3925_v28, %v3919_v54  ;;  %vm3928_vm0 = vc.u32 %v3926_v16, %v3922_v51  ;;  %vm3950_vm1 = vc.u32 %v3948_v46, %v3944_v17  ;;  %v3943_v14 = vshrl.u32 %v3939_v6, 16 }
 0x419   : > { %v3830_v15 = vxor.u32 2147483648, %v3829_v19  ;;  %v3929_v57 = vsel %vm3928_vm0, 1, %v9929_v60  ;;  %v3951_v55 = vsel %vm3950_vm1, 1, %v9929_v60  ;;  %v3921_v11 = vshrl.u32 %v3917_v10, 16 }
 0x41a   : > { %v3931_v30 = vadd.s32 %v3929_v57, %v3927_v13  ;;  %v3953_v35 = vadd.s32 %v3951_v55, %v3949_v40  ;;  %v4032_v18 = vand.u32 31, %v4030_v37  ;;  %v3852_v53 = vadd.s32 3, %v3835_v39 }
 0x41b   : > { %v3831_v8 = vsel %vm3710_vm2, %v3830_v15, %v3829_v19  ;;  %v3923_v41 = vshrl.u32 %v3918_v61, 16  ;;  %v3945_v1 = vshrl.u32 %v3940_v7, 16  ;;  %v8754_v29 = vadd.s32 %v3948_v46, %v3944_v17 }
 0x41c   : > { %v3834_v34 = vsel %vm8683_vm6, %v8316_v5, %v3831_v8  ;;  %v3932_v47 = vadd.s32 %v3931_v30, %v3921_v11  ;;  %v3954_v25 = vadd.s32 %v3953_v35, %v3943_v14  ;;  %v8752_v4 = vsub.s32 32, %v4032_v18 }
 0x41d   : > { %v3836_v6 = vmul.f32 %v3834_v34, %v3834_v34  ;;  %v3956_v10 = vmul.u32 %v8628_v12, %v3902_v48  ;;  %v8757_v36 = vshrl.u32 %v4030_v37, 5  ;;  %v4035_v7 = vshll.u32 %v9928_v42, %v4032_v18 }
 0x41e   : > { %v8759_v0 = vadd.s32 %v3932_v47, %v3923_v41  ;;  %v3955_v39 = vadd.s32 %v3954_v25, %v3945_v1  ;;  %v4036_v59 = vshrl.u32 %v9932_v3, %v8752_v4  ;;  %v4038_v54 = vshll.u32 %v9932_v3, %v4032_v18 }
 0x41f   : > { %v3837_v61 = vmul.f32 -0.001358992, %v3836_v6  ;;  %v3844_v24 = vmul.f32 -0.00019511016, %v3836_v6  ;;  %v4039_v45 = vshrl.u32 %v9933_v63, %v8752_v4  ;;  %v4041_v50 = vshll.u32 %v9933_v63, %v4032_v18 }
 0x420   : > { %vm3958_vm2 = vc.u32 %v8759_v0, %v8754_v29  ;;  %v3959_v12 = vadd.s32 1, %v3955_v39  ;;  %v4042_v51 = vshrl.u32 %v9934_v2, %v8752_v4  ;;  %v8772_v56 = vor.u32 %v4036_v59, %v4035_v7 }
 0x421   : > { %v3838_v17 = vadd.f32 0.041655596, %v3837_v61  ;;  %v3845_v16 = vadd.f32 0.008332121, %v3844_v24  ;;  %v8774_v46 = vor.u32 %v4039_v45, %v4038_v54  ;;  %v4044_v28 = vshll.u32 %v9934_v2, %v4032_v18 }
 0x422   : > { %v3960_v19 = vsel %vm3958_vm2, %v3959_v12, %v3955_v39  ;;  %v4045_v40 = vshrl.u32 %v9942_v21, %v8752_v4  ;;  %v4047_v37 = vshll.u32 %v9942_v21, %v4032_v18  ;;  %v4048_v57 = vshrl.u32 %v9935_v44, %v8752_v4 }
 0x423   : > { %v3839_v48 = vmul.f32 %v3838_v17, %v3836_v6  ;;  %v3846_v13 = vmul.f32 %v3845_v16, %v3836_v6  ;;  %v3961_v15 = vadd.s32 %v3960_v19, %v3956_v10  ;;  %v4043_v14 = vor.u32 %v4042_v51, %v4041_v50 }
 0x424   : > { %v4046_v55 = vor.u32 %v4045_v40, %v4044_v28  ;;  %vm4053_vm3 = vcmp.lt.s32.totalorder %v8757_v36, 4  ;;  %v4176_v11 = vand.u32 2139095040, %v8639_v26  ;;  %v4049_v41 = vor.u32 %v4048_v57, %v4047_v37 }
 0x425   : > { %v3840_v30 = vadd.f32 -0.4999988, %v3839_v48  ;;  %v3847_v35 = vadd.f32 -0.16666654, %v3846_v13  ;;  %v3962_v8 = vadd.s32 536870912, %v3961_v15  ;;  %v3853_v1 = vand.u32 3, %v3852_v53 }
 0x426   : > { %vm4050_vm4 = vcmp.lt.s32.totalorder %v8757_v36, 1  ;;  %vm4052_vm7 = vcmp.lt.s32.totalorder %v8757_v36, 3  ;;  %v4059_v18 = vsel %vm4053_vm3, %v4046_v55, 920167782  ;;  %vm3851_vm5 = vweird.f32 %v8316_v5 }
 0x427   : > { %v3841_v47 = vmul.f32 %v3840_v30, %v3836_v6  ;;  %v3848_v25 = vmul.f32 %v3847_v35, %v3836_v6  ;;  %v8788_v10 = vshrl.u32 %v3962_v8, 30  ;;  %v4058_v39 = vsel %vm4050_vm4, %v8772_v56, %v8774_v46 }
 0x428   : > { %vm4051_vm6 = vcmp.lt.s32.totalorder %v8757_v36, 2  ;;  %v4060_v53 = vsel %vm4052_vm7, %v4043_v14, %v4059_v18  ;;  %v4063_v7 = vsel %vm4053_vm3, %v4049_v41, 1326507024  ;;  %v8800_v59 = vshrl.u32 %v4176_v11, 23 }
 0x429   : > { %v3842_v6 = vadd.f32 1.0, %v3841_v47  ;;  %v3849_v61 = vadd.f32 1.0, %v3848_v25  ;;  %v3964_v24 = vshll.u32 %v8788_v10, 30  ;;  %v4062_v54 = vsel %vm4050_vm4, %v8774_v46, %v4043_v14 }
 0x42a   : > { %vm3854_vm8 = vcmp.lt.s32.totalorder %v3853_v1, 2  ;;  %v4061_v45 = vsel %vm4051_vm6, %v4058_v39, %v4060_v53  ;;  %v4064_v12 = vsel %vm4052_vm7, %v4046_v55, %v4063_v7  ;;  %v8812_v50 = vshll.u32 %v4026_v20, 8 }
 0x42b   : > { %v3850_v51 = vmul.f32 %v3849_v61, %v3834_v34  ;;  %vm3855_vm11 = vcmp.eq.s32.totalorder %v3853_v1, 0  ;;  %v3859_v17 = vxor.u32 2147483648, %v3842_v6  ;;  %v3965_v16 = vsub.s32 %v3961_v15, %v3964_v24 }
 0x42c   : > { %vm3858_vm10 = vcmp.eq.s32.totalorder %v3853_v1, 2  ;;  %v4034_v19 = vshrl.u32 %v9928_v42, %v8752_v4  ;;  %v4065_v28 = vsel %vm4051_vm6, %v4062_v54, %v4064_v12  ;;  %v4092_v40 = vshrl.u32 %v4061_v45, 16 }
 0x42d   : > { %v3856_v37 = vxor.u32 2147483648, %v3850_v51  ;;  %vm3966_vm9 = vcmp.lt.s32.totalorder %v3965_v16, 0  ;;  %v3967_v48 = vsub.s32 0, %v3965_v16  ;;  %v4055_v23 = vsel %vm4053_vm3, %v4043_v14, 2102212464 }
 0x42e   : > { %v4067_v20 = vand.u32 65535, %v8812_v50  ;;  %v4069_v34 = vand.u32 65535, %v4065_v28  ;;  %v4070_v13 = vshrl.u32 %v4065_v28, 16  ;;  %v4091_v57 = vand.u32 65535, %v4061_v45 }
 0x42f   : > { %v3857_v15 = vsel %vm3855_vm11, %v3842_v6, %v3856_v37  ;;  %v3860_v55 = vsel %vm3858_vm10, %v3859_v17, %v3850_v51  ;;  %v3968_v11 = vsel %vm3966_vm9, %v3967_v48, %v3965_v16  ;;  %v4068_v4 = vshrl.u32 %v8812_v50, 16 }
 0x430   : > { %v3861_v30 = vsel %vm3854_vm8, %v3857_v15, %v3860_v55  ;;  %v3957_v35 = vadd.s32 %v8754_v29, %v8759_v0  ;;  %v3969_v8 = vclz %v3968_v11  ;;  %v4094_v41 = vmul.u32 %v4092_v40, %v4067_v20 }
 0x431   : > { %v3862_v14 = vsel %vm3851_vm5, nan, %v3861_v30  ;;  %v4054_v18 = vsel %vm4050_vm4, %v4034_v19, %v8772_v56  ;;  %v4072_v47 = vmul.u32 %v4070_v13, %v4067_v20  ;;  %v4073_v25 = vmul.u32 %v4069_v34, %v4068_v4 }
 0x432   : > { %v5600_v39 = vadd.s32 4294967294, %v3969_v8  ;;  %v3987_v53 = vsub.s32 4, %v8788_v10  ;;  %v4056_v1 = vsel %vm4052_vm7, %v8774_v46, %v4055_v23  ;;  %v4095_v7 = vmul.u32 %v4091_v57, %v4068_v4  ;;  %5434 = vst [vmem:[%s6197_s6 + $0xa8] sm:$0xff] %v3862_v14 }
 0x433   : > { %v4071_v29 = vmul.u32 %v4069_v34, %v4067_v20  ;;  %v4074_v0 = vmul.u32 %v4070_v13, %v4068_v4  ;;  %v4075_v6 = vshll.u32 %v4072_v47, 16  ;;  %v4093_v5 = vmul.u32 %v4091_v57, %v4067_v20 }
 0x434   : > { %vm5601_vm12 = vcmp.lt.s32.totalorder %v5600_v39, 0  ;;  %v4076_v61 = vshrl.u32 %v4072_v47, 16  ;;  %v4077_v24 = vshll.u32 %v4073_v25, 16  ;;  %v4097_v54 = vshll.u32 %v4094_v41, 16 }
 0x435   : > { %v3972_v56 = vsel %vm5601_vm12, 0, %v5600_v39  ;;  %vm4079_vm14 = vc.u32 %v4071_v29, %v4075_v6  ;;  %v4081_v45 = vadd.s32 %v4075_v6, %v4071_v29  ;;  %v4096_v12 = vmul.u32 %v4092_v40, %v4068_v4 }
 0x436   : > { %v3973_v51 = vsub.s32 32, %v3972_v56  ;;  %v3977_v17 = vsub.s32 4294967266, %v3972_v56  ;;  %v4080_v19 = vsel %vm4079_vm14, 1, %v9929_v60  ;;  %v4099_v28 = vshll.u32 %v4095_v7, 16 }
 0x437   : > { %v3974_v46 = vshll.u32 %v3965_v16, %v3972_v56  ;;  %v4082_v37 = vadd.s32 %v4080_v19, %v4074_v0  ;;  %vm4083_vm13 = vc.u32 %v4081_v45, %v4077_v24  ;;  %vm4101_vm15 = vc.u32 %v4093_v5, %v4097_v54 }
 0x438   : > { %v3975_v48 = vshrl.u32 %v3957_v35, %v3973_v51  ;;  %v3978_v23 = vadd.s32 127, %v3977_v17  ;;  %v4084_v20 = vsel %vm4083_vm13, 1, %v9929_v60  ;;  %v4102_v34 = vsel %vm4101_vm15, 1, %v9929_v60 }
 0x439   : > { %v4086_v13 = vadd.s32 %v4084_v20, %v4082_v37  ;;  %v4103_v57 = vadd.s32 %v4097_v54, %v4093_v5  ;;  %v4104_v15 = vadd.s32 %v4102_v34, %v4096_v12  ;;  %v5605_v40 = vadd.s32 4294967169, %v8800_v59 }
 0x43a   : > { %v375_v55 = vmul.f32 %v5903_v49, %v8595_v62  ;;  %vm3865_vm0 = vcmp.lt.s32.totalorder %v8564_v43, 0  ;;  %v3976_v16 = vor.u32 %v3975_v48, %v3974_v46  ;;  %v3979_v11 = vshll.u32 %v3978_v23, 23 }
 0x43b   : > { %v4087_v4 = vadd.s32 %v4086_v13, %v4076_v61  ;;  %vm4105_vm1 = vc.u32 %v4103_v57, %v4099_v28  ;;  %v4173_v30 = vand.u32 2147483647, %v8639_v26  ;;  %v4183_v35 = vadd.s32 1, %v5605_v40 }
 0x43c   : > { %v3980_v8 = vor.u32 4788187, %v3979_v11  ;;  %v4057_v14 = vsel %vm4051_vm6, %v4054_v18, %v4056_v1  ;;  %v4078_v47 = vshrl.u32 %v4073_v25, 16  ;;  %v4106_v39 = vsel %vm4105_vm1, 1, %v9929_v60  ;;  %v8913_v18 = vpop.permute.xlu0 %334 }
 0x43d   : > { %v3988_v62 = vsel %vm3865_vm0, %v3987_v53, %v8788_v10  ;;  %v4098_v59 = vshrl.u32 %v4094_v41, 16  ;;  %v4108_v29 = vadd.s32 %v4106_v39, %v4104_v15  ;;  %vm4184_vm2 = vcmp.gt.s32.totalorder %v4183_v35, 0 }
 0x43e   : > { %v3981_v0 = vand.u32 2147483647, %v3980_v8  ;;  %v3983_v6 = vcvt.s32.f32 %v3976_v16  ;;  %v8849_v5 = vadd.s32 %v4087_v4, %v4078_v47  ;;  %v4185_v61 = vsel %vm4184_vm2, %v4183_v35, 0 }
 0x43f   : > { %v407_v24 = vadd.f32 %v375_v55, %v8636_v22  ;;  %v4100_v54 = vshrl.u32 %v4095_v7, 16  ;;  %v4109_v36 = vadd.s32 %v4108_v29, %v4098_v59  ;;  %vm8854_vm3 = vcmp.le.f32.partialorder %v3863_v9, 0.7853982 }
 0x440   : > { %v3984_v25 = vmul.f32 %v3983_v6, %v3981_v0  ;;  %v8858_v10 = vadd.s32 %v4103_v57, %v4099_v28  ;;  %v4187_v41 = vand.u32 31, %v4185_v61  ;;  %v3990_v53 = vsel %vm8854_vm3, 0, %v3988_v62 }
 0x441   : > { %v4110_v1 = vadd.s32 %v4109_v36, %v4100_v54  ;;  %v4111_v56 = vmul.u32 %v8812_v50, %v4057_v14  ;;  %v4180_v22 = vand.u32 8388607, %v4173_v30  ;;  %v8867_v9 = vshrl.u32 %v4185_v61, 5 }
 0x442   : > { %v3985_v7 = vxor.u32 2147483648, %v3984_v25  ;;  %vm4113_vm4 = vc.u32 %v8849_v5, %v8858_v10  ;;  %v8869_v45 = vsub.s32 32, %v4187_v41  ;;  %v4190_v51 = vshll.u32 %v9928_v42, %v4187_v41 }
 0x443   : > { %v4114_v12 = vadd.s32 1, %v4110_v1  ;;  %v4193_v17 = vshll.u32 %v9932_v3, %v4187_v41  ;;  %v4196_v19 = vshll.u32 %v9933_v63, %v4187_v41  ;;  %v4199_v37 = vshll.u32 %v9934_v2, %v4187_v41 }
 0x444   : > { %v3986_v50 = vsel %vm3865_vm0, %v3985_v7, %v3984_v25  ;;  %v4191_v28 = vshrl.u32 %v9932_v3, %v8869_v45  ;;  %v4194_v46 = vshrl.u32 %v9933_v63, %v8869_v45  ;;  %v4197_v20 = vshrl.u32 %v9934_v2, %v8869_v45 }
 0x445   : > { %v3989_v48 = vsel %vm8854_vm3, %v8564_v43, %v3986_v50  ;;  %v4115_v23 = vsel %vm4113_vm4, %v4114_v12, %v4110_v1  ;;  %v4200_v34 = vshrl.u32 %v9942_v21, %v8869_v45  ;;  %v4202_v40 = vshll.u32 %v9942_v21, %v4187_v41 }
 0x446   : > { %v3991_v13 = vmul.f32 %v3989_v48, %v3989_v48  ;;  %v4116_v57 = vadd.s32 %v4115_v23, %v4111_v56  ;;  %v8888_v15 = vor.u32 %v4191_v28, %v4190_v51  ;;  %v8891_v55 = vor.u32 %v4194_v46, %v4193_v17  ;;  %v9990_v56 = vld [vmem:[#allocation7_spill] sm:$0xff] }
 0x447   : > { %v8893_v16 = vor.u32 %v4197_v20, %v4196_v19  ;;  %v4201_v11 = vor.u32 %v4200_v34, %v4199_v37  ;;  %v4203_v4 = vshrl.u32 %v9935_v44, %v8869_v45  ;;  %vm4208_vm7 = vcmp.lt.s32.totalorder %v8867_v9, 4 }
 0x448   : > { %v3992_v35 = vmul.f32 -0.001358992, %v3991_v13  ;;  %v3999_v8 = vmul.f32 -0.00019511016, %v3991_v13  ;;  %v4117_v14 = vadd.s32 536870912, %v4116_v57  ;;  %v4181_v47 = vor.u32 8388608, %v4180_v22 }
 0x449   : > { %v4204_v39 = vor.u32 %v4203_v4, %v4202_v40  ;;  %vm4205_vm5 = vcmp.lt.s32.totalorder %v8867_v9, 1  ;;  %v4214_v62 = vsel %vm4208_vm7, %v4201_v11, 920167782  ;;  %vm4207_vm6 = vcmp.lt.s32.totalorder %v8867_v9, 3 }
 0x44a   : > { %v3993_v59 = vadd.f32 0.041655596, %v3992_v35  ;;  %v4000_v29 = vadd.f32 0.008332121, %v3999_v8  ;;  %v8901_v0 = vshrl.u32 %v4117_v14, 30  ;;  %v4007_v6 = vadd.s32 3, %v3990_v53 }
 0x44b   : > { %v4213_v61 = vsel %vm4205_vm5, %v8888_v15, %v8891_v55  ;;  %v4215_v54 = vsel %vm4207_vm6, %v8893_v16, %v4214_v62  ;;  %v4218_v36 = vsel %vm4208_vm7, %v4204_v39, 1326507024  ;;  %v4217_v53 = vsel %vm4205_vm5, %v8891_v55, %v8893_v16 }
 0x44c   : > { %v3994_v25 = vmul.f32 %v3993_v59, %v3991_v13  ;;  %v4001_v41 = vmul.f32 %v4000_v29, %v3991_v13  ;;  %v4119_v1 = vshll.u32 %v8901_v0, 30  ;;  %v8922_v22 = vmul.f32 %v5880_v31, %v9990_v56 }
 0x44d   : > { %v8925_v7 = vadd.f32 %v5914_v58, %v407_v24  ;;  %v4219_v12 = vsel %vm4207_vm6, %v4201_v11, %v4218_v36  ;;  %v8929_v51 = vshll.u32 %v4181_v47, 8  ;;  %vm4206_vm8 = vcmp.lt.s32.totalorder %v8867_v9, 2 }
 0x44e   : > { %v3995_v17 = vadd.f32 -0.4999988, %v3994_v25  ;;  %v4002_v19 = vadd.f32 -0.16666654, %v4001_v41  ;;  %v8931_v50 = vsub.s32 %v4116_v57, %v4119_v1  ;;  %v8936_v28 = vmul.f32 %v5882_v32, %v8913_v18 }
 0x44f   : > { %v4008_v46 = vand.u32 3, %v4007_v6  ;;  %v8940_v24 = vsel %vm4206_vm8, %v4213_v61, %v4215_v54  ;;  %v4220_v37 = vsel %vm4206_vm8, %v4217_v53, %v4219_v12  ;;  %vm4006_vm10 = vweird.f32 %v8564_v43 }
 0x450   : > { %v3996_v23 = vmul.f32 %v3995_v17, %v3991_v13  ;;  %v4003_v20 = vmul.f32 %v4002_v19, %v3991_v13  ;;  %vm4121_vm11 = vcmp.lt.s32.totalorder %v8931_v50, 0  ;;  %v4122_v34 = vsub.s32 0, %v8931_v50 }
 0x451   : > { %v4222_v57 = vand.u32 65535, %v8929_v51  ;;  %v4223_v40 = vshrl.u32 %v8929_v51, 16  ;;  %v4224_v11 = vand.u32 65535, %v4220_v37  ;;  %v4225_v4 = vshrl.u32 %v4220_v37, 16 }
 0x452   : > { %v3997_v35 = vadd.f32 1.0, %v3996_v23  ;;  %v4004_v8 = vadd.f32 1.0, %v4003_v20  ;;  %v4123_v14 = vsel %vm4121_vm11, %v4122_v34, %v8931_v50  ;;  %v4247_v47 = vshrl.u32 %v8940_v24, 16 }
 0x453   : > { %vm4009_vm9 = vcmp.lt.s32.totalorder %v4008_v46, 2  ;;  %vm4010_vm12 = vcmp.eq.s32.totalorder %v4008_v46, 0  ;;  %v4124_v13 = vclz %v4123_v14  ;;  %v4227_v39 = vmul.u32 %v4225_v4, %v4222_v57 }
 0x454   : > { %v4005_v62 = vmul.f32 %v4004_v8, %v3989_v48  ;;  %vm4013_vm14 = vcmp.eq.s32.totalorder %v4008_v46, 2  ;;  %v4014_v59 = vxor.u32 2147483648, %v3997_v35  ;;  %v8951_v29 = vmul.u32 %v4224_v11, %v4223_v40 }
 0x455   : > { %v4112_v6 = vadd.s32 %v8858_v10, %v8849_v5  ;;  %v5603_v61 = vadd.s32 4294967294, %v4124_v13  ;;  %v4189_v54 = vshrl.u32 %v9928_v42, %v8869_v45  ;;  %v4246_v36 = vand.u32 65535, %v8940_v24 }
 0x456   : > { %v4011_v25 = vxor.u32 2147483648, %v4005_v62  ;;  %v4226_v41 = vmul.u32 %v4224_v11, %v4222_v57  ;;  %v4230_v1 = vshll.u32 %v4227_v39, 16  ;;  %v4249_v53 = vmul.u32 %v4247_v47, %v4222_v57 }
 0x457   : > { %v4015_v12 = vsel %vm4013_vm14, %v4014_v59, %v4005_v62  ;;  %vm4020_vm13 = vcmp.lt.s32.totalorder %v8576_v27, 0  ;;  %vm5604_vm15 = vcmp.lt.s32.totalorder %v5603_v61, 0  ;;  %v4229_v48 = vmul.u32 %v4225_v4, %v4223_v40 }
 0x458   : > { %v4232_v17 = vshll.u32 %v8951_v29, 16  ;;  %v4012_v19 = vsel %vm4010_vm12, %v3997_v35, %v4011_v25  ;;  %v4127_v5 = vsel %vm5604_vm15, 0, %v5603_v61  ;;  %vm4234_vm0 = vc.u32 %v4226_v41, %v4230_v1 }
 0x459   : > { %v4236_v10 = vadd.s32 %v4230_v1, %v4226_v41  ;;  %v4016_v45 = vsel %vm4009_vm9, %v4012_v19, %v4015_v12  ;;  %v4128_v24 = vsub.s32 32, %v4127_v5  ;;  %v4132_v37 = vsub.s32 4294967266, %v4127_v5 }
 0x45a   : > { %v4250_v23 = vmul.u32 %v4246_v36, %v4223_v40  ;;  %v4017_v20 = vsel %vm4006_vm10, nan, %v4016_v45  ;;  %v4129_v34 = vshll.u32 %v8931_v50, %v4127_v5  ;;  %v4235_v11 = vsel %vm4234_vm0, 1, %v9929_v60 }
 0x45b   : > { %vm4238_vm1 = vc.u32 %v4236_v10, %v4232_v17  ;;  %vm8968_vm2 = vcmp.le.f32.partialorder %v4018_v33, 0.7853982  ;;  %v4130_v35 = vshrl.u32 %v4112_v6, %v4128_v24  ;;  %v4133_v46 = vadd.s32 127, %v4132_v37  ;;  %5435 = vst [vmem:[%s6197_s6 + $0xb0] sm:$0xff] %v4017_v20 }
 0x45c   : > { %v4237_v8 = vadd.s32 %v4235_v11, %v4229_v48  ;;  %v4239_v14 = vsel %vm4238_vm1, 1, %v9929_v60  ;;  %v4142_v43 = vsub.s32 4, %v8901_v0  ;;  %v4231_v13 = vshrl.u32 %v4227_v39, 16 }
 0x45d   : > { %v4248_v62 = vmul.u32 %v4246_v36, %v4222_v57  ;;  %v4252_v50 = vshll.u32 %v4249_v53, 16  ;;  %v4131_v59 = vor.u32 %v4130_v35, %v4129_v34  ;;  %v4134_v61 = vshll.u32 %v4133_v46, 23 }
 0x45e   : > { %v4241_v25 = vadd.s32 %v4239_v14, %v4237_v8  ;;  %v4331_v41 = vand.u32 2139095040, %v8925_v7  ;;  %v4251_v33 = vmul.u32 %v4247_v47, %v4223_v40  ;;  %v4254_v1 = vshll.u32 %v4250_v23, 16 }
 0x45f   : > { %vm4256_vm3 = vc.u32 %v4248_v62, %v4252_v50  ;;  %v4258_v12 = vadd.s32 %v4252_v50, %v4248_v62  ;;  %v4135_v6 = vor.u32 4788187, %v4134_v61  ;;  %v4210_v48 = vsel %vm4208_vm7, %v8893_v16, 2102212464 }
 0x460   : > { %v4242_v17 = vadd.s32 %v4241_v25, %v4231_v13  ;;  %v4257_v19 = vsel %vm4256_vm3, 1, %v9929_v60  ;;  %v4143_v57 = vsel %vm4020_vm13, %v4142_v43, %v8901_v0  ;;  %v4332_v36 = vshrl.u32 %v4331_v41, 23 }
 0x461   : > { %v4259_v39 = vadd.s32 %v4257_v19, %v4251_v33  ;;  %vm4260_vm4 = vc.u32 %v4258_v12, %v4254_v1  ;;  %v4136_v5 = vand.u32 2147483647, %v4135_v6  ;;  %v4138_v40 = vcvt.s32.f32 %v4131_v59 }
 0x462   : > { %v4233_v47 = vshrl.u32 %v8951_v29, 16  ;;  %v4261_v10 = vsel %vm4260_vm4, 1, %v9929_v60  ;;  %v4253_v45 = vshrl.u32 %v4249_v53, 16  ;;  %v4328_v16 = vand.u32 2147483647, %v8925_v7 }
 0x463   : > { %v4263_v24 = vadd.s32 %v4261_v10, %v4259_v39  ;;  %v5608_v37 = vadd.s32 4294967169, %v4332_v36  ;;  %v4139_v20 = vmul.f32 %v4138_v40, %v4136_v5  ;;  %v4209_v34 = vsel %vm4205_vm5, %v4189_v54, %v8888_v15 }
 0x464   : > { %v4211_v0 = vsel %vm4207_vm6, %v8891_v55, %v4210_v48  ;;  %v8992_v11 = vadd.s32 %v4242_v17, %v4233_v47  ;;  %v4145_v29 = vsel %vm8968_vm2, 0, %v4143_v57  ;;  %v4255_v35 = vshrl.u32 %v4250_v23, 16 }
 0x465   : > { %v4264_v53 = vadd.s32 %v4263_v24, %v4253_v45  ;;  %v4338_v46 = vadd.s32 1, %v5608_v37  ;;  %v274_v8 = vmul.f32 %v5908_v52, %v9990_v56  ;;  %v377_v14 = vmul.f32 %v5903_v49, %v8913_v18 }
 0x466   : > { %v4140_v43 = vxor.u32 2147483648, %v4139_v20  ;;  %v9000_v15 = vadd.s32 %v4258_v12, %v4254_v1  ;;  %v408_v55 = vadd.f32 %v8936_v28, %v8922_v22  ;;  %v4212_v54 = vsel %vm4206_vm8, %v4209_v34, %v4211_v0 }
 0x467   : > { %v4265_v13 = vadd.s32 %v4264_v53, %v4255_v35  ;;  %vm4339_vm7 = vcmp.gt.s32.totalorder %v4338_v46, 0  ;;  %v4162_v62 = vadd.s32 3, %v4145_v29  ;;  %v4335_v22 = vand.u32 8388607, %v4328_v16 }
 0x468   : > { %v4141_v23 = vsel %vm4020_vm13, %v4140_v43, %v4139_v20  ;;  %vm4268_vm5 = vc.u32 %v8992_v11, %v9000_v15  ;;  %v4340_v56 = vsel %vm4339_vm7, %v4338_v46, 0  ;;  %v4266_v59 = vmul.u32 %v8929_v51, %v4212_v54 }
 0x469   : > { %v4144_v18 = vsel %vm8968_vm2, %v8576_v27, %v4141_v23  ;;  %v4269_v50 = vadd.s32 1, %v4265_v13  ;;  %v4342_v9 = vand.u32 31, %v4340_v56  ;;  %v409_v61 = vadd.f32 %v377_v14, %v274_v8 }
 0x46a   : > { %v4146_v28 = vmul.f32 %v4144_v18, %v4144_v18  ;;  %v9017_v25 = vadd.f32 %v5889_v38, %v408_v55  ;;  %v9019_v6 = vand.u32 3, %v4162_v62  ;;  %v4336_v48 = vor.u32 8388608, %v4335_v22 }
 0x46b   : > { %v4270_v41 = vsel %vm4268_vm5, %v4269_v50, %v4265_v13  ;;  %v4343_v33 = vsub.s32 32, %v4342_v9  ;;  %v9021_v17 = vshrl.u32 %v4340_v56, 5  ;;  %v4345_v5 = vshll.u32 %v9928_v42, %v4342_v9 }
 0x46c   : > { %v4147_v1 = vmul.f32 -0.001358992, %v4146_v28  ;;  %v4154_v12 = vmul.f32 -0.00019511016, %v4146_v28  ;;  %v4271_v4 = vadd.s32 %v4270_v41, %v4266_v59  ;;  %v4348_v40 = vshll.u32 %v9932_v3, %v4342_v9 }
 0x46d   : > { %v4346_v19 = vshrl.u32 %v9932_v3, %v4343_v33  ;;  %v4349_v57 = vshrl.u32 %v9933_v63, %v4343_v33  ;;  %v4352_v47 = vshrl.u32 %v9934_v2, %v4343_v33  ;;  %v4354_v10 = vshll.u32 %v9934_v2, %v4342_v9 }
 0x46e   : > { %v4148_v39 = vadd.f32 0.041655596, %v4147_v1  ;;  %v4155_v51 = vadd.f32 0.008332121, %v4154_v12  ;;  %v4272_v36 = vadd.s32 536870912, %v4271_v4  ;;  %v4355_v45 = vshrl.u32 %v9942_v21, %v4343_v33 }
 0x46f   : > { %v4351_v34 = vshll.u32 %v9933_v63, %v4342_v9  ;;  %v4347_v0 = vor.u32 %v4346_v19, %v4345_v5  ;;  %v9033_v29 = vor.u32 %v4349_v57, %v4348_v40  ;;  %v4358_v53 = vshrl.u32 %v9935_v44, %v4343_v33 }
 0x470   : > { %v4149_v24 = vmul.f32 %v4148_v39, %v4146_v28  ;;  %v4156_v37 = vmul.f32 %v4155_v51, %v4146_v28  ;;  %v9030_v20 = vshrl.u32 %v4272_v36, 30  ;;  %v4356_v35 = vor.u32 %v4355_v45, %v4354_v10 }
 0x471   : > { %v9037_v46 = vadd.f32 %v5914_v58, %v409_v61  ;;  %vm4165_vm6 = vcmp.eq.s32.totalorder %v9019_v6, 0  ;;  %v4353_v55 = vor.u32 %v4352_v47, %v4351_v34  ;;  %v4357_v54 = vshll.u32 %v9942_v21, %v4342_v9 }
 0x472   : > { %v4150_v8 = vadd.f32 -0.4999988, %v4149_v24  ;;  %v4157_v14 = vadd.f32 -0.16666654, %v4156_v37  ;;  %v4274_v43 = vshll.u32 %v9030_v20, 30  ;;  %vm4360_vm8 = vcmp.lt.s32.totalorder %v9021_v17, 1 }
 0x473   : > { %v9043_v13 = vshll.u32 %v4336_v48, 8  ;;  %vm4164_vm11 = vcmp.lt.s32.totalorder %v9019_v6, 2  ;;  %vm4363_vm10 = vcmp.lt.s32.totalorder %v9021_v17, 4  ;;  %vm4161_vm9 = vweird.f32 %v8576_v27 }
 0x474   : > { %v4151_v23 = vmul.f32 %v4150_v8, %v4146_v28  ;;  %v4158_v62 = vmul.f32 %v4157_v14, %v4146_v28  ;;  %v9046_v56 = vsub.s32 %v4271_v4, %v4274_v43  ;;  %v4359_v50 = vor.u32 %v4358_v53, %v4357_v54 }
 0x475   : > { %vm4362_vm12 = vcmp.lt.s32.totalorder %v9021_v17, 3  ;;  %v4368_v22 = vsel %vm4360_vm8, %v4347_v0, %v9033_v29  ;;  %v4369_v9 = vsel %vm4363_vm10, %v4356_v35, 920167782  ;;  %vm4175_vm14 = vcmp.lt.s32.totalorder %v8639_v26, 0 }
 0x476   : > { %v4152_v59 = vadd.f32 1.0, %v4151_v23  ;;  %v4159_v28 = vadd.f32 1.0, %v4158_v62  ;;  %vm4276_vm13 = vcmp.lt.s32.totalorder %v9046_v56, 0  ;;  %v4277_v61 = vsub.s32 0, %v9046_v56 }
 0x477   : > { %vm4168_vm15 = vcmp.eq.s32.totalorder %v9019_v6, 2  ;;  %v4267_v41 = vadd.s32 %v9000_v15, %v8992_v11  ;;  %v4370_v1 = vsel %vm4362_vm12, %v4353_v55, %v4369_v9  ;;  %v4377_v12 = vand.u32 65535, %v9043_v13 }
 0x478   : > { %v4160_v4 = vmul.f32 %v4159_v28, %v4144_v18  ;;  %v4169_v48 = vxor.u32 2147483648, %v4152_v59  ;;  %v4278_v19 = vsel %vm4276_vm13, %v4277_v61, %v9046_v56  ;;  %vm4361_vm0 = vcmp.lt.s32.totalorder %v9021_v17, 2 }
 0x479   : > { %v4279_v57 = vclz %v4278_v19  ;;  %v4371_v39 = vsel %vm4361_vm0, %v4368_v22, %v4370_v1  ;;  %v4372_v51 = vsel %vm4360_vm8, %v9033_v29, %v4353_v55  ;;  %v4373_v11 = vsel %vm4363_vm10, %v4359_v50, 1326507024 }
 0x47a   : > { %v4166_v15 = vxor.u32 2147483648, %v4160_v4  ;;  %v4344_v36 = vshrl.u32 %v9928_v42, %v4343_v33  ;;  %v4374_v18 = vsel %vm4362_vm12, %v4356_v35, %v4373_v11  ;;  %v4378_v5 = vshrl.u32 %v9043_v13, 16 }
 0x47b   : > { %v5606_v40 = vadd.s32 4294967294, %v4279_v57  ;;  %v4297_v47 = vsub.s32 4, %v9030_v20  ;;  %v4365_v10 = vsel %vm4363_vm10, %v4353_v55, 2102212464  ;;  %v4401_v45 = vand.u32 65535, %v4371_v39 }
 0x47c   : > { %v4167_v24 = vsel %vm4165_vm6, %v4152_v59, %v4166_v15  ;;  %v4170_v37 = vsel %vm4168_vm15, %v4169_v48, %v4160_v4  ;;  %v4375_v33 = vsel %vm4361_vm0, %v4372_v51, %v4374_v18  ;;  %v4402_v34 = vshrl.u32 %v4371_v39, 16 }
 0x47d   : > { %v4171_v35 = vsel %vm4164_vm11, %v4167_v24, %v4170_v37  ;;  %vm5607_vm1 = vcmp.lt.s32.totalorder %v5606_v40, 0  ;;  %v4379_v53 = vand.u32 65535, %v4375_v33  ;;  %v4380_v8 = vshrl.u32 %v4375_v33, 16 }
 0x47e   : > { %v4172_v14 = vsel %vm4161_vm9, nan, %v4171_v35  ;;  %v4282_v43 = vsel %vm5607_vm1, 0, %v5606_v40  ;;  %v4364_v55 = vsel %vm4360_vm8, %v4344_v36, %v4347_v0  ;;  %v4404_v54 = vmul.u32 %v4402_v34, %v4377_v12 }
 0x47f   : > { %v4283_v23 = vsub.s32 32, %v4282_v43  ;;  %v4287_v62 = vsub.s32 4294967266, %v4282_v43  ;;  %v4298_v50 = vsel %vm4175_vm14, %v4297_v47, %v9030_v20  ;;  %v4405_v22 = vmul.u32 %v4401_v45, %v4378_v5  ;;  %5436 = vst [vmem:[%s6197_s6 + $0xb8] sm:$0xff] %v4172_v14 }
 0x480   : > { %vm9099_vm2 = vcmp.le.f32.partialorder %v4173_v30, 0.7853982  ;;  %v4366_v27 = vsel %vm4362_vm12, %v9033_v29, %v4365_v10  ;;  %v4382_v0 = vmul.u32 %v4380_v8, %v4377_v12  ;;  %v4383_v9 = vmul.u32 %v4379_v53, %v4378_v5 }
 0x481   : > { %v4403_v59 = vmul.u32 %v4401_v45, %v4377_v12  ;;  %v4284_v28 = vshll.u32 %v9046_v56, %v4282_v43  ;;  %v4285_v61 = vshrl.u32 %v4267_v41, %v4283_v23  ;;  %v4288_v1 = vadd.s32 127, %v4287_v62 }
 0x482   : > { %v4407_v20 = vshll.u32 %v4404_v54, 16  ;;  %v4381_v4 = vmul.u32 %v4379_v53, %v4377_v12  ;;  %v4384_v48 = vmul.u32 %v4380_v8, %v4378_v5  ;;  %v4385_v19 = vshll.u32 %v4382_v0, 16 }
 0x483   : > { %v4406_v57 = vmul.u32 %v4402_v34, %v4378_v5  ;;  %v4286_v30 = vor.u32 %v4285_v61, %v4284_v28  ;;  %v4289_v39 = vshll.u32 %v4288_v1, 23  ;;  %v4387_v51 = vshll.u32 %v4383_v9, 16 }
 0x484   : > { %v4409_v11 = vshll.u32 %v4405_v22, 16  ;;  %vm4389_vm3 = vc.u32 %v4381_v4, %v4385_v19  ;;  %v4391_v15 = vadd.s32 %v4385_v19, %v4381_v4  ;;  %vm4411_vm4 = vc.u32 %v4403_v59, %v4407_v20 }
 0x485   : > { %v4413_v29 = vadd.s32 %v4407_v20, %v4403_v59  ;;  %v4290_v36 = vor.u32 4788187, %v4289_v39  ;;  %v4390_v18 = vsel %vm4389_vm3, 1, %v9929_v60  ;;  %v4408_v40 = vshrl.u32 %v4404_v54, 16 }
 0x486   : > { %v4412_v56 = vsel %vm4411_vm4, 1, %v9929_v60  ;;  %v4392_v41 = vadd.s32 %v4390_v18, %v4384_v48  ;;  %vm4393_vm7 = vc.u32 %v4391_v15, %v4387_v51  ;;  %v4293_v5 = vcvt.s32.f32 %v4286_v30 }
 0x487   : > { %v4414_v12 = vadd.s32 %v4412_v56, %v4406_v57  ;;  %vm4415_vm5 = vc.u32 %v4413_v29, %v4409_v11  ;;  %v4291_v47 = vand.u32 2147483647, %v4290_v36  ;;  %v4394_v10 = vsel %vm4393_vm7, 1, %v9929_v60 }
 0x488   : > { %v4416_v45 = vsel %vm4415_vm5, 1, %v9929_v60  ;;  %v4386_v24 = vshrl.u32 %v4382_v0, 16  ;;  %v4396_v37 = vadd.s32 %v4394_v10, %v4392_v41  ;;  %v4483_v34 = vand.u32 2147483647, %v9017_v25 }
 0x489   : > { %v4418_v33 = vadd.s32 %v4416_v45, %v4414_v12  ;;  %v4294_v35 = vmul.f32 %v4293_v5, %v4291_v47  ;;  %v4300_v53 = vsel %vm9099_vm2, 0, %v4298_v50  ;;  %v4486_v8 = vand.u32 2139095040, %v9017_v25  ;;  %v9995_v47 = vld [vmem:[#allocation8_spill] sm:$0xff] }
 0x48a   : > { %v4388_v14 = vshrl.u32 %v4383_v9, 16  ;;  %v4397_v43 = vadd.s32 %v4396_v37, %v4386_v24  ;;  %v4410_v54 = vshrl.u32 %v4405_v22, 16  ;;  %v4367_v59 = vsel %vm4361_vm0, %v4364_v55, %v4366_v27  ;;  %v339_v55 = vpop.permute.xlu1 %338 }
 0x48b   : > { %v4419_v23 = vadd.s32 %v4418_v33, %v4408_v40  ;;  %v4295_v62 = vxor.u32 2147483648, %v4294_v35  ;;  %v4417_v28 = vadd.s32 %v4413_v29, %v4409_v11  ;;  %v4487_v0 = vshrl.u32 %v4486_v8, 23 }
 0x48c   : > { %v4398_v61 = vadd.s32 %v4397_v43, %v4388_v14  ;;  %v4490_v20 = vand.u32 8388607, %v4483_v34  ;;  %v4641_v4 = vand.u32 2139095040, %v9037_v46  ;;  %v4317_v48 = vadd.s32 3, %v4300_v53 }
 0x48d   : > { %v4420_v1 = vadd.s32 %v4419_v23, %v4410_v54  ;;  %v4296_v50 = vsel %vm4175_vm14, %v4295_v62, %v4294_v35  ;;  %v5611_v9 = vadd.s32 4294967169, %v4487_v0  ;;  %v4421_v19 = vmul.u32 %v9043_v13, %v4367_v59 }
 0x48e   : > { %v9125_v22 = vsel %vm9099_vm2, %v8639_v26, %v4296_v50  ;;  %vm4423_vm6 = vc.u32 %v4398_v61, %v4417_v28  ;;  %v4491_v39 = vor.u32 8388608, %v4490_v20  ;;  %v4642_v51 = vshrl.u32 %v4641_v4, 23 }
 0x48f   : > { %v4424_v17 = vadd.s32 1, %v4420_v1  ;;  %v4301_v27 = vmul.f32 %v9125_v22, %v9125_v22  ;;  %v4493_v57 = vadd.s32 1, %v5611_v9  ;;  %v378_v6 = vmul.f32 %v5882_v32, %v339_v55 }
 0x490   : > { %v4638_v18 = vand.u32 2147483647, %v9037_v46  ;;  %v9132_v41 = vand.u32 3, %v4317_v48  ;;  %v275_v13 = vmul.f32 %v5880_v31, %v9995_v47  ;;  %v9136_v10 = vshll.u32 %v4491_v39, 8 }
 0x491   : > { %v4425_v30 = vsel %vm4423_vm6, %v4424_v17, %v4420_v1  ;;  %v4302_v11 = vmul.f32 -0.001358992, %v4301_v27  ;;  %v4309_v15 = vmul.f32 -0.00019511016, %v4301_v27  ;;  %vm4494_vm8 = vcmp.gt.s32.totalorder %v4493_v57, 0 }
 0x492   : > { %v4426_v29 = vadd.s32 %v4425_v30, %v4421_v19  ;;  %v4495_v36 = vsel %vm4494_vm8, %v4493_v57, 0  ;;  %v5614_v45 = vadd.s32 4294967169, %v4642_v51  ;;  %v9140_v24 = vmul.f32 %v5908_v52, %v9995_v47 }
 0x493   : > { %v4303_v40 = vadd.f32 0.041655596, %v4302_v11  ;;  %v4310_v56 = vadd.f32 0.008332121, %v4309_v15  ;;  %v4497_v5 = vand.u32 31, %v4495_v36  ;;  %v9143_v53 = vmul.f32 %v5903_v49, %v339_v55 }
 0x494   : > { %v4427_v12 = vadd.s32 536870912, %v4426_v29  ;;  %v9145_v8 = vadd.f32 %v378_v6, %v275_v13  ;;  %v9149_v43 = vand.u32 8388607, %v4638_v18  ;;  %vm4323_vm11 = vcmp.eq.s32.totalorder %v9132_v41, 2 }
 0x495   : > { %v4304_v37 = vmul.f32 %v4303_v40, %v4301_v27  ;;  %v4311_v33 = vmul.f32 %v4310_v56, %v4301_v27  ;;  %v4498_v14 = vsub.s32 32, %v4497_v5  ;;  %vm4330_vm10 = vcmp.lt.s32.totalorder %v8925_v7, 0 }
 0x496   : > { %v4428_v35 = vshrl.u32 %v4427_v12, 30  ;;  %v9153_v62 = vadd.s32 %v4417_v28, %v4398_v61  ;;  %vm4320_vm9 = vcmp.eq.s32.totalorder %v9132_v41, 0  ;;  %v9156_v0 = vshrl.u32 %v4495_v36, 5 }
 0x497   : > { %v4305_v54 = vadd.f32 -0.4999988, %v4304_v37  ;;  %v4312_v23 = vadd.f32 -0.16666654, %v4311_v33  ;;  %v9159_v1 = vand.u32 65535, %v9136_v10  ;;  %v9162_v20 = vshrl.u32 %v9136_v10, 16 }
 0x498   : > { %v4429_v59 = vshll.u32 %v4428_v35, 30  ;;  %v9164_v4 = vadd.s32 1, %v5614_v45  ;;  %vm4319_vm12 = vcmp.lt.s32.totalorder %v9132_v41, 2  ;;  %v4500_v28 = vshll.u32 %v9928_v42, %v4497_v5 }
 0x499   : > { %v4306_v50 = vmul.f32 %v4305_v54, %v4301_v27  ;;  %v4313_v9 = vmul.f32 %v4312_v23, %v4301_v27  ;;  %vm4316_vm14 = vweird.f32 %v8639_v26  ;;  %vm9171_vm13 = vcmp.le.f32.partialorder %v4328_v16, 0.7853982 }
 0x49a   : > { %v4430_v17 = vsub.s32 %v4426_v29, %v4429_v59  ;;  %v4501_v55 = vshrl.u32 %v9932_v3, %v4498_v14  ;;  %v4503_v48 = vshll.u32 %v9932_v3, %v4497_v5  ;;  %v4504_v19 = vshrl.u32 %v9933_v63, %v4498_v14 }
 0x49b   : > { %v4507_v27 = vshrl.u32 %v9934_v2, %v4498_v14  ;;  %v4307_v57 = vadd.f32 1.0, %v4306_v50  ;;  %v4314_v30 = vadd.f32 1.0, %v4313_v9  ;;  %v4452_v51 = vsub.s32 4, %v4428_v35 }
 0x49c   : > { %vm4431_vm15 = vcmp.lt.s32.totalorder %v4430_v17, 0  ;;  %v4432_v39 = vsub.s32 0, %v4430_v17  ;;  %v4506_v11 = vshll.u32 %v9933_v63, %v4497_v5  ;;  %v4509_v16 = vshll.u32 %v9934_v2, %v4497_v5 }
 0x49d   : > { %v4510_v15 = vshrl.u32 %v9942_v21, %v4498_v14  ;;  %v4315_v29 = vmul.f32 %v4314_v30, %v9125_v22  ;;  %v4324_v6 = vxor.u32 2147483648, %v4307_v57  ;;  %v4513_v40 = vshrl.u32 %v9935_v44, %v4498_v14 }
 0x49e   : > { %v4433_v36 = vsel %vm4431_vm15, %v4432_v39, %v4430_v17  ;;  %v4502_v12 = vor.u32 %v4501_v55, %v4500_v28  ;;  %v4505_v47 = vor.u32 %v4504_v19, %v4503_v48  ;;  %v4508_v37 = vor.u32 %v4507_v27, %v4506_v11 }
 0x49f   : > { %v4434_v56 = vclz %v4433_v36  ;;  %v4511_v13 = vor.u32 %v4510_v15, %v4509_v16  ;;  %v4321_v45 = vxor.u32 2147483648, %v4315_v29  ;;  %v4512_v33 = vshll.u32 %v9942_v21, %v4497_v5 }
 0x4a0   : > { %vm4515_vm0 = vcmp.lt.s32.totalorder %v9156_v0, 1  ;;  %v4325_v54 = vsel %vm4323_vm11, %v4324_v6, %v4315_v29  ;;  %v4453_v22 = vsel %vm4330_vm10, %v4452_v51, %v4428_v35  ;;  %v4499_v59 = vshrl.u32 %v9928_v42, %v4498_v14 }
 0x4a1   : > { %v5609_v23 = vadd.s32 4294967294, %v4434_v56  ;;  %v4322_v50 = vsel %vm4320_vm9, %v4307_v57, %v4321_v45  ;;  %v4514_v9 = vor.u32 %v4513_v40, %v4512_v33  ;;  %vm4517_vm1 = vcmp.lt.s32.totalorder %v9156_v0, 3 }
 0x4a2   : > { %vm4518_vm2 = vcmp.lt.s32.totalorder %v9156_v0, 4  ;;  %v4326_v5 = vsel %vm4319_vm12, %v4322_v50, %v4325_v54  ;;  %v4523_v28 = vsel %vm4515_vm0, %v4502_v12, %v4505_v47  ;;  %v4455_v48 = vsel %vm9171_vm13, 0, %v4453_v22 }
 0x4a3   : > { %vm5610_vm3 = vcmp.lt.s32.totalorder %v5609_v23, 0  ;;  %v4524_v35 = vsel %vm4518_vm2, %v4511_v13, 920167782  ;;  %v4327_v14 = vsel %vm4316_vm14, nan, %v4326_v5  ;;  %vm4516_vm4 = vcmp.lt.s32.totalorder %v9156_v0, 2 }
 0x4a4   : > { %v4437_v55 = vsel %vm5610_vm3, 0, %v5609_v23  ;;  %v4525_v19 = vsel %vm4517_vm1, %v4508_v37, %v4524_v35  ;;  %v4520_v57 = vsel %vm4518_vm2, %v4508_v37, 2102212464  ;;  %5437 = vst [vmem:[%s6197_s6 + $0xc0] sm:$0xff] %v4327_v14  ;;  %v4527_v39 = vsel %vm4515_vm0, %v4505_v47, %v4508_v37 }
 0x4a5   : > { %v4438_v27 = vsub.s32 32, %v4437_v55  ;;  %v4442_v41 = vsub.s32 4294967266, %v4437_v55  ;;  %v4439_v30 = vshll.u32 %v4430_v17, %v4437_v55  ;;  %v4526_v26 = vsel %vm4516_vm4, %v4523_v28, %v4525_v19 }
 0x4a6   : > { %v4528_v51 = vsel %vm4518_vm2, %v4514_v9, 1326507024  ;;  %v4556_v29 = vand.u32 65535, %v4526_v26  ;;  %v4519_v6 = vsel %vm4515_vm0, %v4499_v59, %v4502_v12  ;;  %v4521_v17 = vsel %vm4517_vm1, %v4505_v47, %v4520_v57 }
 0x4a7   : > { %v4440_v11 = vshrl.u32 %v9153_v62, %v4438_v27  ;;  %v4443_v16 = vadd.s32 127, %v4442_v41  ;;  %v4529_v15 = vsel %vm4517_vm1, %v4511_v13, %v4528_v51  ;;  %v4557_v40 = vshrl.u32 %v4526_v26, 16 }
 0x4a8   : > { %v4530_v36 = vsel %vm4516_vm4, %v4527_v39, %v4529_v15  ;;  %v9226_v62 = vadd.s32 3, %v4455_v48  ;;  %v4560_v13 = vmul.u32 %v4556_v29, %v9162_v20  ;;  %v4646_v23 = vor.u32 8388608, %v9149_v43 }
 0x4a9   : > { %v4441_v56 = vor.u32 %v4440_v11, %v4439_v30  ;;  %v4444_v45 = vshll.u32 %v4443_v16, 23  ;;  %v4534_v37 = vand.u32 65535, %v4530_v36  ;;  %v4535_v33 = vshrl.u32 %v4530_v36, 16 }
 0x4aa   : > { %v4559_v54 = vmul.u32 %v4557_v40, %v9159_v1  ;;  %v9233_v47 = vsel %vm4516_vm4, %v4519_v6, %v4521_v17  ;;  %vm4649_vm7 = vcmp.gt.s32.totalorder %v9164_v4, 0  ;;  %v4558_v50 = vmul.u32 %v4556_v29, %v9159_v1 }
 0x4ab   : > { %v4445_v12 = vor.u32 4788187, %v4444_v45  ;;  %v4537_v22 = vmul.u32 %v4535_v33, %v9159_v1  ;;  %v4538_v59 = vmul.u32 %v4534_v37, %v9162_v20  ;;  %v4561_v9 = vmul.u32 %v4557_v40, %v9162_v20 }
 0x4ac   : > { %v4562_v5 = vshll.u32 %v4559_v54, 16  ;;  %v4448_v35 = vcvt.s32.f32 %v4441_v56  ;;  %v4536_v14 = vmul.u32 %v4534_v37, %v9159_v1  ;;  %v4539_v0 = vmul.u32 %v4535_v33, %v9162_v20 }
 0x4ad   : > { %v4446_v28 = vand.u32 2147483647, %v4445_v12  ;;  %v4540_v55 = vshll.u32 %v4537_v22, 16  ;;  %v4542_v48 = vshll.u32 %v4538_v59, 16  ;;  %v4564_v19 = vshll.u32 %v4560_v13, 16 }
 0x4ae   : > { %vm4566_vm5 = vc.u32 %v4558_v50, %v4562_v5  ;;  %v4568_v26 = vadd.s32 %v4562_v5, %v4558_v50  ;;  %v4650_v51 = vsel %vm4649_vm7, %v9164_v4, 0  ;;  %v4576_v20 = vmul.u32 %v9136_v10, %v9233_v47 }
 0x4af   : > { %v4449_v27 = vmul.f32 %v4448_v35, %v4446_v28  ;;  %vm4544_vm6 = vc.u32 %v4536_v14, %v4540_v55  ;;  %v4546_v41 = vadd.s32 %v4540_v55, %v4536_v14  ;;  %v4567_v57 = vsel %vm4566_vm5, 1, %v9929_v60 }
 0x4b0   : > { %v4545_v30 = vsel %vm4544_vm6, 1, %v9929_v60  ;;  %v4569_v39 = vadd.s32 %v4567_v57, %v4561_v9  ;;  %v4563_v15 = vshrl.u32 %v4559_v54, 16  ;;  %vm4570_vm11 = vc.u32 %v4568_v26, %v4564_v19 }
 0x4b1   : > { %v4450_v1 = vxor.u32 2147483648, %v4449_v27  ;;  %v4547_v11 = vadd.s32 %v4545_v30, %v4539_v0  ;;  %vm4548_vm8 = vc.u32 %v4546_v41, %v4542_v48  ;;  %v4652_v29 = vand.u32 31, %v4650_v51 }
 0x4b2   : > { %v4549_v16 = vsel %vm4548_vm8, 1, %v9929_v60  ;;  %v4541_v17 = vshrl.u32 %v4537_v22, 16  ;;  %v4571_v40 = vsel %vm4570_vm11, 1, %v9929_v60  ;;  %v4543_v56 = vshrl.u32 %v4538_v59, 16 }
 0x4b3   : > { %v4451_v6 = vsel %vm4330_vm10, %v4450_v1, %v4449_v27  ;;  %v4551_v36 = vadd.s32 %v4549_v16, %v4547_v11  ;;  %v4573_v45 = vadd.s32 %v4571_v40, %v4569_v39  ;;  %v9256_v37 = vsub.s32 32, %v4652_v29 }
 0x4b4   : > { %v4454_v4 = vsel %vm9171_vm13, %v8925_v7, %v4451_v6  ;;  %v4565_v54 = vshrl.u32 %v4560_v13, 16  ;;  %v9258_v12 = vshrl.u32 %v4650_v51, 5  ;;  %v9260_v47 = vadd.s32 %v4568_v26, %v4564_v19 }
 0x4b5   : > { %v4456_v10 = vmul.f32 %v4454_v4, %v4454_v4  ;;  %v4552_v33 = vadd.s32 %v4551_v36, %v4541_v17  ;;  %v4574_v50 = vadd.s32 %v4573_v45, %v4563_v15  ;;  %v4656_v22 = vshrl.u32 %v9932_v3, %v9256_v37 }
 0x4b6   : > { %v4659_v9 = vshrl.u32 %v9933_v63, %v9256_v37  ;;  %v4655_v28 = vshll.u32 %v9928_v42, %v4652_v29  ;;  %v4658_v13 = vshll.u32 %v9932_v3, %v4652_v29  ;;  %v4661_v14 = vshll.u32 %v9933_v63, %v4652_v29 }
 0x4b7   : > { %v4457_v61 = vmul.f32 -0.001358992, %v4456_v10  ;;  %v4464_v5 = vmul.f32 -0.00019511016, %v4456_v10  ;;  %v9266_v59 = vadd.s32 %v4552_v33, %v4543_v56  ;;  %v4575_v35 = vadd.s32 %v4574_v50, %v4565_v54 }
 0x4b8   : > { %v4662_v55 = vshrl.u32 %v9934_v2, %v9256_v37  ;;  %v9275_v19 = vor.u32 %v4656_v22, %v4655_v28  ;;  %v9277_v41 = vor.u32 %v4659_v9, %v4658_v13  ;;  %v4664_v57 = vshll.u32 %v9934_v2, %v4652_v29 }
 0x4b9   : > { %v4458_v0 = vadd.f32 0.041655596, %v4457_v61  ;;  %v4465_v48 = vadd.f32 0.008332121, %v4464_v5  ;;  %vm4578_vm10 = vc.u32 %v9266_v59, %v9260_v47  ;;  %v4579_v27 = vadd.s32 1, %v4575_v35 }
 0x4ba   : > { %v4665_v30 = vshrl.u32 %v9942_v21, %v9256_v37  ;;  %v4667_v51 = vshll.u32 %v9942_v21, %v4652_v29  ;;  %v4668_v1 = vshrl.u32 %v9935_v44, %v9256_v37  ;;  %v4663_v16 = vor.u32 %v4662_v55, %v4661_v14 }
 0x4bb   : > { %v4459_v26 = vmul.f32 %v4458_v0, %v4456_v10  ;;  %v4466_v39 = vmul.f32 %v4465_v48, %v4456_v10  ;;  %v4580_v11 = vsel %vm4578_vm10, %v4579_v27, %v4575_v35  ;;  %vm4673_vm9 = vcmp.lt.s32.totalorder %v9258_v12, 4 }
 0x4bc   : > { %v4666_v15 = vor.u32 %v4665_v30, %v4664_v57  ;;  %v4581_v36 = vadd.s32 %v4580_v11, %v4576_v20  ;;  %v4669_v40 = vor.u32 %v4668_v1, %v4667_v51  ;;  %v4473_v56 = vand.u32 3, %v9226_v62 }
 0x4bd   : > { %v4460_v6 = vadd.f32 -0.4999988, %v4459_v26  ;;  %v4467_v17 = vadd.f32 -0.16666654, %v4466_v39  ;;  %vm4670_vm12 = vcmp.lt.s32.totalorder %v9258_v12, 1  ;;  %vm4672_vm14 = vcmp.lt.s32.totalorder %v9258_v12, 3 }
 0x4be   : > { %v4679_v29 = vsel %vm4673_vm9, %v4666_v15, 920167782  ;;  %v4582_v54 = vadd.s32 536870912, %v4581_v36  ;;  %v4678_v50 = vsel %vm4670_vm12, %v9275_v19, %v9277_v41  ;;  %vm4671_vm13 = vcmp.lt.s32.totalorder %v9258_v12, 2 }
 0x4bf   : > { %v4461_v45 = vmul.f32 %v4460_v6, %v4456_v10  ;;  %v4468_v33 = vmul.f32 %v4467_v17, %v4456_v10  ;;  %v4680_v62 = vsel %vm4672_vm14, %v4663_v16, %v4679_v29  ;;  %v4683_v20 = vsel %vm4673_vm9, %v4669_v40, 1326507024 }
 0x4c0   : > { %v9302_v22 = vshll.u32 %v4646_v23, 8  ;;  %v9304_v61 = vshrl.u32 %v4582_v54, 30  ;;  %v4682_v5 = vsel %vm4670_vm12, %v9277_v41, %v4663_v16  ;;  %v411_v28 = vadd.f32 %v9143_v53, %v9140_v24 }
 0x4c1   : > { %v4462_v9 = vadd.f32 1.0, %v4461_v45  ;;  %v4469_v10 = vadd.f32 1.0, %v4468_v33  ;;  %v4681_v35 = vsel %vm4671_vm13, %v4678_v50, %v4680_v62  ;;  %v4684_v13 = vsel %vm4672_vm14, %v4666_v15, %v4683_v20 }
 0x4c2   : > { %v9317_v43 = vadd.f32 %v5889_v38, %v9145_v8  ;;  %v4584_v55 = vshll.u32 %v9304_v61, 30  ;;  %vm4474_vm15 = vcmp.lt.s32.totalorder %v4473_v56, 2  ;;  %vm4475_vm0 = vcmp.eq.s32.totalorder %v4473_v56, 0 }
 0x4c3   : > { %v4470_v23 = vmul.f32 %v4469_v10, %v4454_v4  ;;  %v4479_v14 = vxor.u32 2147483648, %v4462_v9  ;;  %vm4478_vm1 = vcmp.eq.s32.totalorder %v4473_v56, 2  ;;  %v4685_v24 = vsel %vm4671_vm13, %v4682_v5, %v4684_v13 }
 0x4c4   : > { %v4585_v0 = vsub.s32 %v4581_v36, %v4584_v55  ;;  %v4687_v48 = vand.u32 65535, %v9302_v22  ;;  %v4712_v27 = vshrl.u32 %v4681_v35, 16  ;;  %v4688_v57 = vshrl.u32 %v9302_v22, 16 }
 0x4c5   : > { %v4476_v53 = vxor.u32 2147483648, %v4470_v23  ;;  %v4689_v30 = vand.u32 65535, %v4685_v24  ;;  %v4690_v8 = vshrl.u32 %v4685_v24, 16  ;;  %v4711_v26 = vand.u32 65535, %v4681_v35 }
 0x4c6   : > { %v4480_v39 = vsel %vm4478_vm1, %v4479_v14, %v4470_v23  ;;  %vm4586_vm2 = vcmp.lt.s32.totalorder %v4585_v0, 0  ;;  %v4587_v51 = vsub.s32 0, %v4585_v0  ;;  %vm4471_vm3 = vweird.f32 %v8925_v7 }
 0x4c7   : > { %v4477_v4 = vsel %vm4475_vm0, %v4462_v9, %v4476_v53  ;;  %v4692_v11 = vmul.u32 %v4690_v8, %v4687_v48  ;;  %v4693_v15 = vmul.u32 %v4689_v30, %v4688_v57  ;;  %v9327_v6 = vadd.f32 %v5914_v58, %v411_v28 }
 0x4c8   : > { %v4481_v1 = vsel %vm4474_vm15, %v4477_v4, %v4480_v39  ;;  %v4588_v36 = vsel %vm4586_vm2, %v4587_v51, %v4585_v0  ;;  %v4714_v40 = vmul.u32 %v4712_v27, %v4687_v48  ;;  %v4691_v45 = vmul.u32 %v4689_v30, %v4687_v48 }
 0x4c9   : > { %v4482_v17 = vsel %vm4471_vm3, nan, %v4481_v1  ;;  %v4589_v29 = vclz %v4588_v36  ;;  %v4695_v33 = vshll.u32 %v4692_v11, 16  ;;  %v4715_v54 = vmul.u32 %v4711_v26, %v4688_v57 }
 0x4ca   : > { %5438 = vst [vmem:[%s6197_s6 + $0xc8] sm:$0xff] %v4482_v17  ;;  %v4577_v50 = vadd.s32 %v9260_v47, %v9266_v59  ;;  %v4654_v7 = vshrl.u32 %v9928_v42, %v9256_v37  ;;  %v4675_v56 = vsel %vm4673_vm9, %v4663_v16, 2102212464  ;;  %v4694_v62 = vmul.u32 %v4690_v8, %v4688_v57 }
 0x4cb   : > { %vm4485_vm4 = vcmp.lt.s32.totalorder %v9017_v25, 0  ;;  %v5612_v20 = vadd.s32 4294967294, %v4589_v29  ;;  %v4697_v9 = vshll.u32 %v4693_v15, 16  ;;  %vm4699_vm7 = vc.u32 %v4691_v45, %v4695_v33 }
 0x4cc   : > { %v4701_v10 = vadd.s32 %v4695_v33, %v4691_v45  ;;  %v4696_v5 = vshrl.u32 %v4692_v11, 16  ;;  %v4700_v28 = vsel %vm4699_vm7, 1, %v9929_v60  ;;  %v4713_v35 = vmul.u32 %v4711_v26, %v4687_v48 }
 0x4cd   : > { %v4717_v13 = vshll.u32 %v4714_v40, 16  ;;  %vm5613_vm5 = vcmp.lt.s32.totalorder %v5612_v20, 0  ;;  %v4702_v47 = vadd.s32 %v4700_v28, %v4694_v62  ;;  %v4719_v59 = vshll.u32 %v4715_v54, 16  ;;  %v343_v28 = vpop.permute.xlu2 %342 }
 0x4ce   : > { %vm4703_vm6 = vc.u32 %v4701_v10, %v4697_v9  ;;  %v4592_v37 = vsel %vm5613_vm5, 0, %v5612_v20  ;;  %v4716_v53 = vmul.u32 %v4712_v27, %v4688_v57  ;;  %v4607_v8 = vsub.s32 4, %v9304_v61 }
 0x4cf   : > { %v4704_v23 = vsel %vm4703_vm6, 1, %v9929_v60  ;;  %vm4721_vm8 = vc.u32 %v4713_v35, %v4717_v13  ;;  %v4723_v16 = vadd.s32 %v4717_v13, %v4713_v35  ;;  %v4593_v14 = vsub.s32 32, %v4592_v37 }
 0x4d0   : > { %v4597_v55 = vsub.s32 4294967266, %v4592_v37  ;;  %v4706_v24 = vadd.s32 %v4704_v23, %v4702_v47  ;;  %v4594_v30 = vshll.u32 %v4585_v0, %v4592_v37  ;;  %v4722_v4 = vsel %vm4721_vm8, 1, %v9929_v60  ;;  %v10000_v23 = vld [vmem:[#allocation11_spill] sm:$0xff] }
 0x4d1   : > { %vm4725_vm11 = vc.u32 %v4723_v16, %v4719_v59  ;;  %v4595_v48 = vshrl.u32 %v4577_v50, %v4593_v14  ;;  %v4724_v51 = vadd.s32 %v4722_v4, %v4716_v53  ;;  %v4674_v1 = vsel %vm4670_vm12, %v4654_v7, %v9275_v19 }
 0x4d2   : > { %v4598_v26 = vadd.s32 127, %v4597_v55  ;;  %v4707_v39 = vadd.s32 %v4706_v24, %v4696_v5  ;;  %v4698_v11 = vshrl.u32 %v4693_v15, 16  ;;  %v4726_v17 = vsel %vm4725_vm11, 1, %v9929_v60 }
 0x4d3   : > { %v4793_v36 = vand.u32 2147483647, %v9317_v43  ;;  %v4596_v27 = vor.u32 %v4595_v48, %v4594_v30  ;;  %v4718_v57 = vshrl.u32 %v4714_v40, 16  ;;  %v4728_v29 = vadd.s32 %v4726_v17, %v4724_v51 }
 0x4d4   : > { %v4599_v0 = vshll.u32 %v4598_v26, 23  ;;  %v4608_v45 = vsel %vm4485_vm4, %v4607_v8, %v9304_v61  ;;  %v4676_v33 = vsel %vm4672_vm14, %v9277_v41, %v4675_v56  ;;  %v4708_v50 = vadd.s32 %v4707_v39, %v4698_v11 }
 0x4d5   : > { %v4796_v19 = vand.u32 2139095040, %v9317_v43  ;;  %v4720_v7 = vshrl.u32 %v4715_v54, 16  ;;  %v4729_v62 = vadd.s32 %v4728_v29, %v4718_v57  ;;  %v4800_v20 = vand.u32 8388607, %v4793_v36 }
 0x4d6   : > { %v4600_v15 = vor.u32 4788187, %v4599_v0  ;;  %vm9357_vm10 = vcmp.le.f32.partialorder %v4483_v34, 0.7853982  ;;  %v4727_v61 = vadd.s32 %v4723_v16, %v4719_v59  ;;  %v4603_v5 = vcvt.s32.f32 %v4596_v27 }
 0x4d7   : > { %v4797_v9 = vshrl.u32 %v4796_v19, 23  ;;  %v4677_v41 = vsel %vm4671_vm13, %v4674_v1, %v4676_v33  ;;  %v4730_v56 = vadd.s32 %v4729_v62, %v4720_v7  ;;  %v4610_v54 = vsel %vm9357_vm10, 0, %v4608_v45 }
 0x4d8   : > { %v4601_v10 = vand.u32 2147483647, %v4600_v15  ;;  %vm4733_vm9 = vc.u32 %v4708_v50, %v4727_v61  ;;  %v4801_v34 = vor.u32 8388608, %v4800_v20  ;;  %v4948_v37 = vand.u32 2147483647, %v9327_v6 }
 0x4d9   : > { %v5617_v35 = vadd.s32 4294967169, %v4797_v9  ;;  %v4734_v47 = vadd.s32 1, %v4730_v56  ;;  %v277_v59 = vmul.f32 %v5880_v31, %v10000_v23  ;;  %v4731_v16 = vmul.u32 %v9302_v22, %v4677_v41 }
 0x4da   : > { %v4604_v13 = vmul.f32 %v4603_v5, %v4601_v10  ;;  %v4951_v12 = vand.u32 2139095040, %v9327_v6  ;;  %v380_v55 = vmul.f32 %v5882_v32, %v343_v28  ;;  %v381_v24 = vmul.f32 %v5903_v49, %v343_v28 }
 0x4db   : > { %v4803_v14 = vadd.s32 1, %v5617_v35  ;;  %v4735_v30 = vsel %vm4733_vm9, %v4734_v47, %v4730_v56  ;;  %v278_v8 = vmul.f32 %v5908_v52, %v10000_v23  ;;  %v4627_v4 = vadd.s32 3, %v4610_v54 }
 0x4dc   : > { %v4605_v53 = vxor.u32 2147483648, %v4604_v13  ;;  %v4736_v48 = vadd.s32 %v4735_v30, %v4731_v16  ;;  %v9376_v22 = vshll.u32 %v4801_v34, 8  ;;  %v9380_v39 = vand.u32 8388607, %v4948_v37 }
 0x4dd   : > { %vm4804_vm12 = vcmp.gt.s32.totalorder %v4803_v14, 0  ;;  %v4952_v51 = vshrl.u32 %v4951_v12, 23  ;;  %v9387_v1 = vadd.f32 %v380_v55, %v277_v59  ;;  %v9389_v11 = vadd.f32 %v381_v24, %v278_v8 }
 0x4de   : > { %v4606_v31 = vsel %vm4485_vm4, %v4605_v53, %v4604_v13  ;;  %v4805_v26 = vsel %vm4804_vm12, %v4803_v14, 0  ;;  %v4737_v49 = vadd.s32 536870912, %v4736_v48  ;;  %v9393_v27 = vand.u32 3, %v4627_v4 }
 0x4df   : > { %v9385_v32 = vsel %vm9357_vm10, %v9017_v25, %v4606_v31  ;;  %v4807_v52 = vand.u32 31, %v4805_v26  ;;  %vm4640_vm14 = vcmp.lt.s32.totalorder %v9037_v46, 0  ;;  %v9396_v33 = vadd.s32 %v4727_v61, %v4708_v50 }
 0x4e0   : > { %v4611_v17 = vmul.f32 %v9385_v32, %v9385_v32  ;;  %v4738_v0 = vshrl.u32 %v4737_v49, 30  ;;  %v9399_v19 = vand.u32 65535, %v9376_v22  ;;  %v9402_v7 = vshrl.u32 %v9376_v22, 16 }
 0x4e1   : > { %v4808_v57 = vsub.s32 32, %v4807_v52  ;;  %v5620_v62 = vadd.s32 4294967169, %v4952_v51  ;;  %v4956_v20 = vor.u32 8388608, %v9380_v39  ;;  %vm9407_vm13 = vcmp.le.f32.partialorder %v4638_v18, 0.7853982 }
 0x4e2   : > { %v4612_v29 = vmul.f32 -0.001358992, %v4611_v17  ;;  %v4619_v45 = vmul.f32 -0.00019511016, %v4611_v17  ;;  %v4739_v15 = vshll.u32 %v4738_v0, 30  ;;  %v4762_v50 = vsub.s32 4, %v4738_v0 }
 0x4e3   : > { %v9411_v61 = vshrl.u32 %v4805_v26, 5  ;;  %v4810_v41 = vshll.u32 %v9928_v42, %v4807_v52  ;;  %v4811_v56 = vshrl.u32 %v9932_v3, %v4808_v57  ;;  %v4813_v28 = vshll.u32 %v9932_v3, %v4807_v52 }
 0x4e4   : > { %v4613_v40 = vadd.f32 0.041655596, %v4612_v29  ;;  %v4620_v9 = vadd.f32 0.008332121, %v4619_v45  ;;  %v9413_v5 = vsub.s32 %v4736_v48, %v4739_v15  ;;  %v4814_v13 = vshrl.u32 %v9933_v63, %v4808_v57 }
 0x4e5   : > { %v4816_v18 = vshll.u32 %v9933_v63, %v4807_v52  ;;  %vm4633_vm15 = vcmp.eq.s32.totalorder %v9393_v27, 2  ;;  %v4817_v34 = vshrl.u32 %v9934_v2, %v4808_v57  ;;  %v4820_v23 = vshrl.u32 %v9942_v21, %v4808_v57 }
 0x4e6   : > { %v4614_v54 = vmul.f32 %v4613_v40, %v4611_v17  ;;  %v4621_v35 = vmul.f32 %v4620_v9, %v4611_v17  ;;  %vm4741_vm0 = vcmp.lt.s32.totalorder %v9413_v5, 0  ;;  %v4742_v47 = vsub.s32 0, %v9413_v5 }
 0x4e7   : > { %v4763_v14 = vsel %vm4640_vm14, %v4762_v50, %v4738_v0  ;;  %v4819_v12 = vshll.u32 %v9934_v2, %v4807_v52  ;;  %vm4630_vm1 = vcmp.eq.s32.totalorder %v9393_v27, 0  ;;  %v4812_v24 = vor.u32 %v4811_v56, %v4810_v41 }
 0x4e8   : > { %v4615_v59 = vadd.f32 -0.4999988, %v4614_v54  ;;  %v4622_v16 = vadd.f32 -0.16666654, %v4621_v35  ;;  %v4743_v55 = vsel %vm4741_vm0, %v4742_v47, %v9413_v5  ;;  %v4822_v53 = vshll.u32 %v9942_v21, %v4807_v52 }
 0x4e9   : > { %v4823_v30 = vshrl.u32 %v9935_v44, %v4808_v57  ;;  %vm4629_vm2 = vcmp.lt.s32.totalorder %v9393_v27, 2  ;;  %v4744_v48 = vclz %v4743_v55  ;;  %v9433_v31 = vor.u32 %v4814_v13, %v4813_v28 }
 0x4ea   : > { %v4616_v8 = vmul.f32 %v4615_v59, %v4611_v17  ;;  %v4623_v4 = vmul.f32 %v4622_v16, %v4611_v17  ;;  %vm4626_vm3 = vweird.f32 %v9017_v25  ;;  %v4818_v26 = vor.u32 %v4817_v34, %v4816_v18 }
 0x4eb   : > { %v4821_v49 = vor.u32 %v4820_v23, %v4819_v12  ;;  %v4824_v51 = vor.u32 %v4823_v30, %v4822_v53  ;;  %v9436_v0 = vadd.s32 1, %v5620_v62  ;;  %v5615_v15 = vadd.s32 4294967294, %v4744_v48 }
 0x4ec   : > { %v4617_v29 = vadd.f32 1.0, %v4616_v8  ;;  %v4624_v45 = vadd.f32 1.0, %v4623_v4  ;;  %v4809_v52 = vshrl.u32 %v9928_v42, %v4808_v57  ;;  %v4765_v17 = vsel %vm9407_vm13, 0, %v4763_v14 }
 0x4ed   : > { %vm4825_vm4 = vcmp.lt.s32.totalorder %v9411_v61, 1  ;;  %vm4826_vm7 = vcmp.lt.s32.totalorder %v9411_v61, 2  ;;  %vm4828_vm5 = vcmp.lt.s32.totalorder %v9411_v61, 4  ;;  %vm5616_vm6 = vcmp.lt.s32.totalorder %v5615_v15, 0 }
 0x4ee   : > { %v4625_v40 = vmul.f32 %v4624_v45, %v9385_v32  ;;  %v4634_v9 = vxor.u32 2147483648, %v4617_v29  ;;  %v4833_v62 = vsel %vm4825_vm4, %v4812_v24, %v9433_v31  ;;  %v4747_v50 = vsel %vm5616_vm6, 0, %v5615_v15 }
 0x4ef   : > { %v4834_v57 = vsel %vm4828_vm5, %v4821_v49, 920167782  ;;  %v4837_v41 = vsel %vm4825_vm4, %v9433_v31, %v4818_v26  ;;  %v4838_v56 = vsel %vm4828_vm5, %v4824_v51, 1326507024  ;;  %v4748_v54 = vsub.s32 32, %v4747_v50 }
 0x4f0   : > { %v4631_v28 = vxor.u32 2147483648, %v4625_v40  ;;  %v4635_v32 = vsel %vm4633_vm15, %v4634_v9, %v4625_v40  ;;  %vm4827_vm8 = vcmp.lt.s32.totalorder %v9411_v61, 3  ;;  %v4749_v35 = vshll.u32 %v9413_v5, %v4747_v50 }
 0x4f1   : > { %v4752_v13 = vsub.s32 4294967266, %v4747_v50  ;;  %v4835_v18 = vsel %vm4827_vm8, %v4818_v26, %v4834_v57  ;;  %v4839_v47 = vsel %vm4827_vm8, %v4821_v49, %v4838_v56  ;;  %v4750_v23 = vshrl.u32 %v9396_v33, %v4748_v54 }
 0x4f2   : > { %v4632_v34 = vsel %vm4630_vm1, %v4617_v29, %v4631_v28  ;;  %v4836_v59 = vsel %vm4826_vm7, %v4833_v62, %v4835_v18  ;;  %v4840_v16 = vsel %vm4826_vm7, %v4837_v41, %v4839_v47  ;;  %vm4959_vm11 = vcmp.gt.s32.totalorder %v9436_v0, 0 }
 0x4f3   : > { %v4636_v5 = vsel %vm4629_vm2, %v4632_v34, %v4635_v32  ;;  %v4753_v14 = vadd.s32 127, %v4752_v13  ;;  %v4844_v12 = vand.u32 65535, %v4840_v16  ;;  %v4845_v55 = vshrl.u32 %v4840_v16, 16 }
 0x4f4   : > { %v4637_v53 = vsel %vm4626_vm3, nan, %v4636_v5  ;;  %v4751_v30 = vor.u32 %v4750_v23, %v4749_v35  ;;  %v4866_v8 = vand.u32 65535, %v4836_v59  ;;  %v4867_v4 = vshrl.u32 %v4836_v59, 16 }
 0x4f5   : > { %v4754_v48 = vshll.u32 %v4753_v14, 23  ;;  %v4847_v33 = vmul.u32 %v4845_v55, %v9399_v19  ;;  %v4848_v49 = vmul.u32 %v4844_v12, %v9402_v7  ;;  %5439 = vst [vmem:[%s6197_s6 + $0xd0] sm:$0xff] %v4637_v53  ;;  %v9478_v51 = vadd.s32 3, %v4765_v17 }
 0x4f6   : > { %v4829_v27 = vsel %vm4825_vm4, %v4809_v52, %v4812_v24  ;;  %v4830_v25 = vsel %vm4828_vm5, %v4818_v26, 2102212464  ;;  %v4869_v29 = vmul.u32 %v4867_v4, %v9399_v19  ;;  %v4758_v15 = vcvt.s32.f32 %v4751_v30 }
 0x4f7   : > { %v4755_v45 = vor.u32 4788187, %v4754_v48  ;;  %v4846_v40 = vmul.u32 %v4844_v12, %v9399_v19  ;;  %v4850_v9 = vshll.u32 %v4847_v33, 16  ;;  %v4849_v62 = vmul.u32 %v4845_v55, %v9402_v7 }
 0x4f8   : > { %v4868_v50 = vmul.u32 %v4866_v8, %v9399_v19  ;;  %v4870_v17 = vmul.u32 %v4866_v8, %v9402_v7  ;;  %v4872_v57 = vshll.u32 %v4869_v29, 16  ;;  %v4852_v56 = vshll.u32 %v4848_v49, 16 }
 0x4f9   : > { %v4756_v41 = vand.u32 2147483647, %v4755_v45  ;;  %vm4854_vm10 = vc.u32 %v4846_v40, %v4850_v9  ;;  %v4856_v24 = vadd.s32 %v4850_v9, %v4846_v40  ;;  %v4831_v26 = vsel %vm4827_vm8, %v9433_v31, %v4830_v25 }
 0x4fa   : > { %v4855_v52 = vsel %vm4854_vm10, 1, %v9929_v60  ;;  %v4871_v28 = vmul.u32 %v4867_v4, %v9402_v7  ;;  %vm4876_vm9 = vc.u32 %v4868_v50, %v4872_v57  ;;  %v4874_v13 = vshll.u32 %v4870_v17, 16 }
 0x4fb   : > { %v4759_v32 = vmul.f32 %v4758_v15, %v4756_v41  ;;  %v4857_v54 = vadd.s32 %v4855_v52, %v4849_v62  ;;  %vm4858_vm12 = vc.u32 %v4856_v24, %v4852_v56  ;;  %v4877_v19 = vsel %vm4876_vm9, 1, %v9929_v60 }
 0x4fc   : > { %v4859_v35 = vsel %vm4858_vm12, 1, %v9929_v60  ;;  %v4878_v18 = vadd.s32 %v4872_v57, %v4868_v50  ;;  %v4879_v47 = vadd.s32 %v4877_v19, %v4871_v28  ;;  %v4851_v23 = vshrl.u32 %v4847_v33, 16 }
 0x4fd   : > { %v4760_v34 = vxor.u32 2147483648, %v4759_v32  ;;  %v4861_v59 = vadd.s32 %v4859_v35, %v4857_v54  ;;  %v4960_v31 = vsel %vm4959_vm11, %v9436_v0, 0  ;;  %v4832_v7 = vsel %vm4826_vm7, %v4829_v27, %v4831_v26 }
 0x4fe   : > { %v4853_v16 = vshrl.u32 %v4848_v49, 16  ;;  %vm4880_vm15 = vc.u32 %v4878_v18, %v4874_v13  ;;  %v4962_v5 = vand.u32 31, %v4960_v31  ;;  %v4873_v55 = vshrl.u32 %v4869_v29, 16 }
 0x4ff   : > { %v4761_v14 = vsel %vm4640_vm14, %v4760_v34, %v4759_v32  ;;  %v4862_v12 = vadd.s32 %v4861_v59, %v4851_v23  ;;  %v4881_v53 = vsel %vm4880_vm15, 1, %v9929_v60  ;;  %v4875_v8 = vshrl.u32 %v4870_v17, 16 }
 0x500   : > { %v4764_v30 = vsel %vm9407_vm13, %v9037_v46, %v4761_v14  ;;  %v4883_v4 = vadd.s32 %v4881_v53, %v4879_v47  ;;  %v9507_v0 = vsub.s32 32, %v4962_v5  ;;  %v9511_v33 = vadd.s32 %v4878_v18, %v4874_v13 }
 0x501   : > { %v4766_v61 = vmul.f32 %v4764_v30, %v4764_v30  ;;  %v9509_v48 = vadd.s32 %v4862_v12, %v4853_v16  ;;  %v9513_v49 = vshrl.u32 %v4960_v31, 5  ;;  %v4965_v25 = vshll.u32 %v9928_v42, %v4962_v5 }
 0x502   : > { %v4884_v27 = vadd.s32 %v4883_v4, %v4873_v55  ;;  %v4966_v29 = vshrl.u32 %v9932_v3, %v9507_v0  ;;  %v4969_v10 = vshrl.u32 %v9933_v63, %v9507_v0  ;;  %v4968_v40 = vshll.u32 %v9932_v3, %v4962_v5 }
 0x503   : > { %v4767_v45 = vmul.f32 -0.001358992, %v4766_v61  ;;  %v4774_v15 = vmul.f32 -0.00019511016, %v4766_v61  ;;  %v4971_v9 = vshll.u32 %v9933_v63, %v4962_v5  ;;  %vm4888_vm14 = vc.u32 %v9509_v48, %v9511_v33 }
 0x504   : > { %v4885_v62 = vadd.s32 %v4884_v27, %v4875_v8  ;;  %v9524_v50 = vor.u32 %v4966_v29, %v4965_v25  ;;  %v4972_v17 = vshrl.u32 %v9934_v2, %v9507_v0  ;;  %v4974_v56 = vshll.u32 %v9934_v2, %v4962_v5 }
 0x505   : > { %v4768_v57 = vadd.f32 0.041655596, %v4767_v45  ;;  %v4775_v41 = vadd.f32 0.008332121, %v4774_v15  ;;  %v4975_v24 = vshrl.u32 %v9942_v21, %v9507_v0  ;;  %v9531_v52 = vor.u32 %v4969_v10, %v4968_v40 }
 0x506   : > { %v4889_v26 = vadd.s32 1, %v4885_v62  ;;  %v4977_v28 = vshll.u32 %v9942_v21, %v4962_v5  ;;  %v4978_v32 = vshrl.u32 %v9935_v44, %v9507_v0  ;;  %v4886_v35 = vmul.u32 %v9376_v22, %v4832_v7 }
 0x507   : > { %v4769_v54 = vmul.f32 %v4768_v57, %v4766_v61  ;;  %v4776_v19 = vmul.f32 %v4775_v41, %v4766_v61  ;;  %v4976_v13 = vor.u32 %v4975_v24, %v4974_v56  ;;  %v4973_v47 = vor.u32 %v4972_v17, %v4971_v9 }
 0x508   : > { %v4890_v18 = vsel %vm4888_vm14, %v4889_v26, %v4885_v62  ;;  %v4979_v34 = vor.u32 %v4978_v32, %v4977_v28  ;;  %vm4980_vm13 = vcmp.lt.s32.totalorder %v9513_v49, 1  ;;  %vm4983_vm0 = vcmp.lt.s32.totalorder %v9513_v49, 4 }
 0x509   : > { %v4770_v23 = vadd.f32 -0.4999988, %v4769_v54  ;;  %v4777_v59 = vadd.f32 -0.16666654, %v4776_v19  ;;  %v4891_v31 = vadd.s32 %v4890_v18, %v4886_v35  ;;  %v4783_v16 = vand.u32 3, %v9478_v51 }
 0x50a   : > { %v4988_v5 = vsel %vm4980_vm13, %v9524_v50, %v9531_v52  ;;  %v4989_v22 = vsel %vm4983_vm0, %v4976_v13, 920167782  ;;  %v9548_v7 = vshll.u32 %v4956_v20, 8  ;;  %vm4982_vm1 = vcmp.lt.s32.totalorder %v9513_v49, 3 }
 0x50b   : > { %v4771_v14 = vmul.f32 %v4770_v23, %v4766_v61  ;;  %v4778_v12 = vmul.f32 %v4777_v59, %v4766_v61  ;;  %v4892_v55 = vadd.s32 536870912, %v4891_v31  ;;  %vm4981_vm2 = vcmp.lt.s32.totalorder %v9513_v49, 2 }
 0x50c   : > { %v4990_v51 = vsel %vm4982_vm1, %v4973_v47, %v4989_v22  ;;  %v4992_v53 = vsel %vm4980_vm13, %v9531_v52, %v4973_v47  ;;  %v4993_v8 = vsel %vm4983_vm0, %v4979_v34, 1326507024  ;;  %v9565_v27 = vadd.f32 %v5889_v38, %v9387_v1 }
 0x50d   : > { %v4772_v39 = vadd.f32 1.0, %v4771_v14  ;;  %v4779_v20 = vadd.f32 1.0, %v4778_v12  ;;  %v9559_v4 = vshrl.u32 %v4892_v55, 30  ;;  %v4991_v61 = vsel %vm4981_vm2, %v4988_v5, %v4990_v51 }
 0x50e   : > { %v9569_v25 = vadd.f32 %v5914_v58, %v9389_v11  ;;  %vm4781_vm3 = vweird.f32 %v9037_v46  ;;  %v4994_v29 = vsel %vm4982_vm1, %v4976_v13, %v4993_v8  ;;  %vm4784_vm4 = vcmp.lt.s32.totalorder %v4783_v16, 2 }
 0x50f   : > { %v4780_v10 = vmul.f32 %v4779_v20, %v4764_v30  ;;  %v4789_v45 = vxor.u32 2147483648, %v4772_v39  ;;  %v4894_v15 = vshll.u32 %v9559_v4, 30  ;;  %vm4785_vm7 = vcmp.eq.s32.totalorder %v4783_v16, 0 }
 0x510   : > { %vm4788_vm5 = vcmp.eq.s32.totalorder %v4783_v16, 2  ;;  %v4995_v38 = vsel %vm4981_vm2, %v4992_v53, %v4994_v29  ;;  %v5022_v1 = vshrl.u32 %v4991_v61, 16  ;;  %v4997_v58 = vand.u32 65535, %v9548_v7 }
 0x511   : > { %v4786_v40 = vxor.u32 2147483648, %v4780_v10  ;;  %v4895_v9 = vsub.s32 %v4891_v31, %v4894_v15  ;;  %v5021_v11 = vand.u32 65535, %v4991_v61  ;;  %v4964_v62 = vshrl.u32 %v9928_v42, %v9507_v0 }
 0x512   : > { %v4998_v30 = vshrl.u32 %v9548_v7, 16  ;;  %v4999_v17 = vand.u32 65535, %v4995_v38  ;;  %v5000_v57 = vshrl.u32 %v4995_v38, 16  ;;  %v4790_v56 = vsel %vm4788_vm5, %v4789_v45, %v4780_v10 }
 0x513   : > { %v4787_v41 = vsel %vm4785_vm7, %v4772_v39, %v4786_v40  ;;  %vm4896_vm6 = vcmp.lt.s32.totalorder %v4895_v9, 0  ;;  %v4897_v24 = vsub.s32 0, %v4895_v9  ;;  %v5024_v54 = vmul.u32 %v5022_v1, %v4997_v58 }
 0x514   : > { %v4791_v26 = vsel %vm4784_vm4, %v4787_v41, %v4790_v56  ;;  %v5002_v28 = vmul.u32 %v5000_v57, %v4997_v58  ;;  %v5003_v32 = vmul.u32 %v4999_v17, %v4998_v30  ;;  %v4887_v0 = vadd.s32 %v9511_v33, %v9509_v48 }
 0x515   : > { %v4792_v19 = vsel %vm4781_vm3, nan, %v4791_v26  ;;  %v4898_v35 = vsel %vm4896_vm6, %v4897_v24, %v4895_v9  ;;  %v5025_v13 = vmul.u32 %v5021_v11, %v4998_v30  ;;  %v4985_v34 = vsel %vm4983_vm0, %v4973_v47, 2102212464 }
 0x516   : > { %v4899_v18 = vclz %v4898_v35  ;;  %v5001_v23 = vmul.u32 %v4999_v17, %v4997_v58  ;;  %v5005_v59 = vshll.u32 %v5002_v28, 16  ;;  %5440 = vst [vmem:[%s6197_s6 + $0xd8] sm:$0xff] %v4792_v19  ;;  %v4984_v31 = vsel %vm4980_vm13, %v4964_v62, %v9524_v50 }
 0x517   : > { %v5004_v16 = vmul.u32 %v5000_v57, %v4998_v30  ;;  %v5007_v5 = vshll.u32 %v5003_v32, 16  ;;  %v5023_v46 = vmul.u32 %v5021_v11, %v4997_v58  ;;  %v5027_v48 = vshll.u32 %v5024_v54, 16 }
 0x518   : > { %v5618_v22 = vadd.s32 4294967294, %v4899_v18  ;;  %vm5009_vm8 = vc.u32 %v5001_v23, %v5005_v59  ;;  %v5011_v14 = vadd.s32 %v5005_v59, %v5001_v23  ;;  %v4986_v33 = vsel %vm4982_vm1, %v9531_v52, %v4985_v34 }
 0x519   : > { %v5010_v47 = vsel %vm5009_vm8, 1, %v9929_v60  ;;  %v5026_v12 = vmul.u32 %v5022_v1, %v4998_v30  ;;  %v5029_v55 = vshll.u32 %v5025_v13, 16  ;;  %vm5031_vm9 = vc.u32 %v5023_v46, %v5027_v48 }
 0x51a   : > { %vm5619_vm11 = vcmp.lt.s32.totalorder %v5618_v22, 0  ;;  %v5012_v51 = vadd.s32 %v5010_v47, %v5004_v16  ;;  %vm5013_vm10 = vc.u32 %v5011_v14, %v5007_v5  ;;  %v5032_v8 = vsel %vm5031_vm9, 1, %v9929_v60 }
 0x51b   : > { %v4902_v50 = vsel %vm5619_vm11, 0, %v5618_v22  ;;  %v5014_v53 = vsel %vm5013_vm10, 1, %v9929_v60  ;;  %v5033_v39 = vadd.s32 %v5027_v48, %v5023_v46  ;;  %v5006_v29 = vshrl.u32 %v5002_v28, 16 }
 0x51c   : > { %v4903_v20 = vsub.s32 32, %v4902_v50  ;;  %v4907_v61 = vsub.s32 4294967266, %v4902_v50  ;;  %v5016_v10 = vadd.s32 %v5014_v53, %v5012_v51  ;;  %v4904_v45 = vshll.u32 %v4895_v9, %v4902_v50 }
 0x51d   : > { %v5008_v52 = vshrl.u32 %v5003_v32, 16  ;;  %v5034_v15 = vadd.s32 %v5032_v8, %v5026_v12  ;;  %vm5035_vm12 = vc.u32 %v5033_v39, %v5029_v55  ;;  %v4917_v11 = vsub.s32 4, %v9559_v4 }
 0x51e   : > { %v4905_v38 = vshrl.u32 %v4887_v0, %v4903_v20  ;;  %v4908_v1 = vadd.s32 127, %v4907_v61  ;;  %v5017_v40 = vadd.s32 %v5016_v10, %v5006_v29  ;;  %v5036_v58 = vsel %vm5035_vm12, 1, %v9929_v60 }
 0x51f   : > { %v5028_v62 = vshrl.u32 %v5024_v54, 16  ;;  %v5038_v30 = vadd.s32 %v5036_v58, %v5034_v15  ;;  %v5103_v17 = vand.u32 2147483647, %v9565_v27  ;;  %v5106_v24 = vand.u32 2139095040, %v9565_v27 }
 0x520   : > { %v4906_v57 = vor.u32 %v4905_v38, %v4904_v45  ;;  %v4909_v41 = vshll.u32 %v4908_v1, 23  ;;  %v5018_v56 = vadd.s32 %v5017_v40, %v5008_v52  ;;  %v5030_v9 = vshrl.u32 %v5025_v13, 16 }
 0x521   : > { %v5039_v26 = vadd.s32 %v5038_v30, %v5028_v62  ;;  %vm4795_vm15 = vcmp.lt.s32.totalorder %v9317_v43, 0  ;;  %v4987_v32 = vsel %vm4981_vm2, %v4984_v31, %v4986_v33  ;;  %v5037_v19 = vadd.s32 %v5033_v39, %v5029_v55 }
 0x522   : > { %v4910_v28 = vor.u32 4788187, %v4909_v41  ;;  %v4918_v54 = vsel %vm4795_vm15, %v4917_v11, %v9559_v4  ;;  %v5107_v35 = vshrl.u32 %v5106_v24, 23  ;;  %v5110_v18 = vand.u32 8388607, %v5103_v17 }
 0x523   : > { %v5040_v0 = vadd.s32 %v5039_v26, %v5030_v9  ;;  %v4913_v23 = vcvt.s32.f32 %v4906_v57  ;;  %vm5043_vm14 = vc.u32 %v5018_v56, %v5037_v19  ;;  %v5261_v13 = vand.u32 2139095040, %v9569_v25 }
 0x524   : > { %v4911_v34 = vand.u32 2147483647, %v4910_v28  ;;  %vm9613_vm13 = vcmp.le.f32.partialorder %v4793_v36, 0.7853982  ;;  %v5623_v31 = vadd.s32 4294967169, %v5107_v35  ;;  %v5041_v5 = vmul.u32 %v9548_v7, %v4987_v32 }
 0x525   : > { %v5044_v59 = vadd.s32 1, %v5040_v0  ;;  %v4920_v4 = vsel %vm9613_vm13, 0, %v4918_v54  ;;  %v5111_v22 = vor.u32 8388608, %v5110_v18  ;;  %v5258_v48 = vand.u32 2147483647, %v9569_v25 }
 0x526   : > { %v4914_v16 = vmul.f32 %v4913_v23, %v4911_v34  ;;  %v5113_v14 = vadd.s32 1, %v5623_v31  ;;  %v5262_v12 = vshrl.u32 %v5261_v13, 23  ;;  %v4937_v36 = vadd.s32 3, %v4920_v4 }
 0x527   : > { %v5045_v46 = vsel %vm5043_vm14, %v5044_v59, %v5040_v0  ;;  %v9628_v8 = vshll.u32 %v5111_v22, 8  ;;  %v9632_v39 = vand.u32 8388607, %v5258_v48  ;;  %vm9640_vm1 = vcmp.le.f32.partialorder %v4948_v37, 0.7853982 }
 0x528   : > { %v4915_v33 = vxor.u32 2147483648, %v4914_v16  ;;  %v5046_v47 = vadd.s32 %v5045_v46, %v5041_v5  ;;  %vm5114_vm0 = vcmp.gt.s32.totalorder %v5113_v14, 0  ;;  %v5626_v29 = vadd.s32 4294967169, %v5262_v12 }
 0x529   : > { %v5115_v50 = vsel %vm5114_vm0, %v5113_v14, 0  ;;  %v9636_v10 = vand.u32 3, %v4937_v36  ;;  %vm4950_vm2 = vcmp.lt.s32.totalorder %v9327_v6, 0  ;;  %v5042_v58 = vadd.s32 %v5037_v19, %v5018_v56 }
 0x52a   : > { %v4916_v55 = vsel %vm4795_vm15, %v4915_v33, %v4914_v16  ;;  %v5047_v51 = vadd.s32 536870912, %v5046_v47  ;;  %v5117_v7 = vand.u32 31, %v5115_v50  ;;  %v9646_v11 = vand.u32 65535, %v9628_v8 }
 0x52b   : > { %v9626_v53 = vsel %vm9613_vm13, %v9317_v43, %v4916_v55  ;;  %v9649_v62 = vshrl.u32 %v9628_v8, 16  ;;  %v5266_v30 = vor.u32 8388608, %v9632_v39  ;;  %v9654_v24 = vadd.s32 1, %v5626_v29 }
 0x52c   : > { %v4921_v20 = vmul.f32 %v9626_v53, %v9626_v53  ;;  %v5048_v61 = vshrl.u32 %v5047_v51, 30  ;;  %v5118_v52 = vsub.s32 32, %v5117_v7  ;;  %v9660_v26 = vshrl.u32 %v5115_v50, 5 }
 0x52d   : > { %v5120_v56 = vshll.u32 %v9928_v42, %v5117_v7  ;;  %v5123_v0 = vshll.u32 %v9932_v3, %v5117_v7  ;;  %v5126_v18 = vshll.u32 %v9933_v63, %v5117_v7  ;;  %vm4940_vm4 = vcmp.eq.s32.totalorder %v9636_v10, 0 }
 0x52e   : > { %v4922_v15 = vmul.f32 -0.001358992, %v4921_v20  ;;  %v4929_v38 = vmul.f32 -0.00019511016, %v4921_v20  ;;  %v5049_v1 = vshll.u32 %v5048_v61, 30  ;;  %v5072_v40 = vsub.s32 4, %v5048_v61 }
 0x52f   : > { %v5121_v28 = vshrl.u32 %v9932_v3, %v5118_v52  ;;  %v5124_v35 = vshrl.u32 %v9933_v63, %v5118_v52  ;;  %v5127_v34 = vshrl.u32 %v9934_v2, %v5118_v52  ;;  %v5130_v59 = vshrl.u32 %v9942_v21, %v5118_v52 }
 0x530   : > { %v4923_v37 = vadd.f32 0.041655596, %v4922_v15  ;;  %v4930_v57 = vadd.f32 0.008332121, %v4929_v38  ;;  %v9652_v41 = vsub.s32 %v5046_v47, %v5049_v1  ;;  %v9658_v9 = vsel %vm4950_vm2, %v5072_v40, %v5048_v61 }
 0x531   : > { %vm4943_vm7 = vcmp.eq.s32.totalorder %v9636_v10, 2  ;;  %v5075_v16 = vsel %vm9640_vm1, 0, %v9658_v9  ;;  %v5119_v4 = vshrl.u32 %v9928_v42, %v5118_v52  ;;  %v5133_v5 = vshrl.u32 %v9935_v44, %v5118_v52 }
 0x532   : > { %v4924_v32 = vmul.f32 %v4923_v37, %v4921_v20  ;;  %v4931_v19 = vmul.f32 %v4930_v57, %v4921_v20  ;;  %vm5051_vm3 = vcmp.lt.s32.totalorder %v9652_v41, 0  ;;  %v5052_v54 = vsub.s32 0, %v9652_v41 }
 0x533   : > { %vm4939_vm5 = vcmp.lt.s32.totalorder %v9636_v10, 2  ;;  %v5122_v14 = vor.u32 %v5121_v28, %v5120_v56  ;;  %v5129_v33 = vshll.u32 %v9934_v2, %v5117_v7  ;;  %vm4936_vm6 = vweird.f32 %v9317_v43 }
 0x534   : > { %v4925_v23 = vadd.f32 -0.4999988, %v4924_v32  ;;  %v4932_v13 = vadd.f32 -0.16666654, %v4931_v19  ;;  %v5053_v49 = vsel %vm5051_vm3, %v5052_v54, %v9652_v41  ;;  %v5125_v12 = vor.u32 %v5124_v35, %v5123_v0 }
 0x535   : > { %v5054_v31 = vclz %v5053_v49  ;;  %v5128_v36 = vor.u32 %v5127_v34, %v5126_v18  ;;  %v5132_v55 = vshll.u32 %v9942_v21, %v5117_v7  ;;  %v5131_v61 = vor.u32 %v5130_v59, %v5129_v33 }
 0x536   : > { %v4926_v46 = vmul.f32 %v4925_v23, %v4921_v20  ;;  %v4933_v22 = vmul.f32 %v4932_v13, %v4921_v20  ;;  %vm5135_vm8 = vcmp.lt.s32.totalorder %v9660_v26, 1  ;;  %vm5136_vm10 = vcmp.lt.s32.totalorder %v9660_v26, 2 }
 0x537   : > { %v5621_v47 = vadd.s32 4294967294, %v5054_v31  ;;  %v5134_v29 = vor.u32 %v5133_v5, %v5132_v55  ;;  %vm5137_vm9 = vcmp.lt.s32.totalorder %v9660_v26, 3  ;;  %vm5138_vm12 = vcmp.lt.s32.totalorder %v9660_v26, 4 }
 0x538   : > { %v4927_v51 = vadd.f32 1.0, %v4926_v46  ;;  %v4934_v50 = vadd.f32 1.0, %v4933_v22  ;;  %v5140_v7 = vsel %vm5138_vm12, %v5128_v36, 2102212464  ;;  %v5143_v40 = vsel %vm5135_vm8, %v5122_v14, %v5125_v12 }
 0x539   : > { %vm5622_vm11 = vcmp.lt.s32.totalorder %v5621_v47, 0  ;;  %v5144_v9 = vsel %vm5138_vm12, %v5131_v61, 920167782  ;;  %v5147_v56 = vsel %vm5135_vm8, %v5125_v12, %v5128_v36  ;;  %v5148_v19 = vsel %vm5138_vm12, %v5134_v29, 1326507024 }
 0x53a   : > { %v4935_v20 = vmul.f32 %v4934_v50, %v9626_v53  ;;  %v4944_v52 = vxor.u32 2147483648, %v4927_v51  ;;  %v5057_v15 = vsel %vm5622_vm11, 0, %v5621_v47  ;;  %v5145_v53 = vsel %vm5137_vm9, %v5128_v36, %v5144_v9 }
 0x53b   : > { %v5058_v38 = vsub.s32 32, %v5057_v15  ;;  %v5062_v1 = vsub.s32 4294967266, %v5057_v15  ;;  %v5059_v57 = vshll.u32 %v9652_v41, %v5057_v15  ;;  %v5146_v41 = vsel %vm5136_vm10, %v5143_v40, %v5145_v53 }
 0x53c   : > { %v4941_v37 = vxor.u32 2147483648, %v4935_v20  ;;  %v4945_v0 = vsel %vm4943_vm7, %v4944_v52, %v4935_v20  ;;  %v5149_v35 = vsel %vm5137_vm9, %v5131_v61, %v5148_v19  ;;  %v5176_v31 = vand.u32 65535, %v5146_v41 }
 0x53d   : > { %v5060_v28 = vshrl.u32 %v5042_v58, %v5058_v38  ;;  %v5063_v32 = vadd.s32 127, %v5062_v1  ;;  %v5150_v23 = vsel %vm5136_vm10, %v5147_v56, %v5149_v35  ;;  %v5139_v46 = vsel %vm5135_vm8, %v5119_v4, %v5122_v14 }
 0x53e   : > { %v4942_v54 = vsel %vm4940_vm4, %v4927_v51, %v4941_v37  ;;  %v5154_v49 = vand.u32 65535, %v5150_v23  ;;  %v5155_v59 = vshrl.u32 %v5150_v23, 16  ;;  %v5141_v22 = vsel %vm5137_vm9, %v5125_v12, %v5140_v7 }
 0x53f   : > { %v4946_v58 = vsel %vm4939_vm5, %v4942_v54, %v4945_v0  ;;  %v5061_v18 = vor.u32 %v5060_v28, %v5059_v57  ;;  %v5064_v34 = vshll.u32 %v5063_v32, 23  ;;  %v5177_v10 = vshrl.u32 %v5146_v41, 16 }
 0x540   : > { %v4947_v13 = vsel %vm4936_vm6, nan, %v4946_v58  ;;  %v9714_v33 = vadd.s32 3, %v5075_v16  ;;  %v5157_v47 = vmul.u32 %v5155_v59, %v9646_v11  ;;  %v5158_v36 = vmul.u32 %v5154_v49, %v9649_v62 }
 0x541   : > { %v5065_v5 = vor.u32 4788187, %v5064_v34  ;;  %5441 = vst [vmem:[%s6197_s6 + $0xe0] sm:$0xff] %v4947_v13  ;;  %vm5269_vm15 = vcmp.gt.s32.totalorder %v9654_v24, 0  ;;  %v5068_v55 = vcvt.s32.f32 %v5061_v18  ;;  %v5179_v51 = vmul.u32 %v5177_v10, %v9646_v11 }
 0x542   : > { %v5180_v50 = vmul.u32 %v5176_v31, %v9649_v62  ;;  %v9723_v4 = vsel %vm5136_vm10, %v5139_v46, %v5141_v22  ;;  %v5156_v14 = vmul.u32 %v5154_v49, %v9646_v11  ;;  %v5159_v16 = vmul.u32 %v5155_v59, %v9649_v62 }
 0x543   : > { %v5066_v43 = vand.u32 2147483647, %v5065_v5  ;;  %v5160_v12 = vshll.u32 %v5157_v47, 16  ;;  %v5162_v29 = vshll.u32 %v5158_v36, 16  ;;  %v5178_v20 = vmul.u32 %v5176_v31, %v9646_v11 }
 0x544   : > { %v5182_v52 = vshll.u32 %v5179_v51, 16  ;;  %v5181_v38 = vmul.u32 %v5177_v10, %v9649_v62  ;;  %v5184_v1 = vshll.u32 %v5180_v50, 16  ;;  %v5270_v9 = vsel %vm5269_vm15, %v9654_v24, 0 }
 0x545   : > { %v5069_v61 = vmul.f32 %v5068_v55, %v5066_v43  ;;  %vm5164_vm14 = vc.u32 %v5156_v14, %v5160_v12  ;;  %v5166_v15 = vadd.s32 %v5160_v12, %v5156_v14  ;;  %v5161_v32 = vshrl.u32 %v5157_v47, 16 }
 0x546   : > { %v5165_v26 = vsel %vm5164_vm14, 1, %v9929_v60  ;;  %vm5186_vm13 = vc.u32 %v5178_v20, %v5182_v52  ;;  %v5188_v40 = vadd.s32 %v5182_v52, %v5178_v20  ;;  %v5183_v0 = vshrl.u32 %v5179_v51, 16 }
 0x547   : > { %v5070_v7 = vxor.u32 2147483648, %v5069_v61  ;;  %v5167_v37 = vadd.s32 %v5165_v26, %v5159_v16  ;;  %vm5168_vm0 = vc.u32 %v5166_v15, %v5162_v29  ;;  %v5187_v57 = vsel %vm5186_vm13, 1, %v9929_v60 }
 0x548   : > { %v5169_v56 = vsel %vm5168_vm0, 1, %v9929_v60  ;;  %v5189_v62 = vadd.s32 %v5187_v57, %v5181_v38  ;;  %vm5190_vm3 = vc.u32 %v5188_v40, %v5184_v1  ;;  %v5272_v35 = vand.u32 31, %v5270_v9 }
 0x549   : > { %v5071_v11 = vsel %vm4950_vm2, %v5070_v7, %v5069_v61  ;;  %v5171_v53 = vadd.s32 %v5169_v56, %v5167_v37  ;;  %v5191_v19 = vsel %vm5190_vm3, 1, %v9929_v60  ;;  %v5163_v24 = vshrl.u32 %v5158_v36, 16 }
 0x54a   : > { %v5074_v28 = vsel %vm9640_vm1, %v9327_v6, %v5071_v11  ;;  %v5193_v41 = vadd.s32 %v5191_v19, %v5189_v62  ;;  %v5185_v18 = vshrl.u32 %v5180_v50, 16  ;;  %v5196_v34 = vmul.u32 %v9628_v8, %v9723_v4 }
 0x54b   : > { %v5076_v54 = vmul.f32 %v5074_v28, %v5074_v28  ;;  %v5172_v58 = vadd.s32 %v5171_v53, %v5161_v32  ;;  %v9743_v59 = vsub.s32 32, %v5272_v35  ;;  %v9747_v31 = vadd.s32 %v5188_v40, %v5184_v1 }
 0x54c   : > { %v5194_v49 = vadd.s32 %v5193_v41, %v5183_v0  ;;  %v9749_v5 = vshrl.u32 %v5270_v9, 5  ;;  %v5275_v46 = vshll.u32 %v9928_v42, %v5272_v35  ;;  %v5278_v36 = vshll.u32 %v9932_v3, %v5272_v35 }
 0x54d   : > { %v5077_v23 = vmul.f32 -0.001358992, %v5076_v54  ;;  %v5084_v13 = vmul.f32 -0.00019511016, %v5076_v54  ;;  %v9745_v45 = vadd.s32 %v5172_v58, %v5163_v24  ;;  %v5276_v8 = vshrl.u32 %v9932_v3, %v9743_v59 }
 0x54e   : > { %v5195_v47 = vadd.s32 %v5194_v49, %v5185_v18  ;;  %v5279_v43 = vshrl.u32 %v9933_v63, %v9743_v59  ;;  %v5281_v55 = vshll.u32 %v9933_v63, %v5272_v35  ;;  %v5282_v14 = vshrl.u32 %v9934_v2, %v9743_v59 }
 0x54f   : > { %v5078_v22 = vadd.f32 0.041655596, %v5077_v23  ;;  %v5085_v10 = vadd.f32 0.008332121, %v5084_v13  ;;  %vm5198_vm1 = vc.u32 %v9745_v45, %v9747_v31  ;;  %v9762_v16 = vor.u32 %v5276_v8, %v5275_v46 }
 0x550   : > { %v5199_v4 = vadd.s32 1, %v5195_v47  ;;  %v9764_v12 = vor.u32 %v5279_v43, %v5278_v36  ;;  %v5284_v61 = vshll.u32 %v9934_v2, %v5272_v35  ;;  %v5285_v3 = vshrl.u32 %v9942_v21, %v9743_v59 }
 0x551   : > { %v5079_v51 = vmul.f32 %v5078_v22, %v5076_v54  ;;  %v5086_v50 = vmul.f32 %v5085_v10, %v5076_v54  ;;  %v9769_v15 = vor.u32 %v5282_v14, %v5281_v55  ;;  %v5287_v1 = vshll.u32 %v9942_v21, %v5272_v35 }
 0x552   : > { %v5200_v52 = vsel %vm5198_vm1, %v5199_v4, %v5195_v47  ;;  %v5286_v38 = vor.u32 %v5285_v3, %v5284_v61  ;;  %v5288_v7 = vshrl.u32 %v9935_v44, %v9743_v59  ;;  %v5093_v37 = vand.u32 3, %v9714_v33 }
 0x553   : > { %v5080_v29 = vadd.f32 -0.4999988, %v5079_v51  ;;  %v5087_v20 = vadd.f32 -0.16666654, %v5086_v50  ;;  %v5201_v63 = vadd.s32 %v5200_v52, %v5196_v34  ;;  %vm5290_vm2 = vcmp.lt.s32.totalorder %v9749_v5, 1 }
 0x554   : > { %v5289_v57 = vor.u32 %v5288_v7, %v5287_v1  ;;  %vm5291_vm4 = vcmp.lt.s32.totalorder %v9749_v5, 2  ;;  %vm5293_vm7 = vcmp.lt.s32.totalorder %v9749_v5, 4  ;;  %vm5292_vm5 = vcmp.lt.s32.totalorder %v9749_v5, 3 }
 0x555   : > { %v5081_v26 = vmul.f32 %v5080_v29, %v5076_v54  ;;  %v5088_v40 = vmul.f32 %v5087_v20, %v5076_v54  ;;  %v5202_v2 = vadd.s32 536870912, %v5201_v63  ;;  %v5299_v21 = vsel %vm5293_vm7, %v5286_v38, 920167782 }
 0x556   : > { %v5298_v33 = vsel %vm5290_vm2, %v9762_v16, %v9764_v12  ;;  %v5302_v56 = vsel %vm5290_vm2, %v9764_v12, %v9769_v15  ;;  %v5303_v62 = vsel %vm5293_vm7, %v5289_v57, 1326507024  ;;  %v5300_v19 = vsel %vm5292_vm5, %v9769_v15, %v5299_v21 }
 0x557   : > { %v5082_v9 = vadd.f32 1.0, %v5081_v26  ;;  %v5089_v11 = vadd.f32 1.0, %v5088_v40  ;;  %v9781_v44 = vshrl.u32 %v5202_v2, 30  ;;  %v5304_v54 = vsel %vm5292_vm5, %v5286_v38, %v5303_v62 }
 0x558   : > { %v5305_v41 = vsel %vm5291_vm4, %v5302_v56, %v5304_v54  ;;  %v9803_v35 = vshll.u32 %v5266_v30, 8  ;;  %vm5094_vm6 = vcmp.lt.s32.totalorder %v5093_v37, 2  ;;  %vm5095_vm8 = vcmp.eq.s32.totalorder %v5093_v37, 0 }
 0x559   : > { %v5090_v32 = vmul.f32 %v5089_v11, %v5074_v28  ;;  %v5099_v53 = vxor.u32 2147483648, %v5082_v9  ;;  %v5204_v0 = vshll.u32 %v9781_v44, 30  ;;  %v5309_v28 = vand.u32 65535, %v5305_v41 }
 0x55a   : > { %v5310_v58 = vshrl.u32 %v5305_v41, 16  ;;  %vm5098_vm11 = vcmp.eq.s32.totalorder %v5093_v37, 2  ;;  %v5301_v34 = vsel %vm5291_vm4, %v5298_v33, %v5300_v19  ;;  %v5307_v49 = vand.u32 65535, %v9803_v35 }
 0x55b   : > { %v5096_v24 = vxor.u32 2147483648, %v5090_v32  ;;  %v5205_v18 = vsub.s32 %v5201_v63, %v5204_v0  ;;  %v5100_v13 = vsel %vm5098_vm11, %v5099_v53, %v5090_v32  ;;  %v5308_v46 = vshrl.u32 %v9803_v35, 16 }
 0x55c   : > { %vm5091_vm10 = vweird.f32 %v9327_v6  ;;  %v5312_v10 = vmul.u32 %v5310_v58, %v5307_v49  ;;  %v5332_v36 = vshrl.u32 %v5301_v34, 16  ;;  %v5331_v43 = vand.u32 65535, %v5301_v34 }
 0x55d   : > { %v5097_v23 = vsel %vm5095_vm8, %v5082_v9, %v5096_v24  ;;  %vm5206_vm9 = vcmp.lt.s32.totalorder %v5205_v18, 0  ;;  %v5207_v30 = vsub.s32 0, %v5205_v18  ;;  %v5313_v47 = vmul.u32 %v5309_v28, %v5308_v46 }
 0x55e   : > { %v5101_v39 = vsel %vm5094_vm6, %v5097_v23, %v5100_v13  ;;  %v5311_v51 = vmul.u32 %v5309_v28, %v5307_v49  ;;  %v5315_v50 = vshll.u32 %v5312_v10, 16  ;;  %v5314_v4 = vmul.u32 %v5310_v58, %v5308_v46 }
 0x55f   : > { %v5102_v22 = vsel %vm5091_vm10, nan, %v5101_v39  ;;  %v5208_v8 = vsel %vm5206_vm9, %v5207_v30, %v5205_v18  ;;  %v5317_v14 = vshll.u32 %v5313_v47, 16  ;;  %v5334_v29 = vmul.u32 %v5332_v36, %v5307_v49 }
 0x560   : > { %5442 = vst [vmem:[%s6197_s6 + $0xe8] sm:$0xff] %v5102_v22  ;;  %v5209_v55 = vclz %v5208_v8  ;;  %vm5319_vm12 = vc.u32 %v5311_v51, %v5315_v50  ;;  %v5321_v3 = vadd.s32 %v5315_v50, %v5311_v51  ;;  %v5197_v6 = vadd.s32 %v9747_v31, %v9745_v45 }
 0x561   : > { %v5320_v20 = vsel %vm5319_vm12, 1, %v9929_v60  ;;  %v5335_v52 = vmul.u32 %v5331_v43, %v5308_v46  ;;  %v5337_v38 = vshll.u32 %v5334_v29, 16  ;;  %v5316_v7 = vshrl.u32 %v5312_v10, 16 }
 0x562   : > { %v5624_v61 = vadd.s32 4294967294, %v5209_v55  ;;  %v5322_v63 = vadd.s32 %v5320_v20, %v5314_v4  ;;  %vm5323_vm14 = vc.u32 %v5321_v3, %v5317_v14  ;;  %v5333_v40 = vmul.u32 %v5331_v43, %v5307_v49 }
 0x563   : > { %v5324_v26 = vsel %vm5323_vm14, 1, %v9929_v60  ;;  %v5336_v9 = vmul.u32 %v5332_v36, %v5308_v46  ;;  %v5339_v21 = vshll.u32 %v5335_v52, 16  ;;  %v5274_v32 = vshrl.u32 %v9928_v42, %v9743_v59 }
 0x564   : > { %vm5625_vm15 = vcmp.lt.s32.totalorder %v5624_v61, 0  ;;  %v5326_v57 = vadd.s32 %v5324_v26, %v5322_v63  ;;  %vm5341_vm13 = vc.u32 %v5333_v40, %v5337_v38  ;;  %v5343_v45 = vadd.s32 %v5337_v38, %v5333_v40 }
 0x565   : > { %v5212_v1 = vsel %vm5625_vm15, 0, %v5624_v61  ;;  %v5342_v62 = vsel %vm5341_vm13, 1, %v9929_v60  ;;  %v5295_v53 = vsel %vm5293_vm7, %v9769_v15, 2102212464  ;;  %v5318_v41 = vshrl.u32 %v5313_v47, 16 }
 0x566   : > { %v5213_v37 = vsub.s32 32, %v5212_v1  ;;  %v5217_v2 = vsub.s32 4294967266, %v5212_v1  ;;  %v5214_v11 = vshll.u32 %v5205_v18, %v5212_v1  ;;  %v5327_v56 = vadd.s32 %v5326_v57, %v5316_v7 }
 0x567   : > { %v5344_v19 = vadd.s32 %v5342_v62, %v5336_v9  ;;  %vm5345_vm0 = vc.u32 %v5343_v45, %v5339_v21  ;;  %v5338_v28 = vshrl.u32 %v5334_v29, 16  ;;  %v5294_v34 = vsel %vm5290_vm2, %v5274_v32, %v9762_v16 }
 0x568   : > { %v5215_v31 = vshrl.u32 %v5197_v6, %v5213_v37  ;;  %v5218_v33 = vadd.s32 127, %v5217_v2  ;;  %v5346_v24 = vsel %vm5345_vm0, 1, %v9929_v60  ;;  %v5296_v42 = vsel %vm5292_vm5, %v9764_v12, %v5295_v53 }
 0x569   : > { %v5348_v58 = vadd.s32 %v5346_v24, %v5344_v19  ;;  %v5328_v59 = vadd.s32 %v5327_v56, %v5318_v41  ;;  %v5340_v15 = vshrl.u32 %v5335_v52, 16  ;;  %v5347_v46 = vadd.s32 %v5343_v45, %v5339_v21 }
 0x56a   : > { %v5216_v54 = vor.u32 %v5215_v31, %v5214_v11  ;;  %v5219_v0 = vshll.u32 %v5218_v33, 23  ;;  %v5297_v60 = vsel %vm5291_vm4, %v5294_v34, %v5296_v42  ;;  %vm5105_vm1 = vcmp.lt.s32.totalorder %v9565_v27, 0 }
 0x56b   : > { %v5349_v23 = vadd.s32 %v5348_v58, %v5338_v28  ;;  %vm5353_vm3 = vc.u32 %v5328_v59, %v5347_v46  ;;  %v5351_v16 = vmul.u32 %v9803_v35, %v5297_v60  ;;  %v5227_v12 = vsub.s32 4, %v9781_v44 }
 0x56c   : > { %v5220_v18 = vor.u32 4788187, %v5219_v0  ;;  %v5223_v49 = vcvt.s32.f32 %v5216_v54  ;;  %vm9835_vm2 = vcmp.le.f32.partialorder %v5103_v17, 0.7853982  ;;  %v5352_v56 = vadd.s32 %v5347_v46, %v5328_v59 }
 0x56d   : > { %v5350_v39 = vadd.s32 %v5349_v23, %v5340_v15  ;;  %v5228_v35 = vsel %vm5105_vm1, %v5227_v12, %v9781_v44  ;;  %vm5246_vm8 = vweird.f32 %v9565_v27  ;;  %vm5260_vm10 = vcmp.lt.s32.totalorder %v9569_v25, 0 }
 0x56e   : > { %v5221_v13 = vand.u32 2147483647, %v5220_v18  ;;  %v5230_v61 = vsel %vm9835_vm2, 0, %v5228_v35  ;;  %vm5259_vm9 = vcmp.le.f32.partialorder %v5258_v48, 0.7853982  ;;  %vm5401_vm13 = vweird.f32 %v9569_v25 }
 0x56f   : > { %v5354_v22 = vadd.s32 1, %v5350_v39  ;;  %v5247_v63 = vadd.s32 3, %v5230_v61 }
 0x570   : > { %v5224_v30 = vmul.f32 %v5223_v49, %v5221_v13 }
 0x571   : > { %v5355_v47 = vsel %vm5353_vm3, %v5354_v22, %v5350_v39  ;;  %v5248_v9 = vand.u32 3, %v5247_v63 }
 0x572   : > { %v5225_v10 = vxor.u32 2147483648, %v5224_v30  ;;  %v5356_v8 = vadd.s32 %v5355_v47, %v5351_v16 }
 0x573   : > { %vm5250_vm5 = vcmp.eq.s32.totalorder %v5248_v9, 0  ;;  %vm5253_vm6 = vcmp.eq.s32.totalorder %v5248_v9, 2  ;;  %vm5249_vm11 = vcmp.lt.s32.totalorder %v5248_v9, 2 }
 0x574   : > { %v5226_v5 = vsel %vm5105_vm1, %v5225_v10, %v5224_v30  ;;  %v5357_v51 = vadd.s32 536870912, %v5356_v8 }
 0x575   : > { %v5229_v43 = vsel %vm9835_vm2, %v9565_v27, %v5226_v5 }
 0x576   : > { %v5231_v55 = vmul.f32 %v5229_v43, %v5229_v43  ;;  %v5358_v14 = vshrl.u32 %v5357_v51, 30 }
 0x578   : > { %v5232_v50 = vmul.f32 -0.001358992, %v5231_v55  ;;  %v5239_v4 = vmul.f32 -0.00019511016, %v5231_v55  ;;  %v5359_v29 = vshll.u32 %v5358_v14, 30  ;;  %v5382_v13 = vsub.s32 4, %v5358_v14 }
 0x57a   : > { %v5233_v17 = vadd.f32 0.041655596, %v5232_v50  ;;  %v5240_v3 = vadd.f32 0.008332121, %v5239_v4  ;;  %v5360_v52 = vsub.s32 %v5356_v8, %v5359_v29  ;;  %v5383_v30 = vsel %vm5260_vm10, %v5382_v13, %v5358_v14 }
 0x57b   : > { %v5385_v16 = vsel %vm5259_vm9, 0, %v5383_v30 }
 0x57c   : > { %v5234_v6 = vmul.f32 %v5233_v17, %v5231_v55  ;;  %v5241_v20 = vmul.f32 %v5240_v3, %v5231_v55  ;;  %vm5361_vm4 = vcmp.lt.s32.totalorder %v5360_v52, 0  ;;  %v5362_v7 = vsub.s32 0, %v5360_v52 }
 0x57d   : > { %v5402_v8 = vadd.s32 3, %v5385_v16 }
 0x57e   : > { %v5235_v38 = vadd.f32 -0.4999988, %v5234_v6  ;;  %v5242_v1 = vadd.f32 -0.16666654, %v5241_v20  ;;  %v5363_v44 = vsel %vm5361_vm4, %v5362_v7, %v5360_v52 }
 0x57f   : > { %v5364_v37 = vclz %v5363_v44  ;;  %v5403_v35 = vand.u32 3, %v5402_v8 }
 0x580   : > { %v5236_v26 = vmul.f32 %v5235_v38, %v5231_v55  ;;  %v5243_v40 = vmul.f32 %v5242_v1, %v5231_v55 }
 0x581   : > { %v5627_v11 = vadd.s32 4294967294, %v5364_v37  ;;  %vm5405_vm12 = vcmp.eq.s32.totalorder %v5403_v35, 0  ;;  %vm5408_vm15 = vcmp.eq.s32.totalorder %v5403_v35, 2  ;;  %vm5404_vm14 = vcmp.lt.s32.totalorder %v5403_v35, 2 }
 0x582   : > { %v5237_v2 = vadd.f32 1.0, %v5236_v26  ;;  %v5244_v57 = vadd.f32 1.0, %v5243_v40 }
 0x583   : > { %vm5628_vm7 = vcmp.lt.s32.totalorder %v5627_v11, 0 }
 0x584   : > { %v5245_v21 = vmul.f32 %v5244_v57, %v5229_v43  ;;  %v5254_v45 = vxor.u32 2147483648, %v5237_v2  ;;  %v5367_v33 = vsel %vm5628_vm7, 0, %v5627_v11 }
 0x585   : > { %v5368_v62 = vsub.s32 32, %v5367_v33  ;;  %v5372_v32 = vsub.s32 4294967266, %v5367_v33  ;;  %v5369_v0 = vshll.u32 %v5360_v52, %v5367_v33 }
 0x586   : > { %v5251_v31 = vxor.u32 2147483648, %v5245_v21  ;;  %v5255_v19 = vsel %vm5253_vm6, %v5254_v45, %v5245_v21 }
 0x587   : > { %v5370_v41 = vshrl.u32 %v5352_v56, %v5368_v62  ;;  %v5373_v24 = vadd.s32 127, %v5372_v32 }
 0x588   : > { %v5252_v53 = vsel %vm5250_vm5, %v5237_v2, %v5251_v31 }
 0x589   : > { %v5256_v54 = vsel %vm5249_vm11, %v5252_v53, %v5255_v19  ;;  %v5371_v58 = vor.u32 %v5370_v41, %v5369_v0  ;;  %v5374_v18 = vshll.u32 %v5373_v24, 23 }
 0x58a   : > { %v5257_v28 = vsel %vm5246_vm8, nan, %v5256_v54 }
 0x58b   : > { %5443 = vst [vmem:[%s6197_s6 + $0xf0] sm:$0xff] %v5257_v28  ;;  %v5375_v34 = vor.u32 4788187, %v5374_v18  ;;  %v5378_v15 = vcvt.s32.f32 %v5371_v58 }
 0x58d   : > { %v5376_v42 = vand.u32 2147483647, %v5375_v34 }
 0x58f   : > { %v5379_v23 = vmul.f32 %v5378_v15, %v5376_v42 }
 0x591   : > { %v5380_v59 = vxor.u32 2147483648, %v5379_v23 }
 0x593   : > { %v5381_v27 = vsel %vm5260_vm10, %v5380_v59, %v5379_v23 }
 0x594   : > { %v5384_v49 = vsel %vm5259_vm9, %v9569_v25, %v5381_v27 }
 0x595   : > { %v5386_v46 = vmul.f32 %v5384_v49, %v5384_v49 }
 0x597   : > { %v5387_v60 = vmul.f32 -0.001358992, %v5386_v46  ;;  %v5394_v39 = vmul.f32 -0.00019511016, %v5386_v46 }
 0x599   : > { %v5388_v22 = vadd.f32 0.041655596, %v5387_v60  ;;  %v5395_v10 = vadd.f32 0.008332121, %v5394_v39 }
 0x59b   : > { %v5389_v12 = vmul.f32 %v5388_v22, %v5386_v46  ;;  %v5396_v47 = vmul.f32 %v5395_v10, %v5386_v46 }
 0x59d   : > { %v5390_v36 = vadd.f32 -0.4999988, %v5389_v12  ;;  %v5397_v5 = vadd.f32 -0.16666654, %v5396_v47 }
 0x59f   : > { %v5391_v48 = vmul.f32 %v5390_v36, %v5386_v46  ;;  %v5398_v43 = vmul.f32 %v5397_v5, %v5386_v46 }
 0x5a1   : > { %v5392_v55 = vadd.f32 1.0, %v5391_v48  ;;  %v5399_v51 = vadd.f32 1.0, %v5398_v43 }
 0x5a3   : > { %v5400_v50 = vmul.f32 %v5399_v51, %v5384_v49  ;;  %v5409_v4 = vxor.u32 2147483648, %v5392_v55 }
 0x5a5   : > { %v5406_v14 = vxor.u32 2147483648, %v5400_v50  ;;  %v5410_v17 = vsel %vm5408_vm15, %v5409_v4, %v5400_v50 }
 0x5a7   : > { %v5407_v61 = vsel %vm5405_vm12, %v5392_v55, %v5406_v14 }
 0x5a8   : > { %v5411_v3 = vsel %vm5404_vm14, %v5407_v61, %v5410_v17 }
 0x5a9   : > { %v5412_v29 = vsel %vm5401_vm13, nan, %v5411_v3 }
 0x5aa   : > { %5444 = vst [vmem:[%s6197_s6 + $0xf8] sm:$0xff] %v5412_v29 }
 0x5ab   : > { %5719 = shalt.err (!%p5716_p3)
}
 0x5ac   : > { %s5764_s29 = smov 256   ;;  %s5765_s30 = smov 16  }
 0x5ad   : > { %5637 = dma.vmem_to_hbm [thread:$0]  (%p5819_p5), %s5460_s17, 4096, %s5462_s21, %s5446_s13, %s5764_s29, %s5764_s29, %s5765_s30  }
 0x5ae PF: > { %p5643_p4 = scmp.ge.s32.totalorder %s5754_s12, 2  ;;  %s5476_s3 = sand.u32 1, %s5742_s9  }
 0x5af   : > { %s5477_s4 = scalar_lea.sflag [#allocation3], %s5476_s3 }
 0x5b0   : > { %p5640_p7 = pnand %p5643_p4, %p5823_p6 }
 0x5b2   : > { %p5641_p8 = pneg %p5640_p7 }
 0x5b4   : > { %5737 = dma.done.wait (%p5641_p8), %s5477_s4, 4096  }
 0x5b5   : > { %5739 = vsyncadd (%p5641_p8), %s5477_s4, 4294963200  ;;  %p12_p9 = scmp.ge.s32.totalorder %s5806_s15, 4   ;;  %s10009_s9 = smov %s5746_s10 }
 0x5b6   : > { %s10010_s10 = smov %s5750_s11  ;;  %s10011_s11 = smov %s5817_s18 }
 0x5b7   : > { %s10012_s12 = smov %s5806_s15  ;;  %14 = sbr.rel (!%p12_p9) target bundleno = 3 (0x3), region = 65 }
 0x5bc   :  { %5483 = vsyncpa [#allocation3], 1 }
 0x5bd   :  { %5485 = vsyncpa [#allocation3 + $0x1], 1 }

</bundles_post_ra>
